<compile_context>
chip_gen: v7x
topology: tpu7x:2x2x1
jax: 0.10.0
libtpu: 0.0.40
codegen_flags: <defaults>
</compile_context>

<pallas_src>
import numpy as np
import jax
import jax.numpy as jnp
from jax.experimental import pallas as pl
from jax.experimental.pallas import tpu as pltpu

K = 2
C = 14
DIM = C * C          # 196
KDIM = K * DIM       # 392
P = 256              # lane-padded feature width (multiple of 128)
BT = 128             # batch tile = MXU rows per grid step


def _leaky(v):
    # LeakyReLU(0.2)
    return jnp.where(v > 0, v, 0.2 * v)


def vi_kernel(scal_ref, p_ref, w1T_ref, b1_ref, wqT_ref, bq_ref, wd_ref, bd_ref,
              out_ref, z_ref, phi_ref):
    f32 = jnp.float32

    # ---- encoder ----
    # Conv2d(1,1,2,stride=2) as 4 scalar-broadcast FMAs on the VPU.  p_ref holds the
    # 4 im2col taps at 256-lane-aligned columns; scal_ref[0:4] are the conv taps,
    # scal_ref[4] the conv bias.  (A K=4, tiny-contraction matmul would be pure MXU
    # fill/drain; the VPU does this for free next to the real dots.)
    h0 = (scal_ref[0] * p_ref[:, 0 * P:1 * P]
          + scal_ref[1] * p_ref[:, 1 * P:2 * P]
          + scal_ref[2] * p_ref[:, 2 * P:3 * P]
          + scal_ref[3] * p_ref[:, 3 * P:4 * P]
          + scal_ref[4])
    # nn.Dropout(0.25): identity at inference.
    # Linear(196,196) + LeakyReLU(0.2)  (zero-padded to 256 lanes; pad rows of w1T are 0,
    # pad lanes of b1 are 0, so pad lanes of z stay exactly 0).
    z = _leaky(jnp.dot(h0, w1T_ref[...], preferred_element_type=f32) + b1_ref[...])

    # ---- q_c: Linear(196, 392) as ONE packed (256,512) dot ----
    # output k=0 lives at lanes [0:196], k=1 at lanes [256:452].
    q = jnp.dot(z, wqT_ref[...], preferred_element_type=f32) + bq_ref[...]
    p2 = q * q
    p0 = p2[:, :P]
    p1 = p2[:, P:]
    # softmax over the k axis (k = 2), numerically stable pairwise form.
    m = jnp.maximum(p0, p1)
    e0 = jnp.exp(p0 - m)
    e1 = jnp.exp(p1 - m)
    inv = pl.reciprocal(e0 + e1, approx=True)   # EUP slot; co-issues with VPU/MXU work
    phi0 = e0 * inv
    phi1 = e1 * inv

    # c = z * phi, packed [c0 | c1] at a 256-lane boundary.
    c = jnp.concatenate([z * phi0, z * phi1], axis=1)            # (BT, 512)

    # ---- decoder ----
    # Linear(392,392) + LeakyReLU as ONE packed (512,512) dot (pad rows of wd are 0).
    d = _leaky(jnp.dot(c, wd_ref[...], preferred_element_type=f32) + bd_ref[...])
    d0 = d[:, :P]        # decoder channel 0 (lanes 0:196 real)
    d1 = d[:, P:]        # decoder channel 1

    # ConvTranspose2d(2,1,2,stride=2): 4 per-tap output planes, stored lane-dense at
    # 256-lane offsets.  scal_ref[5:9] = Wt[0,0] taps, scal_ref[9:13] = Wt[1,0] taps,
    # scal_ref[13] = deconv bias.  Re-interleaving to NCHW is layout glue in the wrapper.
    bt = scal_ref[13]
    out_ref[...] = jnp.concatenate(
        [scal_ref[5 + t] * d0 + scal_ref[9 + t] * d1 + bt for t in range(4)], axis=1)

    z_ref[...] = z
    phi_ref[...] = jnp.concatenate([phi0, phi1], axis=1)


def prepare_params(params):
    """One-time weight packing / padding (layout only — NOT on the per-call path)."""
    Wc, bc, W1, b1, Wq, bq, Wd, bd, Wt, bt = [np.asarray(p, np.float32) for p in params]

    # conv / deconv taps + scalar biases -> one tiny SMEM vector
    scal = np.zeros((16,), np.float32)
    scal[0:4] = Wc.reshape(4)            # conv taps, index a*2+b
    scal[4] = bc[0]                      # conv bias
    scal[5:9] = Wt[0, 0].reshape(4)      # deconv taps, decoder channel 0
    scal[9:13] = Wt[1, 0].reshape(4)     # deconv taps, decoder channel 1
    scal[13] = bt[0]                     # deconv bias

    # Linear(196,196): transpose + zero-pad to (256,256)
    w1T = np.zeros((P, P), np.float32)
    w1T[:DIM, :DIM] = W1.T
    b1p = np.zeros((1, P), np.float32)
    b1p[0, :DIM] = b1

    # Linear(196,392): transpose, split per k, pack columns at 256-lane offsets
    WqT = Wq.T                            # (196, 392) [in, out]
    wqT = np.zeros((P, 2 * P), np.float32)
    wqT[:DIM, :DIM] = WqT[:, :DIM]
    wqT[:DIM, P:P + DIM] = WqT[:, DIM:]
    bqp = np.zeros((1, 2 * P), np.float32)
    bqp[0, :DIM] = bq[:DIM]
    bqp[0, P:P + DIM] = bq[DIM:]

    # Linear(392,392): transpose, 4-way split, pack rows/cols at 256-lane offsets
    WdT = Wd.T                            # (392, 392) [in, out]
    wdp = np.zeros((2 * P, 2 * P), np.float32)
    wdp[:DIM, :DIM] = WdT[:DIM, :DIM]
    wdp[:DIM, P:P + DIM] = WdT[:DIM, DIM:]
    wdp[P:P + DIM, :DIM] = WdT[DIM:, :DIM]
    wdp[P:P + DIM, P:P + DIM] = WdT[DIM:, DIM:]
    bdp = np.zeros((1, 2 * P), np.float32)
    bdp[0, :DIM] = bd[:DIM]
    bdp[0, P:P + DIM] = bd[DIM:]

    # TODO(synk): on bandwidth-bound v5e/v6e the resident matrices could be cast to
    # bfloat16 here (MXU still accumulates in f32); kept f32 to hold tighter tolerances.
    return tuple(jnp.asarray(a) for a in (scal, w1T, b1p, wqT, bqp, wdp, bdp))


@jax.jit
def vi_forward(x, packed):
    """x: (B, 1, 28, 28) f32; returns (x_hat (B,1,28,28), z (B,196), phi (B,2,196))."""
    scal, w1T, b1p, wqT, bqp, wdp, bdp = packed
    B = x.shape[0]

    # per-call glue: im2col of the image only (pure layout, ~3 KB/sample)
    img = x.reshape(B, 28, 28)
    patches = img.reshape(B, C, 2, C, 2).transpose(0, 2, 4, 1, 3).reshape(B, 4, DIM)
    patches = jnp.pad(patches, ((0, 0), (0, 0), (0, P - DIM))).reshape(B, 4 * P)

    nb = pl.cdiv(B, BT)
    Bp = nb * BT
    if Bp != B:
        patches = jnp.pad(patches, ((0, Bp - B), (0, 0)))

    out_pack, z_pad, phi_pack = pl.pallas_call(
        vi_kernel,
        grid=(nb,),
        in_specs=[
            pl.BlockSpec(memory_space=pltpu.MemorySpace.SMEM),    # taps + scalar biases
            pl.BlockSpec((BT, 4 * P), lambda i: (i, 0)),          # im2col patches (tiled)
            pl.BlockSpec((P, P), lambda i: (0, 0)),               # W1.T      (resident)
            pl.BlockSpec((1, P), lambda i: (0, 0)),               # b1        (resident)
            pl.BlockSpec((P, 2 * P), lambda i: (0, 0)),           # Wq.T pack (resident)
            pl.BlockSpec((1, 2 * P), lambda i: (0, 0)),           # bq pack   (resident)
            pl.BlockSpec((2 * P, 2 * P), lambda i: (0, 0)),       # Wd.T pack (resident)
            pl.BlockSpec((1, 2 * P), lambda i: (0, 0)),           # bd pack   (resident)
        ],
        out_specs=(
            pl.BlockSpec((BT, 4 * P), lambda i: (i, 0)),          # deconv taps, lane-dense
            pl.BlockSpec((BT, P), lambda i: (i, 0)),              # z
            pl.BlockSpec((BT, 2 * P), lambda i: (i, 0)),          # phi (k packed on lanes)
        ),
        out_shape=(
            jax.ShapeDtypeStruct((Bp, 4 * P), jnp.float32),
            jax.ShapeDtypeStruct((Bp, P), jnp.float32),
            jax.ShapeDtypeStruct((Bp, 2 * P), jnp.float32),
        ),
        compiler_params=pltpu.CompilerParams(
            dimension_semantics=("parallel",)),   # v7x: 2 TCs each take half the batch
    )(scal, patches, w1T, b1p, wqT, bqp, wdp, bdp)

    # per-call glue: drop lane padding, re-interleave the deconv taps to NCHW
    z = z_pad[:B, :DIM]
    phi = jnp.stack([phi_pack[:B, :DIM], phi_pack[:B, P:P + DIM]], axis=1)
    out = out_pack[:B].reshape(B, 4, P)[:, :, :DIM]                 # [b, a*2+bb, i*14+j]
    x_hat = out.reshape(B, 2, 2, C, C).transpose(0, 3, 1, 4, 2).reshape(B, 1, 28, 28)
    return x_hat, z, phi


def vi_reference(x, params):
    """Pure-JAX reference mirroring the PyTorch forward (per-sample semantics)."""
    Wc, bc, W1, b1, Wq, bq, Wd, bd, Wt, bt = params
    hi = jax.lax.Precision.HIGHEST
    B = x.shape[0]
    img = x.reshape(B, 28, 28)
    y = bc[0] + sum(Wc[0, 0, a, b] * img[:, a::2, b::2]
                    for a in range(2) for b in range(2))            # Conv2d stride 2
    h0 = y.reshape(B, DIM)
    z = _leaky(jnp.dot(h0, W1.T, precision=hi) + b1)
    q = jnp.dot(z, Wq.T, precision=hi) + bq
    p = (q * q).reshape(B, K, DIM)
    phi = jax.nn.softmax(p, axis=1)
    c = (z[:, None, :] * phi).reshape(B, KDIM)
    d = _leaky(jnp.dot(c, Wd.T, precision=hi) + bd)
    dmap = d.reshape(B, K, C, C)
    blk = jnp.einsum('cab,ncij->niajb', Wt[:, 0], dmap, precision=hi)
    x_hat = blk.reshape(B, 28, 28) + bt[0]
    return x_hat.reshape(B, 1, 28, 28), z, phi


def init_params(key):
    ks = jax.random.split(key, 10)
    s = lambda k, shape, scale: (scale * jax.random.normal(k, shape)).astype(jnp.float32)
    Wc = s(ks[0], (1, 1, 2, 2), 0.4)                  # Conv2d(1,1,2,2) weight
    bc = s(ks[1], (1,), 0.1)                          # Conv2d bias
    W1 = s(ks[2], (DIM, DIM), 1.0 / np.sqrt(DIM))     # Linear(196,196)
    b1 = s(ks[3], (DIM,), 0.05)
    Wq = s(ks[4], (KDIM, DIM), 1.0 / np.sqrt(DIM))    # Linear(196,392)
    bq = s(ks[5], (KDIM,), 0.05)
    Wd = s(ks[6], (KDIM, KDIM), 1.0 / np.sqrt(KDIM))  # Linear(392,392)
    bd = s(ks[7], (KDIM,), 0.05)
    Wt = s(ks[8], (K, 1, 2, 2), 0.4)                  # ConvTranspose2d(2,1,2,2) weight
    bt = s(ks[9], (1,), 0.1)
    return (Wc, bc, W1, b1, Wq, bq, Wd, bd, Wt, bt)


if __name__ == "__main__":
    key = jax.random.PRNGKey(0)
    kp, kx = jax.random.split(key)
    params = init_params(kp)

    B = 256   # 2 grid steps of 128 rows; on v7x the parallel axis splits across both TCs
    x = jax.random.normal(kx, (B, 1, 28, 28), dtype=jnp.float32)

    packed = prepare_params(params)              # one-time, outside the per-call path
    x_hat, z, phi = vi_forward(x, packed)
    jax.block_until_ready((x_hat, z, phi))

    xr, zr, pr = vi_reference(x, params)
    assert x_hat.shape == (B, 1, 28, 28) and z.shape == (B, DIM) and phi.shape == (B, K, DIM)
    # Tolerances cover both MXU f32 regimes (full-f32 vs bf16-pass default) and the
    # approximate EUP reciprocal used for the softmax denominator; a structural bug
    # would produce O(1) errors and still trip these checks.
    assert np.allclose(np.asarray(z), np.asarray(zr), rtol=2e-2, atol=2e-2)
    assert np.allclose(np.asarray(phi), np.asarray(pr), rtol=3e-2, atol=3e-2)
    assert np.allclose(np.asarray(x_hat), np.asarray(xr), rtol=3e-2, atol=3e-2)
    print("KERNEL_OK")
</pallas_src>

<mosaic_0001>
module attributes {stable_mosaic.version = 11 : i64} {
  func.func @vi_kernel(%arg0: i32, %arg1: memref<16xf32, #tpu.memory_space<smem>>, %arg2: memref<128x1024xf32, #tpu.memory_space<vmem>>, %arg3: memref<256x256xf32, #tpu.memory_space<vmem>>, %arg4: memref<1x256xf32, #tpu.memory_space<vmem>>, %arg5: memref<256x512xf32, #tpu.memory_space<vmem>>, %arg6: memref<1x512xf32, #tpu.memory_space<vmem>>, %arg7: memref<512x512xf32, #tpu.memory_space<vmem>>, %arg8: memref<1x512xf32, #tpu.memory_space<vmem>>, %arg9: memref<128x1024xf32, #tpu.memory_space<vmem>>, %arg10: memref<128x256xf32, #tpu.memory_space<vmem>>, %arg11: memref<128x512xf32, #tpu.memory_space<vmem>>) attributes {dimension_semantics = [#tpu.dimension_semantics<parallel>], iteration_bounds = array<i64: 2>, scalar_prefetch = 0 : i64, scratch_operands = 0 : i64, tpu.core_type = #tpu.core_type<tc>, window_params = [{transform_indices = @transform_0, window_bounds = array<i64: 16>}, {transform_indices = @transform_1, window_bounds = array<i64: 128, 1024>}, {pipeline_mode = #tpu.pipeline_mode<synchronous>, transform_indices = @transform_2, window_bounds = array<i64: 256, 256>}, {pipeline_mode = #tpu.pipeline_mode<synchronous>, transform_indices = @transform_3, window_bounds = array<i64: 1, 256>}, {pipeline_mode = #tpu.pipeline_mode<synchronous>, transform_indices = @transform_4, window_bounds = array<i64: 256, 512>}, {pipeline_mode = #tpu.pipeline_mode<synchronous>, transform_indices = @transform_5, window_bounds = array<i64: 1, 512>}, {pipeline_mode = #tpu.pipeline_mode<synchronous>, transform_indices = @transform_6, window_bounds = array<i64: 512, 512>}, {pipeline_mode = #tpu.pipeline_mode<synchronous>, transform_indices = @transform_7, window_bounds = array<i64: 1, 512>}, {transform_indices = @transform_8, window_bounds = array<i64: 128, 1024>}, {transform_indices = @transform_9, window_bounds = array<i64: 128, 256>}, {transform_indices = @transform_10, window_bounds = array<i64: 128, 512>}]} {
    %c0 = arith.constant 0 : index
    %0 = memref.load %arg1[%c0] : memref<16xf32, #tpu.memory_space<smem>>
    %c0_0 = arith.constant 0 : index
    %c0_1 = arith.constant 0 : index
    %1 = vector.load %arg2[%c0_0, %c0_1] : memref<128x1024xf32, #tpu.memory_space<vmem>>, vector<128x256xf32>
    %2 = vector.broadcast %0 : f32 to vector<128x256xf32>
    %3 = arith.mulf %2, %1 : vector<128x256xf32>
    %c1 = arith.constant 1 : index
    %4 = memref.load %arg1[%c1] : memref<16xf32, #tpu.memory_space<smem>>
    %c0_2 = arith.constant 0 : index
    %c256 = arith.constant 256 : index
    %5 = vector.load %arg2[%c0_2, %c256] : memref<128x1024xf32, #tpu.memory_space<vmem>>, vector<128x256xf32>
    %6 = vector.broadcast %4 : f32 to vector<128x256xf32>
    %7 = arith.mulf %6, %5 : vector<128x256xf32>
    %8 = arith.addf %3, %7 : vector<128x256xf32>
    %c2 = arith.constant 2 : index
    %9 = memref.load %arg1[%c2] : memref<16xf32, #tpu.memory_space<smem>>
    %c0_3 = arith.constant 0 : index
    %c512 = arith.constant 512 : index
    %10 = vector.load %arg2[%c0_3, %c512] : memref<128x1024xf32, #tpu.memory_space<vmem>>, vector<128x256xf32>
    %11 = vector.broadcast %9 : f32 to vector<128x256xf32>
    %12 = arith.mulf %11, %10 : vector<128x256xf32>
    %13 = arith.addf %8, %12 : vector<128x256xf32>
    %c3 = arith.constant 3 : index
    %14 = memref.load %arg1[%c3] : memref<16xf32, #tpu.memory_space<smem>>
    %c0_4 = arith.constant 0 : index
    %c768 = arith.constant 768 : index
    %15 = vector.load %arg2[%c0_4, %c768] : memref<128x1024xf32, #tpu.memory_space<vmem>>, vector<128x256xf32>
    %16 = vector.broadcast %14 : f32 to vector<128x256xf32>
    %17 = arith.mulf %16, %15 : vector<128x256xf32>
    %18 = arith.addf %13, %17 : vector<128x256xf32>
    %c4 = arith.constant 4 : index
    %19 = memref.load %arg1[%c4] : memref<16xf32, #tpu.memory_space<smem>>
    %20 = vector.broadcast %19 : f32 to vector<128x256xf32>
    %21 = arith.addf %18, %20 : vector<128x256xf32>
    %c0_5 = arith.constant 0 : index
    %c0_6 = arith.constant 0 : index
    %22 = vector.load %arg3[%c0_5, %c0_6] : memref<256x256xf32, #tpu.memory_space<vmem>>, vector<256x256xf32>
    %cst = arith.constant dense<0.000000e+00> : vector<128x256xf32>
    %23 = tpu.matmul %21, %22, %cst {dimension_numbers = #tpu.dot_dimension_numbers<[1], [0], [0], [1], [0, 0, 1, 1], [], []>} : vector<128x256xf32>, vector<256x256xf32>, vector<128x256xf32> -> vector<128x256xf32>
    %c0_7 = arith.constant 0 : index
    %c0_8 = arith.constant 0 : index
    %24 = vector.load %arg4[%c0_7, %c0_8] : memref<1x256xf32, #tpu.memory_space<vmem>>, vector<1x256xf32>
    %25 = vector.broadcast %24 : vector<1x256xf32> to vector<128x256xf32>
    %26 = arith.addf %23, %25 : vector<128x256xf32>
    %cst_9 = arith.constant 0.000000e+00 : f32
    %27 = vector.broadcast %cst_9 : f32 to vector<128x256xf32>
    %28 = arith.cmpf ogt, %26, %27 : vector<128x256xf32>
    %cst_10 = arith.constant 2.000000e-01 : f32
    %29 = vector.broadcast %cst_10 : f32 to vector<128x256xf32>
    %30 = arith.mulf %29, %26 : vector<128x256xf32>
    %31 = arith.select %28, %26, %30 : vector<128x256xi1>, vector<128x256xf32>
    %c0_11 = arith.constant 0 : index
    %c0_12 = arith.constant 0 : index
    %32 = vector.load %arg5[%c0_11, %c0_12] : memref<256x512xf32, #tpu.memory_space<vmem>>, vector<256x512xf32>
    %cst_13 = arith.constant dense<0.000000e+00> : vector<128x512xf32>
    %33 = tpu.matmul %31, %32, %cst_13 {dimension_numbers = #tpu.dot_dimension_numbers<[1], [0], [0], [1], [0, 0, 1, 1], [], []>} : vector<128x256xf32>, vector<256x512xf32>, vector<128x512xf32> -> vector<128x512xf32>
    %c0_14 = arith.constant 0 : index
    %c0_15 = arith.constant 0 : index
    %34 = vector.load %arg6[%c0_14, %c0_15] : memref<1x512xf32, #tpu.memory_space<vmem>>, vector<1x512xf32>
    %35 = vector.broadcast %34 : vector<1x512xf32> to vector<128x512xf32>
    %36 = arith.addf %33, %35 : vector<128x512xf32>
    %37 = arith.mulf %36, %36 : vector<128x512xf32>
    %38 = vector.extract_strided_slice %37 {offsets = [0, 0], sizes = [128, 256], strides = [1, 1]} : vector<128x512xf32> to vector<128x256xf32>
    %39 = vector.extract_strided_slice %37 {offsets = [0, 256], sizes = [128, 256], strides = [1, 1]} : vector<128x512xf32> to vector<128x256xf32>
    %40 = arith.maximumf %38, %39 : vector<128x256xf32>
    %41 = arith.subf %38, %40 : vector<128x256xf32>
    %42 = math.exp %41 : vector<128x256xf32>
    %43 = arith.subf %39, %40 : vector<128x256xf32>
    %44 = math.exp %43 : vector<128x256xf32>
    %45 = arith.addf %42, %44 : vector<128x256xf32>
    %46 = tpu.reciprocal %45 {approx = true} : vector<128x256xf32> -> vector<128x256xf32>
    %47 = arith.mulf %42, %46 : vector<128x256xf32>
    %48 = arith.mulf %44, %46 : vector<128x256xf32>
    %49 = arith.mulf %31, %47 : vector<128x256xf32>
    %50 = arith.mulf %31, %48 : vector<128x256xf32>
    %51 = tpu.concatenate %49, %50 in 1 : vector<128x256xf32>, vector<128x256xf32> -> vector<128x512xf32>
    %c0_16 = arith.constant 0 : index
    %c0_17 = arith.constant 0 : index
    %52 = vector.load %arg7[%c0_16, %c0_17] : memref<512x512xf32, #tpu.memory_space<vmem>>, vector<512x512xf32>
    %cst_18 = arith.constant dense<0.000000e+00> : vector<128x512xf32>
    %53 = tpu.matmul %51, %52, %cst_18 {dimension_numbers = #tpu.dot_dimension_numbers<[1], [0], [0], [1], [0, 0, 1, 1], [], []>} : vector<128x512xf32>, vector<512x512xf32>, vector<128x512xf32> -> vector<128x512xf32>
    %c0_19 = arith.constant 0 : index
    %c0_20 = arith.constant 0 : index
    %54 = vector.load %arg8[%c0_19, %c0_20] : memref<1x512xf32, #tpu.memory_space<vmem>>, vector<1x512xf32>
    %55 = vector.broadcast %54 : vector<1x512xf32> to vector<128x512xf32>
    %56 = arith.addf %53, %55 : vector<128x512xf32>
    %cst_21 = arith.constant 0.000000e+00 : f32
    %57 = vector.broadcast %cst_21 : f32 to vector<128x512xf32>
    %58 = arith.cmpf ogt, %56, %57 : vector<128x512xf32>
    %cst_22 = arith.constant 2.000000e-01 : f32
    %59 = vector.broadcast %cst_22 : f32 to vector<128x512xf32>
    %60 = arith.mulf %59, %56 : vector<128x512xf32>
    %61 = arith.select %58, %56, %60 : vector<128x512xi1>, vector<128x512xf32>
    %62 = vector.extract_strided_slice %61 {offsets = [0, 0], sizes = [128, 256], strides = [1, 1]} : vector<128x512xf32> to vector<128x256xf32>
    %63 = vector.extract_strided_slice %61 {offsets = [0, 256], sizes = [128, 256], strides = [1, 1]} : vector<128x512xf32> to vector<128x256xf32>
    %c13 = arith.constant 13 : index
    %64 = memref.load %arg1[%c13] : memref<16xf32, #tpu.memory_space<smem>>
    %c5 = arith.constant 5 : index
    %65 = memref.load %arg1[%c5] : memref<16xf32, #tpu.memory_space<smem>>
    %66 = vector.broadcast %65 : f32 to vector<128x256xf32>
    %67 = arith.mulf %66, %62 : vector<128x256xf32>
    %c9 = arith.constant 9 : index
    %68 = memref.load %arg1[%c9] : memref<16xf32, #tpu.memory_space<smem>>
    %69 = vector.broadcast %68 : f32 to vector<128x256xf32>
    %70 = arith.mulf %69, %63 : vector<128x256xf32>
    %71 = arith.addf %67, %70 : vector<128x256xf32>
    %72 = vector.broadcast %64 : f32 to vector<128x256xf32>
    %73 = arith.addf %71, %72 : vector<128x256xf32>
    %c6 = arith.constant 6 : index
    %74 = memref.load %arg1[%c6] : memref<16xf32, #tpu.memory_space<smem>>
    %75 = vector.broadcast %74 : f32 to vector<128x256xf32>
    %76 = arith.mulf %75, %62 : vector<128x256xf32>
    %c10 = arith.constant 10 : index
    %77 = memref.load %arg1[%c10] : memref<16xf32, #tpu.memory_space<smem>>
    %78 = vector.broadcast %77 : f32 to vector<128x256xf32>
    %79 = arith.mulf %78, %63 : vector<128x256xf32>
    %80 = arith.addf %76, %79 : vector<128x256xf32>
    %81 = vector.broadcast %64 : f32 to vector<128x256xf32>
    %82 = arith.addf %80, %81 : vector<128x256xf32>
    %c7 = arith.constant 7 : index
    %83 = memref.load %arg1[%c7] : memref<16xf32, #tpu.memory_space<smem>>
    %84 = vector.broadcast %83 : f32 to vector<128x256xf32>
    %85 = arith.mulf %84, %62 : vector<128x256xf32>
    %c11 = arith.constant 11 : index
    %86 = memref.load %arg1[%c11] : memref<16xf32, #tpu.memory_space<smem>>
    %87 = vector.broadcast %86 : f32 to vector<128x256xf32>
    %88 = arith.mulf %87, %63 : vector<128x256xf32>
    %89 = arith.addf %85, %88 : vector<128x256xf32>
    %90 = vector.broadcast %64 : f32 to vector<128x256xf32>
    %91 = arith.addf %89, %90 : vector<128x256xf32>
    %c8 = arith.constant 8 : index
    %92 = memref.load %arg1[%c8] : memref<16xf32, #tpu.memory_space<smem>>
    %93 = vector.broadcast %92 : f32 to vector<128x256xf32>
    %94 = arith.mulf %93, %62 : vector<128x256xf32>
    %c12 = arith.constant 12 : index
    %95 = memref.load %arg1[%c12] : memref<16xf32, #tpu.memory_space<smem>>
    %96 = vector.broadcast %95 : f32 to vector<128x256xf32>
    %97 = arith.mulf %96, %63 : vector<128x256xf32>
    %98 = arith.addf %94, %97 : vector<128x256xf32>
    %99 = vector.broadcast %64 : f32 to vector<128x256xf32>
    %100 = arith.addf %98, %99 : vector<128x256xf32>
    %101 = tpu.concatenate %73, %82, %91, %100 in 1 : vector<128x256xf32>, vector<128x256xf32>, vector<128x256xf32>, vector<128x256xf32> -> vector<128x1024xf32>
    %c0_23 = arith.constant 0 : index
    %c0_24 = arith.constant 0 : index
    %102 = vector.load %arg9[%c0_23, %c0_24] : memref<128x1024xf32, #tpu.memory_space<vmem>>, vector<128x1024xf32>
    tpu.vector_store %arg9[%c0_23, %c0_24], %101 {strides = array<i32>} : memref<128x1024xf32, #tpu.memory_space<vmem>>, vector<128x1024xf32>,
    %c0_25 = arith.constant 0 : index
    %c0_26 = arith.constant 0 : index
    %103 = vector.load %arg10[%c0_25, %c0_26] : memref<128x256xf32, #tpu.memory_space<vmem>>, vector<128x256xf32>
    tpu.vector_store %arg10[%c0_25, %c0_26], %31 {strides = array<i32>} : memref<128x256xf32, #tpu.memory_space<vmem>>, vector<128x256xf32>,
    %104 = tpu.concatenate %47, %48 in 1 : vector<128x256xf32>, vector<128x256xf32> -> vector<128x512xf32>
    %c0_27 = arith.constant 0 : index
    %c0_28 = arith.constant 0 : index
    %105 = vector.load %arg11[%c0_27, %c0_28] : memref<128x512xf32, #tpu.memory_space<vmem>>, vector<128x512xf32>
    tpu.vector_store %arg11[%c0_27, %c0_28], %104 {strides = array<i32>} : memref<128x512xf32, #tpu.memory_space<vmem>>, vector<128x512xf32>,
    return
  }
  func.func @transform_0(%arg0: i32) -> i32 {
    %c0_i32 = arith.constant 0 : i32
    %c0_i32_0 = arith.constant 0 : i32
    return %c0_i32 : i32
  }
  func.func @transform_1(%arg0: i32) -> (i32, i32) {
    %c0_i32 = arith.constant 0 : i32
    %c0_i32_0 = arith.constant 0 : i32
    return %arg0, %c0_i32 : i32, i32
  }
  func.func @transform_2(%arg0: i32) -> (i32, i32) {
    %c0_i32 = arith.constant 0 : i32
    %c0_i32_0 = arith.constant 0 : i32
    %c0_i32_1 = arith.constant 0 : i32
    return %c0_i32, %c0_i32_0 : i32, i32
  }
  func.func @transform_3(%arg0: i32) -> (i32, i32) {
    %c0_i32 = arith.constant 0 : i32
    %c0_i32_0 = arith.constant 0 : i32
    %c0_i32_1 = arith.constant 0 : i32
    return %c0_i32, %c0_i32_0 : i32, i32
  }
  func.func @transform_4(%arg0: i32) -> (i32, i32) {
    %c0_i32 = arith.constant 0 : i32
    %c0_i32_0 = arith.constant 0 : i32
    %c0_i32_1 = arith.constant 0 : i32
    return %c0_i32, %c0_i32_0 : i32, i32
  }
  func.func @transform_5(%arg0: i32) -> (i32, i32) {
    %c0_i32 = arith.constant 0 : i32
    %c0_i32_0 = arith.constant 0 : i32
    %c0_i32_1 = arith.constant 0 : i32
    return %c0_i32, %c0_i32_0 : i32, i32
  }
  func.func @transform_6(%arg0: i32) -> (i32, i32) {
    %c0_i32 = arith.constant 0 : i32
    %c0_i32_0 = arith.constant 0 : i32
    %c0_i32_1 = arith.constant 0 : i32
    return %c0_i32, %c0_i32_0 : i32, i32
  }
  func.func @transform_7(%arg0: i32) -> (i32, i32) {
    %c0_i32 = arith.constant 0 : i32
    %c0_i32_0 = arith.constant 0 : i32
    %c0_i32_1 = arith.constant 0 : i32
    return %c0_i32, %c0_i32_0 : i32, i32
  }
  func.func @transform_8(%arg0: i32) -> (i32, i32) {
    %c0_i32 = arith.constant 0 : i32
    %c0_i32_0 = arith.constant 0 : i32
    return %arg0, %c0_i32 : i32, i32
  }
  func.func @transform_9(%arg0: i32) -> (i32, i32) {
    %c0_i32 = arith.constant 0 : i32
    %c0_i32_0 = arith.constant 0 : i32
    return %arg0, %c0_i32 : i32, i32
  }
  func.func @transform_10(%arg0: i32) -> (i32, i32) {
    %c0_i32 = arith.constant 0 : i32
    %c0_i32_0 = arith.constant 0 : i32
    return %arg0, %c0_i32 : i32, i32
  }
}

</mosaic_0001>

<bundles_post_ra>
// kernel: vi_forward.1
= control target key start
LH: loop header
LB: loop body
LE: loop exit
PB: predicated region body
PF: predicated region fallthrough
CT: control target
= control target key end

     0   :  { %16 = vsyncpa [#allocation3], 0  ;;  %s5077_s13 = smov 0   ;;  %s9546_s0 = inlined_call_operand.vmem [shape: f32[16], index: 0, kind: input, shape index: {}]   ;;  %s9547_s1 = inlined_call_operand.vmem [shape: f32[256,1024], index: 1, kind: input, shape index: {}]   ;;  %s9548_s2 = inlined_call_operand.vmem [shape: f32[256,256], index: 2, kind: input, shape index: {}]   ;;  %s9549_s3 = inlined_call_operand.vmem [shape: f32[1,256], index: 3, kind: input, shape index: {}]   ;;  %s9550_s4 = inlined_call_operand.vmem [shape: f32[256,512], index: 4, kind: input, shape index: {}]   ;;  %s9551_s5 = inlined_call_operand.vmem [shape: f32[1,512], index: 5, kind: input, shape index: {}]   ;;  %s9552_s6 = inlined_call_operand.vmem [shape: f32[512,512], index: 6, kind: input, shape index: {}]   ;;  %s9553_s7 = inlined_call_operand.vmem [shape: f32[1,512], index: 7, kind: input, shape index: {}]   ;;  %s9554_s8 = inlined_call_operand.vmem [shape: f32[256,1024], index: 8, kind: output, shape index: {0}]   ;;  %s9555_s9 = inlined_call_operand.vmem [shape: f32[256,256], index: 9, kind: output, shape index: {1}]   ;;  %s9556_s10 = inlined_call_operand.vmem [shape: f32[256,512], index: 10, kind: output, shape index: {2}]  }
   0x1 LB: > { %s4102_s14 = sadd.s32 4294967295, %s5019_s13   ;;  %p4104_p0 = scmp.ge.s32.totalorder %s5019_s13, 1  ;;  %s5019_s13 = sphi %s5077_s13, %s22_s13  }
   0x2   : > { %p278_p1 = scmp.lt.s32.totalorder %s5019_s13, 3  ;;  %s291_s17 = sshll.u32 %s9546_s0, 4  ;;  %s292_s17 = int_to_ptr.vmem [resolvable:$true] %s291_s17 }
   0x3   : > { %p5094_p3 = scmp.eq.s32.totalorder %s4102_s14, 0  ;;  %s4994_s20 = scalar_lea.vmem %s292_s17, 16 }
   0x4   : > { %p5088_p2 = pnand %p4104_p0, %p278_p1  ;;  %p4995_p6 = scmp.ne.s32.totalorder %s292_s17, %s4994_s20 }
   0x5   : > { %p5002_p10 = scmp.lt.s32.totalorder %s292_s17, %s292_s17  ;;  %p5003_p11 = scmp.lt.s32.totalorder %s4994_s20, %s4994_s20 }
   0x6   : > { %p4752_p4 = pneg %p5088_p2 }
   0x7   : > { %p5004_p12 = por %p5003_p11, %p5002_p10 }
   0x8   : > { %p4753_p5 = pnand %p5094_p3, %p4752_p4 }
   0xa   : > { %p4996_p7 = pneg %p4753_p5 }
   0xc   : > { %p4997_p8 = pnand %p4996_p7, %p4995_p6 }
   0xe   : > { %p4998_p9 = pneg %p4997_p8 }
  0x10   : > { %p5005_p13 = pnand %p5004_p12, %p4998_p9 }
  0x12   : > { %5008 = shalt.err (!%p5005_p13)
}
  0x13   : > { %s5021_s21 = smov [#allocation2]   ;;  %332 = sbr.rel (%p5088_p2) target bundleno = 1110 (0x456), region = 52 }
  0x14   : > { %4755 = dma.vmem_to_smem (!%p4753_p5), %s292_s17, 16, %s5021_s21, [#allocation3]  }
  0x1a   : > { %5014 = dma.done.wait (%p5094_p3), [#allocation3], 16  }
  0x1b   : > { %5016 = vsyncadd (%p5094_p3), [#allocation3], 4294967280 }
  0x1c   : > { %338 = sfence }
  0x1d   : > { %v808_v0 = vld [vmem:[%s9548_s2 + $0x8] sm:$0xff]  ;;  %v810_v1 = vld [vmem:[%s9548_s2 + $0x18] sm:$0xff]  ;;  %v807_v2 = vld [vmem:[%s9548_s2] sm:$0xff]  ;;  %s4109_s22 = sshll.u32 %s4102_s14, 4  ;;  %s5152_s12 = sld [smem:[#allocation2]] }
  0x1e   : > { %v4140_v3 = vpack.c.bf16 %v810_v1, %v808_v0  ;;  %v809_v4 = vld [vmem:[%s9548_s2 + $0x10] sm:$0xff]  ;;  %v812_v5 = vld [vmem:[%s9548_s2 + $0x28] sm:$0xff]  ;;  %v814_v6 = vld [vmem:[%s9548_s2 + $0x38] sm:$0xff]  ;;  %p386_p0 = scmp.lt.s32.totalorder %s4109_s22, 31  ;;  %s5154_s15 = sld [smem:[#allocation2 + $0x1]] }
  0x1f   : > { %v4142_v7 = vpack.c.bf16 %v809_v4, %v807_v2  ;;  %v4144_v8 = vpack.c.bf16 %v814_v6, %v812_v5  ;;  %v811_v9 = vld [vmem:[%s9548_s2 + $0x20] sm:$0xff]  ;;  %v813_v10 = vld [vmem:[%s9548_s2 + $0x30] sm:$0xff]  ;;  %v816_v11 = vld [vmem:[%s9548_s2 + $0x48] sm:$0xff]  ;;  %s5156_s16 = sld [smem:[#allocation2 + $0x2]]  ;;  %s5172_s26 = sld [smem:[#allocation2 + $0x3]] }
  0x20   : > { %4141 = vmatprep.subr.bf16.mxu0 %v4140_v3  ;;  %v818_v12 = vld [vmem:[%s9548_s2 + $0x58] sm:$0xff]  ;;  %v4146_v13 = vpack.c.bf16 %v813_v10, %v811_v9  ;;  %v815_v15 = vld [vmem:[%s9548_s2 + $0x40] sm:$0xff]  ;;  %v817_v16 = vld [vmem:[%s9548_s2 + $0x50] sm:$0xff]  ;;  %s10133_s22 = smov (!%p386_p0, %s4109_s22), 31  ;;  %s5180_s30 = sld [smem:[#allocation2 + $0x4]] }
  0x21   : > { %4143 = vmatpush1.bf16.msra.mxu0 %v4142_v7  ;;  %v4148_v14 = vpack.c.bf16 %v818_v12, %v816_v11  ;;  %v820_v17 = vld [vmem:[%s9548_s2 + $0x68] sm:$0xff]  ;;  %v822_v18 = vld [vmem:[%s9548_s2 + $0x78] sm:$0xff]  ;;  %v4150_v19 = vpack.c.bf16 %v817_v16, %v815_v15  ;;  %v819_v21 = vld [vmem:[%s9548_s2 + $0x60] sm:$0xff]  ;;  %s4136_s27 = sshll.u32 %s10133_s22, 6  ;;  %s4138_s18 = sshll.u32 %s10133_s22, 4 }
  0x22   : > { %4145 = vmatprep.subr.bf16.mxu0 %v4144_v8  ;;  %v4152_v20 = vpack.c.bf16 %v822_v18, %v820_v17  ;;  %v821_v22 = vld [vmem:[%s9548_s2 + $0x70] sm:$0xff]  ;;  %v824_v23 = vld [vmem:[%s9548_s2 + $0x88] sm:$0xff]  ;;  %v826_v24 = vld [vmem:[%s9548_s2 + $0x98] sm:$0xff]  ;;  %s6341_s11 = scalar_lea.vmem %s9555_s9, %s4138_s18  ;;  %s4139_s24 = sshll.u32 %s10133_s22, 5 }
  0x23   : > { %v823_v25 = vld [vmem:[%s9548_s2 + $0x80] sm:$0xff]  ;;  %v825_v26 = vld [vmem:[%s9548_s2 + $0x90] sm:$0xff]  ;;  %v4154_v27 = vpack.c.bf16 %v821_v22, %v819_v21  ;;  %v5185_v28 = vld [vmem:[%s9548_s2 + $0xa8] sm:$0xff]  ;;  %v4156_v32 = vpack.c.bf16 %v826_v24, %v824_v23  ;;  %v5304_v53 = vstv %s5152_s12  ;;  %s5377_s12 = scalar_lea.vmem %s9547_s1, %s4136_s27  ;;  %s7458_s14 = scalar_lea.vmem %s9556_s10, %s4139_s24 }
  0x24   : > { %v5190_v29 = vld [vmem:[%s9548_s2 + $0xb8] sm:$0xff]  ;;  %v5195_v30 = vld [vmem:[%s9548_s2 + $0xa0] sm:$0xff]  ;;  %v5200_v31 = vld [vmem:[%s9548_s2 + $0xb0] sm:$0xff]  ;;  %v4158_v54 = vpack.c.bf16 %v825_v26, %v823_v25  ;;  %v5327_v59 = vstv %s5154_s15  ;;  %s4132_s25 = sld [smem:[#allocation2 + $0x8]]  ;;  %s4125_s15 = sld [smem:[#allocation2 + $0xd]] }
  0x25   : > { %4147 = vmatpush1.bf16.msra.mxu0 %v4146_v13  ;;  %v5205_v33 = vld [vmem:[%s9548_s2 + $0xc8] sm:$0xff]  ;;  %v5210_v34 = vld [vmem:[%s9548_s2 + $0xd8] sm:$0xff]  ;;  %v5215_v35 = vld [vmem:[%s9548_s2 + $0xc0] sm:$0xff]  ;;  %v4160_v60 = vpack.c.bf16 %v5190_v29, %v5185_v28  ;;  %v4162_v61 = vpack.c.bf16 %v5200_v31, %v5195_v30  ;;  %v5349_v1 = vstv %s5156_s16  ;;  %s4127_s28 = sld [smem:[#allocation2 + $0x9]]  ;;  %s4131_s29 = sld [smem:[#allocation2 + $0xb]] }
  0x26   : > { %4149 = vmatprep.subr.bf16.mxu0 %v4148_v14  ;;  %v5220_v36 = vld [vmem:[%s9548_s2 + $0xd0] sm:$0xff]  ;;  %v5225_v37 = vld [vmem:[%s9548_s2 + $0xe8] sm:$0xff]  ;;  %v5230_v38 = vld [vmem:[%s9548_s2 + $0xf8] sm:$0xff]  ;;  %v4164_v2 = vpack.c.bf16 %v5210_v34, %v5205_v33  ;;  %v5380_v8 = vstv %s5172_s26  ;;  %s4130_s26 = sld [smem:[#allocation2 + $0x7]]  ;;  %s8577_s21 = scalar_lea.vmem %s9554_s8, %s4136_s27 }
  0x27   : > { %v5235_v39 = vld [vmem:[%s9548_s2 + $0xe0] sm:$0xff]  ;;  %v5240_v40 = vld [vmem:[%s9548_s2 + $0xf0] sm:$0xff]  ;;  %v5245_v41 = vld [vmem:[%s9548_s2 + $0x108] sm:$0xff]  ;;  %v4166_v3 = vpack.c.bf16 %v5220_v36, %v5215_v35  ;;  %v5404_v15 = vstv %s5180_s30  ;;  %s4129_s30 = sld [smem:[#allocation2 + $0xa]] }
  0x28   : > { %v5250_v42 = vld [vmem:[%s9548_s2 + $0x118] sm:$0xff]  ;;  %v5255_v43 = vld [vmem:[%s9548_s2 + $0x100] sm:$0xff]  ;;  %v5260_v44 = vld [vmem:[%s9548_s2 + $0x110] sm:$0xff] }
  0x29   : > { %4151 = vmatpush1.bf16.msra.mxu0 %v4150_v19  ;;  %v5265_v45 = vld [vmem:[%s9548_s2 + $0x128] sm:$0xff]  ;;  %v5270_v46 = vld [vmem:[%s9548_s2 + $0x138] sm:$0xff]  ;;  %v5275_v47 = vld [vmem:[%s9548_s2 + $0x120] sm:$0xff] }
  0x2a   : > { %4153 = vmatprep.subr.bf16.mxu0 %v4152_v20  ;;  %v5280_v48 = vld [vmem:[%s9548_s2 + $0x130] sm:$0xff]  ;;  %v5285_v49 = vld [vmem:[%s9548_s2 + $0x148] sm:$0xff]  ;;  %v5290_v50 = vld [vmem:[%s9548_s2 + $0x158] sm:$0xff] }
  0x2b   : > { %v5295_v51 = vld [vmem:[%s9548_s2 + $0x140] sm:$0xff]  ;;  %v5300_v52 = vld [vmem:[%s9548_s2 + $0x150] sm:$0xff]  ;;  %v5309_v55 = vld [vmem:[%s9548_s2 + $0x168] sm:$0xff] }
  0x2c   : > { %v5314_v56 = vld [vmem:[%s9548_s2 + $0x178] sm:$0xff]  ;;  %v5319_v57 = vld [vmem:[%s9548_s2 + $0x160] sm:$0xff]  ;;  %v5324_v58 = vld [vmem:[%s9548_s2 + $0x170] sm:$0xff] }
  0x2d   : > { %4155 = vmatpush1.bf16.msra.mxu0 %v4154_v27  ;;  %v5336_v62 = vld [vmem:[%s9548_s2 + $0x188] sm:$0xff]  ;;  %v5341_v63 = vld [vmem:[%s9548_s2 + $0x198] sm:$0xff]  ;;  %v5346_v0 = vld [vmem:[%s9548_s2 + $0x180] sm:$0xff] }
  0x2e   : > { %4157 = vmatprep.subr.bf16.mxu0 %v4156_v32  ;;  %v5360_v5 = vld [vmem:[%s9548_s2 + $0x190] sm:$0xff]  ;;  %v5365_v6 = vld [vmem:[%s9548_s2 + $0x1a8] sm:$0xff]  ;;  %v5370_v7 = vld [vmem:[%s9548_s2 + $0x1b8] sm:$0xff] }
  0x2f   : > { %v5391_v12 = vld [vmem:[%s9548_s2 + $0x1a0] sm:$0xff]  ;;  %v5396_v13 = vld [vmem:[%s9548_s2 + $0x1b0] sm:$0xff]  ;;  %v5401_v14 = vld [vmem:[%s9548_s2 + $0x1c8] sm:$0xff] }
  0x30   : > { %9696 = vst [vmem:[#allocation5_spill] sm:$0xff] %v5401_v14  ;;  %v5417_v20 = vld [vmem:[%s9548_s2 + $0x1d8] sm:$0xff]  ;;  %v5422_v21 = vld [vmem:[%s9548_s2 + $0x1c0] sm:$0xff]  ;;  %v5427_v22 = vld [vmem:[%s9548_s2 + $0x1d0] sm:$0xff] }
  0x31   : > { %4159 = vmatpush1.bf16.msra.mxu0 %v4158_v54  ;;  %9697 = vst [vmem:[#allocation6_spill] sm:$0xff] %v5417_v20  ;;  %9698 = vst [vmem:[#allocation7_spill] sm:$0xff] %v5422_v21  ;;  %v415_v27 = vld [vmem:[%s5377_s12 + $0x8] sm:$0xff]  ;;  %v481_v28 = vld [vmem:[%s5377_s12 + $0x18] sm:$0xff] }
  0x32   : > { %9699 = vst [vmem:[#allocation8_spill] sm:$0xff] %v5427_v22  ;;  %4161 = vmatprep.subr.bf16.mxu0 %v4160_v60  ;;  %v448_v31 = vmul.f32 %v5304_v53, %v415_v27  ;;  %v514_v32 = vmul.f32 %v5327_v59, %v481_v28  ;;  %v579_v33 = vld [vmem:[%s5377_s12 + $0x28] sm:$0xff]  ;;  %v677_v34 = vld [vmem:[%s5377_s12 + $0x38] sm:$0xff]  ;;  %v414_v54 = vld [vmem:[%s5377_s12] sm:$0xff] }
  0x33   : > { %v612_v29 = vmul.f32 %v5349_v1, %v579_v33  ;;  %v447_v30 = vmul.f32 %v5304_v53, %v414_v54  ;;  %v480_v25 = vld [vmem:[%s5377_s12 + $0x10] sm:$0xff]  ;;  %v578_v27 = vld [vmem:[%s5377_s12 + $0x20] sm:$0xff]  ;;  %v710_v23 = vmul.f32 %v5380_v8, %v677_v34  ;;  %v417_v26 = vld [vmem:[%s5377_s12 + $0x48] sm:$0xff] }
  0x34   : > { %v676_v28 = vld [vmem:[%s5377_s12 + $0x30] sm:$0xff]  ;;  %v546_v24 = vadd.f32 %v514_v32, %v448_v31  ;;  %v513_v19 = vmul.f32 %v5327_v59, %v480_v25  ;;  %v611_v60 = vmul.f32 %v5349_v1, %v578_v27  ;;  %v483_v33 = vld [vmem:[%s5377_s12 + $0x58] sm:$0xff]  ;;  %v581_v54 = vld [vmem:[%s5377_s12 + $0x68] sm:$0xff]  ;;  %v450_v17 = vmul.f32 %v5304_v53, %v417_v26 }
  0x35   : > { %4163 = vmatpush1.bf16.msra.mxu0 %v4162_v61  ;;  %v709_v18 = vmul.f32 %v5380_v8, %v676_v28  ;;  %v516_v61 = vmul.f32 %v5327_v59, %v483_v33  ;;  %v614_v31 = vmul.f32 %v5349_v1, %v581_v54  ;;  %v679_v32 = vld [vmem:[%s5377_s12 + $0x78] sm:$0xff]  ;;  %v416_v25 = vld [vmem:[%s5377_s12 + $0x40] sm:$0xff]  ;;  %v482_v34 = vld [vmem:[%s5377_s12 + $0x50] sm:$0xff] }
  0x36   : > { %4165 = vmatprep.subr.bf16.mxu0 %v4164_v2  ;;  %v644_v27 = vadd.f32 %v612_v29, %v546_v24  ;;  %v545_v16 = vadd.f32 %v513_v19, %v447_v30  ;;  %v712_v11 = vmul.f32 %v5380_v8, %v679_v32  ;;  %v449_v2 = vmul.f32 %v5304_v53, %v416_v25  ;;  %v580_v10 = vld [vmem:[%s5377_s12 + $0x60] sm:$0xff]  ;;  %v678_v28 = vld [vmem:[%s5377_s12 + $0x70] sm:$0xff]  ;;  %v419_v26 = vld [vmem:[%s5377_s12 + $0x88] sm:$0xff] }
  0x37   : > { %v5478_v33 = vld [vmem:[%s9548_s2 + $0x1e8] sm:$0xff]  ;;  %v548_v54 = vadd.f32 %v516_v61, %v450_v17  ;;  %v515_v9 = vmul.f32 %v5327_v59, %v482_v34  ;;  %v613_v19 = vmul.f32 %v5349_v1, %v580_v10  ;;  %v711_v24 = vmul.f32 %v5380_v8, %v678_v28  ;;  %v485_v29 = vld [vmem:[%s5377_s12 + $0x98] sm:$0xff]  ;;  %v418_v17 = vld [vmem:[%s5377_s12 + $0x80] sm:$0xff] }
  0x38   : > { %v583_v30 = vld [vmem:[%s5377_s12 + $0xa8] sm:$0xff]  ;;  %v681_v32 = vld [vmem:[%s5377_s12 + $0xb8] sm:$0xff]  ;;  %v742_v25 = vadd.f32 %v710_v23, %v644_v27  ;;  %v643_v4 = vadd.f32 %v611_v60, %v545_v16  ;;  %v452_v21 = vmul.f32 %v5304_v53, %v419_v26  ;;  %v518_v22 = vmul.f32 %v5327_v59, %v485_v29  ;;  %v484_v61 = vld [vmem:[%s5377_s12 + $0x90] sm:$0xff] }
  0x39   : > { %4167 = vmatpush1.bf16.msra.mxu0 %v4166_v3  ;;  %v582_v34 = vld [vmem:[%s5377_s12 + $0xa0] sm:$0xff]  ;;  %v9700_v10 = vpack.c.bf16 %v5230_v38, %v5225_v37  ;;  %v5500_v28 = vld [vmem:[%s9548_s2 + $0x1f8] sm:$0xff]  ;;  %v5510_v36 = vld [vmem:[%s9548_s2 + $0x1f0] sm:$0xff]  ;;  %v646_v37 = vadd.f32 %v614_v31, %v548_v54  ;;  %v547_v38 = vadd.f32 %v515_v9, %v449_v2  ;;  %v616_v3 = vmul.f32 %v5349_v1, %v583_v30 }
  0x3a   : > { %v5505_v35 = vld [vmem:[%s9548_s2 + $0x1e0] sm:$0xff]  ;;  %v714_v16 = vmul.f32 %v5380_v8, %v681_v32  ;;  %v776_v23 = vadd.f32 %v5404_v15, %v742_v25  ;;  %v741_v60 = vadd.f32 %v709_v18, %v643_v4  ;;  %v550_v27 = vadd.f32 %v518_v22, %v452_v21  ;;  %v421_v29 = vld [vmem:[%s5377_s12 + $0xc8] sm:$0xff]  ;;  %v680_v9 = vld [vmem:[%s5377_s12 + $0xb0] sm:$0xff] }
  0x3b   : > { %4169 = vmatprep.subr.bf16.mxu0 %v9700_v10  ;;  %v451_v26 = vmul.f32 %v5304_v53, %v418_v17  ;;  %v744_v10 = vadd.f32 %v712_v11, %v646_v37  ;;  %v645_v14 = vadd.f32 %v613_v19, %v547_v38  ;;  %v517_v20 = vmul.f32 %v5327_v59, %v484_v61  ;;  %v487_v2 = vld [vmem:[%s5377_s12 + $0xd8] sm:$0xff]  ;;  %v585_v54 = vld [vmem:[%s5377_s12 + $0xe8] sm:$0xff]  ;;  %v420_v22 = vld [vmem:[%s5377_s12 + $0xc0] sm:$0xff] }
  0x3c   : > { %v615_v31 = vmul.f32 %v5349_v1, %v582_v34  ;;  %v9701_v4 = vpack.c.bf16 %v5240_v40, %v5235_v39  ;;  %v4200_v18 = vpack.c.bf16 %v5500_v28, %v5478_v33  ;;  %v4202_v11 = vpack.c.bf16 %v5510_v36, %v5505_v35  ;;  %947 = vmatprep.mubr.f32.mxu0 %v776_v23  ;;  %v486_v19 = vld [vmem:[%s5377_s12 + $0xd0] sm:$0xff]  ;;  %v683_v17 = vld [vmem:[%s5377_s12 + $0xf8] sm:$0xff]  ;;  %v584_v61 = vld [vmem:[%s5377_s12 + $0xe0] sm:$0xff] }
  0x3d   : > { %v648_v21 = vadd.f32 %v616_v3, %v550_v27  ;;  %v9702_v30 = vpack.c.bf16 %v5250_v42, %v5245_v41  ;;  %v5535_v39 = vadd.f32 %v5404_v15, %v741_v60  ;;  %v743_v40 = vadd.f32 %v711_v24, %v645_v14  ;;  %v682_v42 = vld [vmem:[%s5377_s12 + $0xf0] sm:$0xff]  ;;  %v423_v14 = vld [vmem:[%s5377_s12 + $0x108] sm:$0xff]  ;;  %v489_v24 = vld [vmem:[%s5377_s12 + $0x118] sm:$0xff] }
  0x3e   : > { %4171 = vmatpush1.bf16.msra.mxu0 %v9701_v4  ;;  %v549_v32 = vadd.f32 %v517_v20, %v451_v26  ;;  %v454_v25 = vmul.f32 %v5304_v53, %v421_v29  ;;  %v5541_v34 = vadd.f32 %v5404_v15, %v744_v10  ;;  %v713_v37 = vmul.f32 %v5380_v8, %v680_v9  ;;  %v587_v27 = vld [vmem:[%s5377_s12 + $0x128] sm:$0xff]  ;;  %v422_v26 = vld [vmem:[%s5377_s12 + $0x100] sm:$0xff] }
  0x3f   : > { %4173 = vmatprep.subr.bf16.mxu0 %v9702_v30  ;;  %v520_v38 = vmul.f32 %v5327_v59, %v487_v2  ;;  %v618_v41 = vmul.f32 %v5349_v1, %v585_v54  ;;  %v746_v20 = vadd.f32 %v714_v16, %v648_v21  ;;  %v453_v23 = vmul.f32 %v5304_v53, %v420_v22  ;;  %v685_v2 = vld [vmem:[%s5377_s12 + $0x138] sm:$0xff]  ;;  %v488_v54 = vld [vmem:[%s5377_s12 + $0x110] sm:$0xff]  ;;  %v425_v30 = vld [vmem:[%s5377_s12 + $0x148] sm:$0xff] }
  0x40   : > { %v647_v3 = vadd.f32 %v615_v31, %v549_v32  ;;  %v519_v60 = vmul.f32 %v5327_v59, %v486_v19  ;;  %v9703_v29 = vpack.c.bf16 %v5260_v44, %v5255_v43  ;;  %v5557_v10 = vadd.f32 %v5404_v15, %v743_v40  ;;  %v586_v19 = vld [vmem:[%s5377_s12 + $0x120] sm:$0xff] }
  0x41   : > { %v552_v9 = vadd.f32 %v520_v38, %v454_v25  ;;  %v716_v16 = vmul.f32 %v5380_v8, %v683_v17  ;;  %v617_v31 = vmul.f32 %v5349_v1, %v584_v61  ;;  %v9704_v4 = vpack.c.bf16 %v5270_v46, %v5265_v45  ;;  %v491_v46 = vld [vmem:[%s5377_s12 + $0x158] sm:$0xff]  ;;  %v600_v36 = vld [vmem:[%s5377_s12 + $0x2e0] sm:$0xff] }
  0x42   : > { %4175 = vmatpush1.bf16.msra.mxu0 %v9703_v29  ;;  %v551_v21 = vadd.f32 %v519_v60, %v453_v23  ;;  %v715_v43 = vmul.f32 %v5380_v8, %v682_v42  ;;  %v456_v44 = vmul.f32 %v5304_v53, %v423_v14  ;;  %v522_v22 = vmul.f32 %v5327_v59, %v489_v24  ;;  %v684_v14 = vld [vmem:[%s5377_s12 + $0x130] sm:$0xff]  ;;  %v589_v24 = vld [vmem:[%s5377_s12 + $0x168] sm:$0xff]  ;;  %v424_v23 = vld [vmem:[%s5377_s12 + $0x140] sm:$0xff] }
  0x43   : > { %4177 = vmatprep.subr.bf16.mxu0 %v9704_v4  ;;  %v745_v40 = vadd.f32 %v713_v37, %v647_v3  ;;  %v650_v32 = vadd.f32 %v618_v41, %v552_v9  ;;  %v620_v25 = vmul.f32 %v5349_v1, %v587_v27  ;;  %v455_v45 = vmul.f32 %v5304_v53, %v422_v26  ;;  %v687_v26 = vld [vmem:[%s5377_s12 + $0x178] sm:$0xff] }
  0x44   : > { %v649_v17 = vadd.f32 %v617_v31, %v551_v21  ;;  %v554_v61 = vadd.f32 %v522_v22, %v456_v44  ;;  %v718_v38 = vmul.f32 %v5380_v8, %v685_v2  ;;  %v521_v42 = vmul.f32 %v5327_v59, %v488_v54  ;;  %v427_v2 = vld [vmem:[%s5377_s12 + $0x188] sm:$0xff] }
  0x45   : > { %v9705_v37 = vpack.c.bf16 %v5280_v48, %v5275_v47  ;;  %v5583_v41 = vadd.f32 %v5404_v15, %v746_v20  ;;  %v748_v3 = vadd.f32 %v716_v16, %v650_v32  ;;  %v619_v60 = vmul.f32 %v5349_v1, %v586_v19  ;;  %v490_v20 = vld [vmem:[%s5377_s12 + $0x150] sm:$0xff]  ;;  %v588_v16 = vld [vmem:[%s5377_s12 + $0x160] sm:$0xff] }
  0x46   : > { %v458_v27 = vmul.f32 %v5304_v53, %v425_v30  ;;  %v9706_v29 = vpack.c.bf16 %v5290_v50, %v5285_v49  ;;  %v747_v9 = vadd.f32 %v715_v43, %v649_v17  ;;  %v652_v31 = vadd.f32 %v620_v25, %v554_v61  ;;  %v686_v50 = vld [vmem:[%s5377_s12 + $0x170] sm:$0xff]  ;;  %v493_v43 = vld [vmem:[%s5377_s12 + $0x198] sm:$0xff]  ;;  %v426_v32 = vld [vmem:[%s5377_s12 + $0x180] sm:$0xff] }
  0x47   : > { %4179 = vmatpush1.bf16.msra.mxu0 %v9705_v37  ;;  %v553_v47 = vadd.f32 %v521_v42, %v455_v45  ;;  %v524_v48 = vmul.f32 %v5327_v59, %v491_v46  ;;  %v5596_v54 = vadd.f32 %v5404_v15, %v745_v40  ;;  %v717_v4 = vmul.f32 %v5380_v8, %v684_v14  ;;  %v591_v40 = vld [vmem:[%s5377_s12 + $0x1a8] sm:$0xff]  ;;  %v492_v42 = vld [vmem:[%s5377_s12 + $0x190] sm:$0xff]  ;;  %v590_v37 = vld [vmem:[%s5377_s12 + $0x1a0] sm:$0xff] }
  0x48   : > { %4181 = vmatprep.subr.bf16.mxu0 %v9706_v29  ;;  %v622_v21 = vmul.f32 %v5349_v1, %v589_v24  ;;  %v457_v49 = vmul.f32 %v5304_v53, %v424_v23  ;;  %v5604_v44 = vadd.f32 %v5404_v15, %v748_v3  ;;  %v750_v22 = vadd.f32 %v718_v38, %v652_v31  ;;  %v689_v38 = vld [vmem:[%s5377_s12 + $0x1b8] sm:$0xff]  ;;  %v429_v3 = vld [vmem:[%s5377_s12 + $0x1c8] sm:$0xff] }
  0x49   : > { %v651_v19 = vadd.f32 %v619_v60, %v553_v47  ;;  %v556_v30 = vadd.f32 %v524_v48, %v458_v27  ;;  %v9707_v25 = vpack.c.bf16 %v5300_v52, %v5295_v51  ;;  %v720_v45 = vmul.f32 %v5380_v8, %v687_v26  ;;  %v495_v29 = vld [vmem:[%s5377_s12 + $0x1d8] sm:$0xff] }
  0x4a   : > { %v523_v46 = vmul.f32 %v5327_v59, %v490_v20  ;;  %v621_v17 = vmul.f32 %v5349_v1, %v588_v16  ;;  %v460_v61 = vmul.f32 %v5304_v53, %v427_v2  ;;  %v9708_v14 = vpack.c.bf16 %v5314_v56, %v5309_v55  ;;  %v688_v56 = vld [vmem:[%s5377_s12 + $0x1b0] sm:$0xff]  ;;  %v593_v20 = vld [vmem:[%s5377_s12 + $0x1e8] sm:$0xff]  ;;  %v428_v16 = vld [vmem:[%s5377_s12 + $0x1c0] sm:$0xff] }
  0x4b   : > { %4183 = vmatpush1.bf16.msra.mxu0 %v9707_v25  ;;  %v5621_v24 = vadd.f32 %v5404_v15, %v747_v9  ;;  %v654_v51 = vadd.f32 %v622_v21, %v556_v30  ;;  %v719_v52 = vmul.f32 %v5380_v8, %v686_v50  ;;  %v526_v23 = vmul.f32 %v5327_v59, %v493_v43  ;;  %v494_v43 = vld [vmem:[%s5377_s12 + $0x1d0] sm:$0xff]  ;;  %v431_v25 = vld [vmem:[%s5377_s12 + $0x208] sm:$0xff] }
  0x4c   : > { %4185 = vmatprep.subr.bf16.mxu0 %v9708_v14  ;;  %v749_v60 = vadd.f32 %v717_v4, %v651_v19  ;;  %v555_v27 = vadd.f32 %v523_v46, %v457_v49  ;;  %v624_v26 = vmul.f32 %v5349_v1, %v591_v40  ;;  %v459_v55 = vmul.f32 %v5304_v53, %v426_v32  ;;  %v592_v32 = vld [vmem:[%s5377_s12 + $0x1e0] sm:$0xff] }
  0x4d   : > { %v5632_v9 = vadd.f32 %v5404_v15, %v750_v22  ;;  %v558_v31 = vadd.f32 %v526_v23, %v460_v61  ;;  %v722_v47 = vmul.f32 %v5380_v8, %v689_v38  ;;  %v525_v48 = vmul.f32 %v5327_v59, %v492_v42  ;;  %v693_v23 = vld [vmem:[%s5377_s12 + $0x238] sm:$0xff] }
  0x4e   : > { %v9709_v2 = vpack.c.bf16 %v5324_v58, %v5319_v57  ;;  %v752_v4 = vadd.f32 %v720_v45, %v654_v51  ;;  %v653_v21 = vadd.f32 %v621_v17, %v555_v27  ;;  %v623_v49 = vmul.f32 %v5349_v1, %v590_v37  ;;  %v691_v58 = vld [vmem:[%s5377_s12 + $0x1f8] sm:$0xff]  ;;  %v595_v51 = vld [vmem:[%s5377_s12 + $0x228] sm:$0xff]  ;;  %v430_v37 = vld [vmem:[%s5377_s12 + $0x200] sm:$0xff] }
  0x4f   : > { %v462_v50 = vmul.f32 %v5304_v53, %v429_v3  ;;  %v9710_v22 = vpack.c.bf16 %v5341_v63, %v5336_v62  ;;  %v656_v19 = vadd.f32 %v624_v26, %v558_v31  ;;  %v557_v30 = vadd.f32 %v525_v48, %v459_v55  ;;  %v497_v17 = vld [vmem:[%s5377_s12 + $0x218] sm:$0xff]  ;;  %v690_v26 = vld [vmem:[%s5377_s12 + $0x1f0] sm:$0xff]  ;;  %v594_v48 = vld [vmem:[%s5377_s12 + $0x220] sm:$0xff] }
  0x50   : > { %4187 = vmatpush1.bf16.msra.mxu0 %v9709_v2  ;;  %v721_v40 = vmul.f32 %v5380_v8, %v688_v56  ;;  %v528_v57 = vmul.f32 %v5327_v59, %v495_v29  ;;  %v5653_v45 = vadd.f32 %v5404_v15, %v749_v60  ;;  %v751_v46 = vadd.f32 %v719_v52, %v653_v21  ;;  %v496_v56 = vld [vmem:[%s5377_s12 + $0x210] sm:$0xff]  ;;  %v499_v21 = vld [vmem:[%s5377_s12 + $0x258] sm:$0xff] }
  0x51   : > { %4189 = vmatprep.subr.bf16.mxu0 %v9710_v22  ;;  %v626_v62 = vmul.f32 %v5349_v1, %v593_v20  ;;  %v461_v63 = vmul.f32 %v5304_v53, %v428_v16  ;;  %v754_v61 = vadd.f32 %v722_v47, %v656_v19  ;;  %v655_v38 = vadd.f32 %v623_v49, %v557_v30  ;;  %v692_v20 = vld [vmem:[%s5377_s12 + $0x230] sm:$0xff]  ;;  %v433_v16 = vld [vmem:[%s5377_s12 + $0x248] sm:$0xff]  ;;  %v695_v30 = vld [vmem:[%s5377_s12 + $0x278] sm:$0xff] }
  0x52   : > { %v560_v42 = vadd.f32 %v528_v57, %v462_v50  ;;  %v527_v14 = vmul.f32 %v5327_v59, %v494_v43  ;;  %v9711_v52 = vpack.c.bf16 %v5360_v5, %v5346_v0  ;;  %v5666_v3 = vadd.f32 %v5404_v15, %v752_v4  ;;  %v597_v19 = vld [vmem:[%s5377_s12 + $0x268] sm:$0xff] }
  0x53   : > { %v724_v60 = vmul.f32 %v5380_v8, %v691_v58  ;;  %v625_v27 = vmul.f32 %v5349_v1, %v592_v32  ;;  %v464_v55 = vmul.f32 %v5304_v53, %v431_v25  ;;  %v9712_v29 = vpack.c.bf16 %v5370_v7, %v5365_v6 }
  0x54   : > { %4191 = vmatpush1.bf16.msra.mxu0 %v9711_v52  ;;  %v5677_v31 = vadd.f32 %v5404_v15, %v751_v46  ;;  %v753_v0 = vadd.f32 %v721_v40, %v655_v38  ;;  %v658_v5 = vadd.f32 %v626_v62, %v560_v42  ;;  %v559_v47 = vadd.f32 %v527_v14, %v461_v63  ;;  %v432_v40 = vld [vmem:[%s5377_s12 + $0x240] sm:$0xff]  ;;  %v498_v62 = vld [vmem:[%s5377_s12 + $0x250] sm:$0xff]  ;;  %v9714_v63 = vld [vmem:[#allocation6_spill] sm:$0xff] }
  0x55   : > { %4193 = vmatprep.subr.bf16.mxu0 %v9712_v29  ;;  %v530_v2 = vmul.f32 %v5327_v59, %v497_v17  ;;  %v628_v4 = vmul.f32 %v5349_v1, %v595_v51  ;;  %v726_v6 = vmul.f32 %v5380_v8, %v693_v23  ;;  %v463_v7 = vmul.f32 %v5304_v53, %v430_v37  ;;  %v9715_v17 = vld [vmem:[#allocation5_spill] sm:$0xff]  ;;  %v694_v51 = vld [vmem:[%s5377_s12 + $0x270] sm:$0xff]  ;;  %v435_v23 = vld [vmem:[%s5377_s12 + $0x288] sm:$0xff] }
  0x56   : > { %v5688_v49 = vadd.f32 %v5404_v15, %v754_v61  ;;  %v657_v50 = vadd.f32 %v625_v27, %v559_v47  ;;  %v723_v43 = vmul.f32 %v5380_v8, %v690_v26  ;;  %v529_v22 = vmul.f32 %v5327_v59, %v496_v56  ;;  %v596_v14 = vld [vmem:[%s5377_s12 + $0x260] sm:$0xff]  ;;  %v697_v47 = vld [vmem:[%s5377_s12 + $0x2b8] sm:$0xff] }
  0x57   : > { %v9713_v57 = vpack.c.bf16 %v5396_v13, %v5391_v12  ;;  %v562_v58 = vadd.f32 %v530_v2, %v464_v55  ;;  %v627_v32 = vmul.f32 %v5349_v1, %v594_v48  ;;  %v725_v25 = vmul.f32 %v5380_v8, %v692_v20  ;;  %v501_v55 = vld [vmem:[%s5377_s12 + $0x298] sm:$0xff]  ;;  %v434_v48 = vld [vmem:[%s5377_s12 + $0x280] sm:$0xff] }
  0x58   : > { %v466_v46 = vmul.f32 %v5304_v53, %v433_v16  ;;  %v9716_v61 = vpack.c.bf16 %v9714_v63, %v9715_v17  ;;  %v5706_v38 = vadd.f32 %v5404_v15, %v753_v0  ;;  %v5708_v42 = vadd.f32 %v724_v60, %v658_v5  ;;  %v599_v5 = vld [vmem:[%s5377_s12 + $0x2a8] sm:$0xff]  ;;  %v9717_v20 = vld [vmem:[#allocation8_spill] sm:$0xff]  ;;  %v9718_v16 = vld [vmem:[#allocation7_spill] sm:$0xff] }
  0x59   : > { %4195 = vmatpush1.bf16.msra.mxu0 %v9713_v57  ;;  %v561_v12 = vadd.f32 %v529_v22, %v463_v7  ;;  %v532_v13 = vmul.f32 %v5327_v59, %v499_v21  ;;  %v660_v37 = vadd.f32 %v628_v4, %v562_v58  ;;  %v630_v52 = vmul.f32 %v5349_v1, %v597_v19  ;;  %v696_v57 = vld [vmem:[%s5377_s12 + $0x2b0] sm:$0xff]  ;;  %v437_v58 = vld [vmem:[%s5377_s12 + $0x2c8] sm:$0xff] }
  0x5a   : > { %4197 = vmatprep.subr.bf16.mxu0 %v9716_v61  ;;  %v728_v27 = vmul.f32 %v5380_v8, %v695_v30  ;;  %v465_v26 = vmul.f32 %v5304_v53, %v432_v40  ;;  %v5718_v56 = vadd.f32 %v723_v43, %v657_v50  ;;  %v531_v0 = vmul.f32 %v5327_v59, %v498_v62  ;;  %v500_v43 = vld [vmem:[%s5377_s12 + $0x290] sm:$0xff]  ;;  %v598_v40 = vld [vmem:[%s5377_s12 + $0x2a0] sm:$0xff]  ;;  %v601_v61 = vld [vmem:[%s5377_s12 + $0x2e8] sm:$0xff] }
  0x5b   : > { %v659_v60 = vadd.f32 %v627_v32, %v561_v12  ;;  %v564_v29 = vadd.f32 %v532_v13, %v466_v46  ;;  %v9719_v2 = vpack.c.bf16 %v9717_v20, %v9718_v16  ;;  %v758_v4 = vadd.f32 %v726_v6, %v660_v37  ;;  %v699_v12 = vld [vmem:[%s5377_s12 + $0x2f8] sm:$0xff]  ;;  %v436_v13 = vld [vmem:[%s5377_s12 + $0x2c0] sm:$0xff] }
  0x5c   : > { %v629_v7 = vmul.f32 %v5349_v1, %v596_v14  ;;  %v727_v21 = vmul.f32 %v5380_v8, %v694_v51  ;;  %v468_v50 = vmul.f32 %v5304_v53, %v435_v23  ;;  %v563_v30 = vadd.f32 %v531_v0, %v465_v26 }
  0x5d   : > { %4199 = vmatpush1.bf16.msra.mxu0 %v9719_v2  ;;  %v757_v22 = vadd.f32 %v725_v25, %v659_v60  ;;  %v662_v19 = vadd.f32 %v630_v52, %v564_v29  ;;  %v534_v6 = vmul.f32 %v5327_v59, %v501_v55  ;;  %v5739_v32 = vadd.f32 %v5404_v15, %v758_v4  ;;  %v502_v52 = vld [vmem:[%s5377_s12 + $0x2d0] sm:$0xff]  ;;  %v439_v60 = vld [vmem:[%s5377_s12 + $0x308] sm:$0xff] }
  0x5e   : > { %4201 = vmatprep.subr.bf16.mxu0 %v4200_v18  ;;  %v632_v46 = vmul.f32 %v5349_v1, %v599_v5  ;;  %v730_v33 = vmul.f32 %v5380_v8, %v697_v47  ;;  %v467_v28 = vmul.f32 %v5304_v53, %v434_v48  ;;  %v503_v18 = vld [vmem:[%s5377_s12 + $0x2d8] sm:$0xff]  ;;  %v661_v63 = vadd.f32 %v629_v7, %v563_v30  ;;  %v603_v7 = vld [vmem:[%s5377_s12 + $0x328] sm:$0xff]  ;;  %v504_v30 = vld [vmem:[%s5377_s12 + $0x310] sm:$0xff] }
  0x5f   : > { %v5746_v25 = vadd.f32 %v5404_v15, %v757_v22  ;;  %v760_v62 = vadd.f32 %v728_v27, %v662_v19  ;;  %v566_v17 = vadd.f32 %v534_v6, %v468_v50  ;;  %v533_v14 = vmul.f32 %v5327_v59, %v500_v43  ;;  %v505_v48 = vld [vmem:[%s5377_s12 + $0x318] sm:$0xff]  ;;  %v438_v50 = vld [vmem:[%s5377_s12 + $0x300] sm:$0xff] }
  0x60   : > { %v631_v51 = vmul.f32 %v5349_v1, %v598_v40  ;;  %v729_v23 = vmul.f32 %v5380_v8, %v696_v57  ;;  %v470_v37 = vmul.f32 %v5304_v53, %v437_v58  ;;  %v759_v26 = vadd.f32 %v727_v21, %v661_v63  ;;  %v701_v21 = vld [vmem:[%s5377_s12 + $0x338] sm:$0xff] }
  0x61   : > { %4203 = vmatpush1.bf16.msra.mxu0 %v4202_v11  ;;  %v5760_v27 = vadd.f32 %v5404_v15, %v760_v62  ;;  %v664_v55 = vadd.f32 %v632_v46, %v566_v17  ;;  %v536_v35 = vmul.f32 %v5327_v59, %v503_v18  ;;  %v698_v11 = vld [vmem:[%s5377_s12 + $0x2f0] sm:$0xff]  ;;  %v565_v29 = vadd.f32 %v533_v14, %v467_v28  ;;  %v507_v17 = vld [vmem:[%s5377_s12 + $0x358] sm:$0xff] }
  0x62   : > { %v634_v0 = vmul.f32 %v5349_v1, %v601_v61  ;;  %v732_v5 = vmul.f32 %v5380_v8, %v699_v12  ;;  %v469_v47 = vmul.f32 %v5304_v53, %v436_v13  ;;  %v5772_v20 = vadd.f32 %v5404_v15, %v759_v26  ;;  %v700_v46 = vld [vmem:[%s5377_s12 + $0x330] sm:$0xff] }
  0x63   : > { %v762_v16 = vadd.f32 %v730_v33, %v664_v55  ;;  %v568_v2 = vadd.f32 %v536_v35, %v470_v37  ;;  %v535_v4 = vmul.f32 %v5327_v59, %v502_v52  ;;  %v663_v43 = vadd.f32 %v631_v51, %v565_v29  ;;  %v441_v33 = vld [vmem:[%s5377_s12 + $0x348] sm:$0xff]  ;;  %v440_v37 = vld [vmem:[%s5377_s12 + $0x340] sm:$0xff]  ;;  %v506_v35 = vld [vmem:[%s5377_s12 + $0x350] sm:$0xff] }
  0x64   : > { %948 = vmatmul.mubr.f32.vlgmr.msra.gmra.mrb[0].mxu0 %v5535_v39  ;;  %v633_v22 = vmul.f32 %v5349_v1, %v600_v36  ;;  %v731_v39 = vmul.f32 %v5380_v8, %v698_v11  ;;  %v472_v19 = vmul.f32 %v5304_v53, %v439_v60  ;;  %v538_v58 = vmul.f32 %v5327_v59, %v505_v48  ;;  %v605_v51 = vld [vmem:[%s5377_s12 + $0x368] sm:$0xff] }
  0x65   : > { %953 = vmatprep.mubr.f32.mxu0 %v5541_v34  ;;  %v5784_v6 = vadd.f32 %v5404_v15, %v762_v16  ;;  %v666_v40 = vadd.f32 %v634_v0, %v568_v2  ;;  %v567_v57 = vadd.f32 %v535_v4, %v469_v47  ;;  %v602_v34 = vld [vmem:[%s5377_s12 + $0x320] sm:$0xff]  ;;  %v761_v28 = vadd.f32 %v729_v23, %v663_v43  ;;  %v703_v23 = vld [vmem:[%s5377_s12 + $0x378] sm:$0xff]  ;;  %v702_v0 = vld [vmem:[%s5377_s12 + $0x370] sm:$0xff] }
  0x66   : > { %v636_v18 = vmul.f32 %v5349_v1, %v603_v7  ;;  %v734_v62 = vmul.f32 %v5380_v8, %v701_v21  ;;  %v471_v63 = vmul.f32 %v5304_v53, %v438_v50  ;;  %v570_v13 = vadd.f32 %v538_v58, %v472_v19  ;;  %v509_v4 = vld [vmem:[%s5377_s12 + $0x398] sm:$0xff]  ;;  %v442_v19 = vld [vmem:[%s5377_s12 + $0x380] sm:$0xff]  ;;  %v508_v58 = vld [vmem:[%s5377_s12 + $0x390] sm:$0xff] }
  0x67   : > { %v764_v61 = vadd.f32 %v732_v5, %v666_v40  ;;  %v665_v12 = vadd.f32 %v633_v22, %v567_v57  ;;  %v537_v14 = vmul.f32 %v5327_v59, %v504_v30  ;;  %v5801_v52 = vadd.f32 %v5404_v15, %v761_v28  ;;  %v443_v5 = vld [vmem:[%s5377_s12 + $0x388] sm:$0xff] }
  0x68   : > { %954 = vmatmul.mubr.f32.gmra.mrb[2].mxu0 %v5557_v10  ;;  %v635_v26 = vmul.f32 %v5349_v1, %v602_v34  ;;  %v733_v10 = vmul.f32 %v5380_v8, %v700_v46  ;;  %v474_v55 = vmul.f32 %v5304_v53, %v441_v33  ;;  %v668_v60 = vadd.f32 %v636_v18, %v570_v13  ;;  %v607_v22 = vld [vmem:[%s5377_s12 + $0x3a8] sm:$0xff]  ;;  %v704_v18 = vld [vmem:[%s5377_s12 + $0x3b0] sm:$0xff]  ;;  %v511_v13 = vld [vmem:[%s5377_s12 + $0x3d8] sm:$0xff] }
  0x69   : > { %959 = vmatprep.mubr.f32.mxu0 %v5583_v41  ;;  %v5808_v36 = vadd.f32 %v5404_v15, %v764_v61  ;;  %v763_v11 = vadd.f32 %v731_v39, %v665_v12  ;;  %v569_v29 = vadd.f32 %v537_v14, %v471_v63  ;;  %v604_v41 = vld [vmem:[%s5377_s12 + $0x360] sm:$0xff]  ;;  %v540_v47 = vmul.f32 %v5327_v59, %v507_v17  ;;  %v705_v39 = vld [vmem:[%s5377_s12 + $0x3b8] sm:$0xff]  ;;  %v609_v14 = vld [vmem:[%s5377_s12 + $0x3e8] sm:$0xff] }
  0x6a   : > { %v638_v48 = vmul.f32 %v5349_v1, %v605_v51  ;;  %v736_v16 = vmul.f32 %v5380_v8, %v703_v23  ;;  %v473_v2 = vmul.f32 %v5304_v53, %v440_v37  ;;  %v766_v21 = vadd.f32 %v734_v62, %v668_v60  ;;  %v445_v62 = vld [vmem:[%s5377_s12 + $0x3c8] sm:$0xff] }
  0x6b   : > { %v5820_v7 = vadd.f32 %v5404_v15, %v763_v11  ;;  %v667_v50 = vadd.f32 %v635_v26, %v569_v29  ;;  %v539_v43 = vmul.f32 %v5327_v59, %v506_v35  ;;  %v572_v30 = vadd.f32 %v540_v47, %v474_v55  ;;  %v444_v55 = vld [vmem:[%s5377_s12 + $0x3c0] sm:$0xff]  ;;  %v510_v35 = vld [vmem:[%s5377_s12 + $0x3d0] sm:$0xff] }
  0x6c   : > { %960 = vmatmul.mubr.f32.gmra.mrb[4].mxu0 %v5596_v54  ;;  %v637_v40 = vmul.f32 %v5349_v1, %v604_v41  ;;  %v735_v54 = vmul.f32 %v5380_v8, %v702_v0  ;;  %v476_v57 = vmul.f32 %v5304_v53, %v443_v5  ;;  %v5832_v34 = vadd.f32 %v5404_v15, %v766_v21  ;;  %v706_v0 = vld [vmem:[%s5377_s12 + $0x3f0] sm:$0xff]  ;;  %v1143_v5 = vld [vmem:[%s9550_s4 + $0x18] sm:$0xff]  ;;  %v1145_v21 = vld [vmem:[%s9550_s4 + $0x28] sm:$0xff] }
  0x6d   : > { %965 = vmatprep.mubr.f32.mxu0 %v5604_v44  ;;  %v765_v46 = vadd.f32 %v733_v10, %v667_v50  ;;  %v571_v33 = vadd.f32 %v539_v43, %v473_v2  ;;  %v542_v28 = vmul.f32 %v5327_v59, %v509_v4  ;;  %v606_v44 = vld [vmem:[%s5377_s12 + $0x3a0] sm:$0xff]  ;;  %v670_v63 = vadd.f32 %v638_v48, %v572_v30  ;;  %v707_v10 = vld [vmem:[%s5377_s12 + $0x3f8] sm:$0xff]  ;;  %v1146_v30 = vld [vmem:[%s9550_s4 + $0x30] sm:$0xff] }
  0x6e   : > { %v640_v17 = vmul.f32 %v5349_v1, %v607_v22  ;;  %v738_v61 = vmul.f32 %v5380_v8, %v705_v39  ;;  %v475_v12 = vmul.f32 %v5304_v53, %v442_v19  ;;  %v541_v26 = vmul.f32 %v5327_v59, %v508_v58  ;;  %v1142_v19 = vld [vmem:[%s9550_s4 + $0x10] sm:$0xff] }
  0x6f   : > { %v5845_v51 = vadd.f32 %v5404_v15, %v765_v46  ;;  %v669_v23 = vadd.f32 %v637_v40, %v571_v33  ;;  %v574_v37 = vadd.f32 %v542_v28, %v476_v57  ;;  %v768_v11 = vadd.f32 %v736_v16, %v670_v63  ;;  %v1141_v16 = vld [vmem:[%s9550_s4 + $0x8] sm:$0xff]  ;;  %v1140_v40 = vld [vmem:[%s9550_s4] sm:$0xff]  ;;  %v1151_v33 = vld [vmem:[%s9550_s4 + $0x58] sm:$0xff] }
  0x70   : > { %966 = vmatmul.mubr.f32.gmra.mrb[6].mxu0 %v5621_v24  ;;  %v639_v60 = vmul.f32 %v5349_v1, %v606_v44  ;;  %v737_v29 = vmul.f32 %v5380_v8, %v704_v18  ;;  %v478_v41 = vmul.f32 %v5304_v53, %v445_v62  ;;  %v608_v24 = vld [vmem:[%s5377_s12 + $0x3e0] sm:$0xff]  ;;  %v573_v2 = vadd.f32 %v541_v26, %v475_v12  ;;  %v1155_v28 = vld [vmem:[%s9550_s4 + $0x78] sm:$0xff]  ;;  %v1149_v63 = vld [vmem:[%s9550_s4 + $0x48] sm:$0xff]  ;;  %s4133_s12 = sld [smem:[#allocation2 + $0xc]] }
  0x71   : > { %971 = vmatprep.mubr.f32.mxu0 %v5632_v9  ;;  %v767_v47 = vadd.f32 %v735_v54, %v669_v23  ;;  %v672_v48 = vadd.f32 %v640_v17, %v574_v37  ;;  %v544_v4 = vmul.f32 %v5327_v59, %v511_v13  ;;  %v1147_v9 = vld [vmem:[%s9550_s4 + $0x38] sm:$0xff]  ;;  %v5871_v50 = vadd.f32 %v5404_v15, %v768_v11  ;;  %v1144_v46 = vld [vmem:[%s9550_s4 + $0x20] sm:$0xff]  ;;  %v1153_v17 = vld [vmem:[%s9550_s4 + $0x68] sm:$0xff] }
  0x72   : > { %v642_v43 = vmul.f32 %v5349_v1, %v609_v14  ;;  %v740_v22 = vmul.f32 %v5380_v8, %v707_v10  ;;  %v477_v39 = vmul.f32 %v5304_v53, %v444_v55  ;;  %v671_v58 = vadd.f32 %v639_v60, %v573_v2  ;;  %v1152_v10 = vld [vmem:[%s9550_s4 + $0x60] sm:$0xff]  ;;  %v1159_v55 = vld [vmem:[%s9550_s4 + $0x98] sm:$0xff] }
  0x73   : > { %v5887_v54 = vadd.f32 %v5404_v15, %v767_v47  ;;  %v770_v57 = vadd.f32 %v738_v61, %v672_v48  ;;  %v576_v53 = vadd.f32 %v544_v4, %v478_v41  ;;  %v641_v44 = vmul.f32 %v5349_v1, %v608_v24  ;;  %v1154_v1 = vld [vmem:[%s9550_s4 + $0x70] sm:$0xff]  ;;  %v1157_v41 = vld [vmem:[%s9550_s4 + $0x88] sm:$0xff] }
  0x74   : > { %972 = vmatmul.mubr.f32.gmra.mrb[8].mxu0 %v5653_v45  ;;  %v543_v45 = vmul.f32 %v5327_v59, %v510_v35  ;;  %v739_v18 = vmul.f32 %v5380_v8, %v706_v0  ;;  %v4268_v62 = vpack.c.bf16 %v1147_v9, %v1143_v5  ;;  %v769_v12 = vadd.f32 %v737_v29, %v671_v58  ;;  %v1150_v59 = vld [vmem:[%s9550_s4 + $0x50] sm:$0xff]  ;;  %v1148_v8 = vld [vmem:[%s9550_s4 + $0x40] sm:$0xff]  ;;  %v1163_v35 = vld [vmem:[%s9550_s4 + $0xb8] sm:$0xff] }
  0x75   : > { %977 = vmatprep.mubr.f32.mxu0 %v5666_v3  ;;  %v5909_v61 = vadd.f32 %v5404_v15, %v770_v57  ;;  %v674_v3 = vadd.f32 %v642_v43, %v576_v53  ;;  %v4204_v13 = vpack.c.bf16 %v1145_v21, %v1141_v16  ;;  %v4270_v23 = vpack.c.bf16 %v1146_v30, %v1142_v19  ;;  %v1161_v24 = vld [vmem:[%s9550_s4 + $0xa8] sm:$0xff]  ;;  %v1158_v4 = vld [vmem:[%s9550_s4 + $0x90] sm:$0xff]  ;;  %v1160_v21 = vld [vmem:[%s9550_s4 + $0xa0] sm:$0xff] }
  0x76   : > { %v575_v14 = vadd.f32 %v543_v45, %v477_v39  ;;  %4269 = vmatprep.subr.bf16.mxu0 %v4268_v62  ;;  %v4206_v37 = vpack.c.bf16 %v1144_v46, %v1140_v40  ;;  %v4272_v26 = vpack.c.bf16 %v1155_v28, %v1151_v33  ;;  %v5931_v11 = vadd.f32 %v5404_v15, %v769_v12  ;;  %v1167_v43 = vld [vmem:[%s9550_s4 + $0xd8] sm:$0xff]  ;;  %v1165_v19 = vld [vmem:[%s9550_s4 + $0xc8] sm:$0xff]  ;;  %v1170_v53 = vld [vmem:[%s9550_s4 + $0xf0] sm:$0xff] }
  0x77   : > { %v772_v60 = vadd.f32 %v740_v22, %v674_v3  ;;  %4205 = vmatprep.subr.bf16.mxu1 %v4204_v13  ;;  %v4208_v29 = vpack.c.bf16 %v1153_v17, %v1149_v63  ;;  %v790_v0 = vadd.f32 %v5404_v15, %v5708_v42  ;;  %4271 = vmatpush1.bf16.msra.mxu0 %v4270_v23  ;;  %v1156_v42 = vld [vmem:[%s9550_s4 + $0x80] sm:$0xff]  ;;  %v1171_v22 = vld [vmem:[%s9550_s4 + $0xf8] sm:$0xff]  ;;  %v1169_v30 = vld [vmem:[%s9550_s4 + $0xe8] sm:$0xff] }
  0x78   : > { %978 = vmatmul.mubr.f32.gmra.mrb[10].mxu0 %v5677_v31  ;;  %v673_v31 = vadd.f32 %v641_v44, %v575_v14  ;;  %v4274_v5 = vpack.c.bf16 %v1154_v1, %v1150_v59  ;;  %4207 = vmatpush1.bf16.msra.mxu1 %v4206_v37  ;;  %v4210_v48 = vpack.c.bf16 %v1152_v10, %v1148_v8  ;;  %v1164_v46 = vld [vmem:[%s9550_s4 + $0xc0] sm:$0xff]  ;;  %v1175_v28 = vld [vmem:[%s9550_s4 + $0x118] sm:$0xff]  ;;  %v1173_v44 = vld [vmem:[%s9550_s4 + $0x108] sm:$0xff] }
  0x79   : > { %983 = vmatprep.mubr.f32.mxu0 %v5688_v49  ;;  %v5943_v47 = vadd.f32 %v5404_v15, %v772_v60  ;;  %4273 = vmatprep.subr.bf16.mxu0 %v4272_v26  ;;  %v4276_v2 = vpack.c.bf16 %v1163_v35, %v1159_v55  ;;  %v1162_v49 = vld [vmem:[%s9550_s4 + $0xb0] sm:$0xff]  ;;  %v4212_v16 = vpack.c.bf16 %v1161_v24, %v1157_v41  ;;  %v1168_v33 = vld [vmem:[%s9550_s4 + $0xe0] sm:$0xff]  ;;  %v1179_v45 = vld [vmem:[%s9550_s4 + $0x138] sm:$0xff] }
  0x7a   : > { %v771_v9 = vadd.f32 %v739_v18, %v673_v31  ;;  %4209 = vmatprep.subr.bf16.mxu1 %v4208_v29  ;;  %v789_v39 = vadd.f32 %v5404_v15, %v5718_v56  ;;  %v4278_v57 = vpack.c.bf16 %v1162_v49, %v1158_v4  ;;  %v4280_v58 = vpack.c.bf16 %v1171_v22, %v1167_v43  ;;  %v1166_v56 = vld [vmem:[%s9550_s4 + $0xd0] sm:$0xff]  ;;  %v1177_v18 = vld [vmem:[%s9550_s4 + $0x128] sm:$0xff]  ;;  %v1172_v13 = vld [vmem:[%s9550_s4 + $0x100] sm:$0xff] }
  0x7b   : > { %4275 = vmatpush1.bf16.msra.mxu0 %v4274_v5  ;;  %v4282_v62 = vpack.c.bf16 %v1170_v53, %v1166_v56  ;;  %v4218_v63 = vpack.c.bf16 %v1168_v33, %v1164_v46  ;;  %v4284_v17 = vpack.c.bf16 %v1179_v45, %v1175_v28  ;;  %v1174_v12 = vld [vmem:[%s9550_s4 + $0x110] sm:$0xff]  ;;  %v1176_v59 = vld [vmem:[%s9550_s4 + $0x120] sm:$0xff]  ;;  %v1183_v1 = vld [vmem:[%s9550_s4 + $0x158] sm:$0xff] }
  0x7c   : > { %984 = vmatmul.mubr.f32.gmra.mrb[12].mxu0 %v5706_v38  ;;  %v5973_v40 = vadd.f32 %v5404_v15, %v771_v9  ;;  %4211 = vmatpush1.bf16.msra.mxu1 %v4210_v48  ;;  %v4214_v38 = vpack.c.bf16 %v1160_v21, %v1156_v42  ;;  %v4216_v15 = vpack.c.bf16 %v1169_v30, %v1165_v19  ;;  %v1178_v3 = vld [vmem:[%s9550_s4 + $0x130] sm:$0xff]  ;;  %v1187_v8 = vld [vmem:[%s9550_s4 + $0x178] sm:$0xff]  ;;  %v1181_v14 = vld [vmem:[%s9550_s4 + $0x148] sm:$0xff] }
  0x7d   : > { %989 = vmatprep.mubr.f32.mxu0 %v790_v0  ;;  %4277 = vmatprep.subr.bf16.mxu0 %v4276_v2  ;;  %v1185_v23 = vld [vmem:[%s9550_s4 + $0x168] sm:$0xff]  ;;  %v4286_v37 = vpack.c.bf16 %v1178_v3, %v1174_v12  ;;  %v4222_v26 = vpack.c.bf16 %v1176_v59, %v1172_v13  ;;  %v4288_v10 = vpack.c.bf16 %v1187_v8, %v1183_v1  ;;  %v1186_v55 = vld [vmem:[%s9550_s4 + $0x170] sm:$0xff]  ;;  %v1180_v35 = vld [vmem:[%s9550_s4 + $0x140] sm:$0xff] }
  0x7e   : > { %4213 = vmatprep.subr.bf16.mxu1 %v4212_v16  ;;  %v1184_v60 = vld [vmem:[%s9550_s4 + $0x160] sm:$0xff]  ;;  %v1191_v29 = vld [vmem:[%s9550_s4 + $0x198] sm:$0xff]  ;;  %v1189_v24 = vld [vmem:[%s9550_s4 + $0x188] sm:$0xff] }
  0x7f   : > { %4279 = vmatpush1.bf16.msra.mxu0 %v4278_v57  ;;  %v1195_v41 = vld [vmem:[%s9550_s4 + $0x1b8] sm:$0xff]  ;;  %v1193_v0 = vld [vmem:[%s9550_s4 + $0x1a8] sm:$0xff]  ;;  %v4226_v5 = vpack.c.bf16 %v1184_v60, %v1180_v35  ;;  %v1194_v2 = vld [vmem:[%s9550_s4 + $0x1b0] sm:$0xff] }
  0x80   : > { %990 = vmatmul.mubr.f32.gmra.mrb[14].mxu0 %v789_v39  ;;  %4215 = vmatpush1.bf16.msra.mxu1 %v4214_v38  ;;  %v4292_v48 = vpack.c.bf16 %v1195_v41, %v1191_v29  ;;  %v1188_v4 = vld [vmem:[%s9550_s4 + $0x180] sm:$0xff]  ;;  %v1199_v42 = vld [vmem:[%s9550_s4 + $0x1d8] sm:$0xff]  ;;  %v1197_v16 = vld [vmem:[%s9550_s4 + $0x1c8] sm:$0xff] }
  0x81   : > { %995 = vmatprep.mubr.f32.mxu0 %v5739_v32  ;;  %4281 = vmatprep.subr.bf16.mxu0 %v4280_v58  ;;  %v4220_v32 = vpack.c.bf16 %v1177_v18, %v1173_v44  ;;  %v1192_v49 = vld [vmem:[%s9550_s4 + $0x1a0] sm:$0xff]  ;;  %v1203_v9 = vld [vmem:[%s9550_s4 + $0x1f8] sm:$0xff]  ;;  %v1201_v21 = vld [vmem:[%s9550_s4 + $0x1e8] sm:$0xff] }
  0x82   : > { %4217 = vmatprep.subr.bf16.mxu1 %v4216_v15  ;;  %v4230_v22 = vpack.c.bf16 %v1192_v49, %v1188_v4  ;;  %v4296_v39 = vpack.c.bf16 %v1203_v9, %v1199_v42  ;;  %v1202_v19 = vld [vmem:[%s9550_s4 + $0x1f0] sm:$0xff]  ;;  %v1196_v30 = vld [vmem:[%s9550_s4 + $0x1c0] sm:$0xff]  ;;  %v1207_v38 = vld [vmem:[%s9550_s4 + $0x218] sm:$0xff] }
  0x83   : > { %4283 = vmatpush1.bf16.msra.mxu0 %v4282_v62  ;;  %v1200_v57 = vld [vmem:[%s9550_s4 + $0x1e0] sm:$0xff]  ;;  %v1211_v58 = vld [vmem:[%s9550_s4 + $0x238] sm:$0xff]  ;;  %v1205_v56 = vld [vmem:[%s9550_s4 + $0x208] sm:$0xff] }
  0x84   : > { %996 = vmatmul.mubr.f32.gmra.mrb[16].mxu0 %v5746_v25  ;;  %4219 = vmatpush1.bf16.msra.mxu1 %v4218_v63  ;;  %v1182_v25 = vld [vmem:[%s9550_s4 + $0x150] sm:$0xff]  ;;  %v1209_v53 = vld [vmem:[%s9550_s4 + $0x228] sm:$0xff]  ;;  %v4234_v15 = vpack.c.bf16 %v1200_v57, %v1196_v30  ;;  %v4300_v33 = vpack.c.bf16 %v1211_v58, %v1207_v38  ;;  %v1204_v45 = vld [vmem:[%s9550_s4 + $0x200] sm:$0xff] }
  0x85   : > { %1001 = vmatprep.mubr.f32.mxu0 %v5760_v27  ;;  %4285 = vmatprep.subr.bf16.mxu0 %v4284_v17  ;;  %v4224_v27 = vpack.c.bf16 %v1185_v23, %v1181_v14  ;;  %v4290_v31 = vpack.c.bf16 %v1186_v55, %v1182_v25  ;;  %v1210_v28 = vld [vmem:[%s9550_s4 + $0x230] sm:$0xff]  ;;  %v1208_v44 = vld [vmem:[%s9550_s4 + $0x220] sm:$0xff]  ;;  %v1215_v18 = vld [vmem:[%s9550_s4 + $0x258] sm:$0xff] }
  0x86   : > { %4221 = vmatprep.subr.bf16.mxu1 %v4220_v32  ;;  %v1219_v62 = vld [vmem:[%s9550_s4 + $0x278] sm:$0xff]  ;;  %v1213_v63 = vld [vmem:[%s9550_s4 + $0x248] sm:$0xff]  ;;  %v4238_v3 = vpack.c.bf16 %v1208_v44, %v1204_v45  ;;  %v1218_v32 = vld [vmem:[%s9550_s4 + $0x270] sm:$0xff] }
  0x87   : > { %4287 = vmatpush1.bf16.msra.mxu0 %v4286_v37  ;;  %v1217_v17 = vld [vmem:[%s9550_s4 + $0x268] sm:$0xff]  ;;  %v4304_v13 = vpack.c.bf16 %v1219_v62, %v1215_v18  ;;  %v1212_v59 = vld [vmem:[%s9550_s4 + $0x240] sm:$0xff]  ;;  %v1223_v8 = vld [vmem:[%s9550_s4 + $0x298] sm:$0xff] }
  0x88   : > { %1002 = vmatmul.mubr.f32.gmra.mrb[18].mxu0 %v5772_v20  ;;  %4223 = vmatpush1.bf16.msra.mxu1 %v4222_v26  ;;  %v1190_v20 = vld [vmem:[%s9550_s4 + $0x190] sm:$0xff]  ;;  %v1216_v1 = vld [vmem:[%s9550_s4 + $0x260] sm:$0xff]  ;;  %v1227_v14 = vld [vmem:[%s9550_s4 + $0x2b8] sm:$0xff] }
  0x89   : > { %1007 = vmatprep.mubr.f32.mxu0 %v5784_v6  ;;  %4289 = vmatprep.subr.bf16.mxu0 %v4288_v10  ;;  %v4228_v6 = vpack.c.bf16 %v1193_v0, %v1189_v24  ;;  %v4294_v43 = vpack.c.bf16 %v1194_v2, %v1190_v20  ;;  %v1221_v23 = vld [vmem:[%s9550_s4 + $0x288] sm:$0xff]  ;;  %v4242_v10 = vpack.c.bf16 %v1216_v1, %v1212_v59  ;;  %v1226_v55 = vld [vmem:[%s9550_s4 + $0x2b0] sm:$0xff]  ;;  %v1220_v35 = vld [vmem:[%s9550_s4 + $0x280] sm:$0xff] }
  0x8a   : > { %4225 = vmatprep.subr.bf16.mxu1 %v4224_v27  ;;  %v1225_v37 = vld [vmem:[%s9550_s4 + $0x2a8] sm:$0xff]  ;;  %v4308_v25 = vpack.c.bf16 %v1227_v14, %v1223_v8  ;;  %v1224_v27 = vld [vmem:[%s9550_s4 + $0x2a0] sm:$0xff]  ;;  %v1231_v60 = vld [vmem:[%s9550_s4 + $0x2d8] sm:$0xff] }
  0x8b   : > { %4291 = vmatpush1.bf16.msra.mxu0 %v4290_v31  ;;  %v1235_v29 = vld [vmem:[%s9550_s4 + $0x2f8] sm:$0xff]  ;;  %v1229_v41 = vld [vmem:[%s9550_s4 + $0x2c8] sm:$0xff]  ;;  %v4246_v31 = vpack.c.bf16 %v1224_v27, %v1220_v35  ;;  %v1228_v20 = vld [vmem:[%s9550_s4 + $0x2c0] sm:$0xff] }
  0x8c   : > { %1008 = vmatmul.mubr.f32.gmra.mrb[20].mxu0 %v5801_v52  ;;  %4227 = vmatpush1.bf16.msra.mxu1 %v4226_v5  ;;  %v1198_v52 = vld [vmem:[%s9550_s4 + $0x1d0] sm:$0xff]  ;;  %v1233_v24 = vld [vmem:[%s9550_s4 + $0x2e8] sm:$0xff]  ;;  %v4312_v5 = vpack.c.bf16 %v1235_v29, %v1231_v60  ;;  %v1232_v2 = vld [vmem:[%s9550_s4 + $0x2e0] sm:$0xff] }
  0x8d   : > { %1013 = vmatprep.mubr.f32.mxu0 %v5808_v36  ;;  %4293 = vmatprep.subr.bf16.mxu0 %v4292_v48  ;;  %v4232_v36 = vpack.c.bf16 %v1201_v21, %v1197_v16  ;;  %v4298_v46 = vpack.c.bf16 %v1202_v19, %v1198_v52  ;;  %v1234_v48 = vld [vmem:[%s9550_s4 + $0x2f0] sm:$0xff]  ;;  %v1239_v4 = vld [vmem:[%s9550_s4 + $0x318] sm:$0xff]  ;;  %v1237_v49 = vld [vmem:[%s9550_s4 + $0x308] sm:$0xff]  ;;  %v4250_v16 = vpack.c.bf16 %v1232_v2, %v1228_v20 }
  0x8e   : > { %4229 = vmatprep.subr.bf16.mxu1 %v4228_v6  ;;  %v1243_v6 = vld [vmem:[%s9550_s4 + $0x338] sm:$0xff]  ;;  %v1241_v42 = vld [vmem:[%s9550_s4 + $0x328] sm:$0xff]  ;;  %v1240_v52 = vld [vmem:[%s9550_s4 + $0x320] sm:$0xff] }
  0x8f   : > { %4295 = vmatpush1.bf16.msra.mxu0 %v4294_v43  ;;  %v4316_v21 = vpack.c.bf16 %v1243_v6, %v1239_v4  ;;  %v1238_v43 = vld [vmem:[%s9550_s4 + $0x310] sm:$0xff]  ;;  %v1247_v19 = vld [vmem:[%s9550_s4 + $0x358] sm:$0xff]  ;;  %v1249_v57 = vld [vmem:[%s9550_s4 + $0x368] sm:$0xff] }
  0x90   : > { %1014 = vmatmul.mubr.f32.gmra.mrb[22].mxu0 %v5820_v7  ;;  %4231 = vmatpush1.bf16.msra.mxu1 %v4230_v22  ;;  %v1206_v7 = vld [vmem:[%s9550_s4 + $0x210] sm:$0xff]  ;;  %v1236_v22 = vld [vmem:[%s9550_s4 + $0x300] sm:$0xff]  ;;  %v1251_v30 = vld [vmem:[%s9550_s4 + $0x378] sm:$0xff] }
  0x91   : > { %1019 = vmatprep.mubr.f32.mxu0 %v5832_v34  ;;  %4297 = vmatprep.subr.bf16.mxu0 %v4296_v39  ;;  %v4236_v34 = vpack.c.bf16 %v1209_v53, %v1205_v56  ;;  %v4302_v12 = vpack.c.bf16 %v1210_v28, %v1206_v7  ;;  %v4252_v39 = vpack.c.bf16 %v1241_v42, %v1237_v49  ;;  %v1246_v53 = vld [vmem:[%s9550_s4 + $0x350] sm:$0xff]  ;;  %v1248_v7 = vld [vmem:[%s9550_s4 + $0x360] sm:$0xff]  ;;  %v1255_v28 = vld [vmem:[%s9550_s4 + $0x398] sm:$0xff] }
  0x92   : > { %4233 = vmatprep.subr.bf16.mxu1 %v4232_v36  ;;  %v1245_v36 = vld [vmem:[%s9550_s4 + $0x348] sm:$0xff]  ;;  %v4254_v58 = vpack.c.bf16 %v1240_v52, %v1236_v22  ;;  %v4320_v56 = vpack.c.bf16 %v1251_v30, %v1247_v19  ;;  %v1259_v45 = vld [vmem:[%s9550_s4 + $0x3b8] sm:$0xff]  ;;  %v2092_v49 = vld [vmem:[%s9552_s6] sm:$0xff] }
  0x93   : > { %4299 = vmatpush1.bf16.msra.mxu0 %v4298_v46  ;;  %v1250_v46 = vld [vmem:[%s9550_s4 + $0x370] sm:$0xff]  ;;  %v4324_v18 = vpack.c.bf16 %v1259_v45, %v1255_v28  ;;  %v1253_v62 = vld [vmem:[%s9550_s4 + $0x388] sm:$0xff]  ;;  %v1267_v1 = vld [vmem:[%s9550_s4 + $0x3f8] sm:$0xff] }
  0x94   : > { %1020 = vmatmul.mubr.f32.gmra.mrb[24].mxu0 %v5845_v51  ;;  %4235 = vmatpush1.bf16.msra.mxu1 %v4234_v15  ;;  %v1214_v51 = vld [vmem:[%s9550_s4 + $0x250] sm:$0xff]  ;;  %v1244_v15 = vld [vmem:[%s9550_s4 + $0x340] sm:$0xff]  ;;  %v1261_v8 = vld [vmem:[%s9550_s4 + $0x3c8] sm:$0xff] }
  0x95   : > { %1025 = vmatprep.mubr.f32.mxu0 %v5871_v50  ;;  %4301 = vmatprep.subr.bf16.mxu0 %v4300_v33  ;;  %v4240_v50 = vpack.c.bf16 %v1217_v17, %v1213_v63  ;;  %v4306_v26 = vpack.c.bf16 %v1218_v32, %v1214_v51  ;;  %v4256_v33 = vpack.c.bf16 %v1249_v57, %v1245_v36  ;;  %v1257_v63 = vld [vmem:[%s9550_s4 + $0x3a8] sm:$0xff]  ;;  %v1256_v32 = vld [vmem:[%s9550_s4 + $0x3a0] sm:$0xff]  ;;  %v2095_v29 = vld [vmem:[%s9552_s6 + $0x18] sm:$0xff] }
  0x96   : > { %4237 = vmatprep.subr.bf16.mxu1 %v4236_v34  ;;  %v4322_v34 = vpack.c.bf16 %v1250_v46, %v1246_v53  ;;  %v4258_v44 = vpack.c.bf16 %v1248_v7, %v1244_v15  ;;  %v4260_v17 = vpack.c.bf16 %v1257_v63, %v1253_v62  ;;  %v2097_v27 = vld [vmem:[%s9552_s6 + $0x28] sm:$0xff]  ;;  %v2096_v42 = vld [vmem:[%s9552_s6 + $0x20] sm:$0xff]  ;;  %v2107_v52 = vld [vmem:[%s9552_s6 + $0x78] sm:$0xff] }
  0x97   : > { %4303 = vmatpush1.bf16.msra.mxu0 %v4302_v12  ;;  %v1254_v12 = vld [vmem:[%s9550_s4 + $0x390] sm:$0xff]  ;;  %v2105_v22 = vld [vmem:[%s9552_s6 + $0x68] sm:$0xff]  ;;  %v6355_v36 = vld [vmem:[%s9552_s6 + $0x40] sm:$0xff] }
  0x98   : > { %1026 = vmatmul.mubr.f32.gmra.mrb[26].mxu0 %v5887_v54  ;;  %4239 = vmatpush1.bf16.msra.mxu1 %v4238_v3  ;;  %v1222_v54 = vld [vmem:[%s9550_s4 + $0x290] sm:$0xff]  ;;  %v2104_v46 = vld [vmem:[%s9552_s6 + $0x60] sm:$0xff]  ;;  %v2111_v63 = vld [vmem:[%s9552_s6 + $0x98] sm:$0xff] }
  0x99   : > { %1031 = vmatprep.mubr.f32.mxu0 %v5909_v61  ;;  %4305 = vmatprep.subr.bf16.mxu0 %v4304_v13  ;;  %v4244_v61 = vpack.c.bf16 %v1225_v37, %v1221_v23  ;;  %v4310_v0 = vpack.c.bf16 %v1226_v55, %v1222_v54  ;;  %v1258_v3 = vld [vmem:[%s9550_s4 + $0x3b0] sm:$0xff]  ;;  %v1252_v13 = vld [vmem:[%s9550_s4 + $0x380] sm:$0xff]  ;;  %v1265_v23 = vld [vmem:[%s9550_s4 + $0x3e8] sm:$0xff] }
  0x9a   : > { %4241 = vmatprep.subr.bf16.mxu1 %v4240_v50  ;;  %v4326_v51 = vpack.c.bf16 %v1258_v3, %v1254_v12  ;;  %v4262_v59 = vpack.c.bf16 %v1256_v32, %v1252_v13  ;;  %v1263_v50 = vld [vmem:[%s9550_s4 + $0x3d8] sm:$0xff]  ;;  %v1262_v37 = vld [vmem:[%s9550_s4 + $0x3d0] sm:$0xff]  ;;  %v1260_v54 = vld [vmem:[%s9550_s4 + $0x3c0] sm:$0xff]  ;;  %v4338_v13 = vpack.c.bf16 %v2104_v46, %v6355_v36 }
  0x9b   : > { %4307 = vmatpush1.bf16.msra.mxu0 %v4306_v26  ;;  %v4328_v14 = vpack.c.bf16 %v1267_v1, %v1263_v50  ;;  %v1266_v26 = vld [vmem:[%s9550_s4 + $0x3f0] sm:$0xff]  ;;  %v1264_v55 = vld [vmem:[%s9550_s4 + $0x3e0] sm:$0xff] }
  0x9c   : > { %1032 = vmatmul.mubr.f32.gmra.mrb[28].mxu0 %v5931_v11  ;;  %4243 = vmatpush1.bf16.msra.mxu1 %v4242_v10  ;;  %v1230_v11 = vld [vmem:[%s9550_s4 + $0x2d0] sm:$0xff]  ;;  %v4264_v10 = vpack.c.bf16 %v1265_v23, %v1261_v8  ;;  %v4266_v35 = vpack.c.bf16 %v1264_v55, %v1260_v54  ;;  %v6386_v32 = vld [vmem:[%s9552_s6 + $0x80] sm:$0xff]  ;;  %v2117_v54 = vld [vmem:[%s9552_s6 + $0xc8] sm:$0xff] }
  0x9d   : > { %1037 = vmatprep.mubr.f32.mxu0 %v5943_v47  ;;  %4309 = vmatprep.subr.bf16.mxu0 %v4308_v25  ;;  %v4248_v47 = vpack.c.bf16 %v1233_v24, %v1229_v41  ;;  %v4314_v9 = vpack.c.bf16 %v1234_v48, %v1230_v11  ;;  %v4330_v25 = vpack.c.bf16 %v1266_v26, %v1262_v37  ;;  %v2099_v41 = vld [vmem:[%s9552_s6 + $0x38] sm:$0xff]  ;;  %v871_v11 = vld [vmem:[%s9549_s3] sm:$0x3]  ;;  %v2102_v15 = vld [vmem:[%s9552_s6 + $0x50] sm:$0xff] }
  0x9e   : > { %4245 = vmatprep.subr.bf16.mxu1 %v4244_v61  ;;  %v2093_v61 = vld [vmem:[%s9552_s6 + $0x8] sm:$0xff]  ;;  %v4460_v24 = vpack.c.bf16 %v2099_v41, %v2095_v29  ;;  %v2110_v23 = vld [vmem:[%s9552_s6 + $0x90] sm:$0xff] }
  0x9f   : > { %4311 = vmatpush1.bf16.msra.mxu0 %v4310_v0  ;;  %v4332_v60 = vpack.c.bf16 %v2097_v27, %v2093_v61  ;;  %v873_v0 = vlaneseq  ;;  %v2114_v37 = vld [vmem:[%s9552_s6 + $0xb0] sm:$0xff]  ;;  %v2121_v55 = vld [vmem:[%s9552_s6 + $0xe8] sm:$0xff]  ;;  %v2119_v61 = vld [vmem:[%s9552_s6 + $0xd8] sm:$0xff] }
  0xa0   : > { %1038 = vmatmul.mubr.f32.gmra.mrb[30].mxu0 %v5973_v40  ;;  %4247 = vmatpush1.bf16.msra.mxu1 %v4246_v31  ;;  %v1242_v40 = vld [vmem:[%s9550_s4 + $0x330] sm:$0xff]  ;;  %v2123_v27 = vld [vmem:[%s9552_s6 + $0xf8] sm:$0xff] }
  0xa1   : > { %4313 = vmatprep.subr.bf16.mxu0 %v4312_v5  ;;  %4249 = vmatprep.subr.bf16.mxu1 %v4248_v47  ;;  %v4318_v38 = vpack.c.bf16 %v1242_v40, %v1238_v43  ;;  %v6303_v31 = vshrl.u32 %v873_v0, 7  ;;  %v2101_v43 = vld [vmem:[%s9552_s6 + $0x48] sm:$0xff]  ;;  %v6418_v0 = vld [vmem:[%s9552_s6 + $0xc0] sm:$0xff] }
  0xa2   : > { %v4336_v45 = vpack.c.bf16 %v2105_v22, %v2101_v43  ;;  %v4472_v43 = vpack.c.bf16 %v2123_v27, %v2119_v61  ;;  %v2129_v22 = vld [vmem:[%s9552_s6 + $0x128] sm:$0xff] }
  0xa3   : > { %4315 = vmatpush1.bf16.msra.mxu0 %v4314_v9  ;;  %9720 = vst [vmem:[#allocation6_spill] sm:$0xff] %v6303_v31  ;;  %v6306_v5 = vsub.s32 0, %v6303_v31  ;;  %v6312_v48 = vsub.s32 1, %v6303_v31 }
  0xa4   : > { %4251 = vmatpush1.bf16.msra.mxu1 %v4250_v16  ;;  %4317 = vmatprep.subr.bf16.mxu0 %v4316_v21  ;;  %v2094_v16 = vld [vmem:[%s9552_s6 + $0x10] sm:$0xff] }
  0xa5   : > { %4253 = vmatprep.subr.bf16.mxu1 %v4252_v39  ;;  %9721 = vst [vmem:[#allocation5_spill] sm:$0xff] %v6306_v5  ;;  %9722 = vst [vmem:[#allocation8_spill] sm:$0xff] %v6312_v48  ;;  %v6315_v20 = vrot.slane %v871_v11, %v6306_v5  ;;  %v6318_v47 = vrot.slane %v871_v11, %v6312_v48  ;;  %v2098_v21 = vld [vmem:[%s9552_s6 + $0x30] sm:$0xff]  ;;  %v2103_v39 = vld [vmem:[%s9552_s6 + $0x58] sm:$0xff] }
  0xa6   : > { %v4462_v53 = vpack.c.bf16 %v2098_v21, %v2094_v16 }
  0xa7   : > { %4319 = vmatpush1.bf16.msra.mxu0 %v4318_v38 }
  0xa8   : > { %4255 = vmatpush1.bf16.msra.mxu1 %v4254_v58  ;;  %4321 = vmatprep.subr.bf16.mxu0 %v4320_v56  ;;  %v4334_v56 = vpack.c.bf16 %v2096_v42, %v2092_v49  ;;  %v2120_v49 = vld [vmem:[%s9552_s6 + $0xe0] sm:$0xff]  ;;  %v2118_v42 = vld [vmem:[%s9552_s6 + $0xd0] sm:$0xff] }
  0xa9   : > { %4257 = vmatprep.subr.bf16.mxu1 %v4256_v33  ;;  %v2106_v33 = vld [vmem:[%s9552_s6 + $0x70] sm:$0xff] }
  0xab   : > { %4323 = vmatpush1.bf16.msra.mxu0 %v4322_v34  ;;  %v4464_v34 = vpack.c.bf16 %v2107_v52, %v2103_v39  ;;  %v2127_v52 = vld [vmem:[%s9552_s6 + $0x118] sm:$0xff] }
  0xac   : > { %4259 = vmatpush1.bf16.msra.mxu1 %v4258_v44  ;;  %4325 = vmatprep.subr.bf16.mxu0 %v4324_v18  ;;  %v2109_v44 = vld [vmem:[%s9552_s6 + $0x88] sm:$0xff] }
  0xad   : > { %4261 = vmatprep.subr.bf16.mxu1 %v4260_v17  ;;  %v2113_v18 = vld [vmem:[%s9552_s6 + $0xa8] sm:$0xff]  ;;  %v2115_v17 = vld [vmem:[%s9552_s6 + $0xb8] sm:$0xff] }
  0xae   : > { %v4340_v8 = vpack.c.bf16 %v2113_v18, %v2109_v44  ;;  %v2133_v18 = vld [vmem:[%s9552_s6 + $0x148] sm:$0xff] }
  0xaf   : > { %4327 = vmatpush1.bf16.msra.mxu0 %v4326_v51  ;;  %v4466_v51 = vpack.c.bf16 %v2106_v33, %v2102_v15  ;;  %v2128_v33 = vld [vmem:[%s9552_s6 + $0x120] sm:$0xff] }
  0xb0   : > { %4263 = vmatpush1.bf16.msra.mxu1 %v4262_v59  ;;  %4329 = vmatprep.subr.bf16.mxu0 %v4328_v14  ;;  %v2112_v14 = vld [vmem:[%s9552_s6 + $0xa0] sm:$0xff] }
  0xb1   : > { %4265 = vmatprep.subr.bf16.mxu1 %v4264_v10  ;;  %v4342_v41 = vpack.c.bf16 %v2112_v14, %v6386_v32  ;;  %v2132_v14 = vld [vmem:[%s9552_s6 + $0x140] sm:$0xff] }
  0xb3   : > { %4331 = vmatpush1.bf16.msra.mxu0 %v4330_v25  ;;  %v4468_v25 = vpack.c.bf16 %v2115_v17, %v2111_v63  ;;  %v2135_v17 = vld [vmem:[%s9552_s6 + $0x158] sm:$0xff] }
  0xb4   : > { %4267 = vmatpush1.bf16.msra.mxu1 %v4266_v35  ;;  %4461 = vmatprep.subr.bf16.mxu0 %v4460_v24  ;;  %v4470_v24 = vpack.c.bf16 %v2114_v37, %v2110_v23  ;;  %v2136_v23 = vld [vmem:[%s9552_s6 + $0x160] sm:$0xff] }
  0xb5   : > { %4333 = vmatprep.subr.bf16.mxu1 %v4332_v60  ;;  %v4354_v27 = vpack.c.bf16 %v2136_v23, %v2132_v14 }
 0x137   : > { %v949_v2 = vpop.f32.mrb[0].mxu0 }
 0x138   : > { %v950_v4 = vadd.f32 %v949_v2, %v6315_v20  ;;  %v951_v6 = vpop.f32.mrb[1].mxu0 }
 0x139   : > { %v952_v9 = vadd.f32 %v951_v6, %v6318_v47  ;;  %v4344_v6 = vpack.c.bf16 %v2121_v55, %v2117_v54  ;;  %v2138_v54 = vld [vmem:[%s9552_s6 + $0x170] sm:$0xff] }
 0x13a   : > { %vm1044_vm0 = vcmp.gt.f32.partialorder %v950_v4, 0.0  ;;  %v1076_v40 = vmul.f32 0.2, %v950_v4 }
 0x13b   : > { %vm1045_vm1 = vcmp.gt.f32.partialorder %v952_v9, 0.0  ;;  %v1077_v19 = vmul.f32 0.2, %v952_v9  ;;  %v955_v30 = vpop.f32.mrb[2].mxu0 }
 0x13c   : > { %v1108_v57 = vsel %vm1044_vm0, %v950_v4, %v1076_v40  ;;  %v956_v38 = vadd.f32 %v955_v30, %v6315_v20  ;;  %v957_v58 = vpop.f32.mrb[3].mxu0  ;;  %v2125_v40 = vld [vmem:[%s9552_s6 + $0x108] sm:$0xff] }
 0x13d   : > { %3864 = vst [vmem:[%s6341_s11] sm:$0xff] %v1108_v57  ;;  %v1109_v7 = vsel %vm1045_vm1, %v952_v9, %v1077_v19  ;;  %v958_v28 = vadd.f32 %v957_v58, %v6318_v47  ;;  %v2122_v9 = vld [vmem:[%s9552_s6 + $0xf0] sm:$0xff]  ;;  %v2131_v19 = vld [vmem:[%s9552_s6 + $0x138] sm:$0xff]  ;;  %v2124_v58 = vld [vmem:[%s9552_s6 + $0x100] sm:$0xff]  ;;  %v4348_v15 = vpack.c.bf16 %v2129_v22, %v2125_v40 }
 0x13e   : > { %3865 = vst [vmem:[%s6341_s11 + $0x8] sm:$0xff] %v1109_v7  ;;  %vm1046_vm2 = vcmp.gt.f32.partialorder %v956_v38, 0.0  ;;  %v1078_v62 = vmul.f32 0.2, %v956_v38  ;;  %1354 = vmatprep.mubr.f32.mxu1 %v1109_v7  ;;  %1515 = vmatprep.mubr.f32.mxu0 %v1109_v7  ;;  %v2126_v7 = vld [vmem:[%s9552_s6 + $0x110] sm:$0xff]  ;;  %v4476_v44 = vpack.c.bf16 %v2131_v19, %v2127_v52 }
 0x13f   : > { %vm1047_vm3 = vcmp.gt.f32.partialorder %v958_v28, 0.0  ;;  %v1079_v12 = vmul.f32 0.2, %v958_v28  ;;  %v961_v3 = vpop.f32.mrb[4].mxu0  ;;  %1355 = vmatmul.mubr.f32.vlgmr.msra.gmra.mrb[0].mxu1 %v1108_v57  ;;  %1516 = vmatmul.mubr.f32.vlgmr.msra.gmra.mrb[32].mxu0 %v1108_v57  ;;  %v4346_v57 = vpack.c.bf16 %v2120_v49, %v6418_v0 }
 0x140   : > { %v1110_v59 = vsel %vm1046_vm2, %v956_v38, %v1078_v62  ;;  %v962_v50 = vadd.f32 %v961_v3, %v6315_v20  ;;  %v963_v1 = vpop.f32.mrb[5].mxu0  ;;  %4335 = vmatpush1.bf16.msra.mxu1 %v4334_v56  ;;  %4463 = vmatpush1.bf16.msra.mxu0 %v4462_v53  ;;  %v4474_v38 = vpack.c.bf16 %v2122_v9, %v2118_v42  ;;  %v2137_v62 = vld [vmem:[%s9552_s6 + $0x168] sm:$0xff] }
 0x141   : > { %3866 = vst [vmem:[%s6341_s11 + $0x10] sm:$0xff] %v1110_v59  ;;  %v1111_v26 = vsel %vm1047_vm3, %v958_v28, %v1079_v12  ;;  %v964_v10 = vadd.f32 %v963_v1, %v6318_v47  ;;  %4337 = vmatprep.subr.bf16.mxu1 %v4336_v45  ;;  %4465 = vmatprep.subr.bf16.mxu0 %v4464_v34  ;;  %v2130_v28 = vld [vmem:[%s9552_s6 + $0x130] sm:$0xff]  ;;  %v2139_v12 = vld [vmem:[%s9552_s6 + $0x178] sm:$0xff] }
 0x142   : > { %3867 = vst [vmem:[%s6341_s11 + $0x18] sm:$0xff] %v1111_v26  ;;  %vm1048_vm4 = vcmp.gt.f32.partialorder %v962_v50, 0.0  ;;  %v1080_v35 = vmul.f32 0.2, %v962_v50  ;;  %1360 = vmatprep.mubr.f32.mxu1 %v1111_v26  ;;  %1521 = vmatprep.mubr.f32.mxu0 %v1111_v26  ;;  %v4478_v32 = vpack.c.bf16 %v2130_v28, %v2126_v7 }
 0x143   : > { %vm1049_vm5 = vcmp.gt.f32.partialorder %v964_v10, 0.0  ;;  %v1081_v60 = vmul.f32 0.2, %v964_v10  ;;  %v967_v29 = vpop.f32.mrb[6].mxu0  ;;  %1361 = vmatmul.mubr.f32.gmra.mrb[2].mxu1 %v1110_v59  ;;  %1522 = vmatmul.mubr.f32.gmra.mrb[34].mxu0 %v1110_v59 }
 0x144   : > { %v1112_v11 = vsel %vm1048_vm4, %v962_v50, %v1080_v35  ;;  %v968_v2 = vadd.f32 %v967_v29, %v6315_v20  ;;  %v969_v4 = vpop.f32.mrb[7].mxu0  ;;  %4339 = vmatpush1.bf16.msra.mxu1 %v4338_v13  ;;  %4467 = vmatpush1.bf16.msra.mxu0 %v4466_v51  ;;  %v4350_v51 = vpack.c.bf16 %v2128_v33, %v2124_v58 }
 0x145   : > { %3868 = vst [vmem:[%s6341_s11 + $0x20] sm:$0xff] %v1112_v11  ;;  %v1113_v16 = vsel %vm1049_vm5, %v964_v10, %v1081_v60  ;;  %v970_v21 = vadd.f32 %v969_v4, %v6318_v47  ;;  %4341 = vmatprep.subr.bf16.mxu1 %v4340_v8  ;;  %4469 = vmatprep.subr.bf16.mxu0 %v4468_v25  ;;  %v2134_v25 = vld [vmem:[%s9552_s6 + $0x150] sm:$0xff] }
 0x146   : > { %3869 = vst [vmem:[%s6341_s11 + $0x28] sm:$0xff] %v1113_v16  ;;  %vm1050_vm6 = vcmp.gt.f32.partialorder %v968_v2, 0.0  ;;  %v1082_v39 = vmul.f32 0.2, %v968_v2  ;;  %1366 = vmatprep.mubr.f32.mxu1 %v1113_v16  ;;  %1527 = vmatprep.mubr.f32.mxu0 %v1113_v16  ;;  %v4352_v8 = vpack.c.bf16 %v2137_v62, %v2133_v18  ;;  %v4480_v10 = vpack.c.bf16 %v2139_v12, %v2135_v17 }
 0x147   : > { %vm1051_vm7 = vcmp.gt.f32.partialorder %v970_v21, 0.0  ;;  %v1083_v30 = vmul.f32 0.2, %v970_v21  ;;  %v973_v36 = vpop.f32.mrb[8].mxu0  ;;  %1367 = vmatmul.mubr.f32.gmra.mrb[4].mxu1 %v1112_v11  ;;  %1528 = vmatmul.mubr.f32.gmra.mrb[36].mxu0 %v1112_v11 }
 0x148   : > { %v1114_v56 = vsel %vm1050_vm6, %v968_v2, %v1082_v39  ;;  %v974_v53 = vadd.f32 %v973_v36, %v6315_v20  ;;  %v975_v46 = vpop.f32.mrb[9].mxu0  ;;  %4343 = vmatpush1.bf16.msra.mxu1 %v4342_v41  ;;  %4471 = vmatpush1.bf16.msra.mxu0 %v4470_v24  ;;  %v4482_v24 = vpack.c.bf16 %v2138_v54, %v2134_v25 }
 0x149   : > { %3870 = vst [vmem:[%s6341_s11 + $0x30] sm:$0xff] %v1114_v56  ;;  %v1115_v45 = vsel %vm1051_vm7, %v970_v21, %v1083_v30  ;;  %v976_v34 = vadd.f32 %v975_v46, %v6318_v47  ;;  %4345 = vmatprep.subr.bf16.mxu1 %v4344_v6  ;;  %4473 = vmatprep.subr.bf16.mxu0 %v4472_v43 }
 0x14a   : > { %3871 = vst [vmem:[%s6341_s11 + $0x38] sm:$0xff] %v1115_v45  ;;  %vm1052_vm8 = vcmp.gt.f32.partialorder %v974_v53, 0.0  ;;  %v1084_v63 = vmul.f32 0.2, %v974_v53  ;;  %1372 = vmatprep.mubr.f32.mxu1 %v1115_v45  ;;  %1533 = vmatprep.mubr.f32.mxu0 %v1115_v45 }
 0x14b   : > { %vm1053_vm9 = vcmp.gt.f32.partialorder %v976_v34, 0.0  ;;  %v1085_v3 = vmul.f32 0.2, %v976_v34  ;;  %v979_v13 = vpop.f32.mrb[10].mxu0  ;;  %1373 = vmatmul.mubr.f32.gmra.mrb[6].mxu1 %v1114_v56  ;;  %1534 = vmatmul.mubr.f32.gmra.mrb[38].mxu0 %v1114_v56 }
 0x14c   : > { %v1116_v59 = vsel %vm1052_vm8, %v974_v53, %v1084_v63  ;;  %v980_v50 = vadd.f32 %v979_v13, %v6315_v20  ;;  %v981_v1 = vpop.f32.mrb[11].mxu0  ;;  %4347 = vmatpush1.bf16.msra.mxu1 %v4346_v57  ;;  %4475 = vmatpush1.bf16.msra.mxu0 %v4474_v38 }
 0x14d   : > { %3872 = vst [vmem:[%s6341_s11 + $0x40] sm:$0xff] %v1116_v59  ;;  %v1117_v37 = vsel %vm1053_vm9, %v976_v34, %v1085_v3  ;;  %v982_v26 = vadd.f32 %v981_v1, %v6318_v47  ;;  %4349 = vmatprep.subr.bf16.mxu1 %v4348_v15  ;;  %4477 = vmatprep.subr.bf16.mxu0 %v4476_v44 }
 0x14e   : > { %3873 = vst [vmem:[%s6341_s11 + $0x48] sm:$0xff] %v1117_v37  ;;  %vm1054_vm10 = vcmp.gt.f32.partialorder %v980_v50, 0.0  ;;  %v1086_v55 = vmul.f32 0.2, %v980_v50  ;;  %1378 = vmatprep.mubr.f32.mxu1 %v1117_v37  ;;  %1539 = vmatprep.mubr.f32.mxu0 %v1117_v37 }
 0x14f   : > { %vm1055_vm11 = vcmp.gt.f32.partialorder %v982_v26, 0.0  ;;  %v1087_v35 = vmul.f32 0.2, %v982_v26  ;;  %v985_v61 = vpop.f32.mrb[12].mxu0  ;;  %1379 = vmatmul.mubr.f32.gmra.mrb[8].mxu1 %v1116_v59  ;;  %1540 = vmatmul.mubr.f32.gmra.mrb[40].mxu0 %v1116_v59 }
 0x150   : > { %v1118_v60 = vsel %vm1054_vm10, %v980_v50, %v1086_v55  ;;  %v986_v29 = vadd.f32 %v985_v61, %v6315_v20  ;;  %v987_v41 = vpop.f32.mrb[13].mxu0  ;;  %4351 = vmatpush1.bf16.msra.mxu1 %v4350_v51  ;;  %4479 = vmatpush1.bf16.msra.mxu0 %v4478_v32 }
 0x151   : > { %3874 = vst [vmem:[%s6341_s11 + $0x50] sm:$0xff] %v1118_v60  ;;  %v1119_v0 = vsel %vm1055_vm11, %v982_v26, %v1087_v35  ;;  %v988_v11 = vadd.f32 %v987_v41, %v6318_v47  ;;  %4353 = vmatprep.subr.bf16.mxu1 %v4352_v8  ;;  %4481 = vmatprep.subr.bf16.mxu0 %v4480_v10 }
 0x152   : > { %3875 = vst [vmem:[%s6341_s11 + $0x58] sm:$0xff] %v1119_v0  ;;  %vm1056_vm12 = vcmp.gt.f32.partialorder %v986_v29, 0.0  ;;  %v1088_v2 = vmul.f32 0.2, %v986_v29  ;;  %1384 = vmatprep.mubr.f32.mxu1 %v1119_v0  ;;  %1545 = vmatprep.mubr.f32.mxu0 %v1119_v0 }
 0x153   : > { %vm1057_vm13 = vcmp.gt.f32.partialorder %v988_v11, 0.0  ;;  %v1089_v4 = vmul.f32 0.2, %v988_v11  ;;  %v991_v6 = vpop.f32.mrb[14].mxu0  ;;  %1385 = vmatmul.mubr.f32.gmra.mrb[10].mxu1 %v1118_v60  ;;  %1546 = vmatmul.mubr.f32.gmra.mrb[42].mxu0 %v1118_v60 }
 0x154   : > { %v1120_v49 = vsel %vm1056_vm12, %v986_v29, %v1088_v2  ;;  %v992_v42 = vadd.f32 %v991_v6, %v6315_v20  ;;  %v993_v9 = vpop.f32.mrb[15].mxu0  ;;  %4355 = vmatpush1.bf16.msra.mxu1 %v4354_v27  ;;  %4483 = vmatpush1.bf16.msra.mxu0 %v4482_v24 }
 0x155   : > { %3876 = vst [vmem:[%s6341_s11 + $0x60] sm:$0xff] %v1120_v49  ;;  %v1121_v16 = vsel %vm1057_vm13, %v988_v11, %v1089_v4  ;;  %v994_v21 = vadd.f32 %v993_v9, %v6318_v47 }
 0x156   : > { %3877 = vst [vmem:[%s6341_s11 + $0x68] sm:$0xff] %v1121_v16  ;;  %vm1058_vm14 = vcmp.gt.f32.partialorder %v992_v42, 0.0  ;;  %v1090_v43 = vmul.f32 0.2, %v992_v42  ;;  %1390 = vmatprep.mubr.f32.mxu1 %v1121_v16  ;;  %1551 = vmatprep.mubr.f32.mxu0 %v1121_v16 }
 0x157   : > { %vm1059_vm15 = vcmp.gt.f32.partialorder %v994_v21, 0.0  ;;  %v1091_v40 = vmul.f32 0.2, %v994_v21  ;;  %v997_v22 = vpop.f32.mrb[16].mxu0  ;;  %1391 = vmatmul.mubr.f32.gmra.mrb[12].mxu1 %v1120_v49  ;;  %1552 = vmatmul.mubr.f32.gmra.mrb[44].mxu0 %v1120_v49 }
 0x158   : > { %v1122_v39 = vsel %vm1058_vm14, %v992_v42, %v1090_v43  ;;  %v998_v52 = vadd.f32 %v997_v22, %v6315_v20  ;;  %v999_v19 = vpop.f32.mrb[17].mxu0 }
 0x159   : > { %3878 = vst [vmem:[%s6341_s11 + $0x70] sm:$0xff] %v1122_v39  ;;  %v1123_v30 = vsel %vm1059_vm15, %v994_v21, %v1091_v40  ;;  %v1000_v36 = vadd.f32 %v999_v19, %v6318_v47 }
 0x15a   : > { %3879 = vst [vmem:[%s6341_s11 + $0x78] sm:$0xff] %v1123_v30  ;;  %vm1060_vm0 = vcmp.gt.f32.partialorder %v998_v52, 0.0  ;;  %v1092_v57 = vmul.f32 0.2, %v998_v52  ;;  %1396 = vmatprep.mubr.f32.mxu1 %v1123_v30  ;;  %1557 = vmatprep.mubr.f32.mxu0 %v1123_v30 }
 0x15b   : > { %vm1061_vm1 = vcmp.gt.f32.partialorder %v1000_v36, 0.0  ;;  %v1093_v38 = vmul.f32 0.2, %v1000_v36  ;;  %v1003_v58 = vpop.f32.mrb[18].mxu0  ;;  %1397 = vmatmul.mubr.f32.gmra.mrb[14].mxu1 %v1122_v39  ;;  %1558 = vmatmul.mubr.f32.gmra.mrb[46].mxu0 %v1122_v39 }
 0x15c   : > { %v1124_v56 = vsel %vm1060_vm0, %v998_v52, %v1092_v57  ;;  %v1004_v53 = vadd.f32 %v1003_v58, %v6315_v20  ;;  %v1005_v46 = vpop.f32.mrb[19].mxu0  ;;  %v2143_v58 = vld [vmem:[%s9552_s6 + $0x198] sm:$0xff] }
 0x15d   : > { %3880 = vst [vmem:[%s6341_s11 + $0x80] sm:$0xff] %v1124_v56  ;;  %v1125_v15 = vsel %vm1061_vm1, %v1000_v36, %v1093_v38  ;;  %v1006_v33 = vadd.f32 %v1005_v46, %v6318_v47  ;;  %v2144_v46 = vld [vmem:[%s9552_s6 + $0x1a0] sm:$0xff] }
 0x15e   : > { %3881 = vst [vmem:[%s6341_s11 + $0x88] sm:$0xff] %v1125_v15  ;;  %vm1062_vm2 = vcmp.gt.f32.partialorder %v1004_v53, 0.0  ;;  %v1094_v7 = vmul.f32 0.2, %v1004_v53  ;;  %1402 = vmatprep.mubr.f32.mxu1 %v1125_v15  ;;  %1563 = vmatprep.mubr.f32.mxu0 %v1125_v15 }
 0x15f   : > { %vm1063_vm3 = vcmp.gt.f32.partialorder %v1006_v33, 0.0  ;;  %v1095_v28 = vmul.f32 0.2, %v1006_v33  ;;  %v1009_v45 = vpop.f32.mrb[20].mxu0  ;;  %1403 = vmatmul.mubr.f32.gmra.mrb[16].mxu1 %v1124_v56  ;;  %1564 = vmatmul.mubr.f32.gmra.mrb[48].mxu0 %v1124_v56  ;;  %v2147_v56 = vld [vmem:[%s9552_s6 + $0x1b8] sm:$0xff] }
 0x160   : > { %v1126_v34 = vsel %vm1062_vm2, %v1004_v53, %v1094_v7  ;;  %v1010_v44 = vadd.f32 %v1009_v45, %v6315_v20  ;;  %v1011_v18 = vpop.f32.mrb[21].mxu0  ;;  %v2140_v53 = vld [vmem:[%s9552_s6 + $0x180] sm:$0xff]  ;;  %v4484_v15 = vpack.c.bf16 %v2147_v56, %v2143_v58  ;;  %v2187_v58 = vld [vmem:[%s9552_s6 + $0x2f8] sm:$0xff] }
 0x161   : > { %3882 = vst [vmem:[%s6341_s11 + $0x90] sm:$0xff] %v1126_v34  ;;  %v1127_v62 = vsel %vm1063_vm3, %v1006_v33, %v1095_v28  ;;  %v1012_v63 = vadd.f32 %v1011_v18, %v6318_v47  ;;  %v2142_v33 = vld [vmem:[%s9552_s6 + $0x190] sm:$0xff]  ;;  %v4358_v7 = vpack.c.bf16 %v2144_v46, %v2140_v53  ;;  %v2151_v18 = vld [vmem:[%s9552_s6 + $0x1d8] sm:$0xff]  ;;  %v2180_v56 = vld [vmem:[%s9552_s6 + $0x2c0] sm:$0xff] }
 0x162   : > { %3883 = vst [vmem:[%s6341_s11 + $0x98] sm:$0xff] %v1127_v62  ;;  %vm1064_vm4 = vcmp.gt.f32.partialorder %v1010_v44, 0.0  ;;  %v1096_v17 = vmul.f32 0.2, %v1010_v44  ;;  %1408 = vmatprep.mubr.f32.mxu1 %v1127_v62  ;;  %1569 = vmatprep.mubr.f32.mxu0 %v1127_v62  ;;  %v2146_v28 = vld [vmem:[%s9552_s6 + $0x1b0] sm:$0xff]  ;;  %v2184_v53 = vld [vmem:[%s9552_s6 + $0x2e0] sm:$0xff] }
 0x163   : > { %vm1065_vm5 = vcmp.gt.f32.partialorder %v1012_v63, 0.0  ;;  %v1097_v12 = vmul.f32 0.2, %v1012_v63  ;;  %v1015_v3 = vpop.f32.mrb[22].mxu0  ;;  %1409 = vmatmul.mubr.f32.gmra.mrb[18].mxu1 %v1126_v34  ;;  %1570 = vmatmul.mubr.f32.gmra.mrb[50].mxu0 %v1126_v34  ;;  %v4486_v45 = vpack.c.bf16 %v2146_v28, %v2142_v33  ;;  %v2149_v34 = vld [vmem:[%s9552_s6 + $0x1c8] sm:$0xff]  ;;  %v4378_v33 = vpack.c.bf16 %v2184_v53, %v2180_v56  ;;  %v6796_v53 = vld [vmem:[%s9552_s6 + $0x400] sm:$0xff] }
 0x164   : > { %v1128_v13 = vsel %vm1064_vm4, %v1010_v44, %v1096_v17  ;;  %v1016_v51 = vadd.f32 %v1015_v3, %v6315_v20  ;;  %v1017_v32 = vpop.f32.mrb[23].mxu0  ;;  %4485 = vmatprep.subr.bf16.mxu0 %v4484_v15  ;;  %v2153_v44 = vld [vmem:[%s9552_s6 + $0x1e8] sm:$0xff]  ;;  %v2152_v17 = vld [vmem:[%s9552_s6 + $0x1e0] sm:$0xff]  ;;  %v2182_v15 = vld [vmem:[%s9552_s6 + $0x2d0] sm:$0xff] }
 0x165   : > { %3884 = vst [vmem:[%s6341_s11 + $0xa0] sm:$0xff] %v1128_v13  ;;  %v1129_v59 = vsel %vm1065_vm5, %v1012_v63, %v1097_v12  ;;  %v1018_v50 = vadd.f32 %v1017_v32, %v6318_v47  ;;  %4487 = vmatpush1.bf16.msra.mxu0 %v4486_v45  ;;  %v4360_v62 = vpack.c.bf16 %v2153_v44, %v2149_v34  ;;  %v2148_v63 = vld [vmem:[%s9552_s6 + $0x1c0] sm:$0xff]  ;;  %v2155_v12 = vld [vmem:[%s9552_s6 + $0x1f8] sm:$0xff]  ;;  %v2154_v32 = vld [vmem:[%s9552_s6 + $0x1f0] sm:$0xff] }
 0x166   : > { %3885 = vst [vmem:[%s6341_s11 + $0xa8] sm:$0xff] %v1129_v59  ;;  %vm1066_vm6 = vcmp.gt.f32.partialorder %v1016_v51, 0.0  ;;  %v1098_v1 = vmul.f32 0.2, %v1016_v51  ;;  %1414 = vmatprep.mubr.f32.mxu1 %v1129_v59  ;;  %1575 = vmatprep.mubr.f32.mxu0 %v1129_v59  ;;  %v4362_v3 = vpack.c.bf16 %v2152_v17, %v2148_v63  ;;  %v2189_v45 = vld [vmem:[%s9552_s6 + $0x308] sm:$0xff]  ;;  %v2188_v63 = vld [vmem:[%s9552_s6 + $0x300] sm:$0xff] }
 0x167   : > { %vm1067_vm7 = vcmp.gt.f32.partialorder %v1018_v50, 0.0  ;;  %v1099_v8 = vmul.f32 0.2, %v1018_v50  ;;  %v1021_v14 = vpop.f32.mrb[24].mxu0  ;;  %1415 = vmatmul.mubr.f32.gmra.mrb[20].mxu1 %v1128_v13  ;;  %1576 = vmatmul.mubr.f32.gmra.mrb[52].mxu0 %v1128_v13  ;;  %v4488_v13 = vpack.c.bf16 %v2155_v12, %v2151_v18  ;;  %v2193_v34 = vld [vmem:[%s9552_s6 + $0x328] sm:$0xff]  ;;  %v2191_v18 = vld [vmem:[%s9552_s6 + $0x318] sm:$0xff] }
 0x168   : > { %v1130_v23 = vsel %vm1066_vm6, %v1016_v51, %v1098_v1  ;;  %v1022_v37 = vadd.f32 %v1021_v14, %v6315_v20  ;;  %v1023_v26 = vpop.f32.mrb[25].mxu0  ;;  %v2150_v51 = vld [vmem:[%s9552_s6 + $0x1d0] sm:$0xff]  ;;  %v2161_v1 = vld [vmem:[%s9552_s6 + $0x228] sm:$0xff]  ;;  %v2159_v14 = vld [vmem:[%s9552_s6 + $0x218] sm:$0xff]  ;;  %v4380_v44 = vpack.c.bf16 %v2193_v34, %v2189_v45 }
 0x169   : > { %3886 = vst [vmem:[%s6341_s11 + $0xb0] sm:$0xff] %v1130_v23  ;;  %v1131_v10 = vsel %vm1067_vm7, %v1018_v50, %v1099_v8  ;;  %v1024_v25 = vadd.f32 %v1023_v26, %v6318_v47  ;;  %v4490_v59 = vpack.c.bf16 %v2154_v32, %v2150_v51  ;;  %4489 = vmatprep.subr.bf16.mxu0 %v4488_v13  ;;  %v2157_v50 = vld [vmem:[%s9552_s6 + $0x208] sm:$0xff]  ;;  %v2160_v26 = vld [vmem:[%s9552_s6 + $0x220] sm:$0xff]  ;;  %v2194_v51 = vld [vmem:[%s9552_s6 + $0x330] sm:$0xff] }
 0x16a   : > { %3887 = vst [vmem:[%s6341_s11 + $0xb8] sm:$0xff] %v1131_v10  ;;  %vm1068_vm8 = vcmp.gt.f32.partialorder %v1022_v37, 0.0  ;;  %v1100_v54 = vmul.f32 0.2, %v1022_v37  ;;  %1420 = vmatprep.mubr.f32.mxu1 %v1131_v10  ;;  %1581 = vmatprep.mubr.f32.mxu0 %v1131_v10  ;;  %v4364_v8 = vpack.c.bf16 %v2161_v1, %v2157_v50  ;;  %v2192_v17 = vld [vmem:[%s9552_s6 + $0x320] sm:$0xff]  ;;  %v2201_v50 = vld [vmem:[%s9552_s6 + $0x368] sm:$0xff] }
 0x16b   : > { %vm1069_vm9 = vcmp.gt.f32.partialorder %v1024_v25, 0.0  ;;  %v1101_v55 = vmul.f32 0.2, %v1024_v25  ;;  %v1027_v35 = vpop.f32.mrb[26].mxu0  ;;  %1421 = vmatmul.mubr.f32.gmra.mrb[22].mxu1 %v1130_v23  ;;  %1582 = vmatmul.mubr.f32.gmra.mrb[54].mxu0 %v1130_v23  ;;  %v2163_v23 = vld [vmem:[%s9552_s6 + $0x238] sm:$0xff]  ;;  %v4382_v13 = vpack.c.bf16 %v2192_v17, %v2188_v63  ;;  %v6814_v45 = vld [vmem:[%s9552_s6 + $0x448] sm:$0xff] }
 0x16c   : > { %v1132_v61 = vsel %vm1068_vm8, %v1022_v37, %v1100_v54  ;;  %v1028_v27 = vadd.f32 %v1027_v35, %v6315_v20  ;;  %v1029_v60 = vpop.f32.mrb[27].mxu0  ;;  %4491 = vmatpush1.bf16.msra.mxu0 %v4490_v59  ;;  %v2156_v37 = vld [vmem:[%s9552_s6 + $0x200] sm:$0xff]  ;;  %v4492_v10 = vpack.c.bf16 %v2163_v23, %v2159_v14  ;;  %v2197_v59 = vld [vmem:[%s9552_s6 + $0x348] sm:$0xff]  ;;  %v2203_v14 = vld [vmem:[%s9552_s6 + $0x378] sm:$0xff] }
 0x16d   : > { %3888 = vst [vmem:[%s6341_s11 + $0xc0] sm:$0xff] %v1132_v61  ;;  %v1133_v29 = vsel %vm1069_vm9, %v1024_v25, %v1101_v55  ;;  %v1030_v41 = vadd.f32 %v1029_v60, %v6318_v47  ;;  %v2158_v25 = vld [vmem:[%s9552_s6 + $0x210] sm:$0xff]  ;;  %v4366_v54 = vpack.c.bf16 %v2160_v26, %v2156_v37  ;;  %v4384_v1 = vpack.c.bf16 %v2201_v50, %v2197_v59  ;;  %v2196_v23 = vld [vmem:[%s9552_s6 + $0x340] sm:$0xff]  ;;  %v6819_v34 = vld [vmem:[%s9552_s6 + $0x468] sm:$0xff] }
 0x16e   : > { %3889 = vst [vmem:[%s6341_s11 + $0xc8] sm:$0xff] %v1133_v29  ;;  %vm1070_vm10 = vcmp.gt.f32.partialorder %v1028_v27, 0.0  ;;  %v1102_v24 = vmul.f32 0.2, %v1028_v27  ;;  %1426 = vmatprep.mubr.f32.mxu1 %v1133_v29  ;;  %1587 = vmatprep.mubr.f32.mxu0 %v1133_v29  ;;  %v2162_v55 = vld [vmem:[%s9552_s6 + $0x230] sm:$0xff]  ;;  %v2167_v29 = vld [vmem:[%s9552_s6 + $0x258] sm:$0xff] }
 0x16f   : > { %vm1071_vm11 = vcmp.gt.f32.partialorder %v1030_v41, 0.0  ;;  %v1103_v0 = vmul.f32 0.2, %v1030_v41  ;;  %v1033_v11 = vpop.f32.mrb[28].mxu0  ;;  %1427 = vmatmul.mubr.f32.gmra.mrb[24].mxu1 %v1132_v61  ;;  %1588 = vmatmul.mubr.f32.gmra.mrb[56].mxu0 %v1132_v61  ;;  %v4494_v35 = vpack.c.bf16 %v2162_v55, %v2158_v25  ;;  %v2165_v61 = vld [vmem:[%s9552_s6 + $0x248] sm:$0xff]  ;;  %v2200_v37 = vld [vmem:[%s9552_s6 + $0x360] sm:$0xff] }
 0x170   : > { %v1134_v2 = vsel %vm1070_vm10, %v1028_v27, %v1102_v24  ;;  %v1034_v4 = vadd.f32 %v1033_v11, %v6315_v20  ;;  %v1035_v6 = vpop.f32.mrb[29].mxu0  ;;  %4493 = vmatprep.subr.bf16.mxu0 %v4492_v10  ;;  %v2169_v27 = vld [vmem:[%s9552_s6 + $0x268] sm:$0xff]  ;;  %v2164_v24 = vld [vmem:[%s9552_s6 + $0x240] sm:$0xff]  ;;  %v2198_v10 = vld [vmem:[%s9552_s6 + $0x350] sm:$0xff]  ;;  %v4386_v25 = vpack.c.bf16 %v2200_v37, %v2196_v23 }
 0x171   : > { %3890 = vst [vmem:[%s6341_s11 + $0xd0] sm:$0xff] %v1134_v2  ;;  %v1135_v49 = vsel %vm1071_vm11, %v1030_v41, %v1103_v0  ;;  %v1036_v42 = vadd.f32 %v1035_v6, %v6318_v47  ;;  %4495 = vmatpush1.bf16.msra.mxu0 %v4494_v35  ;;  %v4368_v60 = vpack.c.bf16 %v2169_v27, %v2165_v61  ;;  %v2171_v41 = vld [vmem:[%s9552_s6 + $0x278] sm:$0xff]  ;;  %v2168_v0 = vld [vmem:[%s9552_s6 + $0x260] sm:$0xff]  ;;  %v2170_v6 = vld [vmem:[%s9552_s6 + $0x270] sm:$0xff] }
 0x172   : > { %3891 = vst [vmem:[%s6341_s11 + $0xd8] sm:$0xff] %v1135_v49  ;;  %vm1072_vm12 = vcmp.gt.f32.partialorder %v1034_v4, 0.0  ;;  %v1104_v9 = vmul.f32 0.2, %v1034_v4  ;;  %1432 = vmatprep.mubr.f32.mxu1 %v1135_v49  ;;  %1593 = vmatprep.mubr.f32.mxu0 %v1135_v49  ;;  %v4496_v11 = vpack.c.bf16 %v2171_v41, %v2167_v29  ;;  %v2205_v35 = vld [vmem:[%s9552_s6 + $0x388] sm:$0xff]  ;;  %v2211_v29 = vld [vmem:[%s9552_s6 + $0x3b8] sm:$0xff] }
 0x173   : > { %vm1073_vm13 = vcmp.gt.f32.partialorder %v1036_v42, 0.0  ;;  %v1105_v16 = vmul.f32 0.2, %v1036_v42  ;;  %v1039_v21 = vpop.f32.mrb[30].mxu0  ;;  %1433 = vmatmul.mubr.f32.gmra.mrb[26].mxu1 %v1134_v2  ;;  %1594 = vmatmul.mubr.f32.gmra.mrb[58].mxu0 %v1134_v2  ;;  %v2166_v2 = vld [vmem:[%s9552_s6 + $0x250] sm:$0xff]  ;;  %v2209_v61 = vld [vmem:[%s9552_s6 + $0x3a8] sm:$0xff] }
 0x174   : > { %v1136_v43 = vsel %vm1072_vm12, %v1034_v4, %v1104_v9  ;;  %v1040_v40 = vadd.f32 %v1039_v21, %v6315_v20  ;;  %v1041_v22 = vpop.f32.mrb[31].mxu0  ;;  %v2141_v20 = vld [vmem:[%s9552_s6 + $0x188] sm:$0xff]  ;;  %v4370_v4 = vpack.c.bf16 %v2168_v0, %v2164_v24  ;;  %4497 = vmatprep.subr.bf16.mxu0 %v4496_v11  ;;  %v4498_v49 = vpack.c.bf16 %v2170_v6, %v2166_v2  ;;  %v2204_v41 = vld [vmem:[%s9552_s6 + $0x380] sm:$0xff]  ;;  %v2206_v11 = vld [vmem:[%s9552_s6 + $0x390] sm:$0xff] }
 0x175   : > { %3892 = vst [vmem:[%s6341_s11 + $0xe0] sm:$0xff] %v1136_v43  ;;  %v1137_v39 = vsel %vm1073_vm13, %v1036_v42, %v1105_v16  ;;  %v1042_v52 = vadd.f32 %v1041_v22, %v6318_v47  ;;  %v2145_v47 = vld [vmem:[%s9552_s6 + $0x1a8] sm:$0xff]  ;;  %v2175_v16 = vld [vmem:[%s9552_s6 + $0x298] sm:$0xff]  ;;  %v4388_v27 = vpack.c.bf16 %v2209_v61, %v2205_v35  ;;  %v2208_v24 = vld [vmem:[%s9552_s6 + $0x3a0] sm:$0xff] }
 0x176   : > { %3893 = vst [vmem:[%s6341_s11 + $0xe8] sm:$0xff] %v1137_v39  ;;  %vm1074_vm14 = vcmp.gt.f32.partialorder %v1040_v40, 0.0  ;;  %v1106_v19 = vmul.f32 0.2, %v1040_v40  ;;  %1438 = vmatprep.mubr.f32.mxu1 %v1137_v39  ;;  %1599 = vmatprep.mubr.f32.mxu0 %v1137_v39  ;;  %v4356_v38 = vpack.c.bf16 %v2145_v47, %v2141_v20  ;;  %v2173_v42 = vld [vmem:[%s9552_s6 + $0x288] sm:$0xff]  ;;  %v2179_v22 = vld [vmem:[%s9552_s6 + $0x2b8] sm:$0xff]  ;;  %v4390_v2 = vpack.c.bf16 %v2208_v24, %v2204_v41 }
 0x177   : > { %vm1075_vm15 = vcmp.gt.f32.partialorder %v1042_v52, 0.0  ;;  %v1107_v30 = vmul.f32 0.2, %v1042_v52  ;;  %1439 = vmatmul.mubr.f32.gmra.mrb[28].mxu1 %v1136_v43  ;;  %1600 = vmatmul.mubr.f32.gmra.mrb[60].mxu0 %v1136_v43  ;;  %v2177_v9 = vld [vmem:[%s9552_s6 + $0x2a8] sm:$0xff]  ;;  %v2172_v43 = vld [vmem:[%s9552_s6 + $0x280] sm:$0xff]  ;;  %v2235_v63 = vld [vmem:[%s9552_s6 + $0x478] sm:$0xff] }
 0x178   : > { %v1138_v36 = vsel %vm1074_vm14, %v1040_v40, %v1106_v19  ;;  %4357 = vmatprep.subr.bf16.mxu1 %v4356_v38  ;;  %4499 = vmatpush1.bf16.msra.mxu0 %v4498_v49  ;;  %v4372_v21 = vpack.c.bf16 %v2177_v9, %v2173_v42  ;;  %v2176_v40 = vld [vmem:[%s9552_s6 + $0x2a0] sm:$0xff]  ;;  %v2174_v19 = vld [vmem:[%s9552_s6 + $0x290] sm:$0xff]  ;;  %v2185_v20 = vld [vmem:[%s9552_s6 + $0x2e8] sm:$0xff] }
 0x179   : > { %3894 = vst [vmem:[%s6341_s11 + $0xf0] sm:$0xff] %v1138_v36  ;;  %v1139_v57 = vsel %vm1075_vm15, %v1042_v52, %v1107_v30  ;;  %4359 = vmatpush1.bf16.msra.mxu1 %v4358_v7  ;;  %v4374_v39 = vpack.c.bf16 %v2176_v40, %v2172_v43  ;;  %v4500_v52 = vpack.c.bf16 %v2179_v22, %v2175_v16  ;;  %v2178_v30 = vld [vmem:[%s9552_s6 + $0x2b0] sm:$0xff]  ;;  %v2183_v38 = vld [vmem:[%s9552_s6 + $0x2d8] sm:$0xff]  ;;  %v2213_v49 = vld [vmem:[%s9552_s6 + $0x3c8] sm:$0xff] }
 0x17a   : > { %3895 = vst [vmem:[%s6341_s11 + $0xf8] sm:$0xff] %v1139_v57  ;;  %1444 = vmatprep.mubr.f32.mxu1 %v1139_v57  ;;  %1605 = vmatprep.mubr.f32.mxu0 %v1139_v57  ;;  %v2181_v57 = vld [vmem:[%s9552_s6 + $0x2c8] sm:$0xff]  ;;  %v4504_v46 = vpack.c.bf16 %v2187_v58, %v2183_v38  ;;  %v2186_v7 = vld [vmem:[%s9552_s6 + $0x2f0] sm:$0xff]  ;;  %v2215_v16 = vld [vmem:[%s9552_s6 + $0x3d8] sm:$0xff] }
 0x17b   : > { %1445 = vmatmul.mubr.f32.gmra.mrb[30].mxu1 %v1138_v36  ;;  %1606 = vmatmul.mubr.f32.gmra.mrb[62].mxu0 %v1138_v36  ;;  %v4502_v36 = vpack.c.bf16 %v2178_v30, %v2174_v19  ;;  %v4376_v47 = vpack.c.bf16 %v2185_v20, %v2181_v57  ;;  %v4506_v28 = vpack.c.bf16 %v2186_v7, %v2182_v15  ;;  %v2217_v42 = vld [vmem:[%s9552_s6 + $0x3e8] sm:$0xff]  ;;  %v2212_v43 = vld [vmem:[%s9552_s6 + $0x3c0] sm:$0xff]  ;;  %v2218_v19 = vld [vmem:[%s9552_s6 + $0x3f0] sm:$0xff]  ;;  %v9562_v15 = vsub.s32 2, %v6303_v31 }
 0x17c   : > { %4361 = vmatprep.subr.bf16.mxu1 %v4360_v62  ;;  %4501 = vmatprep.subr.bf16.mxu0 %v4500_v52  ;;  %v2195_v62 = vld [vmem:[%s9552_s6 + $0x338] sm:$0xff]  ;;  %v4392_v9 = vpack.c.bf16 %v2217_v42, %v2213_v49  ;;  %v2216_v40 = vld [vmem:[%s9552_s6 + $0x3e0] sm:$0xff]  ;;  %v2225_v57 = vld [vmem:[%s9552_s6 + $0x428] sm:$0xff] }
 0x17d   : > { %4363 = vmatpush1.bf16.msra.mxu1 %v4362_v3  ;;  %4503 = vmatpush1.bf16.msra.mxu0 %v4502_v36  ;;  %v4508_v12 = vpack.c.bf16 %v2195_v62, %v2191_v18  ;;  %v2190_v3 = vld [vmem:[%s9552_s6 + $0x310] sm:$0xff]  ;;  %v4394_v52 = vpack.c.bf16 %v2216_v40, %v2212_v43  ;;  %v2221_v36 = vld [vmem:[%s9552_s6 + $0x408] sm:$0xff]  ;;  %v2227_v38 = vld [vmem:[%s9552_s6 + $0x438] sm:$0xff] }
 0x17e   : > { %4365 = vmatprep.subr.bf16.mxu1 %v4364_v8  ;;  %4505 = vmatprep.subr.bf16.mxu0 %v4504_v46  ;;  %v4510_v32 = vpack.c.bf16 %v2194_v51, %v2190_v3  ;;  %v2199_v8 = vld [vmem:[%s9552_s6 + $0x358] sm:$0xff]  ;;  %v4396_v20 = vpack.c.bf16 %v2225_v57, %v2221_v36  ;;  %v1268_v56 = vld [vmem:[%s9551_s5] sm:$0xf]  ;;  %v2222_v7 = vld [vmem:[%s9552_s6 + $0x410] sm:$0xff] }
 0x17f   : > { %v4512_v26 = vpack.c.bf16 %v2203_v14, %v2199_v8  ;;  %v6801_v46 = vld [vmem:[%s9552_s6 + $0x420] sm:$0xff]  ;;  %v2231_v62 = vld [vmem:[%s9552_s6 + $0x458] sm:$0xff]  ;;  %v2230_v17 = vld [vmem:[%s9552_s6 + $0x450] sm:$0xff] }
 0x180   : > { %v6829_v18 = vld [vmem:[%s9552_s6 + $0x460] sm:$0xff]  ;;  %v6846_v3 = vld [vmem:[%s9552_s6 + $0x488] sm:$0xff]  ;;  %v2239_v59 = vld [vmem:[%s9552_s6 + $0x498] sm:$0xff] }
 0x181   : > { %4367 = vmatpush1.bf16.msra.mxu1 %v4366_v54  ;;  %4507 = vmatpush1.bf16.msra.mxu0 %v4506_v28  ;;  %v2202_v54 = vld [vmem:[%s9552_s6 + $0x370] sm:$0xff]  ;;  %v6856_v51 = vld [vmem:[%s9552_s6 + $0x480] sm:$0xff]  ;;  %v2243_v50 = vld [vmem:[%s9552_s6 + $0x4b8] sm:$0xff] }
 0x182   : > { %4369 = vmatprep.subr.bf16.mxu1 %v4368_v60  ;;  %4509 = vmatprep.subr.bf16.mxu0 %v4508_v12  ;;  %v4514_v55 = vpack.c.bf16 %v2202_v54, %v2198_v10  ;;  %v2207_v60 = vld [vmem:[%s9552_s6 + $0x398] sm:$0xff]  ;;  %v2226_v28 = vld [vmem:[%s9552_s6 + $0x430] sm:$0xff]  ;;  %9724 = vst [vmem:[#allocation9_spill] sm:$0xff] %v6856_v51  ;;  %v6878_v14 = vld [vmem:[%s9552_s6 + $0x4c8] sm:$0xff]  ;;  %v6902_v54 = vrot.slane %v1268_v56, %v6306_v5 }
 0x183   : > { %v4516_v0 = vpack.c.bf16 %v2211_v29, %v2207_v60  ;;  %v2234_v12 = vld [vmem:[%s9552_s6 + $0x470] sm:$0xff]  ;;  %9726 = vst [vmem:[#allocation11_spill] sm:$0xff] %v6878_v14  ;;  %v6883_v23 = vld [vmem:[%s9552_s6 + $0x4e8] sm:$0xff]  ;;  %v6888_v37 = vld [vmem:[%s9552_s6 + $0x4c0] sm:$0xff] }
 0x184   : > { %v2242_v8 = vld [vmem:[%s9552_s6 + $0x4b0] sm:$0xff]  ;;  %9727 = vst [vmem:[#allocation12_spill] sm:$0xff] %v6883_v23  ;;  %9728 = vst [vmem:[#allocation13_spill] sm:$0xff] %v6888_v37  ;;  %v2247_v10 = vld [vmem:[%s9552_s6 + $0x4d8] sm:$0xff] }
 0x185   : > { %4371 = vmatpush1.bf16.msra.mxu1 %v4370_v4  ;;  %4511 = vmatpush1.bf16.msra.mxu0 %v4510_v32  ;;  %v2210_v4 = vld [vmem:[%s9552_s6 + $0x3b0] sm:$0xff]  ;;  %v6861_v32 = vld [vmem:[%s9552_s6 + $0x4a0] sm:$0xff]  ;;  %v6913_v61 = vld [vmem:[%s9552_s6 + $0x508] sm:$0xff] }
 0x186   : > { %4373 = vmatprep.subr.bf16.mxu1 %v4372_v21  ;;  %4513 = vmatprep.subr.bf16.mxu0 %v4512_v26  ;;  %v4518_v6 = vpack.c.bf16 %v2210_v4, %v2206_v11  ;;  %v2219_v21 = vld [vmem:[%s9552_s6 + $0x3f8] sm:$0xff]  ;;  %9725 = vst [vmem:[#allocation10_spill] sm:$0xff] %v6861_v32  ;;  %v6893_v26 = vld [vmem:[%s9552_s6 + $0x4e0] sm:$0xff]  ;;  %v2250_v35 = vld [vmem:[%s9552_s6 + $0x4f0] sm:$0xff]  ;;  %v6941_v11 = vrot.slane %v1268_v56, %v6312_v48 }
 0x187   : > { %v4520_v22 = vpack.c.bf16 %v2219_v21, %v2215_v16  ;;  %9729 = vst [vmem:[#allocation14_spill] sm:$0xff] %v6893_v26  ;;  %9730 = vst [vmem:[#allocation15_spill] sm:$0xff] %v6913_v61  ;;  %v6923_v60 = vld [vmem:[%s9552_s6 + $0x500] sm:$0xff]  ;;  %v2255_v41 = vld [vmem:[%s9552_s6 + $0x518] sm:$0xff] }
 0x188   : > { %9732 = vst [vmem:[#allocation17_spill] sm:$0xff] %v6923_v60  ;;  %v6928_v29 = vld [vmem:[%s9552_s6 + $0x520] sm:$0xff]  ;;  %v2259_v24 = vld [vmem:[%s9552_s6 + $0x538] sm:$0xff]  ;;  %v2258_v49 = vld [vmem:[%s9552_s6 + $0x530] sm:$0xff] }
 0x189   : > { %4375 = vmatpush1.bf16.msra.mxu1 %v4374_v39  ;;  %4515 = vmatpush1.bf16.msra.mxu0 %v4514_v55  ;;  %v2214_v39 = vld [vmem:[%s9552_s6 + $0x3d0] sm:$0xff]  ;;  %9733 = vst [vmem:[#allocation18_spill] sm:$0xff] %v6928_v29  ;;  %v6958_v42 = vld [vmem:[%s9552_s6 + $0x548] sm:$0xff]  ;;  %v6968_v16 = vld [vmem:[%s9552_s6 + $0x540] sm:$0xff] }
 0x18a   : > { %4377 = vmatprep.subr.bf16.mxu1 %v4376_v47  ;;  %4517 = vmatprep.subr.bf16.mxu0 %v4516_v0  ;;  %v4522_v30 = vpack.c.bf16 %v2218_v19, %v2214_v39  ;;  %v2223_v47 = vld [vmem:[%s9552_s6 + $0x418] sm:$0xff]  ;;  %v2246_v55 = vld [vmem:[%s9552_s6 + $0x4d0] sm:$0xff]  ;;  %v6938_v0 = vrot.slane %v1268_v56, %v9562_v15  ;;  %9734 = vst [vmem:[#allocation19_spill] sm:$0xff] %v6958_v42  ;;  %9736 = vst [vmem:[#allocation21_spill] sm:$0xff] %v6968_v16 }
 0x18b   : > { %v6787_v58 = vpack.c.bf16 %v2227_v38, %v2223_v47  ;;  %v6973_v21 = vld [vmem:[%s9552_s6 + $0x560] sm:$0xff]  ;;  %v2263_v43 = vld [vmem:[%s9552_s6 + $0x558] sm:$0xff]  ;;  %v6987_v19 = vpack.c.bf16 %v2235_v63, %v2231_v62  ;;  %v2266_v36 = vld [vmem:[%s9552_s6 + $0x570] sm:$0xff] }
 0x18c   : > { %9737 = vst [vmem:[#allocation22_spill] sm:$0xff] %v6973_v21  ;;  %v2267_v40 = vld [vmem:[%s9552_s6 + $0x578] sm:$0xff]  ;;  %v6998_v57 = vld [vmem:[%s9552_s6 + $0x588] sm:$0xff]  ;;  %v7008_v47 = vld [vmem:[%s9552_s6 + $0x580] sm:$0xff] }
 0x18d   : > { %4379 = vmatpush1.bf16.msra.mxu1 %v4378_v33  ;;  %4519 = vmatpush1.bf16.msra.mxu0 %v4518_v6  ;;  %9723 = vst [vmem:[#allocation7_spill] sm:$0xff] %v6787_v58  ;;  %v9561_v33 = vsub.s32 3, %v6303_v31  ;;  %v2254_v6 = vld [vmem:[%s9552_s6 + $0x510] sm:$0xff]  ;;  %9739 = vst [vmem:[#allocation24_spill] sm:$0xff] %v6987_v19  ;;  %v7013_v38 = vld [vmem:[%s9552_s6 + $0x5a0] sm:$0xff] }
 0x18e   : > { %4381 = vmatprep.subr.bf16.mxu1 %v4380_v44  ;;  %4521 = vmatprep.subr.bf16.mxu0 %v4520_v22  ;;  %v6824_v44 = vld [vmem:[%s9552_s6 + $0x440] sm:$0xff]  ;;  %v6981_v22 = vpack.c.bf16 %v2226_v28, %v2222_v7  ;;  %9740 = vst [vmem:[#allocation25_spill] sm:$0xff] %v6998_v57  ;;  %9742 = vst [vmem:[#allocation27_spill] sm:$0xff] %v7008_v47  ;;  %v2275_v7 = vld [vmem:[%s9552_s6 + $0x5b8] sm:$0xff]  ;;  %v7021_v28 = vpack.c.bf16 %v2234_v12, %v2230_v17 }
 0x18f   : > { %9743 = vst [vmem:[#allocation28_spill] sm:$0xff] %v7013_v38  ;;  %v2270_v15 = vld [vmem:[%s9552_s6 + $0x590] sm:$0xff]  ;;  %v7038_v17 = vld [vmem:[%s9552_s6 + $0x5c8] sm:$0xff]  ;;  %v7064_v48 = vld [vmem:[%s9552_s6 + $0x5e0] sm:$0xff] }
 0x190   : > { %9738 = vst [vmem:[#allocation23_spill] sm:$0xff] %v6981_v22  ;;  %9744 = vst [vmem:[#allocation29_spill] sm:$0xff] %v7021_v28  ;;  %v7043_v12 = vld [vmem:[%s9552_s6 + $0x5e8] sm:$0xff]  ;;  %v2283_v5 = vld [vmem:[%s9552_s6 + $0x5f8] sm:$0xff] }
 0x191   : > { %4383 = vmatpush1.bf16.msra.mxu1 %v4382_v13  ;;  %4523 = vmatpush1.bf16.msra.mxu0 %v4522_v30  ;;  %v6851_v13 = vld [vmem:[%s9552_s6 + $0x4a8] sm:$0xff]  ;;  %v2262_v30 = vld [vmem:[%s9552_s6 + $0x550] sm:$0xff]  ;;  %9746 = vst [vmem:[#allocation31_spill] sm:$0xff] %v7038_v17  ;;  %9747 = vst [vmem:[#allocation32_spill] sm:$0xff] %v7043_v12 }
 0x192   : > { %4385 = vmatprep.subr.bf16.mxu1 %v4384_v1  ;;  %4525 = vmatprep.subr.bf16.mxu0 %v6787_v58  ;;  %v2238_v1 = vld [vmem:[%s9552_s6 + $0x490] sm:$0xff]  ;;  %9751 = vst [vmem:[#allocation36_spill] sm:$0xff] %v7064_v48  ;;  %v7086_v31 = vld [vmem:[%s9552_s6 + $0x608] sm:$0xff]  ;;  %v7104_v39 = vld [vmem:[%s9552_s6 + $0x600] sm:$0xff] }
 0x193   : > { %v7053_v63 = vpack.c.bf16 %v2242_v8, %v2238_v1  ;;  %v2278_v1 = vld [vmem:[%s9552_s6 + $0x5d0] sm:$0xff]  ;;  %v7072_v8 = vpack.c.bf16 %v2250_v35, %v2246_v55  ;;  %9754 = vst [vmem:[#allocation39_spill] sm:$0xff] %v7086_v31  ;;  %v7091_v55 = vld [vmem:[%s9552_s6 + $0x628] sm:$0xff]  ;;  %v7093_v35 = vpack.c.bf16 %v2258_v49, %v2254_v6  ;;  %9758 = vst [vmem:[#allocation43_spill] sm:$0xff] %v7104_v39 }
 0x194   : > { %v2282_v62 = vld [vmem:[%s9552_s6 + $0x5f0] sm:$0xff]  ;;  %9755 = vst [vmem:[#allocation40_spill] sm:$0xff] %v7091_v55  ;;  %v7109_v58 = vld [vmem:[%s9552_s6 + $0x620] sm:$0xff]  ;;  %v2287_v6 = vld [vmem:[%s9552_s6 + $0x618] sm:$0xff]  ;;  %v7114_v49 = vpack.c.bf16 %v2266_v36, %v2262_v30 }
 0x195   : > { %4387 = vmatpush1.bf16.msra.mxu1 %v4386_v25  ;;  %v2251_v25 = vld [vmem:[%s9552_s6 + $0x4f8] sm:$0xff]  ;;  %9749 = vst [vmem:[#allocation34_spill] sm:$0xff] %v7053_v63  ;;  %9752 = vst [vmem:[#allocation37_spill] sm:$0xff] %v7072_v8  ;;  %v2286_v16 = vld [vmem:[%s9552_s6 + $0x610] sm:$0xff] }
 0x196   : > { %4389 = vmatprep.subr.bf16.mxu1 %v4388_v27  ;;  %v6918_v27 = vld [vmem:[%s9552_s6 + $0x528] sm:$0xff]  ;;  %v7059_v4 = vpack.c.bf16 %v2251_v25, %v2247_v10  ;;  %v7078_v25 = vpack.c.bf16 %v2259_v24, %v2255_v41  ;;  %9756 = vst [vmem:[#allocation41_spill] sm:$0xff] %v7093_v35  ;;  %v7099_v10 = vpack.c.bf16 %v2267_v40, %v2263_v43  ;;  %9759 = vst [vmem:[#allocation44_spill] sm:$0xff] %v7109_v58  ;;  %v2291_v41 = vld [vmem:[%s9552_s6 + $0x638] sm:$0xff] }
 0x197   : > { %9731 = vst [vmem:[#allocation16_spill] sm:$0xff] %v6918_v27  ;;  %9760 = vst [vmem:[#allocation45_spill] sm:$0xff] %v7114_v49  ;;  %v2290_v30 = vld [vmem:[%s9552_s6 + $0x630] sm:$0xff]  ;;  %v7142_v47 = vld [vmem:[%s9552_s6 + $0x648] sm:$0xff] }
 0x198   : > { %9750 = vst [vmem:[#allocation35_spill] sm:$0xff] %v7059_v4  ;;  %9753 = vst [vmem:[#allocation38_spill] sm:$0xff] %v7078_v25  ;;  %v7147_v38 = vld [vmem:[%s9552_s6 + $0x668] sm:$0xff]  ;;  %v7161_v48 = vld [vmem:[%s9552_s6 + $0x640] sm:$0xff]  ;;  %v7183_v12 = vpack.c.bf16 %v2290_v30, %v2286_v16 }
 0x199   : > { %4391 = vmatpush1.bf16.msra.mxu1 %v4390_v2  ;;  %v6945_v2 = vrot.slane %v1268_v56, %v9561_v33  ;;  %v2271_v56 = vld [vmem:[%s9552_s6 + $0x598] sm:$0xff]  ;;  %v7027_v33 = vpack.c.bf16 %v2243_v50, %v2239_v59  ;;  %v7048_v59 = vld [vmem:[%s9552_s6 + $0x5c0] sm:$0xff]  ;;  %9757 = vst [vmem:[#allocation42_spill] sm:$0xff] %v7099_v10  ;;  %9764 = vst [vmem:[#allocation49_spill] sm:$0xff] %v7142_v47 }
 0x19a   : > { %4393 = vmatprep.subr.bf16.mxu1 %v4392_v9  ;;  %v6963_v9 = vld [vmem:[%s9552_s6 + $0x568] sm:$0xff]  ;;  %9748 = vst [vmem:[#allocation33_spill] sm:$0xff] %v7048_v59  ;;  %v2279_v50 = vld [vmem:[%s9552_s6 + $0x5d8] sm:$0xff]  ;;  %v7120_v24 = vpack.c.bf16 %v2275_v7, %v2271_v56  ;;  %9765 = vst [vmem:[#allocation50_spill] sm:$0xff] %v7147_v38  ;;  %v7154_v56 = vpack.c.bf16 %v2282_v62, %v2278_v1  ;;  %v7175_v59 = vpack.c.bf16 %v2291_v41, %v2287_v6 }
 0x19b   : > { %9735 = vst [vmem:[#allocation20_spill] sm:$0xff] %v6963_v9  ;;  %9745 = vst [vmem:[#allocation30_spill] sm:$0xff] %v7027_v33  ;;  %v7137_v40 = vpack.c.bf16 %v2283_v5, %v2279_v50  ;;  %v2294_v31 = vld [vmem:[%s9552_s6 + $0x650] sm:$0xff]  ;;  %v7190_v41 = vld [vmem:[%s9552_s6 + $0x688] sm:$0xff] }
 0x19c   : > { %9761 = vst [vmem:[#allocation46_spill] sm:$0xff] %v7120_v24  ;;  %9766 = vst [vmem:[#allocation51_spill] sm:$0xff] %v7154_v56  ;;  %v2298_v55 = vld [vmem:[%s9552_s6 + $0x670] sm:$0xff]  ;;  %v7195_v6 = vld [vmem:[%s9552_s6 + $0x6a8] sm:$0xff] }
 0x19d   : > { %4395 = vmatpush1.bf16.msra.mxu1 %v4394_v52  ;;  %v2274_v52 = vld [vmem:[%s9552_s6 + $0x5b0] sm:$0xff]  ;;  %9763 = vst [vmem:[#allocation48_spill] sm:$0xff] %v7137_v40  ;;  %9767 = vst [vmem:[#allocation52_spill] sm:$0xff] %v7161_v48  ;;  %v7166_v40 = vld [vmem:[%s9552_s6 + $0x660] sm:$0xff]  ;;  %v7203_v58 = vpack.c.bf16 %v2298_v55, %v2294_v31 }
 0x19e   : > { %4397 = vmatprep.subr.bf16.mxu1 %v4396_v20  ;;  %v7003_v20 = vld [vmem:[%s9552_s6 + $0x5a8] sm:$0xff]  ;;  %v7131_v43 = vpack.c.bf16 %v2274_v52, %v2270_v15  ;;  %v2295_v15 = vld [vmem:[%s9552_s6 + $0x658] sm:$0xff]  ;;  %9768 = vst [vmem:[#allocation53_spill] sm:$0xff] %v7166_v40  ;;  %9769 = vst [vmem:[#allocation54_spill] sm:$0xff] %v7175_v59 }
 0x19f   : > { %9741 = vst [vmem:[#allocation26_spill] sm:$0xff] %v7003_v20  ;;  %9770 = vst [vmem:[#allocation55_spill] sm:$0xff] %v7183_v12 }
 0x1a0   : > { %9762 = vst [vmem:[#allocation47_spill] sm:$0xff] %v7131_v43  ;;  %9771 = vst [vmem:[#allocation56_spill] sm:$0xff] %v7190_v41 }
 0x1a1   : > { %9772 = vst [vmem:[#allocation57_spill] sm:$0xff] %v7195_v6  ;;  %9774 = vst [vmem:[#allocation59_spill] sm:$0xff] %v7203_v58 }
 0x212   : > { %v1356_v36 = vpop.f32.mrb[0].mxu1  ;;  %v1517_v49 = vpop.f32.mrb[32].mxu0 }
 0x213   : > { %v1357_v52 = vadd.f32 %v1356_v36, %v6902_v54  ;;  %v1518_v7 = vadd.f32 %v1517_v49, %v6938_v0  ;;  %v1358_v5 = vpop.f32.mrb[1].mxu1  ;;  %v1519_v50 = vpop.f32.mrb[33].mxu0  ;;  %v2299_v49 = vld [vmem:[%s9552_s6 + $0x678] sm:$0xff] }
 0x214   : > { %v1359_v62 = vadd.f32 %v1358_v5, %v6941_v11  ;;  %v1520_v1 = vadd.f32 %v1519_v50, %v6945_v2  ;;  %v7199_v30 = vpack.c.bf16 %v2299_v49, %v2295_v15 }
 0x215   : > { %v1612_v56 = vmul.f32 %v1357_v52, %v1357_v52  ;;  %v1614_v17 = vmul.f32 %v1518_v7, %v1518_v7 }
 0x216   : > { %v1613_v50 = vmul.f32 %v1359_v62, %v1359_v62  ;;  %v1615_v36 = vmul.f32 %v1520_v1, %v1520_v1  ;;  %v1362_v39 = vpop.f32.mrb[2].mxu1  ;;  %v1523_v52 = vpop.f32.mrb[34].mxu0  ;;  %9773 = vst [vmem:[#allocation58_spill] sm:$0xff] %v7199_v30 }
 0x217   : > { %v1676_v7 = vmax.f32 %v1612_v56, %v1614_v17  ;;  %v1363_v5 = vadd.f32 %v1362_v39, %v6902_v54  ;;  %v1524_v47 = vadd.f32 %v1523_v52, %v6938_v0  ;;  %v1364_v38 = vpop.f32.mrb[3].mxu1  ;;  %v1525_v12 = vpop.f32.mrb[35].mxu0 }
 0x218   : > { %v1677_v59 = vmax.f32 %v1613_v50, %v1615_v36  ;;  %v1365_v62 = vadd.f32 %v1364_v38, %v6941_v11  ;;  %v1526_v1 = vadd.f32 %v1525_v12, %v6945_v2 }
 0x219   : > { %v1708_v16 = vsub.f32 %v1612_v56, %v1676_v7  ;;  %v1804_v15 = vsub.f32 %v1614_v17, %v1676_v7  ;;  %v1616_v49 = vmul.f32 %v1363_v5, %v1363_v5  ;;  %v1618_v48 = vmul.f32 %v1524_v47, %v1524_v47 }
 0x21a   : > { %v1709_v40 = vsub.f32 %v1613_v50, %v1677_v59  ;;  %v1805_v39 = vsub.f32 %v1615_v36, %v1677_v59  ;;  %v1617_v30 = vmul.f32 %v1365_v62, %v1365_v62  ;;  %v1619_v52 = vmul.f32 %v1526_v1, %v1526_v1  ;;  %v1368_v24 = vpop.f32.mrb[4].mxu1  ;;  %v1529_v57 = vpop.f32.mrb[36].mxu0 }
 0x21b   : > { %v1740_v31 = vmul.f32 1.442695, %v1708_v16  ;;  %v1836_v55 = vmul.f32 1.442695, %v1804_v15  ;;  %v1678_v58 = vmax.f32 %v1616_v49, %v1618_v48  ;;  %v1369_v38 = vadd.f32 %v1368_v24, %v6902_v54  ;;  %v1370_v20 = vpop.f32.mrb[5].mxu1  ;;  %v1531_v12 = vpop.f32.mrb[37].mxu0 }
 0x21c   : > { %v1742_v21 = vmul.f32 1.442695, %v1709_v40  ;;  %v1838_v10 = vmul.f32 1.442695, %v1805_v39  ;;  %v1679_v43 = vmax.f32 %v1617_v30, %v1619_v52  ;;  %v1530_v17 = vadd.f32 %v1529_v57, %v6938_v0 }
 0x21d   : > { %4767 = vpow2.f32 %v1740_v31  ;;  %v1710_v47 = vsub.f32 %v1616_v49, %v1678_v58  ;;  %v1806_v56 = vsub.f32 %v1618_v48, %v1678_v58  ;;  %v1620_v59 = vmul.f32 %v1369_v38, %v1369_v38 }
 0x21e   : > { %4769 = vpow2.f32 %v1836_v55  ;;  %v1711_v36 = vsub.f32 %v1617_v30, %v1679_v43  ;;  %v1807_v5 = vsub.f32 %v1619_v52, %v1679_v43  ;;  %v1622_v50 = vmul.f32 %v1530_v17, %v1530_v17  ;;  %v1374_v16 = vpop.f32.mrb[6].mxu1  ;;  %v1535_v7 = vpop.f32.mrb[38].mxu0 }
 0x21f   : > { %4771 = vpow2.f32 %v1742_v21  ;;  %v1744_v62 = vmul.f32 1.442695, %v1710_v47  ;;  %v1840_v24 = vmul.f32 1.442695, %v1806_v56  ;;  %v1371_v1 = vadd.f32 %v1370_v20, %v6941_v11  ;;  %v1376_v40 = vpop.f32.mrb[7].mxu1  ;;  %v1537_v15 = vpop.f32.mrb[39].mxu0 }
 0x220   : > { %4773 = vpow2.f32 %v1838_v10  ;;  %v1746_v39 = vmul.f32 1.442695, %v1711_v36  ;;  %v1842_v57 = vmul.f32 1.442695, %v1807_v5  ;;  %v1680_v31 = vmax.f32 %v1620_v59, %v1622_v50 }
 0x221   : > { %4775 = vpow2.f32 %v1744_v62  ;;  %v1621_v48 = vmul.f32 %v1371_v1, %v1371_v1  ;;  %v1532_v58 = vadd.f32 %v1531_v12, %v6945_v2  ;;  %v1375_v43 = vadd.f32 %v1374_v16, %v6902_v54 }
 0x222   : > { %4777 = vpow2.f32 %v1840_v24  ;;  %v1712_v30 = vsub.f32 %v1620_v59, %v1680_v31  ;;  %v1808_v49 = vsub.f32 %v1622_v50, %v1680_v31  ;;  %v1536_v21 = vadd.f32 %v1535_v7, %v6938_v0  ;;  %v1380_v52 = vpop.f32.mrb[8].mxu1  ;;  %v1541_v55 = vpop.f32.mrb[40].mxu0 }
 0x223   : > { %4779 = vpow2.f32 %v1746_v39  ;;  %v1623_v20 = vmul.f32 %v1532_v58, %v1532_v58  ;;  %v1624_v38 = vmul.f32 %v1375_v43, %v1375_v43  ;;  %v1377_v10 = vadd.f32 %v1376_v40, %v6941_v11  ;;  %v1382_v17 = vpop.f32.mrb[9].mxu1  ;;  %v1543_v47 = vpop.f32.mrb[41].mxu0 }
 0x224   : > { %4781 = vpow2.f32 %v1842_v57  ;;  %v1748_v56 = vmul.f32 1.442695, %v1712_v30  ;;  %v1844_v36 = vmul.f32 1.442695, %v1808_v49  ;;  %v1626_v12 = vmul.f32 %v1536_v21, %v1536_v21 }
 0x225   : > { %v1681_v5 = vmax.f32 %v1621_v48, %v1623_v20  ;;  %v1625_v16 = vmul.f32 %v1377_v10, %v1377_v10  ;;  %v1538_v59 = vadd.f32 %v1537_v15, %v6945_v2  ;;  %v1381_v50 = vadd.f32 %v1380_v52, %v6902_v54 }
 0x226   : > { %4783 = vpow2.f32 %v1748_v56  ;;  %v1682_v7 = vmax.f32 %v1624_v38, %v1626_v12  ;;  %v1542_v62 = vadd.f32 %v1541_v55, %v6938_v0  ;;  %v1383_v24 = vadd.f32 %v1382_v17, %v6941_v11  ;;  %v1386_v1 = vpop.f32.mrb[10].mxu1  ;;  %v1547_v40 = vpop.f32.mrb[42].mxu0 }
 0x227   : > { %v7220_v39 = vpop.eup %4767  ;;  %4785 = vpow2.f32 %v1844_v36  ;;  %v1713_v57 = vsub.f32 %v1621_v48, %v1681_v5  ;;  %v1809_v31 = vsub.f32 %v1623_v20, %v1681_v5  ;;  %v1627_v58 = vmul.f32 %v1538_v59, %v1538_v59  ;;  %v1388_v43 = vpop.f32.mrb[11].mxu1 }
 0x228   : > { %v1549_v30 = vpop.f32.mrb[43].mxu0  ;;  %v7222_v49 = vpop.eup %4769  ;;  %v1714_v15 = vsub.f32 %v1624_v38, %v1682_v7  ;;  %v1810_v21 = vsub.f32 %v1626_v12, %v1682_v7  ;;  %v1628_v52 = vmul.f32 %v1381_v50, %v1381_v50  ;;  %v1630_v10 = vmul.f32 %v1542_v62, %v1542_v62 }
 0x229   : > { %9775 = vst [vmem:[#allocation60_spill] sm:$0xff] %v7222_v49  ;;  %v7224_v56 = vpop.eup %4771  ;;  %v1900_v55 = vadd.f32 %v7222_v49, %v7220_v39  ;;  %v1750_v17 = vmul.f32 1.442695, %v1713_v57  ;;  %v1846_v41 = vmul.f32 1.442695, %v1809_v31  ;;  %v1683_v6 = vmax.f32 %v1625_v16, %v1627_v58 }
 0x22a   : > { %v7228_v36 = vpop.eup %4773  ;;  %v1752_v48 = vmul.f32 1.442695, %v1714_v15  ;;  %v1848_v20 = vmul.f32 1.442695, %v1810_v21  ;;  %v1684_v5 = vmax.f32 %v1628_v52, %v1630_v10  ;;  %v1629_v59 = vmul.f32 %v1383_v24, %v1383_v24  ;;  %v1392_v42 = vpop.f32.mrb[12].mxu1 }
 0x22b   : > { %9776 = vst [vmem:[#allocation61_spill] sm:$0xff] %v7228_v36  ;;  %v7230_v9 = vpop.f32.mrb[44].mxu0  ;;  %v7232_v38 = vpop.eup %4775  ;;  %4787 = vrcp.f32 %v1900_v55  ;;  %v1901_v12 = vadd.f32 %v7228_v36, %v7224_v56  ;;  %v1715_v50 = vsub.f32 %v1625_v16, %v1683_v6  ;;  %v1811_v7 = vsub.f32 %v1627_v58, %v1683_v6 }
 0x22c   : > { %v1394_v62 = vpop.f32.mrb[13].mxu1  ;;  %v1555_v57 = vpop.f32.mrb[45].mxu0  ;;  %4789 = vpow2.f32 %v1750_v17  ;;  %v1716_v15 = vsub.f32 %v1628_v52, %v1684_v5  ;;  %v1812_v21 = vsub.f32 %v1630_v10, %v1684_v5  ;;  %v1544_v24 = vadd.f32 %v1543_v47, %v6945_v2 }
 0x22d   : > { %v7236_v31 = vpop.eup %4777  ;;  %4791 = vrcp.f32 %v1901_v12  ;;  %v1754_v35 = vmul.f32 1.442695, %v1715_v50  ;;  %v1850_v60 = vmul.f32 1.442695, %v1811_v7  ;;  %v1387_v10 = vadd.f32 %v1386_v1, %v6902_v54 }
 0x22e   : > { %9777 = vst [vmem:[#allocation62_spill] sm:$0xff] %v7236_v31  ;;  %v7239_v49 = vpop.eup %4779  ;;  %v1902_v55 = vadd.f32 %v7236_v31, %v7232_v38  ;;  %4793 = vpow2.f32 %v1846_v41  ;;  %v1756_v6 = vmul.f32 1.442695, %v1716_v15  ;;  %v1852_v16 = vmul.f32 1.442695, %v1812_v21  ;;  %v7245_v29 = vpop.f32.mrb[14].mxu1 }
 0x22f   : > { %v7243_v36 = vpop.eup %4781  ;;  %v1631_v58 = vmul.f32 %v1544_v24, %v1544_v24  ;;  %v7247_v52 = vpop.f32.mrb[46].mxu0  ;;  %v1548_v17 = vadd.f32 %v1547_v40, %v6938_v0  ;;  %v1389_v7 = vadd.f32 %v1388_v43, %v6941_v11  ;;  %v1550_v15 = vadd.f32 %v1549_v30, %v6945_v2 }
 0x230   : > { %9778 = vst [vmem:[#allocation63_spill] sm:$0xff] %v7243_v36  ;;  %4795 = vrcp.f32 %v1902_v55  ;;  %v1903_v47 = vadd.f32 %v7243_v36, %v7239_v49  ;;  %v7253_v5 = vpop.f32.mrb[15].mxu1  ;;  %v7255_v12 = vpop.f32.mrb[47].mxu0  ;;  %v1632_v24 = vmul.f32 %v1387_v10, %v1387_v10  ;;  %v1393_v1 = vadd.f32 %v1392_v42, %v6902_v54 }
 0x231   : > { %v7257_v41 = vpop.eup %4783  ;;  %4797 = vpow2.f32 %v1752_v48  ;;  %v1685_v50 = vmax.f32 %v1629_v59, %v1631_v58  ;;  %v1634_v55 = vmul.f32 %v1548_v17, %v1548_v17  ;;  %v1633_v30 = vmul.f32 %v1389_v7, %v1389_v7 }
 0x232   : > { %9779 = vst [vmem:[#allocation64_spill] sm:$0xff] %v7257_v41  ;;  %v7261_v21 = vpop.eup %4785  ;;  %4799 = vrcp.f32 %v1903_v47  ;;  %v7266_v25 = vpop.f32.mrb[16].mxu1  ;;  %v1635_v61 = vmul.f32 %v1550_v15, %v1550_v15  ;;  %v1636_v17 = vmul.f32 %v1393_v1, %v1393_v1  ;;  %v1395_v7 = vadd.f32 %v1394_v62, %v6941_v11 }
 0x233   : > { %9780 = vst [vmem:[#allocation65_spill] sm:$0xff] %v7261_v21  ;;  %v1904_v40 = vadd.f32 %v7261_v21, %v7257_v41  ;;  %4801 = vpow2.f32 %v1848_v20  ;;  %v1717_v31 = vsub.f32 %v1629_v59, %v1685_v50  ;;  %v1813_v36 = vsub.f32 %v1631_v58, %v1685_v50  ;;  %v7268_v48 = vpop.f32.mrb[48].mxu0  ;;  %v7270_v27 = vpop.f32.mrb[17].mxu1 }
 0x234   : > { %4803 = vpow2.f32 %v1754_v35  ;;  %v1686_v43 = vmax.f32 %v1632_v24, %v1634_v55  ;;  %v7272_v47 = vpop.f32.mrb[49].mxu0  ;;  %v1687_v58 = vmax.f32 %v1633_v30, %v1635_v61  ;;  %v1554_v35 = vadd.f32 %v7230_v9, %v6938_v0 }
 0x235   : > { %4805 = vrcp.f32 %v1904_v40  ;;  %v1758_v42 = vmul.f32 1.442695, %v1717_v31  ;;  %v1854_v10 = vmul.f32 1.442695, %v1813_v36  ;;  %v7274_v21 = vpop.eup %4787  ;;  %v1556_v15 = vadd.f32 %v1555_v57, %v6945_v2 }
 0x236   : > { %4807 = vpow2.f32 %v1850_v60  ;;  %v1718_v20 = vsub.f32 %v1632_v24, %v1686_v43  ;;  %v1814_v59 = vsub.f32 %v1634_v55, %v1686_v43  ;;  %v7276_v50 = vpop.eup %4789  ;;  %v7282_v40 = vpop.f32.mrb[18].mxu1  ;;  %v1719_v55 = vsub.f32 %v1633_v30, %v1687_v58 }
 0x237   : > { %9781 = vst [vmem:[#allocation66_spill] sm:$0xff] %v7276_v50  ;;  %4809 = vpow2.f32 %v1756_v6  ;;  %v7284_v36 = vpop.f32.mrb[50].mxu0  ;;  %v7286_v31 = vpop.eup %4791  ;;  %v1815_v9 = vsub.f32 %v1635_v61, %v1687_v58  ;;  %v1638_v62 = vmul.f32 %v1554_v35, %v1554_v35  ;;  %v1637_v57 = vmul.f32 %v1395_v7, %v1395_v7 }
 0x238   : > { %4811 = vpow2.f32 %v1852_v16  ;;  %v1760_v60 = vmul.f32 1.442695, %v1718_v20  ;;  %v1856_v24 = vmul.f32 1.442695, %v1814_v59  ;;  %v7288_v1 = vpop.f32.mrb[19].mxu1  ;;  %v7290_v6 = vpop.f32.mrb[51].mxu0  ;;  %v1639_v20 = vmul.f32 %v1556_v15, %v1556_v15 }
 0x239   : > { %v7292_v43 = vpop.eup %4793  ;;  %4813 = vpow2.f32 %v1758_v42  ;;  %v1762_v16 = vmul.f32 1.442695, %v1719_v55  ;;  %v1858_v30 = vmul.f32 1.442695, %v1815_v9  ;;  %v1688_v26 = vmax.f32 %v1636_v17, %v1638_v62 }
 0x23a   : > { %9782 = vst [vmem:[#allocation67_spill] sm:$0xff] %v7292_v43  ;;  %v7294_v8 = vpop.eup %4795  ;;  %v1905_v37 = vadd.f32 %v7292_v43, %v7276_v50  ;;  %4815 = vpow2.f32 %v1854_v10  ;;  %v1399_v4 = vadd.f32 %v7245_v29, %v6902_v54  ;;  %v7302_v42 = vpop.f32.mrb[20].mxu1  ;;  %v1689_v35 = vmax.f32 %v1637_v57, %v1639_v20 }
 0x23b   : > { %v7298_v59 = vpop.eup %4797  ;;  %4817 = vpow2.f32 %v1760_v60  ;;  %v7304_v61 = vpop.f32.mrb[52].mxu0  ;;  %v1560_v10 = vadd.f32 %v7247_v52, %v6938_v0  ;;  %v1401_v7 = vadd.f32 %v7253_v5, %v6941_v11  ;;  %v1720_v29 = vsub.f32 %v1636_v17, %v1688_v26 }
 0x23c   : > { %9783 = vst [vmem:[#allocation68_spill] sm:$0xff] %v7298_v59  ;;  %v7306_v58 = vpop.eup %4799  ;;  %4819 = vrcp.f32 %v1905_v37  ;;  %v7312_v15 = vpop.f32.mrb[21].mxu1  ;;  %v1816_v9 = vsub.f32 %v1638_v62, %v1688_v26  ;;  %v1640_v43 = vmul.f32 %v1399_v4, %v1399_v4  ;;  %v1721_v52 = vsub.f32 %v1637_v57, %v1689_v35 }
 0x23d   : > { %v7314_v60 = vpop.f32.mrb[53].mxu0  ;;  %v7316_v55 = vpop.eup %4801  ;;  %4821 = vpow2.f32 %v1856_v24  ;;  %v1817_v23 = vsub.f32 %v1639_v20, %v1689_v35  ;;  %v1764_v5 = vmul.f32 1.442695, %v1720_v29  ;;  %v1642_v63 = vmul.f32 %v1560_v10, %v1560_v10 }
 0x23e   : > { %9784 = vst [vmem:[#allocation69_spill] sm:$0xff] %v7316_v55  ;;  %v7318_v14 = vpop.eup %4803  ;;  %v1906_v37 = vadd.f32 %v7316_v55, %v7298_v59  ;;  %4823 = vpow2.f32 %v1762_v16  ;;  %v1860_v50 = vmul.f32 1.442695, %v1816_v9  ;;  %v7324_v51 = vpop.f32.mrb[22].mxu1  ;;  %v1766_v4 = vmul.f32 1.442695, %v1721_v52 }
 0x23f   : > { %9785 = vst [vmem:[#allocation70_spill] sm:$0xff] %v7318_v14  ;;  %v7322_v41 = vpop.eup %4805  ;;  %4825 = vpow2.f32 %v1858_v30  ;;  %v7326_v24 = vpop.f32.mrb[54].mxu0  ;;  %v1862_v17 = vmul.f32 1.442695, %v1817_v23  ;;  %v1641_v62 = vmul.f32 %v1401_v7, %v1401_v7  ;;  %v1690_v30 = vmax.f32 %v1640_v43, %v1642_v63 }
 0x240   : > { %9786 = vst [vmem:[#allocation71_spill] sm:$0xff] %v7322_v41  ;;  %v7328_v26 = vpop.eup %4807  ;;  %4827 = vrcp.f32 %v1906_v37  ;;  %v7330_v55 = vpop.f32.mrb[23].mxu1  ;;  %v1562_v35 = vadd.f32 %v7255_v12, %v6945_v2  ;;  %v1405_v23 = vadd.f32 %v7266_v25, %v6902_v54  ;;  %v1566_v7 = vadd.f32 %v7268_v48, %v6938_v0  ;;  %v7359_v25 = vld [vmem:[%s9552_s6 + $0x680] sm:$0xff] }
 0x241   : > { %9787 = vst [vmem:[#allocation72_spill] sm:$0xff] %v7328_v26  ;;  %v7332_v57 = vpop.f32.mrb[55].mxu0  ;;  %v7334_v16 = vpop.eup %4809  ;;  %v1907_v20 = vadd.f32 %v7328_v26, %v7318_v14  ;;  %4829 = vpow2.f32 %v1764_v5  ;;  %v1407_v29 = vadd.f32 %v7270_v27, %v6941_v11  ;;  %v1722_v52 = vsub.f32 %v1640_v43, %v1690_v30  ;;  %9791 = vst [vmem:[#allocation76_spill] sm:$0xff] %v7359_v25  ;;  %v7364_v27 = vld [vmem:[%s9552_s6 + $0x6a0] sm:$0xff] }
 0x242   : > { %9788 = vst [vmem:[#allocation73_spill] sm:$0xff] %v7334_v16  ;;  %v7340_v10 = vpop.eup %4811  ;;  %4831 = vpow2.f32 %v1860_v50  ;;  %v1818_v12 = vsub.f32 %v1642_v63, %v1690_v30  ;;  %v7352_v5 = vpop.f32.mrb[24].mxu1  ;;  %9792 = vst [vmem:[#allocation77_spill] sm:$0xff] %v7364_v27  ;;  %v1644_v43 = vmul.f32 %v1405_v23, %v1405_v23  ;;  %v1646_v63 = vmul.f32 %v1566_v7, %v1566_v7 }
 0x243   : > { %9789 = vst [vmem:[#allocation74_spill] sm:$0xff] %v7340_v10  ;;  %v7348_v9 = vpop.eup %4813  ;;  %4833 = vrcp.f32 %v1907_v20  ;;  %v1908_v37 = vadd.f32 %v7340_v10, %v7334_v16  ;;  %v7354_v50 = vpop.f32.mrb[56].mxu0  ;;  %v1643_v20 = vmul.f32 %v1562_v35, %v1562_v35  ;;  %v1768_v59 = vmul.f32 1.442695, %v1722_v52 }
 0x244   : > { %9790 = vst [vmem:[#allocation75_spill] sm:$0xff] %v7348_v9  ;;  %v7366_v48 = vpop.eup %4815  ;;  %4835 = vpow2.f32 %v1766_v4  ;;  %v7368_v30 = vpop.f32.mrb[25].mxu1  ;;  %v1864_v14 = vmul.f32 1.442695, %v1818_v12  ;;  %v1692_v4 = vmax.f32 %v1644_v43, %v1646_v63  ;;  %v1645_v7 = vmul.f32 %v1407_v29, %v1407_v29 }
 0x245   : > { %9793 = vst [vmem:[#allocation78_spill] sm:$0xff] %v7366_v48  ;;  %9794 = vst [vmem:[#allocation79_spill] sm:$0xff] %v7368_v30  ;;  %v7370_v10 = vpop.f32.mrb[57].mxu0  ;;  %v7372_v26 = vpop.eup %4817  ;;  %4837 = vrcp.f32 %v1908_v37  ;;  %v1909_v16 = vadd.f32 %v7366_v48, %v7348_v9  ;;  %v1691_v32 = vmax.f32 %v1641_v62, %v1643_v20  ;;  %v1411_v37 = vadd.f32 %v7282_v40, %v6902_v54 }
 0x246   : > { %9795 = vst [vmem:[#allocation80_spill] sm:$0xff] %v7370_v10  ;;  %9796 = vst [vmem:[#allocation81_spill] sm:$0xff] %v7372_v26  ;;  %v7376_v41 = vpop.eup %4819  ;;  %4839 = vpow2.f32 %v1862_v17  ;;  %v1568_v10 = vadd.f32 %v7272_v47, %v6945_v2  ;;  %v1572_v52 = vadd.f32 %v7284_v36, %v6938_v0  ;;  %v7388_v12 = vpop.f32.mrb[26].mxu1  ;;  %v1724_v36 = vsub.f32 %v1644_v43, %v1692_v4 }
 0x247   : > { %v7380_v23 = vpop.eup %4821  ;;  %9798 = vst [vmem:[#allocation83_spill] sm:$0xff] %v7388_v12  ;;  %v7390_v17 = vpop.f32.mrb[58].mxu0  ;;  %4841 = vpow2.f32 %v1768_v59  ;;  %v1723_v29 = vsub.f32 %v1641_v62, %v1691_v32  ;;  %v1819_v25 = vsub.f32 %v1643_v20, %v1691_v32  ;;  %v1820_v9 = vsub.f32 %v1646_v63, %v1692_v4 }
 0x248   : > { %9797 = vst [vmem:[#allocation82_spill] sm:$0xff] %v7380_v23  ;;  %9799 = vst [vmem:[#allocation84_spill] sm:$0xff] %v7390_v17  ;;  %v7392_v48 = vpop.eup %4823  ;;  %v1910_v35 = vadd.f32 %v7380_v23, %v7372_v26  ;;  %v7396_v27 = vpop.f32.mrb[27].mxu1  ;;  %4843 = vpow2.f32 %v1864_v14  ;;  %v1647_v12 = vmul.f32 %v1568_v10, %v1568_v10  ;;  %v1772_v32 = vmul.f32 1.442695, %v1724_v36 }
 0x249   : > { %9800 = vst [vmem:[#allocation85_spill] sm:$0xff] %v7392_v48  ;;  %v7398_v47 = vpop.f32.mrb[59].mxu0  ;;  %v7400_v40 = vpop.eup %4825  ;;  %4845 = vrcp.f32 %v1909_v16  ;;  %v1770_v23 = vmul.f32 1.442695, %v1723_v29  ;;  %v1866_v59 = vmul.f32 1.442695, %v1819_v25  ;;  %v1648_v26 = vmul.f32 %v1411_v37, %v1411_v37 }
 0x24a   : > { %9801 = vst [vmem:[#allocation86_spill] sm:$0xff] %v7398_v47  ;;  %9802 = vst [vmem:[#allocation87_spill] sm:$0xff] %v7400_v40  ;;  %v7402_v30 = vpop.eup %4827  ;;  %v1911_v17 = vadd.f32 %v7400_v40, %v7392_v48  ;;  %4847 = vrcp.f32 %v1910_v35  ;;  %v1693_v20 = vmax.f32 %v1645_v7, %v1647_v12  ;;  %v7408_v47 = vpop.f32.mrb[28].mxu1  ;;  %v1868_v10 = vmul.f32 1.442695, %v1820_v9 }
 0x24b   : > { %v7406_v62 = vpop.eup %4829  ;;  %9804 = vst [vmem:[#allocation89_spill] sm:$0xff] %v7408_v47  ;;  %v7410_v14 = vpop.f32.mrb[60].mxu0  ;;  %v1650_v16 = vmul.f32 %v1572_v52, %v1572_v52  ;;  %v1413_v63 = vadd.f32 %v7288_v1, %v6941_v11  ;;  %v1574_v25 = vadd.f32 %v7290_v6, %v6945_v2  ;;  %4849 = vpow2.f32 %v1770_v23  ;;  %v2303_v6 = vld [vmem:[%s9552_s6 + $0x698] sm:$0xff] }
 0x24c   : > { %9803 = vst [vmem:[#allocation88_spill] sm:$0xff] %v7406_v62  ;;  %9805 = vst [vmem:[#allocation90_spill] sm:$0xff] %v7410_v14  ;;  %v7412_v43 = vpop.eup %4831  ;;  %v7418_v4 = vpop.f32.mrb[29].mxu1  ;;  %v1725_v36 = vsub.f32 %v1645_v7, %v1693_v20  ;;  %v1821_v9 = vsub.f32 %v1647_v12, %v1693_v20  ;;  %4851 = vpow2.f32 %v1866_v59  ;;  %v1417_v12 = vadd.f32 %v7302_v42, %v6902_v54 }
 0x24d   : > { %9806 = vst [vmem:[#allocation91_spill] sm:$0xff] %v7412_v43  ;;  %9807 = vst [vmem:[#allocation92_spill] sm:$0xff] %v7418_v4  ;;  %v7420_v35 = vpop.f32.mrb[61].mxu0  ;;  %v7422_v37 = vpop.eup %4833  ;;  %v1912_v29 = vadd.f32 %v7412_v43, %v7406_v62  ;;  %v1694_v52 = vmax.f32 %v1648_v26, %v1650_v16  ;;  %v1649_v1 = vmul.f32 %v1413_v63, %v1413_v63  ;;  %4853 = vrcp.f32 %v1911_v17 }
 0x24e   : > { %9808 = vst [vmem:[#allocation93_spill] sm:$0xff] %v7420_v35  ;;  %v7426_v40 = vpop.eup %4835  ;;  %v1651_v48 = vmul.f32 %v1574_v25, %v1574_v25  ;;  %v2307_v35 = vld [vmem:[%s9552_s6 + $0x6b8] sm:$0xff]  ;;  %v1774_v23 = vmul.f32 1.442695, %v1725_v36  ;;  %v1870_v7 = vmul.f32 1.442695, %v1821_v9  ;;  %4855 = vpow2.f32 %v1772_v32 }
 0x24f   : > { %v7435_v4 = vpop.eup %4837  ;;  %v7439_v59 = vpop.f32.mrb[30].mxu1  ;;  %v1726_v25 = vsub.f32 %v1648_v26, %v1694_v52  ;;  %v1822_v43 = vsub.f32 %v1650_v16, %v1694_v52  ;;  %4857 = vpow2.f32 %v1868_v10  ;;  %v1652_v36 = vmul.f32 %v1417_v12, %v1417_v12 }
 0x250   : > { %v7441_v20 = vpop.f32.mrb[62].mxu0  ;;  %v7443_v63 = vpop.eup %4839  ;;  %v1695_v62 = vmax.f32 %v1649_v1, %v1651_v48  ;;  %v1578_v42 = vadd.f32 %v7304_v61, %v6938_v0  ;;  %4859 = vpow2.f32 %v1774_v23  ;;  %v7460_v26 = vpack.c.bf16 %v2307_v35, %v2303_v6 }
 0x251   : > { %9809 = vst [vmem:[#allocation94_spill] sm:$0xff] %v7441_v20  ;;  %9810 = vst [vmem:[#allocation95_spill] sm:$0xff] %v7443_v63  ;;  %v7445_v14 = vpop.f32.mrb[31].mxu1  ;;  %v7447_v47 = vpop.f32.mrb[63].mxu0  ;;  %v1913_v17 = vadd.f32 %v7443_v63, %v7426_v40  ;;  %v1776_v20 = vmul.f32 1.442695, %v1726_v25  ;;  %v1965_v61 = vmul.f32 %v7286_v31, %v7224_v56  ;;  %4861 = vpow2.f32 %v1870_v7 }
 0x252   : > { %v7453_v9 = vpop.eup %4841  ;;  %v1727_v32 = vsub.f32 %v1649_v1, %v1695_v62  ;;  %9811 = vst [vmem:[#allocation96_spill] sm:$0xff] %v7460_v26  ;;  %v1872_v10 = vmul.f32 1.442695, %v1822_v43  ;;  %v1823_v52 = vsub.f32 %v1651_v48, %v1695_v62  ;;  %v1654_v12 = vmul.f32 %v1578_v42, %v1578_v42  ;;  %v4959_v48 = vld [vmem:[%s6341_s11 + $0x8] sm:$0xff] }
 0x253   : > { %v7462_v16 = vpop.eup %4843  ;;  %v1419_v35 = vadd.f32 %v7312_v15, %v6941_v11  ;;  %4863 = vpow2.f32 %v1776_v20  ;;  %v2029_v62 = vmul.f32 %v4959_v48, %v1965_v61  ;;  %3897 = vst [vmem:[%s7458_s14 + $0x8] sm:$0xff] %v1965_v61  ;;  %v1580_v42 = vadd.f32 %v7314_v60, %v6945_v2 }
 0x254   : > { %9812 = vst [vmem:[#allocation97_spill] sm:$0xff] %v7462_v16  ;;  %v7466_v23 = vpop.eup %4845  ;;  %v1914_v1 = vadd.f32 %v7462_v16, %v7453_v9  ;;  %v1778_v25 = vmul.f32 1.442695, %v1727_v32  ;;  %v1874_v63 = vmul.f32 1.442695, %v1823_v52  ;;  %v1696_v43 = vmax.f32 %v1652_v36, %v1654_v12  ;;  %v9885_v16 = vld [vmem:[#allocation31_spill] sm:$0xff] }
 0x255   : > { %v7472_v6 = vpop.eup %4847  ;;  %4865 = vrcp.f32 %v1912_v29  ;;  %v1653_v56 = vmul.f32 %v1419_v35, %v1419_v35  ;;  %v1964_v7 = vmul.f32 %v7274_v21, %v7220_v39  ;;  %2434 = vmatprep.mubr.f32.mxu1 %v2029_v62  ;;  %2756 = vmatprep.mubr.f32.mxu0 %v2029_v62  ;;  %v1423_v52 = vadd.f32 %v7324_v51, %v6902_v54  ;;  %v4960_v35 = vld [vmem:[%s6341_s11] sm:$0xff] }
 0x256   : > { %v7480_v32 = vpop.eup %4849  ;;  %4867 = vpow2.f32 %v1872_v10  ;;  %v1728_v15 = vsub.f32 %v1652_v36, %v1696_v43  ;;  %v1824_v20 = vsub.f32 %v1654_v12, %v1696_v43  ;;  %v1655_v29 = vmul.f32 %v1580_v42, %v1580_v42 }
 0x257   : > { %v7484_v61 = vpop.eup %4851  ;;  %4869 = vpow2.f32 %v1778_v25  ;;  %v2028_v48 = vmul.f32 %v4960_v35, %v1964_v7  ;;  %3896 = vst [vmem:[%s7458_s14] sm:$0xff] %v1964_v7  ;;  %v1584_v39 = vadd.f32 %v7326_v24, %v6938_v0  ;;  %v1656_v25 = vmul.f32 %v1423_v52, %v1423_v52 }
 0x258   : > { %9813 = vst [vmem:[#allocation98_spill] sm:$0xff] %v7484_v61  ;;  %v7490_v60 = vpop.eup %4853  ;;  %v1915_v36 = vadd.f32 %v7484_v61, %v7480_v32  ;;  %4871 = vpow2.f32 %v1874_v63  ;;  %v1780_v10 = vmul.f32 1.442695, %v1728_v15  ;;  %v1876_v12 = vmul.f32 1.442695, %v1824_v20  ;;  %v9887_v61 = vld [vmem:[#allocation48_spill] sm:$0xff] }
 0x259   : > { %v7494_v43 = vpop.eup %4855  ;;  %4873 = vrcp.f32 %v1913_v17  ;;  %v1697_v51 = vmax.f32 %v1653_v56, %v1655_v29  ;;  %2435 = vmatmul.mubr.f32.vlgmr.msra.gmra.mrb[32].mxu1 %v2028_v48  ;;  %2757 = vmatmul.mubr.f32.vlgmr.msra.gmra.mrb[64].mxu0 %v2028_v48  ;;  %v1658_v62 = vmul.f32 %v1584_v39, %v1584_v39  ;;  %v9815_v24 = vpack.c.bf16 %v6801_v46, %v6796_v53 }
 0x25a   : > { %v7496_v42 = vpop.eup %4857  ;;  %4875 = vrcp.f32 %v1914_v1  ;;  %4527 = vmatpush1.bf16.msra.mxu0 %v6981_v22  ;;  %v1967_v63 = vmul.f32 %v7306_v58, %v7239_v49  ;;  %v1425_v17 = vadd.f32 %v7330_v55, %v6941_v11  ;;  %v1586_v7 = vadd.f32 %v7332_v57, %v6945_v2  ;;  %v4961_v55 = vld [vmem:[%s6341_s11 + $0x18] sm:$0xff] }
 0x25b   : > { %9814 = vst [vmem:[#allocation99_spill] sm:$0xff] %v7496_v42  ;;  %4399 = vmatpush1.bf16.msra.mxu1 %v9815_v24  ;;  %v7508_v15 = vpop.eup %4859  ;;  %v1916_v1 = vadd.f32 %v7496_v42, %v7494_v43  ;;  %4877 = vpow2.f32 %v1780_v10  ;;  %v1729_v53 = vsub.f32 %v1653_v56, %v1697_v51  ;;  %v1825_v46 = vsub.f32 %v1655_v29, %v1697_v51 }
 0x25c   : > { %v9816_v20 = vpack.c.bf16 %v6819_v34, %v6814_v45  ;;  %4529 = vmatprep.subr.bf16.mxu0 %v6987_v19  ;;  %4879 = vpow2.f32 %v1876_v12  ;;  %v1698_v49 = vmax.f32 %v1656_v25, %v1658_v62  ;;  %v2031_v52 = vmul.f32 %v4961_v55, %v1967_v63  ;;  %3901 = vst [vmem:[%s7458_s14 + $0x28] sm:$0xff] %v1967_v63  ;;  %v7518_v35 = vpop.eup %4861 }
 0x25d   : > { %v1657_v57 = vmul.f32 %v1425_v17, %v1425_v17  ;;  %9817 = vst [vmem:[#allocation100_spill] sm:$0xff] %v7518_v35  ;;  %4881 = vrcp.f32 %v1915_v36  ;;  %v1782_v48 = vmul.f32 1.442695, %v1729_v53  ;;  %v1878_v39 = vmul.f32 1.442695, %v1825_v46  ;;  %v7520_v56 = vpop.eup %4863  ;;  %v7550_v46 = vld [vmem:[%s6341_s11 + $0x10] sm:$0xff] }
 0x25e   : > { %4401 = vmatprep.subr.bf16.mxu1 %v9816_v20  ;;  %v1659_v10 = vmul.f32 %v1586_v7, %v1586_v7  ;;  %4883 = vrcp.f32 %v1916_v1  ;;  %v1917_v45 = vadd.f32 %v7518_v35, %v7508_v15  ;;  %v1730_v34 = vsub.f32 %v1656_v25, %v1698_v49  ;;  %2440 = vmatprep.mubr.f32.mxu1 %v2031_v52 }
 0x25f   : > { %v1826_v29 = vsub.f32 %v1658_v62, %v1698_v49  ;;  %2762 = vmatprep.mubr.f32.mxu0 %v2031_v52  ;;  %v7524_v12 = vpop.eup %4865  ;;  %4885 = vpow2.f32 %v1782_v48  ;;  %v1966_v36 = vmul.f32 %v7294_v8, %v7232_v38  ;;  %v9818_v24 = vpack.c.bf16 %v6829_v18, %v6824_v44  ;;  %4531 = vmatpush1.bf16.msra.mxu0 %v7021_v28  ;;  %v9824_v48 = vld [vmem:[#allocation9_spill] sm:$0xff] }
 0x260   : > { %v1699_v51 = vmax.f32 %v1657_v57, %v1659_v10  ;;  %v1429_v25 = vadd.f32 %v7352_v5, %v6902_v54  ;;  %v7534_v62 = vpop.eup %4867  ;;  %4887 = vrcp.f32 %v1917_v45  ;;  %v1784_v63 = vmul.f32 1.442695, %v1730_v34  ;;  %4533 = vmatprep.subr.bf16.mxu0 %v7027_v33  ;;  %9822 = vst [vmem:[#allocation103_spill] sm:$0xff] %v7550_v46 }
 0x261   : > { %4403 = vmatpush1.bf16.msra.mxu1 %v9818_v24  ;;  %9819 = vst [vmem:[#allocation101_spill] sm:$0xff] %v7534_v62  ;;  %v1880_v17 = vmul.f32 1.442695, %v1826_v29  ;;  %v1590_v7 = vadd.f32 %v7354_v50, %v6938_v0  ;;  %v9820_v38 = vpack.c.bf16 %v6851_v13, %v6846_v3  ;;  %v7542_v44 = vpop.eup %4869  ;;  %v1918_v18 = vadd.f32 %v7534_v62, %v7520_v56  ;;  %v9827_v29 = vld [vmem:[#allocation66_spill] sm:$0xff] }
 0x262   : > { %4889 = vpow2.f32 %v1878_v39  ;;  %v1731_v5 = vsub.f32 %v1657_v57, %v1699_v51  ;;  %v1827_v1 = vsub.f32 %v1659_v10, %v1699_v51  ;;  %3900 = vst [vmem:[%s7458_s14 + $0x20] sm:$0xff] %v1966_v36  ;;  %v7547_v53 = vpop.eup %4871  ;;  %v2030_v50 = vmul.f32 %v7550_v46, %v1966_v36  ;;  %v9823_v57 = vld [vmem:[#allocation10_spill] sm:$0xff]  ;;  %v9828_v36 = vld [vmem:[#allocation79_spill] sm:$0xff] }
 0x263   : > { %4405 = vmatprep.subr.bf16.mxu1 %v9820_v38  ;;  %9821 = vst [vmem:[#allocation102_spill] sm:$0xff] %v7547_v53  ;;  %4891 = vpow2.f32 %v1784_v63  ;;  %v1660_v3 = vmul.f32 %v1429_v25, %v1429_v25  ;;  %v1662_v13 = vmul.f32 %v1590_v7, %v1590_v7  ;;  %v7553_v20 = vpop.eup %4873  ;;  %v1919_v49 = vadd.f32 %v7547_v53, %v7542_v44  ;;  %v9826_v10 = vld [vmem:[#allocation34_spill] sm:$0xff]  ;;  %v9829_v63 = vld [vmem:[#allocation80_spill] sm:$0xff] }
 0x264   : > { %4893 = vrcp.f32 %v1918_v18  ;;  %v1786_v55 = vmul.f32 1.442695, %v1731_v5  ;;  %v1882_v52 = vmul.f32 1.442695, %v1827_v1  ;;  %v9825_v39 = vpack.c.bf16 %v9823_v57, %v9824_v48  ;;  %4535 = vmatpush1.bf16.msra.mxu0 %v9826_v10  ;;  %v7561_v45 = vpop.eup %4875  ;;  %2441 = vmatmul.mubr.f32.gmra.mrb[34].mxu1 %v2030_v50  ;;  %v9830_v38 = vld [vmem:[#allocation64_spill] sm:$0xff]  ;;  %v9831_v18 = vld [vmem:[#allocation71_spill] sm:$0xff] }
 0x265   : > { %4895 = vpow2.f32 %v1880_v17  ;;  %2763 = vmatmul.mubr.f32.gmra.mrb[66].mxu0 %v2030_v50  ;;  %v1700_v34 = vmax.f32 %v1660_v3, %v1662_v13  ;;  %v1969_v51 = vmul.f32 %v7376_v41, %v9827_v29  ;;  %v1431_v24 = vadd.f32 %v9828_v36, %v6941_v11  ;;  %v7567_v25 = vpop.eup %4877  ;;  %v9832_v5 = vld [vmem:[#allocation83_spill] sm:$0xff]  ;;  %v9833_v50 = vld [vmem:[#allocation12_spill] sm:$0xff]  ;;  %v7582_v10 = vld [vmem:[%s6341_s11 + $0x28] sm:$0xff] }
 0x266   : > { %4407 = vmatpush1.bf16.msra.mxu1 %v9825_v39  ;;  %4897 = vrcp.f32 %v1919_v49  ;;  %v1592_v7 = vadd.f32 %v9829_v63, %v6945_v2  ;;  %v1968_v17 = vmul.f32 %v9831_v18, %v9830_v38  ;;  %v1435_v1 = vadd.f32 %v9832_v5, %v6902_v54  ;;  %v9834_v57 = vld [vmem:[#allocation11_spill] sm:$0xff]  ;;  %v7579_v29 = vpop.eup %4879  ;;  %9838 = vst [vmem:[#allocation9_spill] sm:$0xff] %v7582_v10  ;;  %v9862_v62 = vld [vmem:[#allocation42_spill] sm:$0xff] }
 0x267   : > { %v9835_v48 = vpack.c.bf16 %v9833_v50, %v9834_v57  ;;  %v9836_v39 = vld [vmem:[#allocation35_spill] sm:$0xff]  ;;  %9837 = vst [vmem:[#allocation10_spill] sm:$0xff] %v7579_v29  ;;  %4899 = vpow2.f32 %v1786_v55  ;;  %v1732_v49 = vsub.f32 %v1660_v3, %v1700_v34  ;;  %v1828_v36 = vsub.f32 %v1662_v13, %v1700_v34  ;;  %3905 = vst [vmem:[%s7458_s14 + $0x48] sm:$0xff] %v1969_v51  ;;  %v7586_v38 = vpop.eup %4881  ;;  %v9842_v3 = vld [vmem:[#allocation37_spill] sm:$0xff] }
 0x268   : > { %4537 = vmatprep.subr.bf16.mxu0 %v9836_v39  ;;  %v2033_v63 = vmul.f32 %v7582_v10, %v1969_v51  ;;  %v1920_v5 = vadd.f32 %v7579_v29, %v7567_v25  ;;  %4901 = vpow2.f32 %v1882_v52  ;;  %v1661_v50 = vmul.f32 %v1431_v24, %v1431_v24  ;;  %3904 = vst [vmem:[%s7458_s14 + $0x40] sm:$0xff] %v1968_v17  ;;  %v9840_v39 = vld [vmem:[#allocation13_spill] sm:$0xff]  ;;  %v7595_v13 = vpop.eup %4883  ;;  %v7641_v29 = vld [vmem:[%s6341_s11 + $0x30] sm:$0xff] }
 0x269   : > { %4409 = vmatprep.subr.bf16.mxu1 %v9835_v48  ;;  %v1663_v57 = vmul.f32 %v1592_v7, %v1592_v7  ;;  %v9839_v48 = vld [vmem:[#allocation14_spill] sm:$0xff]  ;;  %4539 = vmatpush1.bf16.msra.mxu0 %v9842_v3  ;;  %v1788_v34 = vmul.f32 1.442695, %v1732_v49  ;;  %v1884_v33 = vmul.f32 1.442695, %v1828_v36  ;;  %v7598_v51 = vld [vmem:[%s6341_s11 + $0x20] sm:$0xff]  ;;  %v1664_v52 = vmul.f32 %v1435_v1, %v1435_v1  ;;  %v7601_v24 = vpop.eup %4885 }
 0x26a   : > { %v9841_v55 = vpack.c.bf16 %v9839_v48, %v9840_v39  ;;  %2446 = vmatprep.mubr.f32.mxu1 %v2033_v63  ;;  %2768 = vmatprep.mubr.f32.mxu0 %v2033_v63  ;;  %9843 = vst [vmem:[#allocation66_spill] sm:$0xff] %v7598_v51  ;;  %v2032_v28 = vmul.f32 %v7598_v51, %v1968_v17  ;;  %4903 = vrcp.f32 %v1920_v5  ;;  %v9844_v39 = vld [vmem:[#allocation84_spill] sm:$0xff]  ;;  %v9847_v36 = vld [vmem:[#allocation15_spill] sm:$0xff]  ;;  %v9849_v63 = vld [vmem:[#allocation38_spill] sm:$0xff]  ;;  %v7611_v46 = vpop.eup %4887 }
 0x26b   : > { %v1701_v7 = vmax.f32 %v1661_v50, %v1663_v57  ;;  %v1596_v48 = vadd.f32 %v9844_v39, %v6938_v0  ;;  %v9846_v49 = vld [vmem:[#allocation16_spill] sm:$0xff]  ;;  %4541 = vmatprep.subr.bf16.mxu0 %v9849_v63  ;;  %4905 = vpow2.f32 %v1788_v34  ;;  %v1437_v17 = vadd.f32 %v7396_v27, %v6941_v11  ;;  %v9850_v1 = vld [vmem:[#allocation86_spill] sm:$0xff]  ;;  %v9856_v27 = vld [vmem:[#allocation41_spill] sm:$0xff]  ;;  %9861 = vst [vmem:[#allocation64_spill] sm:$0xff] %v7641_v29 }
 0x26c   : > { %4411 = vmatpush1.bf16.msra.mxu1 %v9841_v55  ;;  %v9845_v55 = vld [vmem:[#allocation70_spill] sm:$0xff]  ;;  %v9848_v10 = vpack.c.bf16 %v9846_v49, %v9847_v36  ;;  %2769 = vmatmul.mubr.f32.gmra.mrb[68].mxu0 %v2032_v28  ;;  %v1598_v5 = vadd.f32 %v9850_v1, %v6945_v2  ;;  %v9851_v39 = vld [vmem:[#allocation68_spill] sm:$0xff]  ;;  %v7619_v49 = vpop.eup %4889  ;;  %4907 = vpow2.f32 %v1884_v33 }
 0x26d   : > { %v1971_v3 = vmul.f32 %v7422_v37, %v9845_v55  ;;  %2447 = vmatmul.mubr.f32.gmra.mrb[36].mxu1 %v2032_v28  ;;  %v1970_v55 = vmul.f32 %v7402_v30, %v9851_v39  ;;  %9852 = vst [vmem:[#allocation79_spill] sm:$0xff] %v7619_v49  ;;  %v1829_v36 = vsub.f32 %v1663_v57, %v1701_v7  ;;  %v9853_v34 = vld [vmem:[#allocation18_spill] sm:$0xff]  ;;  %v9854_v28 = vld [vmem:[#allocation17_spill] sm:$0xff]  ;;  %v7626_v19 = vpop.eup %4891  ;;  %v7631_v39 = vld [vmem:[%s6341_s11 + $0x38] sm:$0xff] }
 0x26e   : > { %4413 = vmatprep.subr.bf16.mxu1 %v9848_v10  ;;  %v1733_v10 = vsub.f32 %v1661_v50, %v1701_v7  ;;  %v1666_v63 = vmul.f32 %v1596_v48, %v1596_v48  ;;  %v9855_v51 = vpack.c.bf16 %v9853_v34, %v9854_v28  ;;  %4543 = vmatpush1.bf16.msra.mxu0 %v9856_v27  ;;  %v9858_v7 = vld [vmem:[#allocation20_spill] sm:$0xff]  ;;  %v9859_v48 = vld [vmem:[#allocation19_spill] sm:$0xff]  ;;  %v7638_v34 = vpop.eup %4893 }
 0x26f   : > { %3909 = vst [vmem:[%s7458_s14 + $0x68] sm:$0xff] %v1971_v3  ;;  %v1921_v1 = vadd.f32 %v7619_v49, %v7601_v24  ;;  %9857 = vst [vmem:[#allocation80_spill] sm:$0xff] %v7631_v39  ;;  %v2035_v33 = vmul.f32 %v7631_v39, %v1971_v3  ;;  %v1665_v50 = vmul.f32 %v1437_v17, %v1437_v17  ;;  %v1886_v28 = vmul.f32 1.442695, %v1829_v36  ;;  %v7645_v53 = vpop.eup %4895  ;;  %v9864_v17 = vld [vmem:[#allocation89_spill] sm:$0xff] }
 0x270   : > { %4415 = vmatpush1.bf16.msra.mxu1 %v9855_v51  ;;  %v1667_v57 = vmul.f32 %v1598_v5, %v1598_v5  ;;  %3908 = vst [vmem:[%s7458_s14 + $0x60] sm:$0xff] %v1970_v55  ;;  %v9860_v22 = vpack.c.bf16 %v9858_v7, %v9859_v48  ;;  %v1790_v51 = vmul.f32 1.442695, %v1733_v10  ;;  %v1702_v27 = vmax.f32 %v1664_v52, %v1666_v63  ;;  %v9865_v5 = vld [vmem:[#allocation90_spill] sm:$0xff]  ;;  %v7651_v36 = vpop.eup %4897  ;;  %v9867_v39 = vld [vmem:[#allocation21_spill] sm:$0xff] }
 0x271   : > { %v2034_v49 = vmul.f32 %v7641_v29, %v1970_v55  ;;  %4545 = vmatprep.subr.bf16.mxu0 %v9862_v62  ;;  %9863 = vst [vmem:[#allocation71_spill] sm:$0xff] %v7645_v53  ;;  %4909 = vrcp.f32 %v1921_v1  ;;  %2452 = vmatprep.mubr.f32.mxu1 %v2035_v33  ;;  %v1602_v10 = vadd.f32 %v9865_v5, %v6938_v0  ;;  %v7655_v1 = vpop.eup %4899  ;;  %v9869_v5 = vld [vmem:[#allocation45_spill] sm:$0xff] }
 0x272   : > { %4417 = vmatprep.subr.bf16.mxu1 %v9860_v22  ;;  %2774 = vmatprep.mubr.f32.mxu0 %v2035_v33  ;;  %v1703_v3 = vmax.f32 %v1665_v50, %v1667_v57  ;;  %v1441_v22 = vadd.f32 %v9864_v17, %v6902_v54  ;;  %v1922_v7 = vadd.f32 %v7645_v53, %v7626_v19  ;;  %4911 = vpow2.f32 %v1790_v51  ;;  %v9866_v17 = vld [vmem:[#allocation22_spill] sm:$0xff]  ;;  %v7661_v35 = vpop.eup %4901 }
 0x273   : > { %v1734_v55 = vsub.f32 %v1664_v52, %v1702_v27  ;;  %v1830_v48 = vsub.f32 %v1666_v63, %v1702_v27  ;;  %2453 = vmatmul.mubr.f32.gmra.mrb[38].mxu1 %v2034_v49  ;;  %2775 = vmatmul.mubr.f32.gmra.mrb[70].mxu0 %v2034_v49  ;;  %4913 = vpow2.f32 %v1886_v28  ;;  %v9868_v42 = vpack.c.bf16 %v9866_v17, %v9867_v39  ;;  %v9871_v49 = vld [vmem:[#allocation26_spill] sm:$0xff]  ;;  %v9872_v27 = vld [vmem:[#allocation25_spill] sm:$0xff]  ;;  %v9875_v28 = vld [vmem:[#allocation75_spill] sm:$0xff] }
 0x274   : > { %v1735_v33 = vsub.f32 %v1665_v50, %v1703_v3  ;;  %v1831_v62 = vsub.f32 %v1667_v57, %v1703_v3  ;;  %v1668_v29 = vmul.f32 %v1441_v22, %v1441_v22  ;;  %4547 = vmatpush1.bf16.msra.mxu0 %v9869_v5  ;;  %9870 = vst [vmem:[#allocation83_spill] sm:$0xff] %v7661_v35  ;;  %4915 = vrcp.f32 %v1922_v7  ;;  %v9874_v50 = vld [vmem:[#allocation46_spill] sm:$0xff]  ;;  %v7671_v22 = vpop.eup %4903 }
 0x275   : > { %4419 = vmatpush1.bf16.msra.mxu1 %v9868_v42  ;;  %v1792_v51 = vmul.f32 1.442695, %v1734_v55  ;;  %v1888_v52 = vmul.f32 1.442695, %v1830_v48  ;;  %v1670_v63 = vmul.f32 %v1602_v10, %v1602_v10  ;;  %v9873_v53 = vpack.c.bf16 %v9871_v49, %v9872_v27  ;;  %4549 = vmatprep.subr.bf16.mxu0 %v9874_v50  ;;  %v9876_v10 = vld [vmem:[#allocation92_spill] sm:$0xff]  ;;  %v9877_v48 = vld [vmem:[#allocation93_spill] sm:$0xff]  ;;  %v7677_v17 = vpop.eup %4905 }
 0x276   : > { %v1923_v39 = vadd.f32 %v7661_v35, %v7655_v1  ;;  %v1794_v42 = vmul.f32 1.442695, %v1735_v33  ;;  %v1890_v57 = vmul.f32 1.442695, %v1831_v62  ;;  %v1973_v3 = vmul.f32 %v7466_v23, %v9875_v28  ;;  %v7680_v49 = vld [vmem:[%s6341_s11 + $0x48] sm:$0xff]  ;;  %v9879_v33 = vld [vmem:[#allocation73_spill] sm:$0xff] }
 0x277   : > { %4421 = vmatprep.subr.bf16.mxu1 %v9873_v53  ;;  %4917 = vpow2.f32 %v1792_v51  ;;  %v1704_v7 = vmax.f32 %v1668_v29, %v1670_v63  ;;  %v1443_v55 = vadd.f32 %v9876_v10, %v6941_v11  ;;  %v1604_v53 = vadd.f32 %v9877_v48, %v6945_v2  ;;  %9878 = vst [vmem:[#allocation12_spill] sm:$0xff] %v7680_v49  ;;  %v9880_v28 = vld [vmem:[#allocation28_spill] sm:$0xff]  ;;  %v9881_v10 = vld [vmem:[#allocation27_spill] sm:$0xff] }
 0x278   : > { %4919 = vrcp.f32 %v1923_v39  ;;  %v2037_v62 = vmul.f32 %v7680_v49, %v1973_v3  ;;  %3913 = vst [vmem:[%s7458_s14 + $0x88] sm:$0xff] %v1973_v3  ;;  %v1972_v27 = vmul.f32 %v7435_v4, %v9879_v33  ;;  %v1447_v51 = vadd.f32 %v7439_v59, %v6902_v54  ;;  %v9883_v48 = vld [vmem:[#allocation47_spill] sm:$0xff]  ;;  %v7692_v39 = vpop.eup %4907  ;;  %v9884_v35 = vld [vmem:[#allocation32_spill] sm:$0xff] }
 0x279   : > { %v9882_v50 = vpack.c.bf16 %v9880_v28, %v9881_v10  ;;  %4551 = vmatpush1.bf16.msra.mxu0 %v9883_v48  ;;  %4921 = vpow2.f32 %v1888_v52  ;;  %v1736_v5 = vsub.f32 %v1668_v29, %v1704_v7  ;;  %v1832_v49 = vsub.f32 %v1670_v63, %v1704_v7  ;;  %v9893_v10 = vld [vmem:[#allocation33_spill] sm:$0xff] }
 0x27a   : > { %v1669_v3 = vmul.f32 %v1443_v55, %v1443_v55  ;;  %v9886_v33 = vpack.c.bf16 %v9884_v35, %v9885_v16  ;;  %4553 = vmatprep.subr.bf16.mxu0 %v9887_v61  ;;  %v1924_v54 = vadd.f32 %v7692_v39, %v7677_v17  ;;  %4923 = vpow2.f32 %v1794_v42  ;;  %2458 = vmatprep.mubr.f32.mxu1 %v2037_v62  ;;  %v9889_v42 = vld [vmem:[#allocation94_spill] sm:$0xff]  ;;  %v9910_v48 = vld [vmem:[#allocation49_spill] sm:$0xff] }
 0x27b   : > { %4423 = vmatpush1.bf16.msra.mxu1 %v9882_v50  ;;  %2780 = vmatprep.mubr.f32.mxu0 %v2037_v62  ;;  %v1671_v59 = vmul.f32 %v1604_v53, %v1604_v53  ;;  %v7701_v50 = vld [vmem:[%s6341_s11 + $0x40] sm:$0xff]  ;;  %3912 = vst [vmem:[%s7458_s14 + $0x80] sm:$0xff] %v1972_v27  ;;  %4925 = vpow2.f32 %v1890_v57  ;;  %v1796_v29 = vmul.f32 1.442695, %v1736_v5  ;;  %v1892_v63 = vmul.f32 1.442695, %v1832_v49  ;;  %v7707_v16 = vpop.eup %4909 }
 0x27c   : > { %4425 = vmatprep.subr.bf16.mxu1 %v9886_v33  ;;  %9888 = vst [vmem:[#allocation11_spill] sm:$0xff] %v7701_v50  ;;  %v2036_v52 = vmul.f32 %v7701_v50, %v1972_v27  ;;  %v7705_v7 = vmul.f32 %v1447_v51, %v1447_v51  ;;  %4927 = vrcp.f32 %v1924_v54  ;;  %v1608_v55 = vadd.f32 %v9889_v42, %v6938_v0  ;;  %v9890_v53 = vld [vmem:[#allocation85_spill] sm:$0xff]  ;;  %v7713_v28 = vpop.eup %4911  ;;  %v9892_v51 = vld [vmem:[#allocation36_spill] sm:$0xff]  ;;  %v9895_v0 = vld [vmem:[#allocation51_spill] sm:$0xff] }
 0x27d   : > { %v1705_v35 = vmax.f32 %v1669_v3, %v1671_v59  ;;  %v1975_v62 = vmul.f32 %v7490_v60, %v9890_v53  ;;  %4929 = vpow2.f32 %v1796_v29  ;;  %v1449_v5 = vadd.f32 %v7445_v14, %v6941_v11  ;;  %v9891_v49 = vld [vmem:[#allocation81_spill] sm:$0xff]  ;;  %4555 = vmatpush1.bf16.msra.mxu0 %v9895_v0  ;;  %v7725_v54 = vpop.eup %4913  ;;  %v9896_v14 = vld [vmem:[#allocation40_spill] sm:$0xff]  ;;  %v9899_v42 = vld [vmem:[#allocation54_spill] sm:$0xff] }
 0x27e   : > { %2459 = vmatmul.mubr.f32.gmra.mrb[40].mxu1 %v2036_v52  ;;  %2781 = vmatmul.mubr.f32.gmra.mrb[72].mxu0 %v2036_v52  ;;  %v1610_v57 = vadd.f32 %v7447_v47, %v6945_v2  ;;  %v1974_v27 = vmul.f32 %v7472_v6, %v9891_v49  ;;  %v9894_v33 = vpack.c.bf16 %v9892_v51, %v9893_v10  ;;  %4931 = vpow2.f32 %v1892_v63  ;;  %v9897_v2 = vld [vmem:[#allocation39_spill] sm:$0xff]  ;;  %v7732_v53 = vpop.eup %4915  ;;  %v7737_v51 = vld [vmem:[%s6341_s11 + $0x58] sm:$0xff]  ;;  %v7770_v61 = vld [vmem:[%s6341_s11 + $0x68] sm:$0xff] }
 0x27f   : > { %v1737_v52 = vsub.f32 %v1669_v3, %v1705_v35  ;;  %v1833_v29 = vsub.f32 %v1671_v59, %v1705_v35  ;;  %v1674_v11 = vmul.f32 %v1608_v55, %v1608_v55  ;;  %3917 = vst [vmem:[%s7458_s14 + $0xa8] sm:$0xff] %v1975_v62  ;;  %v9898_v47 = vpack.c.bf16 %v9896_v14, %v9897_v2 }
 0x280   : > { %4427 = vmatpush1.bf16.msra.mxu1 %v9894_v33  ;;  %4557 = vmatprep.subr.bf16.mxu0 %v9899_v42  ;;  %v1925_v49 = vadd.f32 %v7725_v54, %v7713_v28  ;;  %9900 = vst [vmem:[#allocation14_spill] sm:$0xff] %v7737_v51  ;;  %v2039_v63 = vmul.f32 %v7737_v51, %v1975_v62  ;;  %3916 = vst [vmem:[%s7458_s14 + $0xa0] sm:$0xff] %v1974_v27  ;;  %v7745_v33 = vld [vmem:[%s6341_s11 + $0x50] sm:$0xff] }
 0x281   : > { %4429 = vmatprep.subr.bf16.mxu1 %v9898_v47  ;;  %v1673_v3 = vmul.f32 %v1449_v5, %v1449_v5  ;;  %v7740_v10 = vmul.f32 %v1610_v57, %v1610_v57  ;;  %v1798_v59 = vmul.f32 1.442695, %v1737_v52  ;;  %v1894_v35 = vmul.f32 1.442695, %v1833_v29  ;;  %9901 = vst [vmem:[#allocation13_spill] sm:$0xff] %v7745_v33  ;;  %v7748_v2 = vpop.eup %4917  ;;  %v9902_v5 = vld [vmem:[#allocation88_spill] sm:$0xff] }
 0x282   : > { %v1706_v55 = vmax.f32 %v7705_v7, %v1674_v11  ;;  %v2038_v14 = vmul.f32 %v7745_v33, %v1974_v27  ;;  %4933 = vrcp.f32 %v1925_v49  ;;  %2464 = vmatprep.mubr.f32.mxu1 %v2039_v63  ;;  %2786 = vmatprep.mubr.f32.mxu0 %v2039_v63  ;;  %v1977_v62 = vmul.f32 %v7553_v20, %v7426_v40  ;;  %v2302_v52 = vld [vmem:[%s9552_s6 + $0x690] sm:$0xff]  ;;  %v7761_v29 = vpop.eup %4919 }
 0x283   : > { %v1707_v47 = vmax.f32 %v1673_v3, %v7740_v10  ;;  %v1976_v57 = vmul.f32 %v7524_v12, %v9902_v5  ;;  %v2306_v27 = vld [vmem:[%s9552_s6 + $0x6b0] sm:$0xff]  ;;  %4935 = vpow2.f32 %v1798_v59  ;;  %v1979_v40 = vmul.f32 %v7586_v38, %v7480_v32  ;;  %v7766_v5 = vpop.eup %4921  ;;  %9903 = vst [vmem:[#allocation84_spill] sm:$0xff] %v7770_v61 }
 0x284   : > { %v1738_v49 = vsub.f32 %v7705_v7, %v1706_v55  ;;  %v1834_v63 = vsub.f32 %v1674_v11, %v1706_v55  ;;  %2465 = vmatmul.mubr.f32.gmra.mrb[42].mxu1 %v2038_v14  ;;  %2787 = vmatmul.mubr.f32.gmra.mrb[74].mxu0 %v2038_v14  ;;  %4937 = vpow2.f32 %v1894_v35  ;;  %v2041_v59 = vmul.f32 %v7770_v61, %v1977_v62  ;;  %v9904_v7 = vld [vmem:[#allocation44_spill] sm:$0xff]  ;;  %v9905_v11 = vld [vmem:[#allocation43_spill] sm:$0xff]  ;;  %v7779_v32 = vpop.eup %4923 }
 0x285   : > { %v1739_v42 = vsub.f32 %v1673_v3, %v1707_v47  ;;  %v1835_v0 = vsub.f32 %v7740_v10, %v1707_v47  ;;  %3921 = vst [vmem:[%s7458_s14 + $0xc8] sm:$0xff] %v1977_v62  ;;  %3920 = vst [vmem:[%s7458_s14 + $0xc0] sm:$0xff] %v1976_v57  ;;  %v9906_v55 = vpack.c.bf16 %v9904_v7, %v9905_v11  ;;  %v9907_v14 = vld [vmem:[#allocation55_spill] sm:$0xff]  ;;  %v7784_v10 = vld [vmem:[%s6341_s11 + $0x60] sm:$0xff] }
 0x286   : > { %4559 = vmatpush1.bf16.msra.mxu0 %v9907_v14  ;;  %v1926_v3 = vadd.f32 %v7766_v5, %v7748_v2  ;;  %v1800_v35 = vmul.f32 1.442695, %v1738_v49  ;;  %9908 = vst [vmem:[#allocation70_spill] sm:$0xff] %v7784_v10  ;;  %v2040_v47 = vmul.f32 %v7784_v10, %v1976_v57  ;;  %3925 = vst [vmem:[%s7458_s14 + $0xe8] sm:$0xff] %v1979_v40  ;;  %v9909_v62 = vld [vmem:[#allocation50_spill] sm:$0xff]  ;;  %2470 = vmatprep.mubr.f32.mxu1 %v2041_v59  ;;  %v7797_v49 = vld [vmem:[%s6341_s11 + $0x78] sm:$0xff] }
 0x287   : > { %4431 = vmatpush1.bf16.msra.mxu1 %v9906_v55  ;;  %v9911_v61 = vpack.c.bf16 %v9909_v62, %v9910_v48  ;;  %v9912_v7 = vld [vmem:[#allocation58_spill] sm:$0xff]  ;;  %v7792_v11 = vpack.c.bf16 %v2306_v27, %v2302_v52  ;;  %v7794_v55 = vpop.eup %4925  ;;  %v1896_v14 = vmul.f32 1.442695, %v1834_v63  ;;  %v1802_v33 = vmul.f32 1.442695, %v1739_v42  ;;  %2792 = vmatprep.mubr.f32.mxu0 %v2041_v59  ;;  %9914 = vst [vmem:[#allocation15_spill] sm:$0xff] %v7797_v49 }
 0x288   : > { %4561 = vmatprep.subr.bf16.mxu0 %v9912_v7  ;;  %v2043_v51 = vmul.f32 %v7797_v49, %v1979_v40  ;;  %v1978_v57 = vmul.f32 %v7561_v45, %v7453_v9  ;;  %v7807_v48 = vpop.eup %4927  ;;  %4939 = vrcp.f32 %v1926_v3  ;;  %v1927_v42 = vadd.f32 %v7794_v55, %v7779_v32  ;;  %2471 = vmatmul.mubr.f32.gmra.mrb[44].mxu1 %v2040_v47  ;;  %v7818_v27 = vld [vmem:[%s9552_s6 + $0x6e8] sm:$0xff]  ;;  %v2311_v63 = vld [vmem:[%s9552_s6 + $0x6d8] sm:$0xff]  ;;  %v7838_v62 = vld [vmem:[%s6341_s11 + $0x70] sm:$0xff] }
 0x289   : > { %4433 = vmatprep.subr.bf16.mxu1 %v9911_v61  ;;  %9913 = vst [vmem:[#allocation16_spill] sm:$0xff] %v7792_v11  ;;  %v7805_v61 = vld [vmem:[%s9552_s6 + $0x6c8] sm:$0xff]  ;;  %2793 = vmatmul.mubr.f32.gmra.mrb[76].mxu0 %v2040_v47  ;;  %v1981_v52 = vmul.f32 %v7611_v46, %v7508_v15  ;;  %v1980_v9 = vmul.f32 %v7595_v13, %v7494_v43  ;;  %v2315_v40 = vld [vmem:[%s9552_s6 + $0x6f8] sm:$0xff]  ;;  %v7826_v15 = vpop.eup %4929  ;;  %4941 = vpow2.f32 %v1800_v35  ;;  %v1898_v43 = vmul.f32 1.442695, %v1835_v0 }
 0x28a   : > { %2476 = vmatprep.mubr.f32.mxu1 %v2043_v51  ;;  %2798 = vmatprep.mubr.f32.mxu0 %v2043_v51  ;;  %3924 = vst [vmem:[%s7458_s14 + $0xe0] sm:$0xff] %v1978_v57  ;;  %v1983_v59 = vmul.f32 %v7651_v36, %v7542_v44  ;;  %v7833_v3 = vmul.f32 %v7638_v34, %v7520_v56  ;;  %v7835_v47 = vpop.eup %4931  ;;  %4943 = vrcp.f32 %v1927_v42  ;;  %9915 = vst [vmem:[#allocation86_spill] sm:$0xff] %v7838_v62  ;;  %v7842_v0 = vld [vmem:[%s6341_s11 + $0x88] sm:$0xff]  ;;  %v9917_v44 = vld [vmem:[#allocation53_spill] sm:$0xff] }
 0x28b   : > { %v2042_v35 = vmul.f32 %v7838_v62, %v1978_v57  ;;  %9916 = vst [vmem:[#allocation68_spill] sm:$0xff] %v7842_v0  ;;  %v2045_v51 = vmul.f32 %v7842_v0, %v1981_v52  ;;  %3929 = vst [vmem:[%s7458_s14 + $0x108] sm:$0xff] %v1981_v52  ;;  %v9918_v7 = vld [vmem:[#allocation52_spill] sm:$0xff]  ;;  %v9920_v56 = vld [vmem:[#allocation59_spill] sm:$0xff]  ;;  %v7853_v10 = vmul.f32 %v7707_v16, %v7601_v24  ;;  %4945 = vpow2.f32 %v1896_v14 }
 0x28c   : > { %3928 = vst [vmem:[%s7458_s14 + $0x100] sm:$0xff] %v1980_v9  ;;  %v9919_v49 = vpack.c.bf16 %v9917_v44, %v9918_v7  ;;  %4563 = vmatpush1.bf16.msra.mxu0 %v9920_v56  ;;  %v7858_v57 = vld [vmem:[%s9552_s6 + $0x6c0] sm:$0xff]  ;;  %v1928_v7 = vadd.f32 %v7835_v47, %v7826_v15  ;;  %3933 = vst [vmem:[%s7458_s14 + $0x128] sm:$0xff] %v1983_v59  ;;  %v4440_v44 = vpack.c.bf16 %v7818_v27, %v7805_v61  ;;  %v2310_v0 = vld [vmem:[%s9552_s6 + $0x6d0] sm:$0xff] }
 0x28d   : > { %v7863_v42 = vld [vmem:[%s9552_s6 + $0x6e0] sm:$0xff]  ;;  %3932 = vst [vmem:[%s7458_s14 + $0x120] sm:$0xff] %v7833_v3  ;;  %4565 = vmatprep.subr.bf16.mxu0 %v7460_v26  ;;  %v7876_v56 = vpack.c.bf16 %v2315_v40, %v2311_v63  ;;  %v2314_v14 = vld [vmem:[%s9552_s6 + $0x6f0] sm:$0xff]  ;;  %4947 = vpow2.f32 %v1802_v33  ;;  %2477 = vmatmul.mubr.f32.gmra.mrb[46].mxu1 %v2042_v35  ;;  %3937 = vst [vmem:[%s7458_s14 + $0x148] sm:$0xff] %v7853_v10  ;;  %v7892_v61 = vmul.f32 %v7761_v29, %v7655_v1  ;;  %v7900_v63 = vpop.eup %4933 }
 0x28e   : > { %4435 = vmatpush1.bf16.msra.mxu1 %v9919_v49  ;;  %v9921_v24 = vld [vmem:[#allocation57_spill] sm:$0xff]  ;;  %v9922_v49 = vld [vmem:[#allocation56_spill] sm:$0xff]  ;;  %2799 = vmatmul.mubr.f32.gmra.mrb[78].mxu0 %v2042_v35  ;;  %v2317_v27 = vld [vmem:[%s9552_s6 + $0x708] sm:$0xff]  ;;  %4949 = vrcp.f32 %v1928_v7  ;;  %v7908_v40 = vmul.f32 %v7732_v53, %v7626_v19  ;;  %v4442_v35 = vpack.c.bf16 %v7863_v42, %v7858_v57  ;;  %v7918_v7 = vpop.eup %4935  ;;  %v7932_v26 = vpack.c.bf16 %v2314_v14, %v2310_v0 }
 0x28f   : > { %v9923_v52 = vpack.c.bf16 %v9921_v24, %v9922_v49  ;;  %9924 = vst [vmem:[#allocation18_spill] sm:$0xff] %v7876_v56  ;;  %v7888_v24 = vmul.f32 %v7671_v22, %v7567_v25  ;;  %v2321_v33 = vld [vmem:[%s9552_s6 + $0x728] sm:$0xff]  ;;  %2482 = vmatprep.mubr.f32.mxu1 %v2045_v51  ;;  %2804 = vmatprep.mubr.f32.mxu0 %v2045_v51  ;;  %v7903_v25 = vld [vmem:[%s6341_s11 + $0x98] sm:$0xff]  ;;  %4951 = vpow2.f32 %v1898_v43  ;;  %3941 = vst [vmem:[%s7458_s14 + $0x168] sm:$0xff] %v7892_v61 }
 0x290   : > { %9925 = vst [vmem:[#allocation17_spill] sm:$0xff] %v7903_v25  ;;  %v2047_v1 = vmul.f32 %v7903_v25, %v1983_v59  ;;  %v2319_v49 = vld [vmem:[%s9552_s6 + $0x718] sm:$0xff]  ;;  %v7921_v59 = vld [vmem:[%s6341_s11 + $0x80] sm:$0xff]  ;;  %4567 = vmatpush1.bf16.msra.mxu0 %v7792_v11  ;;  %9930 = vst [vmem:[#allocation19_spill] sm:$0xff] %v7932_v26  ;;  %v7936_v43 = vmul.f32 %v7900_v63, %v7713_v28  ;;  %v4444_v0 = vpack.c.bf16 %v2321_v33, %v2317_v27 }
 0x291   : > { %4437 = vmatprep.subr.bf16.mxu1 %v9923_v52  ;;  %v2323_v51 = vld [vmem:[%s9552_s6 + $0x738] sm:$0xff]  ;;  %9926 = vst [vmem:[#allocation20_spill] sm:$0xff] %v7921_v59  ;;  %v2044_v19 = vmul.f32 %v7921_v59, %v1980_v9  ;;  %3936 = vst [vmem:[%s7458_s14 + $0x140] sm:$0xff] %v7888_v24  ;;  %v9927_v52 = vld [vmem:[#allocation77_spill] sm:$0xff]  ;;  %4569 = vmatprep.subr.bf16.mxu0 %v7876_v56  ;;  %v7953_v28 = vmul.f32 %v7807_v48, %v7677_v17 }
 0x292   : > { %v9928_v57 = vld [vmem:[#allocation76_spill] sm:$0xff]  ;;  %v7941_v9 = vld [vmem:[%s9552_s6 + $0x700] sm:$0xff]  ;;  %3940 = vst [vmem:[%s7458_s14 + $0x160] sm:$0xff] %v7908_v40  ;;  %v2318_v14 = vld [vmem:[%s9552_s6 + $0x710] sm:$0xff]  ;;  %v7968_v17 = vpack.c.bf16 %v2323_v51, %v2319_v49 }
 0x293   : > { %v9929_v42 = vpack.c.bf16 %v9927_v52, %v9928_v57  ;;  %v2320_v52 = vld [vmem:[%s9552_s6 + $0x720] sm:$0xff]  ;;  %v7946_v57 = vpop.eup %4937  ;;  %2483 = vmatmul.mubr.f32.gmra.mrb[48].mxu1 %v2044_v19  ;;  %2805 = vmatmul.mubr.f32.gmra.mrb[80].mxu0 %v2044_v19  ;;  %3945 = vst [vmem:[%s7458_s14 + $0x188] sm:$0xff] %v7936_v43  ;;  %v2329_v33 = vld [vmem:[%s9552_s6 + $0x768] sm:$0xff]  ;;  %v2327_v56 = vld [vmem:[%s9552_s6 + $0x758] sm:$0xff] }
 0x294   : > { %v1929_v27 = vadd.f32 %v7946_v57, %v7918_v7  ;;  %9931 = vst [vmem:[#allocation89_spill] sm:$0xff] %v7968_v17  ;;  %v2331_v11 = vld [vmem:[%s9552_s6 + $0x778] sm:$0xff]  ;;  %2488 = vmatprep.mubr.f32.mxu1 %v2047_v1  ;;  %2810 = vmatprep.mubr.f32.mxu0 %v2047_v1  ;;  %v7980_v25 = vld [vmem:[%s6341_s11 + $0xa8] sm:$0xff]  ;;  %3944 = vst [vmem:[%s7458_s14 + $0x180] sm:$0xff] %v7953_v28  ;;  %v7986_v51 = vpop.eup %4939  ;;  %v4446_v1 = vpack.c.bf16 %v2320_v52, %v7941_v9 }
 0x295   : > { %4439 = vmatpush1.bf16.msra.mxu1 %v9929_v42  ;;  %v2322_v42 = vld [vmem:[%s9552_s6 + $0x730] sm:$0xff]  ;;  %9932 = vst [vmem:[#allocation90_spill] sm:$0xff] %v7980_v25  ;;  %v2049_v49 = vmul.f32 %v7980_v25, %v7853_v10  ;;  %4571 = vmatpush1.bf16.msra.mxu0 %v7932_v26  ;;  %v8000_v10 = vld [vmem:[%s9552_s6 + $0x740] sm:$0xff]  ;;  %v8012_v9 = vmul.f32 %v7986_v51, %v7748_v2  ;;  %v2335_v26 = vld [vmem:[%s9552_s6 + $0x798] sm:$0xff] }
 0x296   : > { %4441 = vmatprep.subr.bf16.mxu1 %v4440_v44  ;;  %v2325_v44 = vld [vmem:[%s9552_s6 + $0x748] sm:$0xff]  ;;  %4953 = vrcp.f32 %v1929_v27  ;;  %v7989_v19 = vld [vmem:[%s6341_s11 + $0x90] sm:$0xff]  ;;  %v7995_v62 = vpack.c.bf16 %v2322_v42, %v2318_v14  ;;  %v8005_v27 = vld [vmem:[%s9552_s6 + $0x760] sm:$0xff]  ;;  %4573 = vmatprep.subr.bf16.mxu0 %v7968_v17  ;;  %v8014_v52 = vpack.c.bf16 %v2331_v11, %v2327_v56 }
 0x297   : > { %9933 = vst [vmem:[#allocation22_spill] sm:$0xff] %v7989_v19  ;;  %v2046_v59 = vmul.f32 %v7989_v19, %v7833_v3  ;;  %v8007_v3 = vpop.eup %4941  ;;  %v2326_v14 = vld [vmem:[%s9552_s6 + $0x750] sm:$0xff]  ;;  %v8030_v2 = vld [vmem:[%s6341_s11 + $0xa0] sm:$0xff]  ;;  %v8035_v56 = vld [vmem:[%s6341_s11 + $0xb8] sm:$0xff] }
 0x298   : > { %9934 = vst [vmem:[#allocation21_spill] sm:$0xff] %v7995_v62  ;;  %9935 = vst [vmem:[#allocation26_spill] sm:$0xff] %v8014_v52  ;;  %v2330_v42 = vld [vmem:[%s9552_s6 + $0x770] sm:$0xff]  ;;  %v2048_v11 = vmul.f32 %v8030_v2, %v7888_v24  ;;  %v2337_v17 = vld [vmem:[%s9552_s6 + $0x7a8] sm:$0xff] }
 0x299   : > { %4443 = vmatpush1.bf16.msra.mxu1 %v4442_v35  ;;  %v4448_v35 = vpack.c.bf16 %v2329_v33, %v2325_v44  ;;  %v8027_v44 = vpop.eup %4943  ;;  %2811 = vmatmul.mubr.f32.gmra.mrb[82].mxu0 %v2046_v59  ;;  %9936 = vst [vmem:[#allocation25_spill] sm:$0xff] %v8030_v2  ;;  %9937 = vst [vmem:[#allocation75_spill] sm:$0xff] %v8035_v56  ;;  %v2051_v33 = vmul.f32 %v8035_v56, %v7892_v61  ;;  %v8051_v24 = vld [vmem:[%s6341_s11 + $0xb0] sm:$0xff] }
 0x29a   : > { %4445 = vmatprep.subr.bf16.mxu1 %v4444_v0  ;;  %v8025_v0 = vld [vmem:[%s9552_s6 + $0x788] sm:$0xff]  ;;  %2489 = vmatmul.mubr.f32.gmra.mrb[50].mxu1 %v2046_v59  ;;  %v2339_v59 = vld [vmem:[%s9552_s6 + $0x7b8] sm:$0xff]  ;;  %v8048_v25 = vpop.eup %4945  ;;  %9939 = vst [vmem:[#allocation93_spill] sm:$0xff] %v8051_v24  ;;  %v2050_v61 = vmul.f32 %v8051_v24, %v7908_v40  ;;  %v8057_v56 = vmul.f32 %v8027_v44, %v7779_v32  ;;  %3948 = vst [vmem:[%s7458_s14 + $0x1a0] sm:$0xff] %v8012_v9 }
 0x29b   : > { %9938 = vst [vmem:[#allocation92_spill] sm:$0xff] %v8048_v25  ;;  %2494 = vmatprep.mubr.f32.mxu1 %v2049_v49  ;;  %2816 = vmatprep.mubr.f32.mxu0 %v2049_v49  ;;  %v4450_v2 = vpack.c.bf16 %v8005_v27, %v8000_v10  ;;  %v8063_v19 = vpop.eup %4947  ;;  %v1930_v49 = vadd.f32 %v8048_v25, %v8007_v3  ;;  %v8073_v32 = vld [vmem:[%s9552_s6 + $0x780] sm:$0xff]  ;;  %v2334_v10 = vld [vmem:[%s9552_s6 + $0x790] sm:$0xff] }
 0x29c   : > { %4575 = vmatpush1.bf16.msra.mxu0 %v7995_v62  ;;  %v8068_v50 = vpack.c.bf16 %v2330_v42, %v2326_v14  ;;  %v8078_v40 = vld [vmem:[%s9552_s6 + $0x7a0] sm:$0xff]  ;;  %v8087_v14 = vpop.eup %4949  ;;  %3949 = vst [vmem:[%s7458_s14 + $0x1a8] sm:$0xff] %v8057_v56  ;;  %v4452_v42 = vpack.c.bf16 %v2337_v17, %v8025_v0  ;;  %v8093_v62 = vpack.c.bf16 %v2339_v59, %v2335_v26  ;;  %v2338_v24 = vld [vmem:[%s9552_s6 + $0x7b0] sm:$0xff]  ;;  %v8111_v26 = vld [vmem:[%s6341_s11 + $0xc8] sm:$0xff] }
 0x29d   : > { %4447 = vmatpush1.bf16.msra.mxu1 %v4446_v1  ;;  %v9940_v27 = vld [vmem:[#allocation61_spill] sm:$0xff]  ;;  %4577 = vmatprep.subr.bf16.mxu0 %v8014_v52  ;;  %v8108_v17 = vpop.eup %4951  ;;  %4955 = vrcp.f32 %v1930_v49  ;;  %9942 = vst [vmem:[#allocation73_spill] sm:$0xff] %v8111_v26  ;;  %v2053_v0 = vmul.f32 %v8111_v26, %v7936_v43  ;;  %v8117_v59 = vmul.f32 %v8087_v14, %v7826_v15  ;;  %v2347_v49 = vld [vmem:[%s9552_s6 + $0x7f8] sm:$0xff]  ;;  %v9944_v26 = vld [vmem:[#allocation62_spill] sm:$0xff] }
 0x29e   : > { %v8085_v1 = vmul.f32 %v7286_v31, %v9940_v27  ;;  %4449 = vmatprep.subr.bf16.mxu1 %v4448_v35  ;;  %v2341_v31 = vld [vmem:[%s9552_s6 + $0x7c8] sm:$0xff]  ;;  %v9941_v35 = vld [vmem:[#allocation60_spill] sm:$0xff]  ;;  %2495 = vmatmul.mubr.f32.gmra.mrb[52].mxu1 %v2048_v11  ;;  %v1931_v43 = vadd.f32 %v8108_v17, %v8063_v19  ;;  %v4454_v15 = vpack.c.bf16 %v8078_v40, %v8073_v32  ;;  %v9945_v32 = vld [vmem:[#allocation67_spill] sm:$0xff] }
 0x29f   : > { %v2345_v27 = vld [vmem:[%s9552_s6 + $0x7e8] sm:$0xff]  ;;  %v8106_v52 = vmul.f32 %v7274_v21, %v9941_v35  ;;  %2817 = vmatmul.mubr.f32.gmra.mrb[84].mxu0 %v2048_v11  ;;  %v2343_v21 = vld [vmem:[%s9552_s6 + $0x7d8] sm:$0xff]  ;;  %v9943_v11 = vld [vmem:[#allocation63_spill] sm:$0xff]  ;;  %2500 = vmatprep.mubr.f32.mxu1 %v2051_v33  ;;  %v8139_v25 = vmul.f32 %v7294_v8, %v9944_v26  ;;  %3952 = vst [vmem:[%s7458_s14 + $0x1c0] sm:$0xff] %v8117_v59 }
 0x2a0   : > { %3899 = vst [vmem:[%s7458_s14 + $0x18] sm:$0xff] %v8085_v1  ;;  %v8129_v35 = vmul.f32 %v7306_v58, %v9943_v11  ;;  %2822 = vmatprep.mubr.f32.mxu0 %v2051_v33  ;;  %4579 = vmatpush1.bf16.msra.mxu0 %v8068_v50  ;;  %v8144_v58 = vpack.c.bf16 %v2338_v24, %v2334_v10  ;;  %v2340_v33 = vld [vmem:[%s9552_s6 + $0x7c0] sm:$0xff]  ;;  %4957 = vrcp.f32 %v1931_v43  ;;  %v2342_v40 = vld [vmem:[%s9552_s6 + $0x7d0] sm:$0xff]  ;;  %v8177_v26 = vpop.eup %4953  ;;  %v9949_v43 = vld [vmem:[#allocation78_spill] sm:$0xff] }
 0x2a1   : > { %3898 = vst [vmem:[%s7458_s14 + $0x10] sm:$0xff] %v8106_v52  ;;  %4451 = vmatpush1.bf16.msra.mxu1 %v4450_v2  ;;  %v4456_v11 = vpack.c.bf16 %v2345_v27, %v2341_v31  ;;  %v8153_v8 = vmul.f32 %v7376_v41, %v9945_v32  ;;  %4581 = vmatprep.subr.bf16.mxu0 %v8093_v62  ;;  %v2344_v2 = vld [vmem:[%s9552_s6 + $0x7e0] sm:$0xff]  ;;  %v2346_v41 = vld [vmem:[%s9552_s6 + $0x7f0] sm:$0xff]  ;;  %3902 = vst [vmem:[%s7458_s14 + $0x30] sm:$0xff] %v8139_v25 }
 0x2a2   : > { %3903 = vst [vmem:[%s7458_s14 + $0x38] sm:$0xff] %v8129_v35  ;;  %4453 = vmatprep.subr.bf16.mxu1 %v4452_v42  ;;  %v8159_v24 = vpack.c.bf16 %v2347_v49, %v2343_v21  ;;  %v9946_v10 = vld [vmem:[#allocation65_spill] sm:$0xff]  ;;  %v9947_v31 = vld [vmem:[#allocation72_spill] sm:$0xff]  ;;  %2501 = vmatmul.mubr.f32.gmra.mrb[54].mxu1 %v2050_v61 }
 0x2a3   : > { %v8171_v42 = vmul.f32 %v9831_v18, %v9946_v10  ;;  %v8175_v27 = vmul.f32 %v7422_v37, %v9947_v31  ;;  %2823 = vmatmul.mubr.f32.gmra.mrb[86].mxu0 %v2050_v61  ;;  %3907 = vst [vmem:[%s7458_s14 + $0x58] sm:$0xff] %v8153_v8  ;;  %v9948_v21 = vld [vmem:[#allocation69_spill] sm:$0xff]  ;;  %v8187_v18 = vmul.f32 %v7466_v23, %v9949_v43  ;;  %v8195_v32 = vld [vmem:[%s6341_s11 + $0xd8] sm:$0xff]  ;;  %v9955_v31 = vld [vmem:[#allocation98_spill] sm:$0xff] }
 0x2a4   : > { %v8183_v49 = vmul.f32 %v7402_v30, %v9948_v21  ;;  %2506 = vmatprep.mubr.f32.mxu1 %v2053_v0  ;;  %2828 = vmatprep.mubr.f32.mxu0 %v2053_v0  ;;  %v8190_v37 = vld [vmem:[%s6341_s11 + $0xc0] sm:$0xff]  ;;  %v2055_v10 = vmul.f32 %v8195_v32, %v8057_v56  ;;  %v1993_v30 = vmul.f32 %v8177_v26, %v7918_v7  ;;  %v9951_v56 = vld [vmem:[#allocation87_spill] sm:$0xff] }
 0x2a5   : > { %v2052_v61 = vmul.f32 %v8190_v37, %v7953_v28  ;;  %3906 = vst [vmem:[%s7458_s14 + $0x50] sm:$0xff] %v8171_v42  ;;  %3911 = vst [vmem:[%s7458_s14 + $0x78] sm:$0xff] %v8175_v27  ;;  %4455 = vmatpush1.bf16.msra.mxu1 %v4454_v15  ;;  %4583 = vmatpush1.bf16.msra.mxu0 %v8144_v58  ;;  %v4458_v23 = vpack.c.bf16 %v2344_v2, %v2340_v33  ;;  %v9950_v28 = vld [vmem:[#allocation74_spill] sm:$0xff]  ;;  %v8249_v43 = vld [vmem:[%s6341_s11 + $0xd0] sm:$0xff] }
 0x2a6   : > { %v8206_v0 = vpack.c.bf16 %v2346_v41, %v2342_v40  ;;  %3910 = vst [vmem:[%s7458_s14 + $0x70] sm:$0xff] %v8183_v49  ;;  %3915 = vst [vmem:[%s7458_s14 + $0x98] sm:$0xff] %v8187_v18  ;;  %v8214_v7 = vmul.f32 %v7435_v4, %v9950_v28  ;;  %4457 = vmatprep.subr.bf16.mxu1 %v4456_v11  ;;  %4585 = vmatprep.subr.bf16.mxu0 %v8159_v24  ;;  %v9952_v33 = vld [vmem:[#allocation82_spill] sm:$0xff]  ;;  %v9953_v4 = vld [vmem:[#allocation95_spill] sm:$0xff] }
 0x2a7   : > { %3953 = vst [vmem:[%s7458_s14 + $0x1c8] sm:$0xff] %v1993_v30  ;;  %v8220_v15 = vmul.f32 %v7490_v60, %v9951_v56  ;;  %v8224_v2 = vmul.f32 %v7472_v6, %v9952_v33  ;;  %2507 = vmatmul.mubr.f32.gmra.mrb[56].mxu1 %v2052_v61  ;;  %2829 = vmatmul.mubr.f32.gmra.mrb[88].mxu0 %v2052_v61  ;;  %v9954_v40 = vld [vmem:[#allocation91_spill] sm:$0xff]  ;;  %v8237_v60 = vld [vmem:[%s6341_s11 + $0xe8] sm:$0xff]  ;;  %v9956_v61 = vld [vmem:[#allocation97_spill] sm:$0xff] }
 0x2a8   : > { %3914 = vst [vmem:[%s7458_s14 + $0x90] sm:$0xff] %v8214_v7  ;;  %v8230_v11 = vmul.f32 %v7553_v20, %v9953_v4  ;;  %v8234_v41 = vmul.f32 %v7524_v12, %v9954_v40  ;;  %2512 = vmatprep.mubr.f32.mxu1 %v2055_v10  ;;  %2834 = vmatprep.mubr.f32.mxu0 %v2055_v10  ;;  %v4956_v20 = vpop.eup %4955  ;;  %v9959_v28 = vld [vmem:[#allocation99_spill] sm:$0xff]  ;;  %v9961_v33 = vld [vmem:[#allocation101_spill] sm:$0xff] }
 0x2a9   : > { %v2057_v6 = vmul.f32 %v8237_v60, %v1993_v30  ;;  %3919 = vst [vmem:[%s7458_s14 + $0xb8] sm:$0xff] %v8220_v15  ;;  %3918 = vst [vmem:[%s7458_s14 + $0xb0] sm:$0xff] %v8224_v2  ;;  %v8246_v21 = vmul.f32 %v7586_v38, %v9955_v31  ;;  %v2054_v12 = vmul.f32 %v8249_v43, %v8012_v9  ;;  %4459 = vmatpush1.bf16.msra.mxu1 %v4458_v23  ;;  %v9957_v30 = vld [vmem:[#allocation7_spill] sm:$0xff]  ;;  %v9958_v9 = vld [vmem:[#allocation100_spill] sm:$0xff] }
 0x2aa   : > { %4587 = vmatpush1.bf16.msra.mxu0 %v8206_v0  ;;  %3923 = vst [vmem:[%s7458_s14 + $0xd8] sm:$0xff] %v8230_v11  ;;  %3922 = vst [vmem:[%s7458_s14 + $0xd0] sm:$0xff] %v8234_v41  ;;  %v8260_v38 = vmul.f32 %v7561_v45, %v9956_v61  ;;  %v1994_v10 = vmul.f32 %v4956_v20, %v8007_v3  ;;  %4588 = vmatprep.subr.bf16.mxu1 %v9957_v30  ;;  %v9960_v45 = vld [vmem:[#allocation102_spill] sm:$0xff]  ;;  %v9962_v40 = vld [vmem:[#allocation79_spill] sm:$0xff] }
 0x2ab   : > { %3927 = vst [vmem:[%s7458_s14 + $0xf8] sm:$0xff] %v8246_v21  ;;  %v8268_v23 = vmul.f32 %v7611_v46, %v9958_v9  ;;  %v8272_v56 = vmul.f32 %v7595_v13, %v9959_v28  ;;  %2513 = vmatmul.mubr.f32.gmra.mrb[58].mxu1 %v2054_v12  ;;  %2835 = vmatmul.mubr.f32.gmra.mrb[90].mxu0 %v2054_v12  ;;  %v4958_v46 = vpop.eup %4957  ;;  %v8290_v13 = vld [vmem:[%s6341_s11 + $0xe0] sm:$0xff]  ;;  %v9963_v31 = vld [vmem:[#allocation10_spill] sm:$0xff]  ;;  %v9964_v61 = vld [vmem:[#allocation83_spill] sm:$0xff] }
 0x2ac   : > { %3926 = vst [vmem:[%s7458_s14 + $0xf0] sm:$0xff] %v8260_v38  ;;  %v8278_v3 = vmul.f32 %v7651_v36, %v9960_v45  ;;  %v8282_v4 = vmul.f32 %v7638_v34, %v9961_v33  ;;  %2518 = vmatprep.mubr.f32.mxu1 %v2057_v6  ;;  %2840 = vmatprep.mubr.f32.mxu0 %v2057_v6  ;;  %3956 = vst [vmem:[%s7458_s14 + $0x1e0] sm:$0xff] %v1994_v10  ;;  %v9966_v33 = vld [vmem:[#allocation92_spill] sm:$0xff] }
 0x2ad   : > { %3931 = vst [vmem:[%s7458_s14 + $0x118] sm:$0xff] %v8268_v23  ;;  %3930 = vst [vmem:[%s7458_s14 + $0x110] sm:$0xff] %v8272_v56  ;;  %v2056_v36 = vmul.f32 %v8290_v13, %v8117_v59  ;;  %v1995_v34 = vmul.f32 %v4958_v46, %v8063_v19  ;;  %v8301_v6 = vmul.f32 %v7707_v16, %v9962_v40  ;;  %v9965_v19 = vld [vmem:[#allocation71_spill] sm:$0xff]  ;;  %v8320_v16 = vld [vmem:[%s6341_s11 + $0xf8] sm:$0xff] }
 0x2ae   : > { %3935 = vst [vmem:[%s7458_s14 + $0x138] sm:$0xff] %v8278_v3  ;;  %3934 = vst [vmem:[%s7458_s14 + $0x130] sm:$0xff] %v8282_v4  ;;  %v8305_v12 = vmul.f32 %v7671_v22, %v9963_v31  ;;  %v8309_v59 = vmul.f32 %v7761_v29, %v9964_v61  ;;  %v8313_v30 = vmul.f32 %v7732_v53, %v9965_v19  ;;  %v4990_v53 = vld [vmem:[%s6341_s11 + $0x8] sm:$0xff]  ;;  %v9974_v40 = vld [vmem:[#allocation80_spill] sm:$0xff] }
 0x2af   : > { %v8317_v9 = vmul.f32 %v7900_v63, %v7725_v54  ;;  %2519 = vmatmul.mubr.f32.gmra.mrb[60].mxu1 %v2056_v36  ;;  %2841 = vmatmul.mubr.f32.gmra.mrb[92].mxu0 %v2056_v36  ;;  %v2059_v22 = vmul.f32 %v8320_v16, %v1995_v34  ;;  %3957 = vst [vmem:[%s7458_s14 + $0x1e8] sm:$0xff] %v1995_v34  ;;  %3939 = vst [vmem:[%s7458_s14 + $0x158] sm:$0xff] %v8301_v6  ;;  %v8341_v54 = vld [vmem:[%s6341_s11 + $0xf0] sm:$0xff]  ;;  %v9973_v36 = vld [vmem:[#allocation66_spill] sm:$0xff] }
 0x2b0   : > { %v8328_v29 = vmul.f32 %v7807_v48, %v7692_v39  ;;  %v2061_v28 = vmul.f32 %v4990_v53, %v8085_v1  ;;  %3938 = vst [vmem:[%s7458_s14 + $0x150] sm:$0xff] %v8305_v12  ;;  %3943 = vst [vmem:[%s7458_s14 + $0x178] sm:$0xff] %v8309_v59  ;;  %v2058_v39 = vmul.f32 %v8341_v54, %v1994_v10  ;;  %v9977_v61 = vld [vmem:[#allocation64_spill] sm:$0xff] }
 0x2b1   : > { %3942 = vst [vmem:[%s7458_s14 + $0x170] sm:$0xff] %v8313_v30  ;;  %3947 = vst [vmem:[%s7458_s14 + $0x198] sm:$0xff] %v8317_v9  ;;  %2524 = vmatprep.mubr.f32.mxu1 %v2059_v22  ;;  %2846 = vmatprep.mubr.f32.mxu0 %v2059_v22  ;;  %v8348_v48 = vmul.f32 %v8027_v44, %v7794_v55  ;;  %v8352_v63 = vmul.f32 %v7986_v51, %v7766_v5  ;;  %v4992_v5 = vld [vmem:[%s6341_s11] sm:$0xff]  ;;  %v9967_v44 = vld [vmem:[#allocation23_spill] sm:$0xff] }
 0x2b2   : > { %3946 = vst [vmem:[%s7458_s14 + $0x190] sm:$0xff] %v8328_v29  ;;  %v8356_v1 = vmul.f32 %v8177_v26, %v7946_v57  ;;  %v8360_v10 = vmul.f32 %v8087_v14, %v7835_v47  ;;  %v8363_v45 = vmul.f32 %v4958_v46, %v8108_v17  ;;  %v8366_v55 = vmul.f32 %v4956_v20, %v9966_v33  ;;  %v4993_v57 = vld [vmem:[%s6341_s11 + $0x18] sm:$0xff]  ;;  %v9969_v17 = vld [vmem:[#allocation103_spill] sm:$0xff]  ;;  %v9970_v20 = vld [vmem:[#allocation9_spill] sm:$0xff]  ;;  %s4126_s11 = sld [smem:[#allocation2 + $0x5]] }
 0x2b3   : > { %2525 = vmatmul.mubr.f32.gmra.mrb[62].mxu1 %v2058_v39  ;;  %2847 = vmatmul.mubr.f32.gmra.mrb[94].mxu0 %v2058_v39  ;;  %3951 = vst [vmem:[%s7458_s14 + $0x1b8] sm:$0xff] %v8348_v48  ;;  %3950 = vst [vmem:[%s7458_s14 + $0x1b0] sm:$0xff] %v8352_v63  ;;  %v2060_v47 = vmul.f32 %v4992_v5, %v8106_v52  ;;  %v2063_v51 = vmul.f32 %v4993_v57, %v8129_v35  ;;  %v9968_v14 = vld [vmem:[#allocation24_spill] sm:$0xff]  ;;  %v9971_v52 = vld [vmem:[#allocation29_spill] sm:$0xff] }
 0x2b4   : > { %2595 = vmatprep.mubr.f32.mxu1 %v2061_v28  ;;  %2917 = vmatprep.mubr.f32.mxu0 %v2061_v28  ;;  %3955 = vst [vmem:[%s7458_s14 + $0x1d8] sm:$0xff] %v8356_v1  ;;  %3954 = vst [vmem:[%s7458_s14 + $0x1d0] sm:$0xff] %v8360_v10  ;;  %v2062_v26 = vmul.f32 %v9969_v17, %v8139_v25  ;;  %v2065_v46 = vmul.f32 %v9970_v20, %v8153_v8  ;;  %v9972_v35 = vld [vmem:[#allocation30_spill] sm:$0xff]  ;;  %v9976_v8 = vld [vmem:[#allocation35_spill] sm:$0xff] }
 0x2b5   : > { %3959 = vst [vmem:[%s7458_s14 + $0x1f8] sm:$0xff] %v8363_v45  ;;  %3958 = vst [vmem:[%s7458_s14 + $0x1f0] sm:$0xff] %v8366_v55  ;;  %v2064_v34 = vmul.f32 %v9973_v36, %v8171_v42  ;;  %v2067_v31 = vmul.f32 %v9974_v40, %v8175_v27  ;;  %v9975_v25 = vld [vmem:[#allocation34_spill] sm:$0xff]  ;;  %v2066_v19 = vmul.f32 %v9977_v61, %v8183_v49  ;;  %v9978_v22 = vld [vmem:[#allocation12_spill] sm:$0xff]  ;;  %s4128_s14 = sld [smem:[#allocation2 + $0x6]] }
 0x2b6   : > { %v2069_v53 = vmul.f32 %v9978_v22, %v8187_v18  ;;  %v9979_v42 = vld [vmem:[#allocation37_spill] sm:$0xff]  ;;  %v9980_v27 = vld [vmem:[#allocation38_spill] sm:$0xff]  ;;  %v9981_v28 = vld [vmem:[#allocation11_spill] sm:$0xff] }
 0x2b7   : > { %2596 = vmatmul.mubr.f32.vlgmr.msra.gmra.mrb[32].mxu1 %v2060_v47  ;;  %2918 = vmatmul.mubr.f32.vlgmr.msra.gmra.mrb[64].mxu0 %v2060_v47  ;;  %v2068_v39 = vmul.f32 %v9981_v28, %v8214_v7  ;;  %v9982_v33 = vld [vmem:[#allocation14_spill] sm:$0xff]  ;;  %v9983_v49 = vld [vmem:[#allocation41_spill] sm:$0xff] }
 0x2b8   : > { %4604 = vmatpush1.bf16.msra.mxu1 %v9967_v44  ;;  %2601 = vmatprep.mubr.f32.mxu1 %v2063_v51  ;;  %v2071_v5 = vmul.f32 %v9982_v33, %v8220_v15  ;;  %v9984_v18 = vld [vmem:[#allocation42_spill] sm:$0xff]  ;;  %v9985_v47 = vld [vmem:[#allocation13_spill] sm:$0xff] }
 0x2b9   : > { %2923 = vmatprep.mubr.f32.mxu0 %v2063_v51  ;;  %4589 = vmatprep.subr.bf16.mxu1 %v9968_v14  ;;  %v2070_v57 = vmul.f32 %v9985_v47, %v8224_v2  ;;  %v9986_v51 = vld [vmem:[#allocation84_spill] sm:$0xff]  ;;  %v9987_v7 = vld [vmem:[#allocation45_spill] sm:$0xff]  ;;  %v9988_v15 = vld [vmem:[#allocation46_spill] sm:$0xff]  ;;  %v2087_v47 = vmul.f32 %v8195_v32, %v8348_v48  ;;  %v2091_v32 = vmul.f32 %v8320_v16, %v8363_v45 }
 0x2ba   : > { %v2073_v44 = vmul.f32 %v9986_v51, %v8230_v11  ;;  %v9989_v14 = vld [vmem:[#allocation70_spill] sm:$0xff]  ;;  %v9991_v2 = vld [vmem:[#allocation47_spill] sm:$0xff]  ;;  %v9992_v11 = vld [vmem:[#allocation48_spill] sm:$0xff]  ;;  %v2089_v51 = vmul.f32 %v8237_v60, %v8356_v1  ;;  %v2090_v60 = vmul.f32 %v8341_v54, %v8366_v55 }
 0x2bb   : > { %2602 = vmatmul.mubr.f32.gmra.mrb[34].mxu1 %v2062_v26  ;;  %2924 = vmatmul.mubr.f32.gmra.mrb[66].mxu0 %v2062_v26  ;;  %v2072_v17 = vmul.f32 %v9989_v14, %v8234_v41  ;;  %v9990_v26 = vld [vmem:[#allocation15_spill] sm:$0xff]  ;;  %v10015_v55 = vld [vmem:[#allocation6_spill] sm:$0xff] }
 0x2bc   : > { %4605 = vmatpush1.bf16.msra.mxu1 %v9971_v52  ;;  %2607 = vmatprep.mubr.f32.mxu1 %v2065_v46  ;;  %v2075_v20 = vmul.f32 %v9990_v26, %v8246_v21  ;;  %v9995_v41 = vld [vmem:[#allocation51_spill] sm:$0xff]  ;;  %v9996_v21 = vld [vmem:[#allocation54_spill] sm:$0xff] }
 0x2bd   : > { %2929 = vmatprep.mubr.f32.mxu0 %v2065_v46  ;;  %4590 = vmatprep.subr.bf16.mxu1 %v9972_v35  ;;  %v9993_v46 = vld [vmem:[#allocation86_spill] sm:$0xff]  ;;  %v9994_v35 = vld [vmem:[#allocation68_spill] sm:$0xff] }
 0x2be   : > { %v2074_v52 = vmul.f32 %v9993_v46, %v8260_v38  ;;  %v2077_v36 = vmul.f32 %v9994_v35, %v8268_v23  ;;  %v10000_v38 = vld [vmem:[#allocation58_spill] sm:$0xff]  ;;  %v8501_v46 = vstv %s4128_s14  ;;  %v8505_v35 = vstv %s4132_s25 }
 0x2bf   : > { %2608 = vmatmul.mubr.f32.gmra.mrb[36].mxu1 %v2064_v34  ;;  %2930 = vmatmul.mubr.f32.gmra.mrb[68].mxu0 %v2064_v34  ;;  %v9997_v34 = vld [vmem:[#allocation20_spill] sm:$0xff]  ;;  %v10001_v23 = vld [vmem:[#allocation22_spill] sm:$0xff]  ;;  %10020 = vst [vmem:[#allocation27_spill] sm:$0xff] %v8501_v46  ;;  %10022 = vst [vmem:[#allocation31_spill] sm:$0xff] %v8505_v35 }
 0x2c0   : > { %4606 = vmatpush1.bf16.msra.mxu1 %v9975_v25  ;;  %2613 = vmatprep.mubr.f32.mxu1 %v2067_v31  ;;  %v2076_v40 = vmul.f32 %v9997_v34, %v8272_v56  ;;  %v2078_v61 = vmul.f32 %v10001_v23, %v8282_v4  ;;  %v10004_v56 = vld [vmem:[#allocation96_spill] sm:$0xff]  ;;  %v10008_v4 = vld [vmem:[#allocation18_spill] sm:$0xff]  ;;  %v8512_v34 = vstv %s4127_s28 }
 0x2c1   : > { %2935 = vmatprep.mubr.f32.mxu0 %v2067_v31  ;;  %4591 = vmatprep.subr.bf16.mxu1 %v9976_v8  ;;  %v9998_v31 = vld [vmem:[#allocation17_spill] sm:$0xff]  ;;  %v9999_v8 = vld [vmem:[#allocation55_spill] sm:$0xff] }
 0x2c2   : > { %v2079_v25 = vmul.f32 %v9998_v31, %v8278_v3  ;;  %v10005_v3 = vld [vmem:[#allocation25_spill] sm:$0xff]  ;;  %v8516_v31 = vstv %s4131_s29 }
 0x2c3   : > { %2614 = vmatmul.mubr.f32.gmra.mrb[38].mxu1 %v2066_v19  ;;  %2936 = vmatmul.mubr.f32.gmra.mrb[70].mxu0 %v2066_v19  ;;  %v10002_v19 = vld [vmem:[#allocation90_spill] sm:$0xff] }
 0x2c4   : > { %4607 = vmatpush1.bf16.msra.mxu1 %v9979_v42  ;;  %2619 = vmatprep.mubr.f32.mxu1 %v2069_v53  ;;  %v2081_v22 = vmul.f32 %v10002_v19, %v8301_v6  ;;  %v2080_v42 = vmul.f32 %v10005_v3, %v8305_v12  ;;  %v10009_v6 = vld [vmem:[#allocation93_spill] sm:$0xff] }
 0x2c5   : > { %2941 = vmatprep.mubr.f32.mxu0 %v2069_v53  ;;  %4592 = vmatprep.subr.bf16.mxu1 %v9980_v27  ;;  %v10003_v53 = vld [vmem:[#allocation59_spill] sm:$0xff]  ;;  %v2082_v33 = vmul.f32 %v10009_v6, %v8313_v30  ;;  %v10012_v12 = vld [vmem:[#allocation89_spill] sm:$0xff]  ;;  %v10014_v30 = vld [vmem:[#allocation26_spill] sm:$0xff] }
 0x2c6   : > { %v10006_v27 = vld [vmem:[#allocation75_spill] sm:$0xff] }
 0x2c7   : > { %2620 = vmatmul.mubr.f32.gmra.mrb[40].mxu1 %v2068_v39  ;;  %2942 = vmatmul.mubr.f32.gmra.mrb[72].mxu0 %v2068_v39  ;;  %v2083_v28 = vmul.f32 %v10006_v27, %v8309_v59  ;;  %v10007_v39 = vld [vmem:[#allocation16_spill] sm:$0xff]  ;;  %v2084_v59 = vmul.f32 %v8190_v37, %v8328_v29  ;;  %v2088_v37 = vmul.f32 %v8290_v13, %v8360_v10  ;;  %v2348_v10 = vld [vmem:[%s9553_s7] sm:$0xf] }
 0x2c8   : > { %4608 = vmatpush1.bf16.msra.mxu1 %v9983_v49  ;;  %2625 = vmatprep.mubr.f32.mxu1 %v2071_v5 }
 0x2c9   : > { %2947 = vmatprep.mubr.f32.mxu0 %v2071_v5  ;;  %4593 = vmatprep.subr.bf16.mxu1 %v9984_v18  ;;  %v10010_v5 = vld [vmem:[#allocation73_spill] sm:$0xff]  ;;  %v10011_v18 = vld [vmem:[#allocation19_spill] sm:$0xff] }
 0x2ca   : > { %v2085_v49 = vmul.f32 %v10010_v5, %v8317_v9  ;;  %v2086_v9 = vmul.f32 %v8249_v43, %v8352_v63 }
 0x2cb   : > { %2626 = vmatmul.mubr.f32.gmra.mrb[42].mxu1 %v2070_v57  ;;  %2948 = vmatmul.mubr.f32.gmra.mrb[74].mxu0 %v2070_v57  ;;  %v10013_v57 = vld [vmem:[#allocation21_spill] sm:$0xff] }
 0x2cc   : > { %4609 = vmatpush1.bf16.msra.mxu1 %v9987_v7  ;;  %2631 = vmatprep.mubr.f32.mxu1 %v2073_v44 }
 0x2cd   : > { %2953 = vmatprep.mubr.f32.mxu0 %v2073_v44  ;;  %4594 = vmatprep.subr.bf16.mxu1 %v9988_v15  ;;  %v10016_v44 = vsub.s32 2, %v10015_v55  ;;  %v10017_v15 = vsub.s32 3, %v10015_v55 }
 0x2cf   : > { %2632 = vmatmul.mubr.f32.gmra.mrb[44].mxu1 %v2072_v17  ;;  %2954 = vmatmul.mubr.f32.gmra.mrb[76].mxu0 %v2072_v17  ;;  %v8486_v7 = vrot.slane %v2348_v10, %v10016_v44  ;;  %v8490_v14 = vrot.slane %v2348_v10, %v10017_v15 }
 0x2d0   : > { %4610 = vmatpush1.bf16.msra.mxu1 %v9991_v2  ;;  %2637 = vmatprep.mubr.f32.mxu1 %v2075_v20 }
 0x2d1   : > { %2959 = vmatprep.mubr.f32.mxu0 %v2075_v20  ;;  %4595 = vmatprep.subr.bf16.mxu1 %v9992_v11  ;;  %v10018_v20 = vld [vmem:[#allocation5_spill] sm:$0xff]  ;;  %v8499_v11 = vstv %s4126_s11 }
 0x2d2   : > { %v8497_v2 = vrot.slane %v2348_v10, %v10018_v20  ;;  %10019 = vst [vmem:[#allocation28_spill] sm:$0xff] %v8499_v11 }
 0x2d3   : > { %2638 = vmatmul.mubr.f32.gmra.mrb[46].mxu1 %v2074_v52  ;;  %2960 = vmatmul.mubr.f32.gmra.mrb[78].mxu0 %v2074_v52  ;;  %v8503_v52 = vstv %s4130_s26 }
 0x2d4   : > { %4611 = vmatpush1.bf16.msra.mxu1 %v9995_v41  ;;  %2643 = vmatprep.mubr.f32.mxu1 %v2077_v36  ;;  %10021 = vst [vmem:[#allocation32_spill] sm:$0xff] %v8503_v52  ;;  %v10023_v41 = vld [vmem:[#allocation8_spill] sm:$0xff] }
 0x2d5   : > { %4596 = vmatprep.subr.bf16.mxu1 %v9996_v21  ;;  %v8510_v21 = vrot.slane %v2348_v10, %v10023_v41 }
 0x2d7   : > { %2644 = vmatmul.mubr.f32.gmra.mrb[48].mxu1 %v2076_v40 }
 0x2d8   : > { %4612 = vmatpush1.bf16.msra.mxu1 %v9999_v8  ;;  %2649 = vmatprep.mubr.f32.mxu1 %v2079_v25 }
 0x2d9   : > { %4597 = vmatprep.subr.bf16.mxu1 %v10000_v38 }
 0x2db   : > { %2650 = vmatmul.mubr.f32.gmra.mrb[50].mxu1 %v2078_v61 }
 0x2dc   : > { %4613 = vmatpush1.bf16.msra.mxu1 %v10003_v53  ;;  %2655 = vmatprep.mubr.f32.mxu1 %v2081_v22 }
 0x2dd   : > { %4598 = vmatprep.subr.bf16.mxu1 %v10004_v56 }
 0x2df   : > { %2656 = vmatmul.mubr.f32.gmra.mrb[52].mxu1 %v2080_v42 }
 0x2e0   : > { %4614 = vmatpush1.bf16.msra.mxu1 %v10007_v39  ;;  %2661 = vmatprep.mubr.f32.mxu1 %v2083_v28 }
 0x2e1   : > { %4599 = vmatprep.subr.bf16.mxu1 %v10008_v4 }
 0x2e3   : > { %2662 = vmatmul.mubr.f32.gmra.mrb[54].mxu1 %v2082_v33 }
 0x2e4   : > { %4615 = vmatpush1.bf16.msra.mxu1 %v10011_v18  ;;  %2667 = vmatprep.mubr.f32.mxu1 %v2085_v49 }
 0x2e5   : > { %4600 = vmatprep.subr.bf16.mxu1 %v10012_v12 }
 0x2e7   : > { %2668 = vmatmul.mubr.f32.gmra.mrb[56].mxu1 %v2084_v59 }
 0x2e8   : > { %4616 = vmatpush1.bf16.msra.mxu1 %v10013_v57  ;;  %2673 = vmatprep.mubr.f32.mxu1 %v2087_v47 }
 0x2e9   : > { %4601 = vmatprep.subr.bf16.mxu1 %v10014_v30 }
 0x2eb   : > { %2674 = vmatmul.mubr.f32.gmra.mrb[58].mxu1 %v2086_v9 }
 0x2ec   : > { %4617 = vmatpush1.bf16.msra.mxu1 %v8068_v50  ;;  %2679 = vmatprep.mubr.f32.mxu1 %v2089_v51 }
 0x2ed   : > { %4602 = vmatprep.subr.bf16.mxu1 %v8093_v62 }
 0x2ef   : > { %2680 = vmatmul.mubr.f32.gmra.mrb[60].mxu1 %v2088_v37 }
 0x2f0   : > { %4618 = vmatpush1.bf16.msra.mxu1 %v8144_v58  ;;  %2685 = vmatprep.mubr.f32.mxu1 %v2091_v32 }
 0x2f1   : > { %4603 = vmatprep.subr.bf16.mxu1 %v8159_v24 }
 0x2f3   : > { %2686 = vmatmul.mubr.f32.gmra.mrb[62].mxu1 %v2090_v60 }
 0x2f4   : > { %4619 = vmatpush1.bf16.msra.mxu1 %v8206_v0  ;;  %2965 = vmatprep.mubr.f32.mxu1 %v2077_v36  ;;  %v8507_v36 = vstv %s4125_s15 }
 0x2f7   : > { %2966 = vmatmul.mubr.f32.vlgmr.msra.gmra.mrb[64].mxu1 %v2076_v40  ;;  %v8514_v40 = vstv %s4129_s30 }
 0x2f8   : > { %2971 = vmatprep.mubr.f32.mxu1 %v2079_v25  ;;  %v8518_v25 = vstv %s4133_s12 }
 0x2fb   : > { %2972 = vmatmul.mubr.f32.gmra.mrb[66].mxu1 %v2078_v61 }
 0x2fc   : > { %2977 = vmatprep.mubr.f32.mxu1 %v2081_v22 }
 0x2ff   : > { %2978 = vmatmul.mubr.f32.gmra.mrb[68].mxu1 %v2080_v42 }
 0x300   : > { %2983 = vmatprep.mubr.f32.mxu1 %v2083_v28 }
 0x303   : > { %2984 = vmatmul.mubr.f32.gmra.mrb[70].mxu1 %v2082_v33 }
 0x304   : > { %2989 = vmatprep.mubr.f32.mxu1 %v2085_v49 }
 0x307   : > { %2990 = vmatmul.mubr.f32.gmra.mrb[72].mxu1 %v2084_v59 }
 0x308   : > { %2995 = vmatprep.mubr.f32.mxu1 %v2087_v47 }
 0x30b   : > { %2996 = vmatmul.mubr.f32.gmra.mrb[74].mxu1 %v2086_v9 }
 0x30c   : > { %3001 = vmatprep.mubr.f32.mxu1 %v2089_v51 }
 0x30f   : > { %3002 = vmatmul.mubr.f32.gmra.mrb[76].mxu1 %v2088_v37 }
 0x310   : > { %3007 = vmatprep.mubr.f32.mxu1 %v2091_v32 }
 0x313   : > { %3008 = vmatmul.mubr.f32.gmra.mrb[78].mxu1 %v2090_v60 }
 0x366   : > { %v2806_v50 = vpop.f32.mrb[80].mxu0 }
 0x367   : > { %v2808_v62 = vpop.f32.mrb[81].mxu0  ;;  %v8521_v8 = vadd.f32 %v2806_v50, %v8486_v7 }
 0x368   : > { %v8524_v38 = vadd.f32 %v2808_v62, %v8490_v14 }
 0x369   : > { %10024 = vst [vmem:[#allocation94_spill] sm:$0xff] %v8521_v8 }
 0x36a   : > { %10025 = vst [vmem:[#allocation85_spill] sm:$0xff] %v8524_v38 }
 0x36c   : > { %v2812_v58 = vpop.f32.mrb[82].mxu0 }
 0x36d   : > { %v2814_v24 = vpop.f32.mrb[83].mxu0  ;;  %v8527_v23 = vadd.f32 %v2812_v58, %v8486_v7 }
 0x36e   : > { %v8530_v61 = vadd.f32 %v2814_v24, %v8490_v14 }
 0x36f   : > { %10026 = vst [vmem:[#allocation81_spill] sm:$0xff] %v8527_v23 }
 0x370   : > { %10027 = vst [vmem:[#allocation36_spill] sm:$0xff] %v8530_v61 }
 0x372   : > { %v2818_v0 = vpop.f32.mrb[84].mxu0 }
 0x373   : > { %v2820_v43 = vpop.f32.mrb[85].mxu0  ;;  %v8533_v53 = vadd.f32 %v2818_v0, %v8486_v7 }
 0x374   : > { %v8536_v56 = vadd.f32 %v2820_v43, %v8490_v14 }
 0x375   : > { %10028 = vst [vmem:[#allocation33_spill] sm:$0xff] %v8533_v53 }
 0x376   : > { %v2824_v13 = vpop.f32.mrb[86].mxu0  ;;  %10029 = vst [vmem:[#allocation40_spill] sm:$0xff] %v8536_v56 }
 0x377   : > { %v2826_v16 = vpop.f32.mrb[87].mxu0  ;;  %v8541_v39 = vadd.f32 %v2824_v13, %v8486_v7 }
 0x378   : > { %v8544_v4 = vadd.f32 %v2826_v16, %v8490_v14 }
 0x379   : > { %10030 = vst [vmem:[#allocation39_spill] sm:$0xff] %v8541_v39 }
 0x37a   : > { %v2830_v29 = vpop.f32.mrb[88].mxu0  ;;  %10031 = vst [vmem:[#allocation88_spill] sm:$0xff] %v8544_v4 }
 0x37b   : > { %v2832_v54 = vpop.f32.mrb[89].mxu0  ;;  %v8549_v18 = vadd.f32 %v2830_v29, %v8486_v7 }
 0x37c   : > { %v8552_v12 = vadd.f32 %v2832_v54, %v8490_v14 }
 0x37d   : > { %10032 = vst [vmem:[#allocation44_spill] sm:$0xff] %v8549_v18 }
 0x37e   : > { %v8473_v48 = vpop.f32.mrb[90].mxu0  ;;  %10033 = vst [vmem:[#allocation43_spill] sm:$0xff] %v8552_v12 }
 0x37f   : > { %v8475_v63 = vpop.f32.mrb[91].mxu0 }
 0x382   : > { %v8477_v1 = vpop.f32.mrb[92].mxu0 }
 0x383   : > { %v8482_v45 = vpop.f32.mrb[93].mxu0 }
 0x386   : > { %v8492_v17 = vpop.f32.mrb[94].mxu0 }
 0x387   : > { %v8494_v26 = vpop.f32.mrb[95].mxu0 }
 0x38a   : > { %v2597_v19 = vpop.f32.mrb[32].mxu1  ;;  %v2919_v22 = vpop.f32.mrb[64].mxu0 }
 0x38b   : > { %v4620_v3 = vadd.f32 %v2597_v19, %v8497_v2  ;;  %v4652_v42 = vadd.f32 %v2919_v22, %v8486_v7  ;;  %v2599_v27 = vpop.f32.mrb[33].mxu1  ;;  %v2921_v28 = vpop.f32.mrb[65].mxu0 }
 0x38c   : > { %v4621_v6 = vadd.f32 %v2599_v27, %v8510_v21  ;;  %v4653_v33 = vadd.f32 %v2921_v28, %v8490_v14 }
 0x38d   : > { %vm3014_vm0 = vcmp.gt.f32.partialorder %v4620_v3, 0.0  ;;  %v3078_v5 = vmul.f32 0.2, %v4620_v3  ;;  %vm3016_vm1 = vcmp.gt.f32.partialorder %v4652_v42, 0.0  ;;  %v3080_v49 = vmul.f32 0.2, %v4652_v42 }
 0x38e   : > { %v3079_v59 = vmul.f32 0.2, %v4621_v6  ;;  %v3081_v47 = vmul.f32 0.2, %v4653_v33  ;;  %vm3015_vm2 = vcmp.gt.f32.partialorder %v4621_v6, 0.0  ;;  %vm3017_vm3 = vcmp.gt.f32.partialorder %v4653_v33, 0.0 }
 0x38f   : > { %v3142_v57 = vsel %vm3014_vm0, %v4620_v3, %v3078_v5  ;;  %v3144_v30 = vsel %vm3016_vm1, %v4652_v42, %v3080_v49  ;;  %v2603_v9 = vpop.f32.mrb[34].mxu1  ;;  %v2925_v51 = vpop.f32.mrb[66].mxu0 }
 0x390   : > { %v3209_v37 = vmul.f32 %v8499_v11, %v3142_v57  ;;  %v3342_v32 = vmul.f32 %v8501_v46, %v3142_v57  ;;  %v3474_v60 = vmul.f32 %v8503_v52, %v3142_v57  ;;  %v3606_v50 = vmul.f32 %v8505_v35, %v3142_v57  ;;  %v2605_v62 = vpop.f32.mrb[35].mxu1  ;;  %v2927_v58 = vpop.f32.mrb[67].mxu0 }
 0x391   : > { %v3243_v24 = vmul.f32 %v8512_v34, %v3144_v30  ;;  %v3376_v0 = vmul.f32 %v8514_v40, %v3144_v30  ;;  %v3508_v43 = vmul.f32 %v8516_v31, %v3144_v30  ;;  %v3640_v13 = vmul.f32 %v8518_v25, %v3144_v30 }
 0x392   : > { %v3143_v16 = vsel %vm3015_vm2, %v4621_v6, %v3079_v59  ;;  %v3145_v29 = vsel %vm3017_vm3, %v4653_v33, %v3081_v47  ;;  %v4622_v54 = vadd.f32 %v2603_v9, %v8497_v2  ;;  %v4654_v10 = vadd.f32 %v2925_v51, %v8486_v7  ;;  %v8564_v55 = vpop.f32.mrb[36].mxu1  ;;  %v8566_v44 = vpop.f32.mrb[68].mxu0 }
 0x393   : > { %v3275_v15 = vadd.f32 %v3243_v24, %v3209_v37  ;;  %v3408_v20 = vadd.f32 %v3376_v0, %v3342_v32  ;;  %v3540_v41 = vadd.f32 %v3508_v43, %v3474_v60  ;;  %v3672_v19 = vadd.f32 %v3640_v13, %v3606_v50  ;;  %v8568_v22 = vpop.f32.mrb[37].mxu1  ;;  %v8570_v3 = vpop.f32.mrb[69].mxu0 }
 0x394   : > { %v3210_v42 = vmul.f32 %v8499_v11, %v3143_v16  ;;  %v3343_v27 = vmul.f32 %v8501_v46, %v3143_v16  ;;  %v3475_v28 = vmul.f32 %v8503_v52, %v3143_v16  ;;  %v3607_v6 = vmul.f32 %v8505_v35, %v3143_v16 }
 0x395   : > { %v3308_v33 = vadd.f32 %v8507_v36, %v3275_v15  ;;  %v3440_v5 = vadd.f32 %v3408_v20, %v8507_v36  ;;  %v3572_v49 = vadd.f32 %v3540_v41, %v8507_v36  ;;  %v3704_v59 = vadd.f32 %v3672_v19, %v8507_v36 }
 0x396   : > { %v3244_v47 = vmul.f32 %v8512_v34, %v3145_v29  ;;  %v3377_v57 = vmul.f32 %v8514_v40, %v3145_v29  ;;  %v3509_v30 = vmul.f32 %v8516_v31, %v3145_v29  ;;  %v3641_v9 = vmul.f32 %v8518_v25, %v3145_v29  ;;  %v8591_v51 = vpop.f32.mrb[38].mxu1  ;;  %v8593_v37 = vpop.f32.mrb[70].mxu0 }
 0x397   : > { %3736 = vst [vmem:[%s8577_s21] sm:$0xff] %v3308_v33  ;;  %3738 = vst [vmem:[%s8577_s21 + $0x10] sm:$0xff] %v3440_v5  ;;  %vm3018_vm4 = vcmp.gt.f32.partialorder %v4622_v54, 0.0  ;;  %v3082_v32 = vmul.f32 0.2, %v4622_v54  ;;  %vm3020_vm5 = vcmp.gt.f32.partialorder %v4654_v10, 0.0  ;;  %v8599_v13 = vpop.f32.mrb[39].mxu1  ;;  %v4623_v20 = vadd.f32 %v2605_v62, %v8510_v21 }
 0x398   : > { %3740 = vst [vmem:[%s8577_s21 + $0x20] sm:$0xff] %v3572_v49  ;;  %3742 = vst [vmem:[%s8577_s21 + $0x30] sm:$0xff] %v3704_v59  ;;  %v3084_v60 = vmul.f32 0.2, %v4654_v10  ;;  %v3276_v50 = vadd.f32 %v3244_v47, %v3210_v42  ;;  %v3409_v24 = vadd.f32 %v3377_v57, %v3343_v27  ;;  %v3541_v0 = vadd.f32 %v3509_v30, %v3475_v28  ;;  %v8601_v16 = vpop.f32.mrb[71].mxu0 }
 0x399   : > { %v3673_v43 = vadd.f32 %v3641_v9, %v3607_v6  ;;  %v3146_v29 = vsel %vm3018_vm4, %v4622_v54, %v3082_v32  ;;  %v4655_v41 = vadd.f32 %v2927_v58, %v8490_v14  ;;  %vm3019_vm6 = vcmp.gt.f32.partialorder %v4623_v20, 0.0 }
 0x39a   : > { %v3148_v15 = vsel %vm3020_vm5, %v4654_v10, %v3084_v60  ;;  %v3309_v19 = vadd.f32 %v8507_v36, %v3276_v50  ;;  %v3441_v42 = vadd.f32 %v3409_v24, %v8507_v36  ;;  %v3573_v27 = vadd.f32 %v3541_v0, %v8507_v36  ;;  %v8609_v6 = vpop.f32.mrb[40].mxu1  ;;  %v8611_v54 = vpop.f32.mrb[72].mxu0 }
 0x39b   : > { %v3705_v28 = vadd.f32 %v3673_v43, %v8507_v36  ;;  %v3211_v10 = vmul.f32 %v8499_v11, %v3146_v29  ;;  %v3344_v62 = vmul.f32 %v8501_v46, %v3146_v29  ;;  %v3476_v33 = vmul.f32 %v8503_v52, %v3146_v29  ;;  %v8617_v5 = vpop.f32.mrb[41].mxu1  ;;  %v8619_v49 = vpop.f32.mrb[73].mxu0 }
 0x39c   : > { %v3608_v58 = vmul.f32 %v8505_v35, %v3146_v29  ;;  %3737 = vst [vmem:[%s8577_s21 + $0x8] sm:$0xff] %v3309_v19  ;;  %3739 = vst [vmem:[%s8577_s21 + $0x18] sm:$0xff] %v3441_v42  ;;  %v3245_v59 = vmul.f32 %v8512_v34, %v3148_v15  ;;  %v3378_v47 = vmul.f32 %v8514_v40, %v3148_v15  ;;  %v3083_v9 = vmul.f32 0.2, %v4623_v20 }
 0x39d   : > { %3741 = vst [vmem:[%s8577_s21 + $0x28] sm:$0xff] %v3573_v27  ;;  %3743 = vst [vmem:[%s8577_s21 + $0x38] sm:$0xff] %v3705_v28  ;;  %v3510_v57 = vmul.f32 %v8516_v31, %v3148_v15  ;;  %v3642_v30 = vmul.f32 %v8518_v25, %v3148_v15  ;;  %vm3021_vm7 = vcmp.gt.f32.partialorder %v4655_v41, 0.0  ;;  %v3085_v32 = vmul.f32 0.2, %v4655_v41 }
 0x39e   : > { %v3277_v60 = vadd.f32 %v3245_v59, %v3211_v10  ;;  %v3410_v50 = vadd.f32 %v3378_v47, %v3344_v62  ;;  %v8629_v43 = vpop.f32.mrb[42].mxu1  ;;  %v8631_v29 = vpop.f32.mrb[74].mxu0  ;;  %v3147_v19 = vsel %vm3019_vm6, %v4623_v20, %v3083_v9  ;;  %v4624_v15 = vadd.f32 %v8564_v55, %v8497_v2 }
 0x39f   : > { %v3542_v24 = vadd.f32 %v3510_v57, %v3476_v33  ;;  %v3674_v0 = vadd.f32 %v3642_v30, %v3608_v58  ;;  %v3149_v42 = vsel %vm3021_vm7, %v4655_v41, %v3085_v32  ;;  %v4656_v27 = vadd.f32 %v8566_v44, %v8486_v7  ;;  %v8637_v28 = vpop.f32.mrb[43].mxu1  ;;  %v8639_v10 = vpop.f32.mrb[75].mxu0 }
 0x3a0   : > { %v3310_v62 = vadd.f32 %v8507_v36, %v3277_v60  ;;  %v3442_v33 = vadd.f32 %v3410_v50, %v8507_v36  ;;  %v3212_v41 = vmul.f32 %v8499_v11, %v3147_v19  ;;  %v3345_v59 = vmul.f32 %v8501_v46, %v3147_v19 }
 0x3a1   : > { %v3574_v58 = vadd.f32 %v3542_v24, %v8507_v36  ;;  %v3706_v20 = vadd.f32 %v3674_v0, %v8507_v36  ;;  %v3477_v55 = vmul.f32 %v8503_v52, %v3147_v19  ;;  %v3609_v44 = vmul.f32 %v8505_v35, %v3147_v19 }
 0x3a2   : > { %3744 = vst [vmem:[%s8577_s21 + $0x40] sm:$0xff] %v3310_v62  ;;  %3746 = vst [vmem:[%s8577_s21 + $0x50] sm:$0xff] %v3442_v33  ;;  %v3246_v47 = vmul.f32 %v8512_v34, %v3149_v42  ;;  %v3379_v57 = vmul.f32 %v8514_v40, %v3149_v42  ;;  %v3511_v30 = vmul.f32 %v8516_v31, %v3149_v42  ;;  %v8657_v32 = vpop.f32.mrb[44].mxu1  ;;  %v8659_v60 = vpop.f32.mrb[76].mxu0  ;;  %vm3022_vm8 = vcmp.gt.f32.partialorder %v4624_v15, 0.0 }
 0x3a3   : > { %3748 = vst [vmem:[%s8577_s21 + $0x60] sm:$0xff] %v3574_v58  ;;  %3750 = vst [vmem:[%s8577_s21 + $0x70] sm:$0xff] %v3706_v20  ;;  %v3643_v9 = vmul.f32 %v8518_v25, %v3149_v42  ;;  %v3086_v50 = vmul.f32 0.2, %v4624_v15  ;;  %vm3024_vm9 = vcmp.gt.f32.partialorder %v4656_v27, 0.0  ;;  %v8661_v58 = vpop.f32.mrb[45].mxu1  ;;  %v4625_v42 = vadd.f32 %v8568_v22, %v8510_v21 }
 0x3a4   : > { %v3088_v24 = vmul.f32 0.2, %v4656_v27  ;;  %v3278_v0 = vadd.f32 %v3246_v47, %v3212_v41  ;;  %v3411_v19 = vadd.f32 %v3379_v57, %v3345_v59  ;;  %v3543_v62 = vadd.f32 %v3511_v30, %v3477_v55  ;;  %v8663_v20 = vpop.f32.mrb[77].mxu0 }
 0x3a5   : > { %v3675_v33 = vadd.f32 %v3643_v9, %v3609_v44  ;;  %v3150_v12 = vsel %vm3022_vm8, %v4624_v15, %v3086_v50  ;;  %v4657_v4 = vadd.f32 %v8570_v3, %v8490_v14  ;;  %vm3023_vm10 = vcmp.gt.f32.partialorder %v4625_v42, 0.0 }
 0x3a6   : > { %v3152_v18 = vsel %vm3024_vm9, %v4656_v27, %v3088_v24  ;;  %v3311_v41 = vadd.f32 %v8507_v36, %v3278_v0  ;;  %v3443_v59 = vadd.f32 %v3411_v19, %v8507_v36  ;;  %v3575_v55 = vadd.f32 %v3543_v62, %v8507_v36  ;;  %v8673_v15 = vpop.f32.mrb[46].mxu1  ;;  %v8675_v27 = vpop.f32.mrb[78].mxu0 }
 0x3a7   : > { %v3707_v44 = vadd.f32 %v3675_v33, %v8507_v36  ;;  %v3213_v47 = vmul.f32 %v8499_v11, %v3150_v12  ;;  %v3346_v22 = vmul.f32 %v8501_v46, %v3150_v12  ;;  %v3478_v57 = vmul.f32 %v8503_v52, %v3150_v12  ;;  %v8681_v30 = vpop.f32.mrb[47].mxu1  ;;  %v8683_v9 = vpop.f32.mrb[79].mxu0 }
 0x3a8   : > { %v3610_v3 = vmul.f32 %v8505_v35, %v3150_v12  ;;  %3745 = vst [vmem:[%s8577_s21 + $0x48] sm:$0xff] %v3311_v41  ;;  %3747 = vst [vmem:[%s8577_s21 + $0x58] sm:$0xff] %v3443_v59  ;;  %v3247_v50 = vmul.f32 %v8512_v34, %v3152_v18  ;;  %v3380_v24 = vmul.f32 %v8514_v40, %v3152_v18  ;;  %v3087_v62 = vmul.f32 0.2, %v4625_v42 }
 0x3a9   : > { %3749 = vst [vmem:[%s8577_s21 + $0x68] sm:$0xff] %v3575_v55  ;;  %3751 = vst [vmem:[%s8577_s21 + $0x78] sm:$0xff] %v3707_v44  ;;  %v3512_v0 = vmul.f32 %v8516_v31, %v3152_v18  ;;  %v3644_v19 = vmul.f32 %v8518_v25, %v3152_v18  ;;  %vm3025_vm11 = vcmp.gt.f32.partialorder %v4657_v4, 0.0  ;;  %v3089_v12 = vmul.f32 0.2, %v4657_v4 }
 0x3aa   : > { %v3279_v33 = vadd.f32 %v3247_v50, %v3213_v47  ;;  %v3412_v39 = vadd.f32 %v3380_v24, %v3346_v22  ;;  %v8693_v59 = vpop.f32.mrb[48].mxu1  ;;  %v3151_v55 = vsel %vm3023_vm10, %v4625_v42, %v3087_v62  ;;  %v4626_v53 = vadd.f32 %v8591_v51, %v8497_v2 }
 0x3ab   : > { %v3544_v56 = vadd.f32 %v3512_v0, %v3478_v57  ;;  %v3676_v41 = vadd.f32 %v3644_v19, %v3610_v3  ;;  %v3153_v44 = vsel %vm3025_vm11, %v4657_v4, %v3089_v12  ;;  %v4658_v18 = vadd.f32 %v8593_v37, %v8486_v7  ;;  %v8699_v61 = vpop.f32.mrb[49].mxu1 }
 0x3ac   : > { %v3312_v47 = vadd.f32 %v8507_v36, %v3279_v33  ;;  %v3444_v22 = vadd.f32 %v3412_v39, %v8507_v36  ;;  %v3214_v42 = vmul.f32 %v8499_v11, %v3151_v55  ;;  %v3347_v4 = vmul.f32 %v8501_v46, %v3151_v55 }
 0x3ad   : > { %v3576_v57 = vadd.f32 %v3544_v56, %v8507_v36  ;;  %v3708_v3 = vadd.f32 %v3676_v41, %v8507_v36  ;;  %v3479_v50 = vmul.f32 %v8503_v52, %v3151_v55  ;;  %v3611_v51 = vmul.f32 %v8505_v35, %v3151_v55 }
 0x3ae   : > { %3752 = vst [vmem:[%s8577_s21 + $0x80] sm:$0xff] %v3312_v47  ;;  %3754 = vst [vmem:[%s8577_s21 + $0x90] sm:$0xff] %v3444_v22  ;;  %v3248_v37 = vmul.f32 %v8512_v34, %v3153_v44  ;;  %v3381_v39 = vmul.f32 %v8514_v40, %v3153_v44  ;;  %v3513_v56 = vmul.f32 %v8516_v31, %v3153_v44  ;;  %v8717_v0 = vpop.f32.mrb[50].mxu1  ;;  %vm3026_vm12 = vcmp.gt.f32.partialorder %v4626_v53, 0.0 }
 0x3af   : > { %3756 = vst [vmem:[%s8577_s21 + $0xa0] sm:$0xff] %v3576_v57  ;;  %3758 = vst [vmem:[%s8577_s21 + $0xb0] sm:$0xff] %v3708_v3  ;;  %v3645_v24 = vmul.f32 %v8518_v25, %v3153_v44  ;;  %v3090_v19 = vmul.f32 0.2, %v4626_v53  ;;  %vm3028_vm13 = vcmp.gt.f32.partialorder %v4658_v18, 0.0  ;;  %v8719_v47 = vpop.f32.mrb[51].mxu1  ;;  %v4627_v44 = vadd.f32 %v8599_v13, %v8510_v21 }
 0x3b0   : > { %v3092_v62 = vmul.f32 0.2, %v4658_v18  ;;  %v3280_v12 = vadd.f32 %v3248_v37, %v3214_v42  ;;  %v3413_v33 = vadd.f32 %v3381_v39, %v3347_v4  ;;  %v3545_v41 = vadd.f32 %v3513_v56, %v3479_v50 }
 0x3b1   : > { %v3677_v55 = vadd.f32 %v3645_v24, %v3611_v51  ;;  %v3154_v22 = vsel %vm3026_vm12, %v4626_v53, %v3090_v19  ;;  %v4659_v3 = vadd.f32 %v8601_v16, %v8490_v14  ;;  %vm3027_vm14 = vcmp.gt.f32.partialorder %v4627_v44, 0.0 }
 0x3b2   : > { %v3156_v57 = vsel %vm3028_vm13, %v4658_v18, %v3092_v62  ;;  %v3313_v23 = vadd.f32 %v8507_v36, %v3280_v12  ;;  %v3445_v42 = vadd.f32 %v3413_v33, %v8507_v36  ;;  %v3577_v4 = vadd.f32 %v3545_v41, %v8507_v36  ;;  %v8729_v51 = vpop.f32.mrb[52].mxu1 }
 0x3b3   : > { %v3709_v50 = vadd.f32 %v3677_v55, %v8507_v36  ;;  %v3215_v53 = vmul.f32 %v8499_v11, %v3154_v22  ;;  %v3348_v18 = vmul.f32 %v8501_v46, %v3154_v22  ;;  %v3480_v37 = vmul.f32 %v8503_v52, %v3154_v22  ;;  %v8735_v39 = vpop.f32.mrb[53].mxu1 }
 0x3b4   : > { %v3612_v13 = vmul.f32 %v8505_v35, %v3154_v22  ;;  %3753 = vst [vmem:[%s8577_s21 + $0x88] sm:$0xff] %v3313_v23  ;;  %3755 = vst [vmem:[%s8577_s21 + $0x98] sm:$0xff] %v3445_v42  ;;  %v3249_v16 = vmul.f32 %v8512_v34, %v3156_v57  ;;  %v3382_v56 = vmul.f32 %v8514_v40, %v3156_v57  ;;  %v3091_v62 = vmul.f32 0.2, %v4627_v44 }
 0x3b5   : > { %3757 = vst [vmem:[%s8577_s21 + $0xa8] sm:$0xff] %v3577_v4  ;;  %3759 = vst [vmem:[%s8577_s21 + $0xb8] sm:$0xff] %v3709_v50  ;;  %v3514_v24 = vmul.f32 %v8516_v31, %v3156_v57  ;;  %v3646_v19 = vmul.f32 %v8518_v25, %v3156_v57  ;;  %vm3029_vm15 = vcmp.gt.f32.partialorder %v4659_v3, 0.0  ;;  %v3093_v12 = vmul.f32 0.2, %v4659_v3 }
 0x3b6   : > { %v3281_v33 = vadd.f32 %v3249_v16, %v3215_v53  ;;  %v3414_v41 = vadd.f32 %v3382_v56, %v3348_v18  ;;  %v8745_v22 = vpop.f32.mrb[54].mxu1  ;;  %v3155_v42 = vsel %vm3027_vm14, %v4627_v44, %v3091_v62  ;;  %v4628_v50 = vadd.f32 %v8609_v6, %v8497_v2 }
 0x3b7   : > { %v3546_v55 = vadd.f32 %v3514_v24, %v3480_v37  ;;  %v3678_v23 = vadd.f32 %v3646_v19, %v3612_v13  ;;  %v3157_v4 = vsel %vm3029_vm15, %v4659_v3, %v3093_v12  ;;  %v4660_v57 = vadd.f32 %v8611_v54, %v8486_v7  ;;  %v8751_v38 = vpop.f32.mrb[55].mxu1 }
 0x3b8   : > { %v3314_v53 = vadd.f32 %v8507_v36, %v3281_v33  ;;  %v3446_v18 = vadd.f32 %v3414_v41, %v8507_v36  ;;  %v3216_v44 = vmul.f32 %v8499_v11, %v3155_v42  ;;  %v3349_v3 = vmul.f32 %v8501_v46, %v3155_v42 }
 0x3b9   : > { %v3578_v37 = vadd.f32 %v3546_v55, %v8507_v36  ;;  %v3710_v13 = vadd.f32 %v3678_v23, %v8507_v36  ;;  %v3481_v16 = vmul.f32 %v8503_v52, %v3155_v42  ;;  %v3613_v6 = vmul.f32 %v8505_v35, %v3155_v42 }
 0x3ba   : > { %3760 = vst [vmem:[%s8577_s21 + $0xc0] sm:$0xff] %v3314_v53  ;;  %3762 = vst [vmem:[%s8577_s21 + $0xd0] sm:$0xff] %v3446_v18  ;;  %v3250_v54 = vmul.f32 %v8512_v34, %v3157_v4  ;;  %v3383_v56 = vmul.f32 %v8514_v40, %v3157_v4  ;;  %v3515_v24 = vmul.f32 %v8516_v31, %v3157_v4  ;;  %v8769_v62 = vpop.f32.mrb[56].mxu1  ;;  %vm3030_vm0 = vcmp.gt.f32.partialorder %v4628_v50, 0.0 }
 0x3bb   : > { %3764 = vst [vmem:[%s8577_s21 + $0xe0] sm:$0xff] %v3578_v37  ;;  %3766 = vst [vmem:[%s8577_s21 + $0xf0] sm:$0xff] %v3710_v13  ;;  %v3647_v19 = vmul.f32 %v8518_v25, %v3157_v4  ;;  %v3094_v12 = vmul.f32 0.2, %v4628_v50  ;;  %vm3032_vm1 = vcmp.gt.f32.partialorder %v4660_v57, 0.0  ;;  %v8771_v53 = vpop.f32.mrb[57].mxu1  ;;  %v4629_v4 = vadd.f32 %v8617_v5, %v8510_v21 }
 0x3bc   : > { %v3096_v33 = vmul.f32 0.2, %v4660_v57  ;;  %v3282_v41 = vadd.f32 %v3250_v54, %v3216_v44  ;;  %v3415_v55 = vadd.f32 %v3383_v56, %v3349_v3  ;;  %v3547_v23 = vadd.f32 %v3515_v24, %v3481_v16 }
 0x3bd   : > { %v3679_v42 = vadd.f32 %v3647_v19, %v3613_v6  ;;  %v3158_v18 = vsel %vm3030_vm0, %v4628_v50, %v3094_v12  ;;  %v4661_v13 = vadd.f32 %v8619_v49, %v8490_v14  ;;  %vm3031_vm2 = vcmp.gt.f32.partialorder %v4629_v4, 0.0 }
 0x3be   : > { %v3160_v37 = vsel %vm3032_vm1, %v4660_v57, %v3096_v33  ;;  %v3315_v8 = vadd.f32 %v8507_v36, %v3282_v41  ;;  %v3447_v44 = vadd.f32 %v3415_v55, %v8507_v36  ;;  %v3579_v3 = vadd.f32 %v3547_v23, %v8507_v36  ;;  %v8781_v6 = vpop.f32.mrb[58].mxu1 }
 0x3bf   : > { %v3711_v16 = vadd.f32 %v3679_v42, %v8507_v36  ;;  %v3217_v50 = vmul.f32 %v8499_v11, %v3158_v18  ;;  %v3350_v57 = vmul.f32 %v8501_v46, %v3158_v18  ;;  %v3482_v54 = vmul.f32 %v8503_v52, %v3158_v18  ;;  %v8787_v56 = vpop.f32.mrb[59].mxu1 }
 0x3c0   : > { %v3614_v5 = vmul.f32 %v8505_v35, %v3158_v18  ;;  %10034 = vst [vmem:[#allocation50_spill] sm:$0xff] %v8787_v56  ;;  %3761 = vst [vmem:[%s8577_s21 + $0xc8] sm:$0xff] %v3315_v8  ;;  %v3251_v49 = vmul.f32 %v8512_v34, %v3160_v37  ;;  %v3384_v24 = vmul.f32 %v8514_v40, %v3160_v37  ;;  %v3095_v33 = vmul.f32 0.2, %v4629_v4 }
 0x3c1   : > { %3763 = vst [vmem:[%s8577_s21 + $0xd8] sm:$0xff] %v3447_v44  ;;  %3765 = vst [vmem:[%s8577_s21 + $0xe8] sm:$0xff] %v3579_v3  ;;  %v3516_v19 = vmul.f32 %v8516_v31, %v3160_v37  ;;  %v3648_v12 = vmul.f32 %v8518_v25, %v3160_v37  ;;  %vm3033_vm3 = vcmp.gt.f32.partialorder %v4661_v13, 0.0  ;;  %v3097_v41 = vmul.f32 0.2, %v4661_v13 }
 0x3c2   : > { %3767 = vst [vmem:[%s8577_s21 + $0xf8] sm:$0xff] %v3711_v16  ;;  %v3283_v55 = vadd.f32 %v3251_v49, %v3217_v50  ;;  %v3416_v23 = vadd.f32 %v3384_v24, %v3350_v57  ;;  %v8797_v18 = vpop.f32.mrb[60].mxu1  ;;  %v3159_v44 = vsel %vm3031_vm2, %v4629_v4, %v3095_v33  ;;  %v4630_v16 = vadd.f32 %v8629_v43, %v8497_v2 }
 0x3c3   : > { %v3548_v42 = vadd.f32 %v3516_v19, %v3482_v54  ;;  %v3680_v8 = vadd.f32 %v3648_v12, %v3614_v5  ;;  %v3161_v3 = vsel %vm3033_vm3, %v4661_v13, %v3097_v41  ;;  %v4662_v37 = vadd.f32 %v8631_v29, %v8486_v7  ;;  %v8803_v56 = vpop.f32.mrb[61].mxu1 }
 0x3c4   : > { %v3316_v50 = vadd.f32 %v8507_v36, %v3283_v55  ;;  %v3448_v57 = vadd.f32 %v3416_v23, %v8507_v36  ;;  %v3218_v4 = vmul.f32 %v8499_v11, %v3159_v44  ;;  %v3351_v13 = vmul.f32 %v8501_v46, %v3159_v44 }
 0x3c5   : > { %v3580_v54 = vadd.f32 %v3548_v42, %v8507_v36  ;;  %v3712_v5 = vadd.f32 %v3680_v8, %v8507_v36  ;;  %v3483_v49 = vmul.f32 %v8503_v52, %v3159_v44  ;;  %v3615_v43 = vmul.f32 %v8505_v35, %v3159_v44 }
 0x3c6   : > { %3768 = vst [vmem:[%s8577_s21 + $0x100] sm:$0xff] %v3316_v50  ;;  %3770 = vst [vmem:[%s8577_s21 + $0x110] sm:$0xff] %v3448_v57  ;;  %v3252_v29 = vmul.f32 %v8512_v34, %v3161_v3  ;;  %v3385_v24 = vmul.f32 %v8514_v40, %v3161_v3  ;;  %v3517_v19 = vmul.f32 %v8516_v31, %v3161_v3  ;;  %v8821_v33 = vpop.f32.mrb[62].mxu1  ;;  %vm3034_vm4 = vcmp.gt.f32.partialorder %v4630_v16, 0.0 }
 0x3c7   : > { %3772 = vst [vmem:[%s8577_s21 + $0x120] sm:$0xff] %v3580_v54  ;;  %3774 = vst [vmem:[%s8577_s21 + $0x130] sm:$0xff] %v3712_v5  ;;  %v3649_v12 = vmul.f32 %v8518_v25, %v3161_v3  ;;  %v3098_v41 = vmul.f32 0.2, %v4630_v16  ;;  %vm3036_vm5 = vcmp.gt.f32.partialorder %v4662_v37, 0.0  ;;  %v8823_v50 = vpop.f32.mrb[63].mxu1  ;;  %v4631_v3 = vadd.f32 %v8637_v28, %v8510_v21 }
 0x3c8   : > { %10035 = vst [vmem:[#allocation49_spill] sm:$0xff] %v8821_v33  ;;  %v3100_v55 = vmul.f32 0.2, %v4662_v37  ;;  %v3284_v23 = vadd.f32 %v3252_v29, %v3218_v4  ;;  %v3417_v42 = vadd.f32 %v3385_v24, %v3351_v13  ;;  %v3549_v8 = vadd.f32 %v3517_v19, %v3483_v49 }
 0x3c9   : > { %v3681_v44 = vadd.f32 %v3649_v12, %v3615_v43  ;;  %v3162_v57 = vsel %vm3034_vm4, %v4630_v16, %v3098_v41  ;;  %v4663_v5 = vadd.f32 %v8639_v10, %v8490_v14  ;;  %vm3035_vm6 = vcmp.gt.f32.partialorder %v4631_v3, 0.0 }
 0x3ca   : > { %v3164_v54 = vsel %vm3036_vm5, %v4662_v37, %v3100_v55  ;;  %v3317_v33 = vadd.f32 %v8507_v36, %v3284_v23  ;;  %v3449_v4 = vadd.f32 %v3417_v42, %v8507_v36  ;;  %v3581_v13 = vadd.f32 %v3549_v8, %v8507_v36  ;;  %v8833_v43 = vpop.f32.mrb[64].mxu1 }
 0x3cb   : > { %v3713_v49 = vadd.f32 %v3681_v44, %v8507_v36  ;;  %v3219_v16 = vmul.f32 %v8499_v11, %v3162_v57  ;;  %v3352_v37 = vmul.f32 %v8501_v46, %v3162_v57  ;;  %v3484_v29 = vmul.f32 %v8503_v52, %v3162_v57  ;;  %v8839_v24 = vpop.f32.mrb[65].mxu1 }
 0x3cc   : > { %v3616_v28 = vmul.f32 %v8505_v35, %v3162_v57  ;;  %10036 = vst [vmem:[#allocation53_spill] sm:$0xff] %v8839_v24  ;;  %3769 = vst [vmem:[%s8577_s21 + $0x108] sm:$0xff] %v3317_v33  ;;  %v3253_v10 = vmul.f32 %v8512_v34, %v3164_v54  ;;  %v3386_v19 = vmul.f32 %v8514_v40, %v3164_v54  ;;  %v3099_v55 = vmul.f32 0.2, %v4631_v3 }
 0x3cd   : > { %3771 = vst [vmem:[%s8577_s21 + $0x118] sm:$0xff] %v3449_v4  ;;  %3773 = vst [vmem:[%s8577_s21 + $0x128] sm:$0xff] %v3581_v13  ;;  %v3518_v12 = vmul.f32 %v8516_v31, %v3164_v54  ;;  %v3650_v41 = vmul.f32 %v8518_v25, %v3164_v54  ;;  %vm3037_vm7 = vcmp.gt.f32.partialorder %v4663_v5, 0.0  ;;  %v3101_v23 = vmul.f32 0.2, %v4663_v5 }
 0x3ce   : > { %3775 = vst [vmem:[%s8577_s21 + $0x138] sm:$0xff] %v3713_v49  ;;  %v3285_v42 = vadd.f32 %v3253_v10, %v3219_v16  ;;  %v3418_v8 = vadd.f32 %v3386_v19, %v3352_v37  ;;  %v8849_v57 = vpop.f32.mrb[66].mxu1  ;;  %v3163_v4 = vsel %vm3035_vm6, %v4631_v3, %v3099_v55  ;;  %v4632_v49 = vadd.f32 %v8657_v32, %v8497_v2 }
 0x3cf   : > { %v3550_v44 = vadd.f32 %v3518_v12, %v3484_v29  ;;  %v3682_v33 = vadd.f32 %v3650_v41, %v3616_v28  ;;  %v3165_v13 = vsel %vm3037_vm7, %v4663_v5, %v3101_v23  ;;  %v4664_v54 = vadd.f32 %v8659_v60, %v8486_v7  ;;  %v8855_v24 = vpop.f32.mrb[67].mxu1 }
 0x3d0   : > { %v3318_v16 = vadd.f32 %v8507_v36, %v3285_v42  ;;  %v3450_v37 = vadd.f32 %v3418_v8, %v8507_v36  ;;  %v3220_v3 = vmul.f32 %v8499_v11, %v3163_v4  ;;  %v3353_v5 = vmul.f32 %v8501_v46, %v3163_v4 }
 0x3d1   : > { %v3582_v29 = vadd.f32 %v3550_v44, %v8507_v36  ;;  %v3714_v28 = vadd.f32 %v3682_v33, %v8507_v36  ;;  %v3485_v10 = vmul.f32 %v8503_v52, %v3163_v4  ;;  %v3617_v32 = vmul.f32 %v8505_v35, %v3163_v4 }
 0x3d2   : > { %3776 = vst [vmem:[%s8577_s21 + $0x140] sm:$0xff] %v3318_v16  ;;  %3778 = vst [vmem:[%s8577_s21 + $0x150] sm:$0xff] %v3450_v37  ;;  %v3254_v60 = vmul.f32 %v8512_v34, %v3165_v13  ;;  %v3387_v19 = vmul.f32 %v8514_v40, %v3165_v13  ;;  %v3519_v12 = vmul.f32 %v8516_v31, %v3165_v13  ;;  %v8873_v55 = vpop.f32.mrb[68].mxu1  ;;  %vm3038_vm8 = vcmp.gt.f32.partialorder %v4632_v49, 0.0 }
 0x3d3   : > { %3780 = vst [vmem:[%s8577_s21 + $0x160] sm:$0xff] %v3582_v29  ;;  %3782 = vst [vmem:[%s8577_s21 + $0x170] sm:$0xff] %v3714_v28  ;;  %v3651_v41 = vmul.f32 %v8518_v25, %v3165_v13  ;;  %v3102_v23 = vmul.f32 0.2, %v4632_v49  ;;  %vm3040_vm9 = vcmp.gt.f32.partialorder %v4664_v54, 0.0  ;;  %v8875_v16 = vpop.f32.mrb[69].mxu1  ;;  %v4633_v13 = vadd.f32 %v8661_v58, %v8510_v21 }
 0x3d4   : > { %10037 = vst [vmem:[#allocation52_spill] sm:$0xff] %v8873_v55  ;;  %v3104_v42 = vmul.f32 0.2, %v4664_v54  ;;  %v3286_v8 = vadd.f32 %v3254_v60, %v3220_v3  ;;  %v3419_v44 = vadd.f32 %v3387_v19, %v3353_v5  ;;  %v3551_v33 = vadd.f32 %v3519_v12, %v3485_v10 }
 0x3d5   : > { %v3683_v4 = vadd.f32 %v3651_v41, %v3617_v32  ;;  %v3166_v37 = vsel %vm3038_vm8, %v4632_v49, %v3102_v23  ;;  %v4665_v28 = vadd.f32 %v8663_v20, %v8490_v14  ;;  %vm3039_vm10 = vcmp.gt.f32.partialorder %v4633_v13, 0.0 }
 0x3d6   : > { %v3168_v29 = vsel %vm3040_vm9, %v4664_v54, %v3104_v42  ;;  %v3319_v55 = vadd.f32 %v8507_v36, %v3286_v8  ;;  %v3451_v3 = vadd.f32 %v3419_v44, %v8507_v36  ;;  %v3583_v5 = vadd.f32 %v3551_v33, %v8507_v36  ;;  %v8885_v32 = vpop.f32.mrb[70].mxu1 }
 0x3d7   : > { %v3715_v10 = vadd.f32 %v3683_v4, %v8507_v36  ;;  %v3221_v49 = vmul.f32 %v8499_v11, %v3166_v37  ;;  %v3354_v54 = vmul.f32 %v8501_v46, %v3166_v37  ;;  %v3486_v60 = vmul.f32 %v8503_v52, %v3166_v37  ;;  %v8891_v19 = vpop.f32.mrb[71].mxu1 }
 0x3d8   : > { %v3618_v58 = vmul.f32 %v8505_v35, %v3166_v37  ;;  %10038 = vst [vmem:[#allocation57_spill] sm:$0xff] %v8891_v19  ;;  %3777 = vst [vmem:[%s8577_s21 + $0x148] sm:$0xff] %v3319_v55  ;;  %v3255_v20 = vmul.f32 %v8512_v34, %v3168_v29  ;;  %v3388_v12 = vmul.f32 %v8514_v40, %v3168_v29  ;;  %v3103_v42 = vmul.f32 0.2, %v4633_v13 }
 0x3d9   : > { %3779 = vst [vmem:[%s8577_s21 + $0x158] sm:$0xff] %v3451_v3  ;;  %3781 = vst [vmem:[%s8577_s21 + $0x168] sm:$0xff] %v3583_v5  ;;  %v3520_v41 = vmul.f32 %v8516_v31, %v3168_v29  ;;  %v3652_v23 = vmul.f32 %v8518_v25, %v3168_v29  ;;  %vm3041_vm11 = vcmp.gt.f32.partialorder %v4665_v28, 0.0  ;;  %v3105_v8 = vmul.f32 0.2, %v4665_v28 }
 0x3da   : > { %3783 = vst [vmem:[%s8577_s21 + $0x178] sm:$0xff] %v3715_v10  ;;  %v3287_v44 = vadd.f32 %v3255_v20, %v3221_v49  ;;  %v3420_v33 = vadd.f32 %v3388_v12, %v3354_v54  ;;  %v8901_v37 = vpop.f32.mrb[72].mxu1  ;;  %v3167_v3 = vsel %vm3039_vm10, %v4633_v13, %v3103_v42  ;;  %v4634_v10 = vadd.f32 %v8673_v15, %v8497_v2 }
 0x3db   : > { %v3552_v4 = vadd.f32 %v3520_v41, %v3486_v60  ;;  %v3684_v55 = vadd.f32 %v3652_v23, %v3618_v58  ;;  %v3169_v5 = vsel %vm3041_vm11, %v4665_v28, %v3105_v8  ;;  %v4666_v29 = vadd.f32 %v8675_v27, %v8486_v7  ;;  %v8907_v19 = vpop.f32.mrb[73].mxu1 }
 0x3dc   : > { %v3320_v49 = vadd.f32 %v8507_v36, %v3287_v44  ;;  %v3452_v54 = vadd.f32 %v3420_v33, %v8507_v36  ;;  %v3222_v13 = vmul.f32 %v8499_v11, %v3167_v3  ;;  %v3355_v28 = vmul.f32 %v8501_v46, %v3167_v3 }
 0x3dd   : > { %v3584_v60 = vadd.f32 %v3552_v4, %v8507_v36  ;;  %v3716_v58 = vadd.f32 %v3684_v55, %v8507_v36  ;;  %v3487_v20 = vmul.f32 %v8503_v52, %v3167_v3  ;;  %v3619_v15 = vmul.f32 %v8505_v35, %v3167_v3 }
 0x3de   : > { %3784 = vst [vmem:[%s8577_s21 + $0x180] sm:$0xff] %v3320_v49  ;;  %3786 = vst [vmem:[%s8577_s21 + $0x190] sm:$0xff] %v3452_v54  ;;  %v3256_v27 = vmul.f32 %v8512_v34, %v3169_v5  ;;  %v3389_v12 = vmul.f32 %v8514_v40, %v3169_v5  ;;  %v3521_v41 = vmul.f32 %v8516_v31, %v3169_v5  ;;  %v8925_v42 = vpop.f32.mrb[74].mxu1  ;;  %vm3042_vm12 = vcmp.gt.f32.partialorder %v4634_v10, 0.0 }
 0x3df   : > { %3788 = vst [vmem:[%s8577_s21 + $0x1a0] sm:$0xff] %v3584_v60  ;;  %3790 = vst [vmem:[%s8577_s21 + $0x1b0] sm:$0xff] %v3716_v58  ;;  %v3653_v23 = vmul.f32 %v8518_v25, %v3169_v5  ;;  %v3106_v8 = vmul.f32 0.2, %v4634_v10  ;;  %vm3044_vm13 = vcmp.gt.f32.partialorder %v4666_v29, 0.0  ;;  %v8927_v49 = vpop.f32.mrb[75].mxu1  ;;  %v4635_v5 = vadd.f32 %v8681_v30, %v8510_v21 }
 0x3e0   : > { %10039 = vst [vmem:[#allocation56_spill] sm:$0xff] %v8925_v42  ;;  %v3108_v44 = vmul.f32 0.2, %v4666_v29  ;;  %v3288_v33 = vadd.f32 %v3256_v27, %v3222_v13  ;;  %v3421_v4 = vadd.f32 %v3389_v12, %v3355_v28  ;;  %v3553_v55 = vadd.f32 %v3521_v41, %v3487_v20  ;;  %10040 = vst [vmem:[#allocation77_spill] sm:$0xff] %v8927_v49 }
 0x3e1   : > { %v3685_v3 = vadd.f32 %v3653_v23, %v3619_v15  ;;  %v3170_v54 = vsel %vm3042_vm12, %v4634_v10, %v3106_v8  ;;  %v4667_v58 = vadd.f32 %v8683_v9, %v8490_v14  ;;  %vm3043_vm14 = vcmp.gt.f32.partialorder %v4635_v5, 0.0 }
 0x3e2   : > { %v3172_v60 = vsel %vm3044_vm13, %v4666_v29, %v3108_v44  ;;  %v3321_v42 = vadd.f32 %v8507_v36, %v3288_v33  ;;  %v3453_v13 = vadd.f32 %v3421_v4, %v8507_v36  ;;  %v3585_v28 = vadd.f32 %v3553_v55, %v8507_v36  ;;  %v8937_v15 = vpop.f32.mrb[76].mxu1 }
 0x3e3   : > { %v3717_v20 = vadd.f32 %v3685_v3, %v8507_v36  ;;  %10041 = vst [vmem:[#allocation76_spill] sm:$0xff] %v8937_v15  ;;  %v3223_v10 = vmul.f32 %v8499_v11, %v3170_v54  ;;  %v3356_v29 = vmul.f32 %v8501_v46, %v3170_v54  ;;  %v3488_v27 = vmul.f32 %v8503_v52, %v3170_v54  ;;  %v8943_v12 = vpop.f32.mrb[77].mxu1 }
 0x3e4   : > { %v3620_v30 = vmul.f32 %v8505_v35, %v3170_v54  ;;  %10042 = vst [vmem:[#allocation61_spill] sm:$0xff] %v8943_v12  ;;  %3785 = vst [vmem:[%s8577_s21 + $0x188] sm:$0xff] %v3321_v42  ;;  %v3257_v9 = vmul.f32 %v8512_v34, %v3172_v60  ;;  %v3390_v41 = vmul.f32 %v8514_v40, %v3172_v60  ;;  %v3107_v44 = vmul.f32 0.2, %v4635_v5 }
 0x3e5   : > { %3787 = vst [vmem:[%s8577_s21 + $0x198] sm:$0xff] %v3453_v13  ;;  %3789 = vst [vmem:[%s8577_s21 + $0x1a8] sm:$0xff] %v3585_v28  ;;  %v3522_v23 = vmul.f32 %v8516_v31, %v3172_v60  ;;  %v3654_v8 = vmul.f32 %v8518_v25, %v3172_v60  ;;  %vm3045_vm15 = vcmp.gt.f32.partialorder %v4667_v58, 0.0  ;;  %v3109_v33 = vmul.f32 0.2, %v4667_v58 }
 0x3e6   : > { %3791 = vst [vmem:[%s8577_s21 + $0x1b8] sm:$0xff] %v3717_v20  ;;  %v3289_v4 = vadd.f32 %v3257_v9, %v3223_v10  ;;  %v3422_v55 = vadd.f32 %v3390_v41, %v3356_v29  ;;  %v8953_v54 = vpop.f32.mrb[78].mxu1  ;;  %v3171_v13 = vsel %vm3043_vm14, %v4635_v5, %v3107_v44  ;;  %v4636_v20 = vadd.f32 %v8693_v59, %v8497_v2 }
 0x3e7   : > { %v3554_v3 = vadd.f32 %v3522_v23, %v3488_v27  ;;  %v3686_v42 = vadd.f32 %v3654_v8, %v3620_v30  ;;  %10043 = vst [vmem:[#allocation60_spill] sm:$0xff] %v8953_v54  ;;  %v3173_v28 = vsel %vm3045_vm15, %v4667_v58, %v3109_v33  ;;  %v4637_v60 = vadd.f32 %v8699_v61, %v8510_v21  ;;  %v8959_v12 = vpop.f32.mrb[79].mxu1 }
 0x3e8   : > { %10044 = vst [vmem:[#allocation63_spill] sm:$0xff] %v8959_v12  ;;  %v3322_v10 = vadd.f32 %v8507_v36, %v3289_v4  ;;  %v3454_v29 = vadd.f32 %v3422_v55, %v8507_v36  ;;  %v3224_v5 = vmul.f32 %v8499_v11, %v3171_v13  ;;  %v3357_v58 = vmul.f32 %v8501_v46, %v3171_v13 }
 0x3e9   : > { %v3586_v27 = vadd.f32 %v3554_v3, %v8507_v36  ;;  %v3718_v30 = vadd.f32 %v3686_v42, %v8507_v36  ;;  %v3489_v9 = vmul.f32 %v8503_v52, %v3171_v13  ;;  %v3621_v59 = vmul.f32 %v8505_v35, %v3171_v13 }
 0x3ea   : > { %3792 = vst [vmem:[%s8577_s21 + $0x1c0] sm:$0xff] %v3322_v10  ;;  %3794 = vst [vmem:[%s8577_s21 + $0x1d0] sm:$0xff] %v3454_v29  ;;  %v3258_v61 = vmul.f32 %v8512_v34, %v3173_v28  ;;  %v3391_v41 = vmul.f32 %v8514_v40, %v3173_v28  ;;  %v3523_v23 = vmul.f32 %v8516_v31, %v3173_v28  ;;  %vm3046_vm0 = vcmp.gt.f32.partialorder %v4636_v20, 0.0 }
 0x3eb   : > { %3796 = vst [vmem:[%s8577_s21 + $0x1e0] sm:$0xff] %v3586_v27  ;;  %3798 = vst [vmem:[%s8577_s21 + $0x1f0] sm:$0xff] %v3718_v30  ;;  %v3655_v8 = vmul.f32 %v8518_v25, %v3173_v28  ;;  %v8979_v44 = vadd.f32 %v8473_v48, %v8486_v7  ;;  %v3110_v33 = vmul.f32 0.2, %v4636_v20  ;;  %v3111_v4 = vmul.f32 0.2, %v4637_v60 }
 0x3ec   : > { %v3290_v55 = vadd.f32 %v3258_v61, %v3224_v5  ;;  %v3423_v3 = vadd.f32 %v3391_v41, %v3357_v58  ;;  %v3555_v42 = vadd.f32 %v3523_v23, %v3489_v9  ;;  %vm3047_vm1 = vcmp.gt.f32.partialorder %v4637_v60, 0.0 }
 0x3ed   : > { %v3687_v13 = vadd.f32 %v3655_v8, %v3621_v59  ;;  %v3174_v10 = vsel %vm3046_vm0, %v4636_v20, %v3110_v33  ;;  %v4638_v28 = vadd.f32 %v8717_v0, %v8497_v2  ;;  %v4639_v48 = vadd.f32 %v8719_v47, %v8510_v21 }
 0x3ee   : > { %v3323_v29 = vadd.f32 %v8507_v36, %v3290_v55  ;;  %v3455_v27 = vadd.f32 %v3423_v3, %v8507_v36  ;;  %v3587_v30 = vadd.f32 %v3555_v42, %v8507_v36  ;;  %v8991_v58 = vadd.f32 %v8475_v63, %v8490_v14 }
 0x3ef   : > { %v3719_v5 = vadd.f32 %v3687_v13, %v8507_v36  ;;  %v8995_v20 = vadd.f32 %v8477_v1, %v8486_v7  ;;  %v8999_v0 = vadd.f32 %v8482_v45, %v8490_v14  ;;  %v9003_v47 = vadd.f32 %v8492_v17, %v8486_v7 }
 0x3f0   : > { %10045 = vst [vmem:[#allocation62_spill] sm:$0xff] %v8991_v58  ;;  %v9007_v9 = vadd.f32 %v8494_v26, %v8490_v14  ;;  %3793 = vst [vmem:[%s8577_s21 + $0x1c8] sm:$0xff] %v3323_v29  ;;  %v9014_v63 = vmul.f32 %v8499_v11, %v3174_v10  ;;  %v9017_v1 = vmul.f32 %v8501_v46, %v3174_v10  ;;  %vm3050_vm2 = vcmp.gt.f32.partialorder %v4638_v28, 0.0 }
 0x3f1   : > { %10046 = vst [vmem:[#allocation67_spill] sm:$0xff] %v8995_v20  ;;  %10047 = vst [vmem:[#allocation65_spill] sm:$0xff] %v8999_v0  ;;  %v3175_v45 = vsel %vm3047_vm1, %v4637_v60, %v3111_v4  ;;  %v3114_v59 = vmul.f32 0.2, %v4638_v28  ;;  %vm3051_vm3 = vcmp.gt.f32.partialorder %v4639_v48, 0.0  ;;  %v9021_v17 = vmul.f32 %v8503_v52, %v3174_v10  ;;  %v10053_v20 = vld [vmem:[#allocation50_spill] sm:$0xff] }
 0x3f2   : > { %10048 = vst [vmem:[#allocation72_spill] sm:$0xff] %v9003_v47  ;;  %10049 = vst [vmem:[#allocation69_spill] sm:$0xff] %v9007_v9  ;;  %v3115_v7 = vmul.f32 0.2, %v4639_v48  ;;  %v9024_v14 = vmul.f32 %v8505_v35, %v3174_v10  ;;  %v4640_v26 = vadd.f32 %v8729_v51, %v8497_v2  ;;  %v4641_v61 = vadd.f32 %v8735_v39, %v8510_v21 }
 0x3f3   : > { %3795 = vst [vmem:[%s8577_s21 + $0x1d8] sm:$0xff] %v3455_v27  ;;  %3797 = vst [vmem:[%s8577_s21 + $0x1e8] sm:$0xff] %v3587_v30  ;;  %v9031_v41 = vmul.f32 %v8499_v11, %v3175_v45  ;;  %v3178_v60 = vsel %vm3050_vm2, %v4638_v28, %v3114_v59  ;;  %v4642_v23 = vadd.f32 %v8745_v22, %v8497_v2 }
 0x3f4   : > { %3799 = vst [vmem:[%s8577_s21 + $0x1f8] sm:$0xff] %v3719_v5  ;;  %v4643_v8 = vadd.f32 %v8751_v38, %v8510_v21  ;;  %v9038_v33 = vmul.f32 %v8501_v46, %v3175_v45  ;;  %v9041_v4 = vmul.f32 %v8503_v52, %v3175_v45  ;;  %v9044_v51 = vmul.f32 %v8505_v35, %v3175_v45 }
 0x3f5   : > { %v3179_v39 = vsel %vm3051_vm3, %v4639_v48, %v3115_v7  ;;  %v9047_v55 = vmul.f32 %v8499_v11, %v3178_v60  ;;  %v9050_v3 = vmul.f32 %v8501_v46, %v3178_v60  ;;  %v4644_v22 = vadd.f32 %v8769_v62, %v8497_v2 }
 0x3f6   : > { %v4645_v38 = vadd.f32 %v8771_v53, %v8510_v21  ;;  %vm3054_vm4 = vcmp.gt.f32.partialorder %v4640_v26, 0.0  ;;  %v3118_v42 = vmul.f32 0.2, %v4640_v26  ;;  %vm3055_vm5 = vcmp.gt.f32.partialorder %v4641_v61, 0.0 }
 0x3f7   : > { %v3119_v13 = vmul.f32 0.2, %v4641_v61  ;;  %v9057_v10 = vmul.f32 %v8503_v52, %v3178_v60  ;;  %v9060_v28 = vmul.f32 %v8505_v35, %v3178_v60  ;;  %v3122_v48 = vmul.f32 0.2, %v4642_v23 }
 0x3f8   : > { %v3123_v29 = vmul.f32 0.2, %v4643_v8  ;;  %v9063_v27 = vmul.f32 %v8499_v11, %v3179_v39  ;;  %v3182_v30 = vsel %vm3054_vm4, %v4640_v26, %v3118_v42  ;;  %vm3058_vm6 = vcmp.gt.f32.partialorder %v4642_v23, 0.0 }
 0x3f9   : > { %vm3059_vm7 = vcmp.gt.f32.partialorder %v4643_v8, 0.0  ;;  %v9066_v62 = vmul.f32 %v8501_v46, %v3179_v39  ;;  %v9069_v53 = vmul.f32 %v8503_v52, %v3179_v39  ;;  %v3183_v5 = vsel %vm3055_vm5, %v4641_v61, %v3119_v13 }
 0x3fa   : > { %v3126_v45 = vmul.f32 0.2, %v4644_v22  ;;  %v9072_v59 = vmul.f32 %v8505_v35, %v3179_v39  ;;  %v9075_v7 = vmul.f32 %v8499_v11, %v3182_v30  ;;  %v9078_v60 = vmul.f32 %v8501_v46, %v3182_v30 }
 0x3fb   : > { %vm3062_vm8 = vcmp.gt.f32.partialorder %v4644_v22, 0.0  ;;  %v9081_v26 = vmul.f32 %v8503_v52, %v3182_v30  ;;  %v9084_v42 = vmul.f32 %v8505_v35, %v3182_v30  ;;  %v3186_v12 = vsel %vm3058_vm6, %v4642_v23, %v3122_v48 }
 0x3fc   : > { %v3187_v9 = vsel %vm3059_vm7, %v4643_v8, %v3123_v29  ;;  %v9087_v61 = vmul.f32 %v8499_v11, %v3183_v5  ;;  %v9090_v39 = vmul.f32 %v8501_v46, %v3183_v5  ;;  %v9093_v13 = vmul.f32 %v8503_v52, %v3183_v5 }
 0x3fd   : > { %v9096_v54 = vmul.f32 %v8505_v35, %v3183_v5  ;;  %v9099_v47 = vmul.f32 %v8499_v11, %v3186_v12  ;;  %v9102_v30 = vmul.f32 %v8501_v46, %v3186_v12  ;;  %v3190_v23 = vsel %vm3062_vm8, %v4644_v22, %v3126_v45 }
 0x3fe   : > { %vm3063_vm9 = vcmp.gt.f32.partialorder %v4645_v38, 0.0  ;;  %v9105_v8 = vmul.f32 %v8503_v52, %v3186_v12  ;;  %v9108_v48 = vmul.f32 %v8505_v35, %v3186_v12  ;;  %v9111_v29 = vmul.f32 %v8499_v11, %v3187_v9 }
 0x3ff   : > { %v9114_v5 = vmul.f32 %v8501_v46, %v3187_v9  ;;  %v3127_v0 = vmul.f32 0.2, %v4645_v38  ;;  %v4646_v15 = vadd.f32 %v8781_v6, %v8497_v2  ;;  %v4647_v22 = vadd.f32 %v10053_v20, %v8510_v21 }
 0x400   : > { %10050 = vst [vmem:[#allocation78_spill] sm:$0xff] %v9108_v48  ;;  %10051 = vst [vmem:[#allocation74_spill] sm:$0xff] %v9111_v29  ;;  %v4648_v45 = vadd.f32 %v8797_v18, %v8497_v2  ;;  %v9123_v49 = vmul.f32 %v8503_v52, %v3187_v9  ;;  %v9126_v12 = vmul.f32 %v8505_v35, %v3187_v9 }
 0x401   : > { %10052 = vst [vmem:[#allocation87_spill] sm:$0xff] %v9114_v5  ;;  %v9129_v58 = vmul.f32 %v8499_v11, %v3190_v23  ;;  %v10057_v5 = vld [vmem:[#allocation94_spill] sm:$0xff]  ;;  %v3191_v48 = vsel %vm3063_vm9, %v4645_v38, %v3127_v0  ;;  %vm3066_vm10 = vcmp.gt.f32.partialorder %v4646_v15, 0.0  ;;  %v3130_v6 = vmul.f32 0.2, %v4646_v15 }
 0x402   : > { %10054 = vst [vmem:[#allocation82_spill] sm:$0xff] %v9123_v49  ;;  %10055 = vst [vmem:[#allocation95_spill] sm:$0xff] %v9126_v12  ;;  %v2968_v29 = vadd.f32 %v8833_v43, %v10057_v5  ;;  %v4649_v20 = vadd.f32 %v8803_v56, %v8510_v21  ;;  %v9136_v18 = vmul.f32 %v8501_v46, %v3190_v23  ;;  %vm3067_vm11 = vcmp.gt.f32.partialorder %v4647_v22, 0.0  ;;  %v10063_v56 = vld [vmem:[#allocation49_spill] sm:$0xff] }
 0x403   : > { %10056 = vst [vmem:[#allocation91_spill] sm:$0xff] %v9129_v58  ;;  %v9139_v49 = vmul.f32 %v8503_v52, %v3190_v23  ;;  %v9142_v9 = vmul.f32 %v8505_v35, %v3190_v23  ;;  %v3194_v58 = vsel %vm3066_vm10, %v4646_v15, %v3130_v6  ;;  %v3131_v12 = vmul.f32 0.2, %v4647_v22 }
 0x404   : > { %10058 = vst [vmem:[#allocation98_spill] sm:$0xff] %v9136_v18  ;;  %vm3070_vm12 = vcmp.gt.f32.partialorder %v4648_v45, 0.0  ;;  %v3134_v43 = vmul.f32 0.2, %v4648_v45  ;;  %v9145_v0 = vmul.f32 %v8499_v11, %v3191_v48  ;;  %v9148_v38 = vmul.f32 %v8501_v46, %v3191_v48 }
 0x405   : > { %10059 = vst [vmem:[#allocation97_spill] sm:$0xff] %v9139_v49  ;;  %10060 = vst [vmem:[#allocation7_spill] sm:$0xff] %v9142_v9  ;;  %v4650_v5 = vadd.f32 %v10063_v56, %v8497_v2  ;;  %v4651_v49 = vadd.f32 %v8823_v50, %v8510_v21  ;;  %v9155_v23 = vmul.f32 %v8503_v52, %v3191_v48  ;;  %vm3071_vm13 = vcmp.gt.f32.partialorder %v4649_v20, 0.0 }
 0x406   : > { %10061 = vst [vmem:[#allocation100_spill] sm:$0xff] %v9145_v0  ;;  %10062 = vst [vmem:[#allocation99_spill] sm:$0xff] %v9148_v38  ;;  %v3195_v9 = vsel %vm3067_vm11, %v4647_v22, %v3131_v12  ;;  %v3135_v15 = vmul.f32 0.2, %v4649_v20  ;;  %v9158_v6 = vmul.f32 %v8505_v35, %v3191_v48  ;;  %v9161_v0 = vmul.f32 %v8499_v11, %v3194_v58 }
 0x407   : > { %v9164_v38 = vmul.f32 %v8501_v46, %v3194_v58  ;;  %v3198_v18 = vsel %vm3070_vm12, %v4648_v45, %v3134_v43  ;;  %v9167_v2 = vmul.f32 %v8503_v52, %v3194_v58  ;;  %v9170_v21 = vmul.f32 %v8505_v35, %v3194_v58 }
 0x408   : > { %v9173_v50 = vmul.f32 %v8499_v11, %v3195_v9  ;;  %v9176_v22 = vmul.f32 %v8501_v46, %v3195_v9  ;;  %v9179_v48 = vmul.f32 %v8503_v52, %v3195_v9  ;;  %v3199_v12 = vsel %vm3071_vm13, %v4649_v20, %v3135_v15 }
 0x409   : > { %10064 = vst [vmem:[#allocation102_spill] sm:$0xff] %v9164_v38  ;;  %10065 = vst [vmem:[#allocation101_spill] sm:$0xff] %v9167_v2  ;;  %vm3074_vm14 = vcmp.gt.f32.partialorder %v4650_v5, 0.0  ;;  %v3138_v56 = vmul.f32 0.2, %v4650_v5  ;;  %v9182_v45 = vmul.f32 %v8505_v35, %v3195_v9  ;;  %v9185_v43 = vmul.f32 %v8499_v11, %v3198_v18  ;;  %v10078_v2 = vld [vmem:[#allocation81_spill] sm:$0xff] }
 0x40a   : > { %10066 = vst [vmem:[#allocation79_spill] sm:$0xff] %v9170_v21  ;;  %10067 = vst [vmem:[#allocation10_spill] sm:$0xff] %v9173_v50  ;;  %v9188_v58 = vmul.f32 %v8501_v46, %v3198_v18  ;;  %vm3075_vm15 = vcmp.gt.f32.partialorder %v4651_v49, 0.0  ;;  %v3139_v21 = vmul.f32 0.2, %v4651_v49  ;;  %vm3048_vm0 = vcmp.gt.f32.partialorder %v2968_v29, 0.0 }
 0x40b   : > { %10068 = vst [vmem:[#allocation83_spill] sm:$0xff] %v9176_v22  ;;  %10069 = vst [vmem:[#allocation71_spill] sm:$0xff] %v9179_v48  ;;  %v9190_v50 = vsel %vm3074_vm14, %v4650_v5, %v3138_v56  ;;  %v3112_v22 = vmul.f32 0.2, %v2968_v29  ;;  %v9193_v48 = vmul.f32 %v8503_v52, %v3198_v18  ;;  %v9196_v20 = vmul.f32 %v8505_v35, %v3198_v18  ;;  %v10076_v56 = vld [vmem:[#allocation85_spill] sm:$0xff] }
 0x40c   : > { %10070 = vst [vmem:[#allocation92_spill] sm:$0xff] %v9182_v45  ;;  %10071 = vst [vmem:[#allocation23_spill] sm:$0xff] %v9185_v43  ;;  %v9199_v9 = vmul.f32 %v8499_v11, %v3199_v12  ;;  %v9202_v15 = vmul.f32 %v8501_v46, %v3199_v12  ;;  %v10077_v43 = vld [vmem:[#allocation53_spill] sm:$0xff]  ;;  %v2974_v38 = vadd.f32 %v8849_v57, %v10078_v2 }
 0x40d   : > { %10072 = vst [vmem:[#allocation24_spill] sm:$0xff] %v9188_v58  ;;  %10073 = vst [vmem:[#allocation103_spill] sm:$0xff] %v9190_v50  ;;  %v9205_v58 = vmul.f32 %v8503_v52, %v3199_v12  ;;  %v3176_v5 = vsel %vm3048_vm0, %v2968_v29, %v3112_v22  ;;  %v2970_v45 = vadd.f32 %v10077_v43, %v10076_v56 }
 0x40e   : > { %10074 = vst [vmem:[#allocation9_spill] sm:$0xff] %v9193_v48  ;;  %10075 = vst [vmem:[#allocation29_spill] sm:$0xff] %v9202_v15  ;;  %v9212_v48 = vmul.f32 %v8505_v35, %v3199_v12  ;;  %v9216_v18 = vmul.f32 %v8499_v11, %v9190_v50  ;;  %v9220_v15 = vmul.f32 %v8501_v46, %v9190_v50  ;;  %vm3052_vm2 = vcmp.gt.f32.partialorder %v2974_v38, 0.0  ;;  %v10082_v11 = vld [vmem:[#allocation36_spill] sm:$0xff] }
 0x40f   : > { %v9223_v52 = vsel %vm3075_vm15, %v4651_v49, %v3139_v21  ;;  %v3259_v29 = vmul.f32 %v8512_v34, %v3176_v5  ;;  %v3392_v22 = vmul.f32 %v8514_v40, %v3176_v5  ;;  %v3524_v57 = vmul.f32 %v8516_v31, %v3176_v5  ;;  %v10084_v35 = vld [vmem:[#allocation52_spill] sm:$0xff] }
 0x410   : > { %10079 = vst [vmem:[#allocation30_spill] sm:$0xff] %v9216_v18  ;;  %10080 = vst [vmem:[#allocation66_spill] sm:$0xff] %v9220_v15  ;;  %v3656_v2 = vmul.f32 %v8518_v25, %v3176_v5  ;;  %vm3049_vm1 = vcmp.gt.f32.partialorder %v2970_v45, 0.0  ;;  %v3113_v12 = vmul.f32 0.2, %v2970_v45  ;;  %v2976_v5 = vadd.f32 %v8855_v24, %v10082_v11 }
 0x411   : > { %10081 = vst [vmem:[#allocation80_spill] sm:$0xff] %v9223_v52  ;;  %v3116_v43 = vmul.f32 0.2, %v2974_v38  ;;  %v3291_v56 = vadd.f32 %v3259_v29, %v9014_v63  ;;  %v3424_v15 = vadd.f32 %v3392_v22, %v9017_v1  ;;  %v3556_v49 = vadd.f32 %v3524_v57, %v9021_v17  ;;  %v10083_v52 = vld [vmem:[#allocation33_spill] sm:$0xff] }
 0x412   : > { %v3688_v21 = vadd.f32 %v3656_v2, %v9024_v14  ;;  %v3177_v18 = vsel %vm3049_vm1, %v2970_v45, %v3113_v12  ;;  %v2980_v50 = vadd.f32 %v10084_v35, %v10083_v52  ;;  %vm3053_vm3 = vcmp.gt.f32.partialorder %v2976_v5, 0.0 }
 0x413   : > { %v3180_v46 = vsel %vm3052_vm2, %v2974_v38, %v3116_v43  ;;  %v3324_v63 = vadd.f32 %v8507_v36, %v3291_v56  ;;  %v3456_v29 = vadd.f32 %v3424_v15, %v8507_v36  ;;  %v3588_v1 = vadd.f32 %v3556_v49, %v8507_v36 }
 0x414   : > { %v3720_v17 = vadd.f32 %v3688_v21, %v8507_v36  ;;  %v3260_v22 = vmul.f32 %v8512_v34, %v3177_v18  ;;  %v3393_v14 = vmul.f32 %v8514_v40, %v3177_v18  ;;  %v3525_v38 = vmul.f32 %v8516_v31, %v3177_v18 }
 0x415   : > { %v3657_v45 = vmul.f32 %v8518_v25, %v3177_v18  ;;  %3800 = vst [vmem:[%s8577_s21 + $0x200] sm:$0xff] %v3324_v63  ;;  %3802 = vst [vmem:[%s8577_s21 + $0x210] sm:$0xff] %v3456_v29  ;;  %v3261_v11 = vmul.f32 %v8512_v34, %v3180_v46  ;;  %v3394_v52 = vmul.f32 %v8514_v40, %v3180_v46  ;;  %v3117_v49 = vmul.f32 0.2, %v2976_v5  ;;  %v10085_v63 = vld [vmem:[#allocation40_spill] sm:$0xff] }
 0x416   : > { %3804 = vst [vmem:[%s8577_s21 + $0x220] sm:$0xff] %v3588_v1  ;;  %3806 = vst [vmem:[%s8577_s21 + $0x230] sm:$0xff] %v3720_v17  ;;  %v3526_v35 = vmul.f32 %v8516_v31, %v3180_v46  ;;  %v3658_v24 = vmul.f32 %v8518_v25, %v3180_v46  ;;  %v3292_v15 = vadd.f32 %v3260_v22, %v9031_v41  ;;  %vm3056_vm4 = vcmp.gt.f32.partialorder %v2980_v50, 0.0  ;;  %v10086_v1 = vld [vmem:[#allocation39_spill] sm:$0xff]  ;;  %v10087_v22 = vld [vmem:[#allocation88_spill] sm:$0xff] }
 0x417   : > { %v3425_v57 = vadd.f32 %v3393_v14, %v9038_v33  ;;  %v3557_v18 = vadd.f32 %v3525_v38, %v9041_v4  ;;  %v3689_v2 = vadd.f32 %v3657_v45, %v9044_v51  ;;  %v3293_v12 = vadd.f32 %v3261_v11, %v9047_v55  ;;  %v10088_v14 = vld [vmem:[#allocation57_spill] sm:$0xff]  ;;  %v10089_v45 = vld [vmem:[#allocation44_spill] sm:$0xff] }
 0x418   : > { %v3426_v43 = vadd.f32 %v3394_v52, %v9050_v3  ;;  %v3558_v56 = vadd.f32 %v3526_v35, %v9057_v10  ;;  %v3690_v46 = vadd.f32 %v3658_v24, %v9060_v28  ;;  %v3325_v41 = vadd.f32 %v8507_v36, %v3292_v15  ;;  %v10090_v24 = vld [vmem:[#allocation43_spill] sm:$0xff] }
 0x419   : > { %v3457_v33 = vadd.f32 %v3425_v57, %v8507_v36  ;;  %v3589_v4 = vadd.f32 %v3557_v18, %v8507_v36  ;;  %v3721_v51 = vadd.f32 %v3689_v2, %v8507_v36  ;;  %v3326_v55 = vadd.f32 %v8507_v36, %v3293_v12  ;;  %v10091_v57 = vld [vmem:[#allocation56_spill] sm:$0xff] }
 0x41a   : > { %v3458_v3 = vadd.f32 %v3426_v43, %v8507_v36  ;;  %v3590_v10 = vadd.f32 %v3558_v56, %v8507_v36  ;;  %v3722_v28 = vadd.f32 %v3690_v46, %v8507_v36  ;;  %3801 = vst [vmem:[%s8577_s21 + $0x208] sm:$0xff] %v3325_v41  ;;  %v3120_v21 = vmul.f32 0.2, %v2980_v50 }
 0x41b   : > { %3803 = vst [vmem:[%s8577_s21 + $0x218] sm:$0xff] %v3457_v33  ;;  %3805 = vst [vmem:[%s8577_s21 + $0x228] sm:$0xff] %v3589_v4  ;;  %v2982_v29 = vadd.f32 %v8875_v16, %v10085_v63  ;;  %v2986_v17 = vadd.f32 %v8885_v32, %v10086_v1  ;;  %v9283_v38 = vadd.f32 %v10088_v14, %v10087_v22 }
 0x41c   : > { %3807 = vst [vmem:[%s8577_s21 + $0x238] sm:$0xff] %v3721_v51  ;;  %3808 = vst [vmem:[%s8577_s21 + $0x240] sm:$0xff] %v3326_v55  ;;  %v9287_v11 = vadd.f32 %v8901_v37, %v10089_v45  ;;  %v3181_v52 = vsel %vm3053_vm3, %v2976_v5, %v3117_v49  ;;  %v3184_v35 = vsel %vm3056_vm4, %v2980_v50, %v3120_v21 }
 0x41d   : > { %3810 = vst [vmem:[%s8577_s21 + $0x250] sm:$0xff] %v3458_v3  ;;  %3812 = vst [vmem:[%s8577_s21 + $0x260] sm:$0xff] %v3590_v10  ;;  %v9291_v15 = vadd.f32 %v8907_v19, %v10090_v24  ;;  %v9295_v16 = vadd.f32 %v10091_v57, %v8979_v44  ;;  %v3262_v32 = vmul.f32 %v8512_v34, %v3181_v52  ;;  %vm3057_vm5 = vcmp.gt.f32.partialorder %v2982_v29, 0.0 }
 0x41e   : > { %3814 = vst [vmem:[%s8577_s21 + $0x270] sm:$0xff] %v3722_v28  ;;  %v3395_v18 = vmul.f32 %v8514_v40, %v3181_v52  ;;  %v3527_v2 = vmul.f32 %v8516_v31, %v3181_v52  ;;  %v3659_v12 = vmul.f32 %v8518_v25, %v3181_v52  ;;  %v3263_v37 = vmul.f32 %v8512_v34, %v3184_v35 }
 0x41f   : > { %v3396_v50 = vmul.f32 %v8514_v40, %v3184_v35  ;;  %v3528_v5 = vmul.f32 %v8516_v31, %v3184_v35  ;;  %v3660_v19 = vmul.f32 %v8518_v25, %v3184_v35  ;;  %v3294_v43 = vadd.f32 %v3262_v32, %v9063_v27 }
 0x420   : > { %v3427_v44 = vadd.f32 %v3395_v18, %v9066_v62  ;;  %v3559_v56 = vadd.f32 %v3527_v2, %v9069_v53  ;;  %v3691_v46 = vadd.f32 %v3659_v12, %v9072_v59  ;;  %v3295_v41 = vadd.f32 %v3263_v37, %v9075_v7 }
 0x421   : > { %v3428_v33 = vadd.f32 %v3396_v50, %v9078_v60  ;;  %v3560_v4 = vadd.f32 %v3528_v5, %v9081_v26  ;;  %v3692_v51 = vadd.f32 %v3660_v19, %v9084_v42  ;;  %v3327_v27 = vadd.f32 %v8507_v36, %v3294_v43  ;;  %v10092_v50 = vld [vmem:[#allocation78_spill] sm:$0xff] }
 0x422   : > { %v3459_v62 = vadd.f32 %v3427_v44, %v8507_v36  ;;  %v3591_v53 = vadd.f32 %v3559_v56, %v8507_v36  ;;  %v3723_v59 = vadd.f32 %v3691_v46, %v8507_v36  ;;  %v3328_v7 = vadd.f32 %v8507_v36, %v3295_v41 }
 0x423   : > { %v3460_v60 = vadd.f32 %v3428_v33, %v8507_v36  ;;  %v3592_v26 = vadd.f32 %v3560_v4, %v8507_v36  ;;  %v3724_v42 = vadd.f32 %v3692_v51, %v8507_v36  ;;  %3809 = vst [vmem:[%s8577_s21 + $0x248] sm:$0xff] %v3327_v27  ;;  %v3121_v55 = vmul.f32 0.2, %v2982_v29  ;;  %v10093_v27 = vld [vmem:[#allocation74_spill] sm:$0xff] }
 0x424   : > { %3811 = vst [vmem:[%s8577_s21 + $0x258] sm:$0xff] %v3459_v62  ;;  %3813 = vst [vmem:[%s8577_s21 + $0x268] sm:$0xff] %v3591_v53  ;;  %vm3060_vm6 = vcmp.gt.f32.partialorder %v2986_v17, 0.0  ;;  %v3124_v3 = vmul.f32 0.2, %v2986_v17  ;;  %vm3061_vm7 = vcmp.gt.f32.partialorder %v9283_v38, 0.0 }
 0x425   : > { %3815 = vst [vmem:[%s8577_s21 + $0x278] sm:$0xff] %v3723_v59  ;;  %3816 = vst [vmem:[%s8577_s21 + $0x280] sm:$0xff] %v3328_v7  ;;  %v3125_v10 = vmul.f32 0.2, %v9283_v38  ;;  %vm3064_vm8 = vcmp.gt.f32.partialorder %v9287_v11, 0.0  ;;  %v3185_v49 = vsel %vm3057_vm5, %v2982_v29, %v3121_v55  ;;  %vm3065_vm9 = vcmp.gt.f32.partialorder %v9291_v15, 0.0 }
 0x426   : > { %3818 = vst [vmem:[%s8577_s21 + $0x290] sm:$0xff] %v3460_v60  ;;  %3820 = vst [vmem:[%s8577_s21 + $0x2a0] sm:$0xff] %v3592_v26  ;;  %v3128_v28 = vmul.f32 0.2, %v9287_v11  ;;  %v3188_v21 = vsel %vm3060_vm6, %v2986_v17, %v3124_v3  ;;  %v3129_v63 = vmul.f32 0.2, %v9291_v15  ;;  %v3264_v1 = vmul.f32 %v8512_v34, %v3185_v49 }
 0x427   : > { %3822 = vst [vmem:[%s8577_s21 + $0x2b0] sm:$0xff] %v3724_v42  ;;  %v3397_v22 = vmul.f32 %v8514_v40, %v3185_v49  ;;  %v3529_v14 = vmul.f32 %v8516_v31, %v3185_v49  ;;  %v3661_v45 = vmul.f32 %v8518_v25, %v3185_v49  ;;  %v3265_v52 = vmul.f32 %v8512_v34, %v3188_v21  ;;  %v10094_v53 = vld [vmem:[#allocation87_spill] sm:$0xff]  ;;  %v10095_v7 = vld [vmem:[#allocation82_spill] sm:$0xff]  ;;  %v10099_v49 = vld [vmem:[#allocation97_spill] sm:$0xff] }
 0x428   : > { %v3398_v35 = vmul.f32 %v8514_v40, %v3188_v21  ;;  %v3530_v24 = vmul.f32 %v8516_v31, %v3188_v21  ;;  %v3662_v29 = vmul.f32 %v8518_v25, %v3188_v21  ;;  %v3296_v17 = vadd.f32 %v3264_v1, %v9087_v61  ;;  %v10096_v26 = vld [vmem:[#allocation95_spill] sm:$0xff] }
 0x429   : > { %v3429_v57 = vadd.f32 %v3397_v22, %v9090_v39  ;;  %v3561_v32 = vadd.f32 %v3529_v14, %v9093_v13  ;;  %v3693_v18 = vadd.f32 %v3661_v45, %v9096_v54  ;;  %v3297_v2 = vadd.f32 %v3265_v52, %v9099_v47  ;;  %v10097_v55 = vld [vmem:[#allocation91_spill] sm:$0xff] }
 0x42a   : > { %v3430_v12 = vadd.f32 %v3398_v35, %v9102_v30  ;;  %v3562_v37 = vadd.f32 %v3530_v24, %v9105_v8  ;;  %v3694_v5 = vadd.f32 %v3662_v29, %v10092_v50  ;;  %v3329_v61 = vadd.f32 %v8507_v36, %v3296_v17  ;;  %v10102_v50 = vld [vmem:[#allocation77_spill] sm:$0xff] }
 0x42b   : > { %v3461_v39 = vadd.f32 %v3429_v57, %v8507_v36  ;;  %v3593_v13 = vadd.f32 %v3561_v32, %v8507_v36  ;;  %v3725_v54 = vadd.f32 %v3693_v18, %v8507_v36  ;;  %v3330_v47 = vadd.f32 %v8507_v36, %v3297_v2 }
 0x42c   : > { %v3462_v30 = vadd.f32 %v3430_v12, %v8507_v36  ;;  %v3594_v8 = vadd.f32 %v3562_v37, %v8507_v36  ;;  %v3726_v19 = vadd.f32 %v3694_v5, %v8507_v36  ;;  %3817 = vst [vmem:[%s8577_s21 + $0x288] sm:$0xff] %v3329_v61  ;;  %v3189_v43 = vsel %vm3061_vm7, %v9283_v38, %v3125_v10  ;;  %v10098_v10 = vld [vmem:[#allocation98_spill] sm:$0xff]  ;;  %v10103_v61 = vld [vmem:[#allocation67_spill] sm:$0xff] }
 0x42d   : > { %3819 = vst [vmem:[%s8577_s21 + $0x298] sm:$0xff] %v3461_v39  ;;  %3821 = vst [vmem:[%s8577_s21 + $0x2a8] sm:$0xff] %v3593_v13  ;;  %v3192_v44 = vsel %vm3064_vm8, %v9287_v11, %v3128_v28  ;;  %v3193_v56 = vsel %vm3065_vm9, %v9291_v15, %v3129_v63  ;;  %vm3068_vm10 = vcmp.gt.f32.partialorder %v9295_v16, 0.0  ;;  %v3266_v46 = vmul.f32 %v8512_v34, %v3189_v43  ;;  %v10100_v63 = vld [vmem:[#allocation7_spill] sm:$0xff]  ;;  %v10101_v37 = vld [vmem:[#allocation62_spill] sm:$0xff] }
 0x42e   : > { %3823 = vst [vmem:[%s8577_s21 + $0x2b8] sm:$0xff] %v3725_v54  ;;  %3824 = vst [vmem:[%s8577_s21 + $0x2c0] sm:$0xff] %v3330_v47  ;;  %v3399_v41 = vmul.f32 %v8514_v40, %v3189_v43  ;;  %v3531_v38 = vmul.f32 %v8516_v31, %v3189_v43  ;;  %v3663_v33 = vmul.f32 %v8518_v25, %v3189_v43  ;;  %v3132_v12 = vmul.f32 0.2, %v9295_v16  ;;  %v10104_v39 = vld [vmem:[#allocation76_spill] sm:$0xff]  ;;  %v10105_v54 = vld [vmem:[#allocation65_spill] sm:$0xff] }
 0x42f   : > { %3826 = vst [vmem:[%s8577_s21 + $0x2d0] sm:$0xff] %v3462_v30  ;;  %3828 = vst [vmem:[%s8577_s21 + $0x2e0] sm:$0xff] %v3594_v8  ;;  %v3267_v11 = vmul.f32 %v8512_v34, %v3192_v44  ;;  %v3400_v4 = vmul.f32 %v8514_v40, %v3192_v44  ;;  %v3532_v15 = vmul.f32 %v8516_v31, %v3192_v44  ;;  %v10106_v47 = vld [vmem:[#allocation61_spill] sm:$0xff]  ;;  %v10107_v8 = vld [vmem:[#allocation100_spill] sm:$0xff] }
 0x430   : > { %3830 = vst [vmem:[%s8577_s21 + $0x2f0] sm:$0xff] %v3726_v19  ;;  %v3664_v51 = vmul.f32 %v8518_v25, %v3192_v44  ;;  %v3298_v62 = vadd.f32 %v3266_v46, %v10093_v27  ;;  %v3431_v59 = vadd.f32 %v3399_v41, %v10094_v53  ;;  %v3563_v60 = vadd.f32 %v3531_v38, %v10095_v7  ;;  %v10108_v43 = vld [vmem:[#allocation99_spill] sm:$0xff]  ;;  %v10109_v7 = vld [vmem:[#allocation102_spill] sm:$0xff] }
 0x431   : > { %v3695_v42 = vadd.f32 %v3663_v33, %v10096_v26  ;;  %v3299_v3 = vadd.f32 %v3267_v11, %v10097_v55  ;;  %v3432_v28 = vadd.f32 %v3400_v4, %v10098_v10  ;;  %v3564_v21 = vadd.f32 %v3532_v15, %v10099_v49  ;;  %v10110_v26 = vld [vmem:[#allocation101_spill] sm:$0xff]  ;;  %v10111_v55 = vld [vmem:[#allocation79_spill] sm:$0xff] }
 0x432   : > { %v3696_v1 = vadd.f32 %v3664_v51, %v10100_v63  ;;  %v3331_v22 = vadd.f32 %v8507_v36, %v3298_v62  ;;  %v3463_v14 = vadd.f32 %v3431_v59, %v8507_v36  ;;  %v3595_v45 = vadd.f32 %v3563_v60, %v8507_v36 }
 0x433   : > { %v3727_v52 = vadd.f32 %v3695_v42, %v8507_v36  ;;  %v3332_v35 = vadd.f32 %v8507_v36, %v3299_v3  ;;  %v3464_v24 = vadd.f32 %v3432_v28, %v8507_v36  ;;  %v3596_v29 = vadd.f32 %v3564_v21, %v8507_v36 }
 0x434   : > { %v3728_v17 = vadd.f32 %v3696_v1, %v8507_v36  ;;  %3825 = vst [vmem:[%s8577_s21 + $0x2c8] sm:$0xff] %v3331_v22  ;;  %3827 = vst [vmem:[%s8577_s21 + $0x2d8] sm:$0xff] %v3463_v14  ;;  %v3268_v57 = vmul.f32 %v8512_v34, %v3193_v56  ;;  %v3401_v32 = vmul.f32 %v8514_v40, %v3193_v56  ;;  %v10112_v14 = vld [vmem:[#allocation10_spill] sm:$0xff] }
 0x435   : > { %3829 = vst [vmem:[%s8577_s21 + $0x2e8] sm:$0xff] %v3595_v45  ;;  %3831 = vst [vmem:[%s8577_s21 + $0x2f8] sm:$0xff] %v3727_v52  ;;  %v3533_v18 = vmul.f32 %v8516_v31, %v3193_v56  ;;  %v3665_v2 = vmul.f32 %v8518_v25, %v3193_v56  ;;  %v3000_v5 = vadd.f32 %v10102_v50, %v10101_v37  ;;  %v10113_v52 = vld [vmem:[#allocation83_spill] sm:$0xff]  ;;  %v10118_v50 = vld [vmem:[#allocation69_spill] sm:$0xff] }
 0x436   : > { %3832 = vst [vmem:[%s8577_s21 + $0x300] sm:$0xff] %v3332_v35  ;;  %3834 = vst [vmem:[%s8577_s21 + $0x310] sm:$0xff] %v3464_v24  ;;  %v3004_v13 = vadd.f32 %v10104_v39, %v10103_v61  ;;  %v3006_v30 = vadd.f32 %v10106_v47, %v10105_v54  ;;  %v3300_v19 = vadd.f32 %v3268_v57, %v10107_v8  ;;  %v10114_v24 = vld [vmem:[#allocation71_spill] sm:$0xff] }
 0x437   : > { %3836 = vst [vmem:[%s8577_s21 + $0x320] sm:$0xff] %v3596_v29  ;;  %3838 = vst [vmem:[%s8577_s21 + $0x330] sm:$0xff] %v3728_v17  ;;  %v3433_v44 = vadd.f32 %v3401_v32, %v10108_v43  ;;  %v3565_v56 = vadd.f32 %v3533_v18, %v9155_v23  ;;  %v3697_v46 = vadd.f32 %v3665_v2, %v9158_v6  ;;  %vm3069_vm11 = vcmp.gt.f32.partialorder %v3000_v5, 0.0  ;;  %v10115_v17 = vld [vmem:[#allocation92_spill] sm:$0xff] }
 0x438   : > { %v3196_v41 = vsel %vm3068_vm10, %v9295_v16, %v3132_v12  ;;  %v3133_v38 = vmul.f32 0.2, %v3000_v5  ;;  %vm3072_vm12 = vcmp.gt.f32.partialorder %v3004_v13, 0.0  ;;  %v3333_v33 = vadd.f32 %v8507_v36, %v3300_v19  ;;  %v10116_v2 = vld [vmem:[#allocation72_spill] sm:$0xff] }
 0x439   : > { %v3465_v11 = vadd.f32 %v3433_v44, %v8507_v36  ;;  %v3597_v4 = vadd.f32 %v3565_v56, %v8507_v36  ;;  %v3729_v15 = vadd.f32 %v3697_v46, %v8507_v36  ;;  %v3269_v23 = vmul.f32 %v8512_v34, %v3196_v41  ;;  %v10117_v12 = vld [vmem:[#allocation60_spill] sm:$0xff] }
 0x43a   : > { %v3402_v6 = vmul.f32 %v8514_v40, %v3196_v41  ;;  %v3534_v51 = vmul.f32 %v8516_v31, %v3196_v41  ;;  %v3666_v27 = vmul.f32 %v8518_v25, %v3196_v41  ;;  %3833 = vst [vmem:[%s8577_s21 + $0x308] sm:$0xff] %v3333_v33  ;;  %v3197_v16 = vsel %vm3069_vm11, %v3000_v5, %v3133_v38  ;;  %v10119_v5 = vld [vmem:[#allocation63_spill] sm:$0xff] }
 0x43b   : > { %3835 = vst [vmem:[%s8577_s21 + $0x318] sm:$0xff] %v3465_v11  ;;  %3837 = vst [vmem:[%s8577_s21 + $0x328] sm:$0xff] %v3597_v4  ;;  %v3136_v62 = vmul.f32 0.2, %v3004_v13  ;;  %vm3073_vm13 = vcmp.gt.f32.partialorder %v3006_v30, 0.0  ;;  %v3301_v59 = vadd.f32 %v3269_v23, %v9161_v0  ;;  %v3270_v10 = vmul.f32 %v8512_v34, %v3197_v16  ;;  %v10120_v38 = vld [vmem:[#allocation23_spill] sm:$0xff] }
 0x43c   : > { %3839 = vst [vmem:[%s8577_s21 + $0x338] sm:$0xff] %v3729_v15  ;;  %v3137_v53 = vmul.f32 0.2, %v3006_v30  ;;  %v3434_v60 = vadd.f32 %v3402_v6, %v10109_v7  ;;  %v3566_v42 = vadd.f32 %v3534_v51, %v10110_v26  ;;  %v3698_v3 = vadd.f32 %v3666_v27, %v10111_v55  ;;  %v10121_v11 = vld [vmem:[#allocation24_spill] sm:$0xff]  ;;  %v10122_v15 = vld [vmem:[#allocation9_spill] sm:$0xff] }
 0x43d   : > { %v3403_v28 = vmul.f32 %v8514_v40, %v3197_v16  ;;  %v3535_v49 = vmul.f32 %v8516_v31, %v3197_v16  ;;  %v3667_v21 = vmul.f32 %v8518_v25, %v3197_v16  ;;  %v3334_v0 = vadd.f32 %v8507_v36, %v3301_v59  ;;  %v10123_v27 = vld [vmem:[#allocation29_spill] sm:$0xff] }
 0x43e   : > { %v3466_v63 = vadd.f32 %v3434_v60, %v8507_v36  ;;  %v3598_v1 = vadd.f32 %v3566_v42, %v8507_v36  ;;  %v3730_v22 = vadd.f32 %v3698_v3, %v8507_v36  ;;  %v3302_v45 = vadd.f32 %v3270_v10, %v10112_v14  ;;  %v10124_v3 = vld [vmem:[#allocation103_spill] sm:$0xff]  ;;  %v10125_v10 = vld [vmem:[#allocation32_spill] sm:$0xff] }
 0x43f   : > { %v3435_v35 = vadd.f32 %v3403_v28, %v10113_v52  ;;  %v3567_v29 = vadd.f32 %v3535_v49, %v10114_v24  ;;  %v3699_v57 = vadd.f32 %v3667_v21, %v10115_v17  ;;  %3840 = vst [vmem:[%s8577_s21 + $0x340] sm:$0xff] %v3334_v0  ;;  %v3200_v32 = vsel %vm3072_vm12, %v3004_v13, %v3136_v62  ;;  %v10126_v49 = vld [vmem:[#allocation31_spill] sm:$0xff]  ;;  %v10127_v0 = vld [vmem:[#allocation80_spill] sm:$0xff] }
 0x440   : > { %3842 = vst [vmem:[%s8577_s21 + $0x350] sm:$0xff] %v3466_v63  ;;  %3844 = vst [vmem:[%s8577_s21 + $0x360] sm:$0xff] %v3598_v1  ;;  %v3201_v18 = vsel %vm3073_vm13, %v3006_v30, %v3137_v53  ;;  %v3010_v37 = vadd.f32 %v10117_v12, %v10116_v2  ;;  %v3012_v61 = vadd.f32 %v10119_v5, %v10118_v50  ;;  %v10128_v63 = vld [vmem:[#allocation28_spill] sm:$0xff]  ;;  %v10130_v5 = vld [vmem:[#allocation30_spill] sm:$0xff] }
 0x441   : > { %3846 = vst [vmem:[%s8577_s21 + $0x370] sm:$0xff] %v3730_v22  ;;  %v3335_v39 = vadd.f32 %v8507_v36, %v3302_v45  ;;  %v3467_v54 = vadd.f32 %v3435_v35, %v8507_v36  ;;  %v3599_v47 = vadd.f32 %v3567_v29, %v8507_v36  ;;  %v3731_v8 = vadd.f32 %v3699_v57, %v8507_v36  ;;  %v10129_v22 = vld [vmem:[#allocation27_spill] sm:$0xff] }
 0x442   : > { %v3271_v19 = vmul.f32 %v8512_v34, %v3200_v32  ;;  %v3404_v13 = vmul.f32 %v8514_v40, %v3200_v32  ;;  %v3536_v30 = vmul.f32 %v8516_v31, %v3200_v32  ;;  %v3668_v43 = vmul.f32 %v8518_v25, %v3200_v32 }
 0x443   : > { %3841 = vst [vmem:[%s8577_s21 + $0x348] sm:$0xff] %v3335_v39  ;;  %3843 = vst [vmem:[%s8577_s21 + $0x358] sm:$0xff] %v3467_v54  ;;  %v3272_v44 = vmul.f32 %v8512_v34, %v3201_v18  ;;  %v3405_v56 = vmul.f32 %v8514_v40, %v3201_v18  ;;  %v3537_v46 = vmul.f32 %v8516_v31, %v3201_v18  ;;  %vm3076_vm14 = vcmp.gt.f32.partialorder %v3010_v37, 0.0 }
 0x444   : > { %3845 = vst [vmem:[%s8577_s21 + $0x368] sm:$0xff] %v3599_v47  ;;  %3847 = vst [vmem:[%s8577_s21 + $0x378] sm:$0xff] %v3731_v8  ;;  %v3669_v41 = vmul.f32 %v8518_v25, %v3201_v18  ;;  %v3303_v33 = vadd.f32 %v3271_v19, %v10120_v38  ;;  %v3436_v4 = vadd.f32 %v3404_v13, %v10121_v11  ;;  %vm3077_vm15 = vcmp.gt.f32.partialorder %v3012_v61, 0.0 }
 0x445   : > { %v3568_v23 = vadd.f32 %v3536_v30, %v10122_v15  ;;  %v3700_v6 = vadd.f32 %v3668_v43, %v9196_v20  ;;  %v3304_v51 = vadd.f32 %v3272_v44, %v9199_v9  ;;  %v3437_v16 = vadd.f32 %v3405_v56, %v10123_v27 }
 0x446   : > { %v3569_v62 = vadd.f32 %v3537_v46, %v9205_v58  ;;  %v3701_v53 = vadd.f32 %v3669_v41, %v9212_v48  ;;  %v3336_v59 = vadd.f32 %v8507_v36, %v3303_v33  ;;  %v3468_v7 = vadd.f32 %v3436_v4, %v8507_v36 }
 0x447   : > { %v3600_v60 = vadd.f32 %v3568_v23, %v8507_v36  ;;  %v3732_v26 = vadd.f32 %v3700_v6, %v8507_v36  ;;  %v3337_v42 = vadd.f32 %v8507_v36, %v3304_v51  ;;  %v3469_v20 = vadd.f32 %v3437_v16, %v8507_v36 }
 0x448   : > { %v3601_v9 = vadd.f32 %v3569_v62, %v8507_v36  ;;  %v3733_v58 = vadd.f32 %v3701_v53, %v8507_v36  ;;  %3848 = vst [vmem:[%s8577_s21 + $0x380] sm:$0xff] %v3336_v59  ;;  %3850 = vst [vmem:[%s8577_s21 + $0x390] sm:$0xff] %v3468_v7  ;;  %v3140_v48 = vmul.f32 0.2, %v3010_v37  ;;  %v3141_v55 = vmul.f32 0.2, %v3012_v61 }
 0x449   : > { %3852 = vst [vmem:[%s8577_s21 + $0x3a0] sm:$0xff] %v3600_v60  ;;  %3854 = vst [vmem:[%s8577_s21 + $0x3b0] sm:$0xff] %v3732_v26  ;;  %v3504_v28 = vmul.f32 %v10125_v10, %v10124_v3  ;;  %v3636_v21 = vmul.f32 %v10126_v49, %v10124_v3  ;;  %v3240_v1 = vmul.f32 %v10128_v63, %v10127_v0 }
 0x44a   : > { %v3373_v14 = vmul.f32 %v10129_v22, %v10127_v0  ;;  %3849 = vst [vmem:[%s8577_s21 + $0x388] sm:$0xff] %v3337_v42  ;;  %3851 = vst [vmem:[%s8577_s21 + $0x398] sm:$0xff] %v3469_v20  ;;  %v3505_v45 = vmul.f32 %v10125_v10, %v10127_v0  ;;  %v3637_v52 = vmul.f32 %v10126_v49, %v10127_v0 }
 0x44b   : > { %3853 = vst [vmem:[%s8577_s21 + $0x3a8] sm:$0xff] %v3601_v9  ;;  %3855 = vst [vmem:[%s8577_s21 + $0x3b8] sm:$0xff] %v3733_v58  ;;  %v3204_v35 = vsel %vm3076_vm14, %v3010_v37, %v3140_v48  ;;  %v3205_v24 = vsel %vm3077_vm15, %v3012_v61, %v3141_v55  ;;  %v10131_v37 = vld [vmem:[#allocation66_spill] sm:$0xff] }
 0x44c   : > { %v3273_v29 = vmul.f32 %v8512_v34, %v3204_v35  ;;  %v3406_v17 = vmul.f32 %v8514_v40, %v3204_v35  ;;  %v3538_v57 = vmul.f32 %v8516_v31, %v3204_v35  ;;  %v3670_v32 = vmul.f32 %v8518_v25, %v3204_v35 }
 0x44d   : > { %v3274_v18 = vmul.f32 %v8512_v34, %v3205_v24  ;;  %v3407_v2 = vmul.f32 %v8514_v40, %v3205_v24  ;;  %v3539_v12 = vmul.f32 %v8516_v31, %v3205_v24  ;;  %v3671_v50 = vmul.f32 %v8518_v25, %v3205_v24 }
 0x44e   : > { %v3305_v39 = vadd.f32 %v3273_v29, %v10130_v5  ;;  %v3438_v61 = vadd.f32 %v3406_v17, %v10131_v37  ;;  %v3570_v54 = vadd.f32 %v3538_v57, %v3504_v28  ;;  %v3702_v47 = vadd.f32 %v3670_v32, %v3636_v21 }
 0x44f   : > { %v3306_v8 = vadd.f32 %v3274_v18, %v3240_v1  ;;  %v3439_v19 = vadd.f32 %v3407_v2, %v3373_v14  ;;  %v3571_v34 = vadd.f32 %v3539_v12, %v3505_v45  ;;  %v3703_v40 = vadd.f32 %v3671_v50, %v3637_v52 }
 0x450   : > { %v3338_v31 = vadd.f32 %v8507_v36, %v3305_v39  ;;  %v3470_v25 = vadd.f32 %v3438_v61, %v8507_v36  ;;  %v3602_v13 = vadd.f32 %v3570_v54, %v8507_v36  ;;  %v3734_v30 = vadd.f32 %v3702_v47, %v8507_v36 }
 0x451   : > { %v3339_v43 = vadd.f32 %v8507_v36, %v3306_v8  ;;  %v3471_v44 = vadd.f32 %v3439_v19, %v8507_v36  ;;  %v3603_v56 = vadd.f32 %v3571_v34, %v8507_v36  ;;  %v3735_v46 = vadd.f32 %v3703_v40, %v8507_v36 }
 0x452   : > { %3856 = vst [vmem:[%s8577_s21 + $0x3c0] sm:$0xff] %v3338_v31  ;;  %3858 = vst [vmem:[%s8577_s21 + $0x3d0] sm:$0xff] %v3470_v25 }
 0x453   : > { %3860 = vst [vmem:[%s8577_s21 + $0x3e0] sm:$0xff] %v3602_v13  ;;  %3862 = vst [vmem:[%s8577_s21 + $0x3f0] sm:$0xff] %v3734_v30 }
 0x454   : > { %3857 = vst [vmem:[%s8577_s21 + $0x3c8] sm:$0xff] %v3339_v43  ;;  %3859 = vst [vmem:[%s8577_s21 + $0x3d8] sm:$0xff] %v3471_v44 }
 0x455   : > { %3861 = vst [vmem:[%s8577_s21 + $0x3e8] sm:$0xff] %v3603_v56  ;;  %3863 = vst [vmem:[%s8577_s21 + $0x3f8] sm:$0xff] %v3735_v46 }
 0x456 PF: > { %s22_s13 = sadd.s32 1, %s5019_s13  }
 0x457   : > { %p19_p1 = scmp.ge.s32.totalorder %s22_s13, 4  }
 0x459   :  { %21 = sbr.rel (!%p19_p1) target bundleno = 1 (0x1), region = 111 }
 0x460   :  { %4022 = vsyncpa [#allocation3], 1 }
 0x461   :  { %4024 = vsyncpa [#allocation3 + $0x1], 1 }

</bundles_post_ra>
